<compile_context>
chip_gen: v5e
topology: v5e:2x2
jax: 0.10.0
libtpu: 0.0.40
codegen_flags: <defaults>
</compile_context>

<pallas_src>
import functools
import math

import jax
import jax.numpy as jnp
from jax.experimental import pallas as pl
from jax.experimental.pallas import tpu as pltpu


# ----------------------------- in-kernel helpers ----------------------------

def _add_ln(x, y, g, b, eps=1e-5):
    """LayerNorm(x + y) over the last dim, fp32, biased variance (PyTorch semantics)."""
    z = x + y
    mu = jnp.mean(z, axis=-1, keepdims=True)
    var = jnp.mean(jnp.square(z - mu), axis=-1, keepdims=True)
    return (z - mu) * jax.lax.rsqrt(var + eps) * g + b


def _attn_core(q, k, v, *, B, Lq, Lk, nhead):
    """Scores/softmax/PV for the already-projected q/k/v.

    q: (B*Lq, E), k/v: (B*Lk, E).  The scale 1/sqrt(Dh) is already folded into q.
    Returns (B*Lq, E) — per-head outputs concatenated back to full E.
    """
    E = q.shape[-1]
    Dh = E // nhead
    outs = []
    for b in range(B):                                   # static unroll (B small)
        qb = q[b * Lq:(b + 1) * Lq]                      # sublane-aligned row slices
        kb = k[b * Lk:(b + 1) * Lk]
        vb = v[b * Lk:(b + 1) * Lk]
        heads = []
        for h in range(nhead):                           # static unroll (H small)
            sl = slice(h * Dh, (h + 1) * Dh)             # static lane slice
            s = jax.lax.dot_general(qb[:, sl], kb[:, sl], (((1,), (1,)), ((), ())),
                                    preferred_element_type=jnp.float32)   # (Lq, Lk)
            s = s - jnp.max(s, axis=-1, keepdims=True)
            p = jnp.exp(s)
            p = p * pl.reciprocal(jnp.sum(p, axis=-1, keepdims=True), approx=True)
            heads.append(jnp.dot(p, vb[:, sl], preferred_element_type=jnp.float32))
        outs.append(jnp.concatenate(heads, axis=-1))     # (Lq, E)
    return jnp.concatenate(outs, axis=0)                 # (B*Lq, E)


def _mha(q_in, k_in, v_in, wqkv, bqkv, wo, bo, *, B, Lq, Lk, nhead):
    """Full multi-head attention with dense full-E projections.

    q_in: (B*Lq, E); k_in/v_in: (B*Lk, E).
    wqkv: (3, E, E) [q-scale folded into wqkv[0]/bqkv[0]], bqkv: (3, 1, E),
    wo: (E, E), bo: (1, E).
    """
    q = jnp.dot(q_in, wqkv[0], preferred_element_type=jnp.float32) + bqkv[0]
    k = jnp.dot(k_in, wqkv[1], preferred_element_type=jnp.float32) + bqkv[1]
    v = jnp.dot(v_in, wqkv[2], preferred_element_type=jnp.float32) + bqkv[2]
    attn = _attn_core(q, k, v, B=B, Lq=Lq, Lk=Lk, nhead=nhead)
    return jnp.dot(attn, wo, preferred_element_type=jnp.float32) + bo


# ------------------------------- fused kernel --------------------------------

def _transformer_kernel(src_ref, pos_ref, qe_ref,
                        enc_wqkv_ref, enc_bqkv_ref, enc_wo_ref, enc_bo_ref,
                        enc_w1_ref, enc_b1_ref, enc_w2_ref, enc_b2_ref,
                        enc_lng_ref, enc_lnb_ref,
                        dec_sa_wqkv_ref, dec_sa_bqkv_ref, dec_sa_wo_ref, dec_sa_bo_ref,
                        dec_ca_wqkv_ref, dec_ca_bqkv_ref, dec_ca_wo_ref, dec_ca_bo_ref,
                        dec_w1_ref, dec_b1_ref, dec_w2_ref, dec_b2_ref,
                        dec_lng_ref, dec_lnb_ref,
                        o_ref, *, B, L, NQ, nhead, num_enc, num_dec):
    f32 = jnp.float32
    src = src_ref[...].astype(f32)      # (B*L, E)
    pos = pos_ref[...].astype(f32)      # (B*L, E)
    qe = qe_ref[...].astype(f32)        # (NQ, E)
    E = src.shape[-1]

    # ------------------------------ encoder ------------------------------
    mem = src
    for l in range(num_enc):            # static unroll; weights indexed from VMEM slabs
        q_in = mem + pos                # q = k = src + pos, v = src
        attn = _mha(q_in, q_in, mem,
                    enc_wqkv_ref[l], enc_bqkv_ref[l], enc_wo_ref[l], enc_bo_ref[l],
                    B=B, Lq=L, Lk=L, nhead=nhead)
        x = _add_ln(mem, attn, enc_lng_ref[l, 0], enc_lnb_ref[l, 0])
        h = jnp.maximum(
            jnp.dot(x, enc_w1_ref[l], preferred_element_type=f32) + enc_b1_ref[l], 0.0)
        y = jnp.dot(h, enc_w2_ref[l], preferred_element_type=f32) + enc_b2_ref[l]
        mem = _add_ln(x, y, enc_lng_ref[l, 1], enc_lnb_ref[l, 1])

    # ------------------------------ decoder ------------------------------
    qpos = jnp.concatenate([qe] * B, axis=0)       # query_embed.repeat(bs,1,1) -> (B*NQ, E)
    tgt = jnp.zeros((B * NQ, E), f32)              # tgt = zeros_like(query_embed)
    mem_pos = mem + pos                            # hoisted: reused by every decoder layer
    for l in range(num_dec):
        # self-attention among queries
        q_in = tgt + qpos
        sa = _mha(q_in, q_in, tgt,
                  dec_sa_wqkv_ref[l], dec_sa_bqkv_ref[l], dec_sa_wo_ref[l], dec_sa_bo_ref[l],
                  B=B, Lq=NQ, Lk=NQ, nhead=nhead)
        x = _add_ln(tgt, sa, dec_lng_ref[l, 0], dec_lnb_ref[l, 0])
        # cross-attention to encoder memory
        ca = _mha(x + qpos, mem_pos, mem,
                  dec_ca_wqkv_ref[l], dec_ca_bqkv_ref[l], dec_ca_wo_ref[l], dec_ca_bo_ref[l],
                  B=B, Lq=NQ, Lk=L, nhead=nhead)
        x = _add_ln(x, ca, dec_lng_ref[l, 1], dec_lnb_ref[l, 1])
        # feed-forward
        h = jnp.maximum(
            jnp.dot(x, dec_w1_ref[l], preferred_element_type=f32) + dec_b1_ref[l], 0.0)
        y = jnp.dot(h, dec_w2_ref[l], preferred_element_type=f32) + dec_b2_ref[l]
        tgt = _add_ln(x, y, dec_lng_ref[l, 2], dec_lnb_ref[l, 2])

    o_ref[...] = tgt.astype(o_ref.dtype)           # single (B*NQ, E) store


# --------------------------------- wrapper ------------------------------------

_ARG_NAMES = (
    "enc_wqkv", "enc_bqkv", "enc_wo", "enc_bo",
    "enc_w1", "enc_b1", "enc_w2", "enc_b2", "enc_lng", "enc_lnb",
    "dec_sa_wqkv", "dec_sa_bqkv", "dec_sa_wo", "dec_sa_bo",
    "dec_ca_wqkv", "dec_ca_bqkv", "dec_ca_wo", "dec_ca_bo",
    "dec_w1", "dec_b1", "dec_w2", "dec_b2", "dec_lng", "dec_lnb",
)


def transformer_forward(params, src, query_embed, pos_embed, *, nhead):
    B, L, E = src.shape
    NQ = query_embed.shape[0]
    num_enc = params["enc_wqkv"].shape[0]
    num_dec = params["dec_sa_wqkv"].shape[0]

    args = (src.reshape(B * L, E), pos_embed.reshape(B * L, E), query_embed,
            *[params[n] for n in _ARG_NAMES])

    kernel = functools.partial(_transformer_kernel, B=B, L=L, NQ=NQ, nhead=nhead,
                               num_enc=num_enc, num_dec=num_dec)
    out = pl.pallas_call(
        kernel,
        out_shape=jax.ShapeDtypeStruct((B * NQ, E), src.dtype),
        in_specs=[pl.BlockSpec(memory_space=pltpu.MemorySpace.VMEM) for _ in args],
        out_specs=pl.BlockSpec(memory_space=pltpu.MemorySpace.VMEM),
    )(*args)
    return out.reshape(B, NQ, E)


# --------------------------- parameter creation ------------------------------

def _xavier(key, shape):
    fan_in, fan_out = shape
    limit = math.sqrt(6.0 / (fan_in + fan_out))
    return jax.random.uniform(key, shape, jnp.float32, -limit, limit)


def _mha_params(key, E, H):
    """MHA params as dense lane-wide slabs; 1/sqrt(Dh) folded into the q projection."""
    Dh = E // H
    scale = 1.0 / math.sqrt(Dh)
    ks = jax.random.split(key, 4)
    wq = _xavier(ks[0], (E, E)) * scale
    wk = _xavier(ks[1], (E, E))
    wv = _xavier(ks[2], (E, E))
    wo = _xavier(ks[3], (E, E))
    # NOTE: the q bias must carry the same fold; it is zero here but kept explicit so a
    # real weight-import path stays correct.
    bq = jnp.zeros((1, E), jnp.float32) * scale
    bk = jnp.zeros((1, E), jnp.float32)
    bv = jnp.zeros((1, E), jnp.float32)
    return {
        "wqkv": jnp.stack([wq, wk, wv]),   # (3, E, E)
        "bqkv": jnp.stack([bq, bk, bv]),   # (3, 1, E)
        "wo": wo,                          # (E, E)
        "bo": jnp.zeros((1, E), jnp.float32),
    }


def make_transformer_params(key, E, F, H, num_enc, num_dec):
    keys = jax.random.split(key, num_enc + num_dec)
    enc, dec = [], []
    for i in range(num_enc):
        ks = jax.random.split(keys[i], 3)
        mha = _mha_params(ks[0], E, H)
        enc.append(dict(
            wqkv=mha["wqkv"], bqkv=mha["bqkv"], wo=mha["wo"], bo=mha["bo"],
            w1=_xavier(ks[1], (E, F)), b1=jnp.zeros((1, F), jnp.float32),
            w2=_xavier(ks[2], (F, E)), b2=jnp.zeros((1, E), jnp.float32),
            lng=jnp.ones((2, 1, E), jnp.float32), lnb=jnp.zeros((2, 1, E), jnp.float32)))
    for i in range(num_dec):
        ks = jax.random.split(keys[num_enc + i], 4)
        sa = _mha_params(ks[0], E, H)
        ca = _mha_params(ks[1], E, H)
        dec.append(dict(
            sa_wqkv=sa["wqkv"], sa_bqkv=sa["bqkv"], sa_wo=sa["wo"], sa_bo=sa["bo"],
            ca_wqkv=ca["wqkv"], ca_bqkv=ca["bqkv"], ca_wo=ca["wo"], ca_bo=ca["bo"],
            w1=_xavier(ks[2], (E, F)), b1=jnp.zeros((1, F), jnp.float32),
            w2=_xavier(ks[3], (F, E)), b2=jnp.zeros((1, E), jnp.float32),
            lng=jnp.ones((3, 1, E), jnp.float32), lnb=jnp.zeros((3, 1, E), jnp.float32)))

    def stack(layers, k):
        return jnp.stack([lyr[k] for lyr in layers])

    params = {}
    for k in ("wqkv", "bqkv", "wo", "bo", "w1", "b1", "w2", "b2", "lng", "lnb"):
        params["enc_" + k] = stack(enc, k)
    for k in ("sa_wqkv", "sa_bqkv", "sa_wo", "sa_bo",
              "ca_wqkv", "ca_bqkv", "ca_wo", "ca_bo",
              "w1", "b1", "w2", "b2", "lng", "lnb"):
        params["dec_" + k] = stack(dec, k)
    return params


# --------------------------------- main ---------------------------------------

if __name__ == "__main__":
    # Transformer(embed_dim=32, nhead=4, num_encoder_layers=2,
    #             num_decoder_layers=2, dim_feedforward=64, dropout=0.0) -- eval mode
    E, NHEAD, NENC, NDEC, FF = 32, 4, 2, 2, 64
    B, SRC_LEN, NUM_QUERIES = 2, 16, 8

    root = jax.random.PRNGKey(0)
    k_param, k_src, k_query, k_pos = jax.random.split(root, 4)

    params = make_transformer_params(k_param, E, FF, NHEAD, NENC, NDEC)

    src = jax.random.normal(k_src, (B, SRC_LEN, E), jnp.float32)
    query_embed = jax.random.normal(k_query, (NUM_QUERIES, E), jnp.float32)
    pos_embed = jax.random.normal(k_pos, (B, SRC_LEN, E), jnp.float32)

    fwd = jax.jit(functools.partial(transformer_forward, nhead=NHEAD))
    out = fwd(params, src, query_embed, pos_embed)
    jax.block_until_ready(out)

    assert out.shape == (B, NUM_QUERIES, E), out.shape
    assert bool(jnp.all(jnp.isfinite(out)))
    print("KERNEL_OK")
</pallas_src>

<mosaic_0001>
module attributes {stable_mosaic.version = 11 : i64} {
  func.func @_transformer_kernel(%arg0: memref<32x32xf32, #tpu.memory_space<vmem>>, %arg1: memref<32x32xf32, #tpu.memory_space<vmem>>, %arg2: memref<8x32xf32, #tpu.memory_space<vmem>>, %arg3: memref<2x3x32x32xf32, #tpu.memory_space<vmem>>, %arg4: memref<2x3x1x32xf32, #tpu.memory_space<vmem>>, %arg5: memref<2x32x32xf32, #tpu.memory_space<vmem>>, %arg6: memref<2x1x32xf32, #tpu.memory_space<vmem>>, %arg7: memref<2x32x64xf32, #tpu.memory_space<vmem>>, %arg8: memref<2x1x64xf32, #tpu.memory_space<vmem>>, %arg9: memref<2x64x32xf32, #tpu.memory_space<vmem>>, %arg10: memref<2x1x32xf32, #tpu.memory_space<vmem>>, %arg11: memref<2x2x1x32xf32, #tpu.memory_space<vmem>>, %arg12: memref<2x2x1x32xf32, #tpu.memory_space<vmem>>, %arg13: memref<2x3x32x32xf32, #tpu.memory_space<vmem>>, %arg14: memref<2x3x1x32xf32, #tpu.memory_space<vmem>>, %arg15: memref<2x32x32xf32, #tpu.memory_space<vmem>>, %arg16: memref<2x1x32xf32, #tpu.memory_space<vmem>>, %arg17: memref<2x3x32x32xf32, #tpu.memory_space<vmem>>, %arg18: memref<2x3x1x32xf32, #tpu.memory_space<vmem>>, %arg19: memref<2x32x32xf32, #tpu.memory_space<vmem>>, %arg20: memref<2x1x32xf32, #tpu.memory_space<vmem>>, %arg21: memref<2x32x64xf32, #tpu.memory_space<vmem>>, %arg22: memref<2x1x64xf32, #tpu.memory_space<vmem>>, %arg23: memref<2x64x32xf32, #tpu.memory_space<vmem>>, %arg24: memref<2x1x32xf32, #tpu.memory_space<vmem>>, %arg25: memref<2x3x1x32xf32, #tpu.memory_space<vmem>>, %arg26: memref<2x3x1x32xf32, #tpu.memory_space<vmem>>, %arg27: memref<16x32xf32, #tpu.memory_space<vmem>>) attributes {dimension_semantics = [], scalar_prefetch = 0 : i64, scratch_operands = 0 : i64, tpu.core_type = #tpu.core_type<tc>} {
    %c0 = arith.constant 0 : index
    %c0_0 = arith.constant 0 : index
    %0 = vector.load %arg0[%c0, %c0_0] : memref<32x32xf32, #tpu.memory_space<vmem>>, vector<32x32xf32>
    %c0_1 = arith.constant 0 : index
    %c0_2 = arith.constant 0 : index
    %1 = vector.load %arg1[%c0_1, %c0_2] : memref<32x32xf32, #tpu.memory_space<vmem>>, vector<32x32xf32>
    %c0_3 = arith.constant 0 : index
    %c0_4 = arith.constant 0 : index
    %2 = vector.load %arg2[%c0_3, %c0_4] : memref<8x32xf32, #tpu.memory_space<vmem>>, vector<8x32xf32>
    %3 = arith.addf %0, %1 : vector<32x32xf32>
    %c0_5 = arith.constant 0 : index
    %c0_6 = arith.constant 0 : index
    %c0_7 = arith.constant 0 : index
    %c0_8 = arith.constant 0 : index
    %4 = vector.load %arg3[%c0_5, %c0_6, %c0_7, %c0_8] : memref<2x3x32x32xf32, #tpu.memory_space<vmem>>, vector<1x3x32x32xf32>
    %5 = vector.shape_cast %4 : vector<1x3x32x32xf32> to vector<3x32x32xf32>
    %c0_9 = arith.constant 0 : index
    %c0_10 = arith.constant 0 : index
    %c0_11 = arith.constant 0 : index
    %c0_12 = arith.constant 0 : index
    %6 = vector.load %arg4[%c0_9, %c0_10, %c0_11, %c0_12] : memref<2x3x1x32xf32, #tpu.memory_space<vmem>>, vector<1x3x1x32xf32>
    %7 = vector.shape_cast %6 : vector<1x3x1x32xf32> to vector<3x1x32xf32>
    %c0_13 = arith.constant 0 : index
    %c0_14 = arith.constant 0 : index
    %c0_15 = arith.constant 0 : index
    %8 = vector.load %arg5[%c0_13, %c0_14, %c0_15] : memref<2x32x32xf32, #tpu.memory_space<vmem>>, vector<1x32x32xf32>
    %9 = vector.shape_cast %8 : vector<1x32x32xf32> to vector<32x32xf32>
    %c0_16 = arith.constant 0 : index
    %c0_17 = arith.constant 0 : index
    %c0_18 = arith.constant 0 : index
    %10 = vector.load %arg6[%c0_16, %c0_17, %c0_18] : memref<2x1x32xf32, #tpu.memory_space<vmem>>, vector<1x1x32xf32>
    %11 = vector.shape_cast %10 : vector<1x1x32xf32> to vector<1x32xf32>
    %12 = vector.extract_strided_slice %5 {offsets = [0, 0, 0], sizes = [1, 32, 32], strides = [1, 1, 1]} : vector<3x32x32xf32> to vector<1x32x32xf32>
    %13 = vector.shape_cast %12 : vector<1x32x32xf32> to vector<32x32xf32>
    %cst = arith.constant dense<0.000000e+00> : vector<32x32xf32>
    %14 = tpu.matmul %3, %13, %cst {dimension_numbers = #tpu.dot_dimension_numbers<[1], [0], [0], [1], [0, 0, 1, 1], [], []>} : vector<32x32xf32>, vector<32x32xf32>, vector<32x32xf32> -> vector<32x32xf32>
    %15 = vector.extract_strided_slice %7 {offsets = [0, 0, 0], sizes = [1, 1, 32], strides = [1, 1, 1]} : vector<3x1x32xf32> to vector<1x1x32xf32>
    %16 = vector.shape_cast %15 : vector<1x1x32xf32> to vector<1x32xf32>
    %17 = vector.broadcast %16 : vector<1x32xf32> to vector<32x32xf32>
    %18 = arith.addf %14, %17 : vector<32x32xf32>
    %19 = vector.extract_strided_slice %5 {offsets = [1, 0, 0], sizes = [1, 32, 32], strides = [1, 1, 1]} : vector<3x32x32xf32> to vector<1x32x32xf32>
    %20 = vector.shape_cast %19 : vector<1x32x32xf32> to vector<32x32xf32>
    %cst_19 = arith.constant dense<0.000000e+00> : vector<32x32xf32>
    %21 = tpu.matmul %3, %20, %cst_19 {dimension_numbers = #tpu.dot_dimension_numbers<[1], [0], [0], [1], [0, 0, 1, 1], [], []>} : vector<32x32xf32>, vector<32x32xf32>, vector<32x32xf32> -> vector<32x32xf32>
    %22 = vector.extract_strided_slice %7 {offsets = [1, 0, 0], sizes = [1, 1, 32], strides = [1, 1, 1]} : vector<3x1x32xf32> to vector<1x1x32xf32>
    %23 = vector.shape_cast %22 : vector<1x1x32xf32> to vector<1x32xf32>
    %24 = vector.broadcast %23 : vector<1x32xf32> to vector<32x32xf32>
    %25 = arith.addf %21, %24 : vector<32x32xf32>
    %26 = vector.extract_strided_slice %5 {offsets = [2, 0, 0], sizes = [1, 32, 32], strides = [1, 1, 1]} : vector<3x32x32xf32> to vector<1x32x32xf32>
    %27 = vector.shape_cast %26 : vector<1x32x32xf32> to vector<32x32xf32>
    %cst_20 = arith.constant dense<0.000000e+00> : vector<32x32xf32>
    %28 = tpu.matmul %0, %27, %cst_20 {dimension_numbers = #tpu.dot_dimension_numbers<[1], [0], [0], [1], [0, 0, 1, 1], [], []>} : vector<32x32xf32>, vector<32x32xf32>, vector<32x32xf32> -> vector<32x32xf32>
    %29 = vector.extract_strided_slice %7 {offsets = [2, 0, 0], sizes = [1, 1, 32], strides = [1, 1, 1]} : vector<3x1x32xf32> to vector<1x1x32xf32>
    %30 = vector.shape_cast %29 : vector<1x1x32xf32> to vector<1x32xf32>
    %31 = vector.broadcast %30 : vector<1x32xf32> to vector<32x32xf32>
    %32 = arith.addf %28, %31 : vector<32x32xf32>
    %33 = vector.extract_strided_slice %18 {offsets = [0, 0], sizes = [16, 32], strides = [1, 1]} : vector<32x32xf32> to vector<16x32xf32>
    %34 = vector.extract_strided_slice %25 {offsets = [0, 0], sizes = [16, 32], strides = [1, 1]} : vector<32x32xf32> to vector<16x32xf32>
    %35 = vector.extract_strided_slice %32 {offsets = [0, 0], sizes = [16, 32], strides = [1, 1]} : vector<32x32xf32> to vector<16x32xf32>
    %36 = vector.extract_strided_slice %33 {offsets = [0, 0], sizes = [16, 8], strides = [1, 1]} : vector<16x32xf32> to vector<16x8xf32>
    %37 = vector.extract_strided_slice %34 {offsets = [0, 0], sizes = [16, 8], strides = [1, 1]} : vector<16x32xf32> to vector<16x8xf32>
    %cst_21 = arith.constant dense<0.000000e+00> : vector<16x16xf32>
    %38 = tpu.matmul %36, %37, %cst_21 {dimension_numbers = #tpu.dot_dimension_numbers<[1], [1], [0], [0], [0, 0, 1, 0], [], []>} : vector<16x8xf32>, vector<16x8xf32>, vector<16x16xf32> -> vector<16x16xf32>
    %cst_22 = arith.constant dense<0xFF800000> : vector<16xf32>
    %39 = vector.multi_reduction <maximumf>, %38, %cst_22 [1] : vector<16x16xf32> to vector<16xf32>
    %40 = vector.shape_cast %39 : vector<16xf32> to vector<16x1xf32>
    %41 = vector.broadcast %40 : vector<16x1xf32> to vector<16x16xf32>
    %42 = arith.subf %38, %41 : vector<16x16xf32>
    %43 = math.exp %42 : vector<16x16xf32>
    %cst_23 = arith.constant dense<0.000000e+00> : vector<16xf32>
    %44 = vector.multi_reduction <add>, %43, %cst_23 [1] : vector<16x16xf32> to vector<16xf32>
    %45 = vector.shape_cast %44 : vector<16xf32> to vector<16x1xf32>
    %46 = tpu.reciprocal %45 {approx = true} : vector<16x1xf32> -> vector<16x1xf32>
    %47 = vector.broadcast %46 : vector<16x1xf32> to vector<16x16xf32>
    %48 = arith.mulf %43, %47 : vector<16x16xf32>
    %49 = vector.extract_strided_slice %35 {offsets = [0, 0], sizes = [16, 8], strides = [1, 1]} : vector<16x32xf32> to vector<16x8xf32>
    %cst_24 = arith.constant dense<0.000000e+00> : vector<16x8xf32>
    %50 = tpu.matmul %48, %49, %cst_24 {dimension_numbers = #tpu.dot_dimension_numbers<[1], [0], [0], [1], [0, 0, 1, 1], [], []>} : vector<16x16xf32>, vector<16x8xf32>, vector<16x8xf32> -> vector<16x8xf32>
    %51 = vector.extract_strided_slice %33 {offsets = [0, 8], sizes = [16, 8], strides = [1, 1]} : vector<16x32xf32> to vector<16x8xf32>
    %52 = vector.extract_strided_slice %34 {offsets = [0, 8], sizes = [16, 8], strides = [1, 1]} : vector<16x32xf32> to vector<16x8xf32>
    %cst_25 = arith.constant dense<0.000000e+00> : vector<16x16xf32>
    %53 = tpu.matmul %51, %52, %cst_25 {dimension_numbers = #tpu.dot_dimension_numbers<[1], [1], [0], [0], [0, 0, 1, 0], [], []>} : vector<16x8xf32>, vector<16x8xf32>, vector<16x16xf32> -> vector<16x16xf32>
    %cst_26 = arith.constant dense<0xFF800000> : vector<16xf32>
    %54 = vector.multi_reduction <maximumf>, %53, %cst_26 [1] : vector<16x16xf32> to vector<16xf32>
    %55 = vector.shape_cast %54 : vector<16xf32> to vector<16x1xf32>
    %56 = vector.broadcast %55 : vector<16x1xf32> to vector<16x16xf32>
    %57 = arith.subf %53, %56 : vector<16x16xf32>
    %58 = math.exp %57 : vector<16x16xf32>
    %cst_27 = arith.constant dense<0.000000e+00> : vector<16xf32>
    %59 = vector.multi_reduction <add>, %58, %cst_27 [1] : vector<16x16xf32> to vector<16xf32>
    %60 = vector.shape_cast %59 : vector<16xf32> to vector<16x1xf32>
    %61 = tpu.reciprocal %60 {approx = true} : vector<16x1xf32> -> vector<16x1xf32>
    %62 = vector.broadcast %61 : vector<16x1xf32> to vector<16x16xf32>
    %63 = arith.mulf %58, %62 : vector<16x16xf32>
    %64 = vector.extract_strided_slice %35 {offsets = [0, 8], sizes = [16, 8], strides = [1, 1]} : vector<16x32xf32> to vector<16x8xf32>
    %cst_28 = arith.constant dense<0.000000e+00> : vector<16x8xf32>
    %65 = tpu.matmul %63, %64, %cst_28 {dimension_numbers = #tpu.dot_dimension_numbers<[1], [0], [0], [1], [0, 0, 1, 1], [], []>} : vector<16x16xf32>, vector<16x8xf32>, vector<16x8xf32> -> vector<16x8xf32>
    %66 = vector.extract_strided_slice %33 {offsets = [0, 16], sizes = [16, 8], strides = [1, 1]} : vector<16x32xf32> to vector<16x8xf32>
    %67 = vector.extract_strided_slice %34 {offsets = [0, 16], sizes = [16, 8], strides = [1, 1]} : vector<16x32xf32> to vector<16x8xf32>
    %cst_29 = arith.constant dense<0.000000e+00> : vector<16x16xf32>
    %68 = tpu.matmul %66, %67, %cst_29 {dimension_numbers = #tpu.dot_dimension_numbers<[1], [1], [0], [0], [0, 0, 1, 0], [], []>} : vector<16x8xf32>, vector<16x8xf32>, vector<16x16xf32> -> vector<16x16xf32>
    %cst_30 = arith.constant dense<0xFF800000> : vector<16xf32>
    %69 = vector.multi_reduction <maximumf>, %68, %cst_30 [1] : vector<16x16xf32> to vector<16xf32>
    %70 = vector.shape_cast %69 : vector<16xf32> to vector<16x1xf32>
    %71 = vector.broadcast %70 : vector<16x1xf32> to vector<16x16xf32>
    %72 = arith.subf %68, %71 : vector<16x16xf32>
    %73 = math.exp %72 : vector<16x16xf32>
    %cst_31 = arith.constant dense<0.000000e+00> : vector<16xf32>
    %74 = vector.multi_reduction <add>, %73, %cst_31 [1] : vector<16x16xf32> to vector<16xf32>
    %75 = vector.shape_cast %74 : vector<16xf32> to vector<16x1xf32>
    %76 = tpu.reciprocal %75 {approx = true} : vector<16x1xf32> -> vector<16x1xf32>
    %77 = vector.broadcast %76 : vector<16x1xf32> to vector<16x16xf32>
    %78 = arith.mulf %73, %77 : vector<16x16xf32>
    %79 = vector.extract_strided_slice %35 {offsets = [0, 16], sizes = [16, 8], strides = [1, 1]} : vector<16x32xf32> to vector<16x8xf32>
    %cst_32 = arith.constant dense<0.000000e+00> : vector<16x8xf32>
    %80 = tpu.matmul %78, %79, %cst_32 {dimension_numbers = #tpu.dot_dimension_numbers<[1], [0], [0], [1], [0, 0, 1, 1], [], []>} : vector<16x16xf32>, vector<16x8xf32>, vector<16x8xf32> -> vector<16x8xf32>
    %81 = vector.extract_strided_slice %33 {offsets = [0, 24], sizes = [16, 8], strides = [1, 1]} : vector<16x32xf32> to vector<16x8xf32>
    %82 = vector.extract_strided_slice %34 {offsets = [0, 24], sizes = [16, 8], strides = [1, 1]} : vector<16x32xf32> to vector<16x8xf32>
    %cst_33 = arith.constant dense<0.000000e+00> : vector<16x16xf32>
    %83 = tpu.matmul %81, %82, %cst_33 {dimension_numbers = #tpu.dot_dimension_numbers<[1], [1], [0], [0], [0, 0, 1, 0], [], []>} : vector<16x8xf32>, vector<16x8xf32>, vector<16x16xf32> -> vector<16x16xf32>
    %cst_34 = arith.constant dense<0xFF800000> : vector<16xf32>
    %84 = vector.multi_reduction <maximumf>, %83, %cst_34 [1] : vector<16x16xf32> to vector<16xf32>
    %85 = vector.shape_cast %84 : vector<16xf32> to vector<16x1xf32>
    %86 = vector.broadcast %85 : vector<16x1xf32> to vector<16x16xf32>
    %87 = arith.subf %83, %86 : vector<16x16xf32>
    %88 = math.exp %87 : vector<16x16xf32>
    %cst_35 = arith.constant dense<0.000000e+00> : vector<16xf32>
    %89 = vector.multi_reduction <add>, %88, %cst_35 [1] : vector<16x16xf32> to vector<16xf32>
    %90 = vector.shape_cast %89 : vector<16xf32> to vector<16x1xf32>
    %91 = tpu.reciprocal %90 {approx = true} : vector<16x1xf32> -> vector<16x1xf32>
    %92 = vector.broadcast %91 : vector<16x1xf32> to vector<16x16xf32>
    %93 = arith.mulf %88, %92 : vector<16x16xf32>
    %94 = vector.extract_strided_slice %35 {offsets = [0, 24], sizes = [16, 8], strides = [1, 1]} : vector<16x32xf32> to vector<16x8xf32>
    %cst_36 = arith.constant dense<0.000000e+00> : vector<16x8xf32>
    %95 = tpu.matmul %93, %94, %cst_36 {dimension_numbers = #tpu.dot_dimension_numbers<[1], [0], [0], [1], [0, 0, 1, 1], [], []>} : vector<16x16xf32>, vector<16x8xf32>, vector<16x8xf32> -> vector<16x8xf32>
    %96 = tpu.concatenate %50, %65, %80, %95 in 1 : vector<16x8xf32>, vector<16x8xf32>, vector<16x8xf32>, vector<16x8xf32> -> vector<16x32xf32>
    %97 = vector.extract_strided_slice %18 {offsets = [16, 0], sizes = [16, 32], strides = [1, 1]} : vector<32x32xf32> to vector<16x32xf32>
    %98 = vector.extract_strided_slice %25 {offsets = [16, 0], sizes = [16, 32], strides = [1, 1]} : vector<32x32xf32> to vector<16x32xf32>
    %99 = vector.extract_strided_slice %32 {offsets = [16, 0], sizes = [16, 32], strides = [1, 1]} : vector<32x32xf32> to vector<16x32xf32>
    %100 = vector.extract_strided_slice %97 {offsets = [0, 0], sizes = [16, 8], strides = [1, 1]} : vector<16x32xf32> to vector<16x8xf32>
    %101 = vector.extract_strided_slice %98 {offsets = [0, 0], sizes = [16, 8], strides = [1, 1]} : vector<16x32xf32> to vector<16x8xf32>
    %cst_37 = arith.constant dense<0.000000e+00> : vector<16x16xf32>
    %102 = tpu.matmul %100, %101, %cst_37 {dimension_numbers = #tpu.dot_dimension_numbers<[1], [1], [0], [0], [0, 0, 1, 0], [], []>} : vector<16x8xf32>, vector<16x8xf32>, vector<16x16xf32> -> vector<16x16xf32>
    %cst_38 = arith.constant dense<0xFF800000> : vector<16xf32>
    %103 = vector.multi_reduction <maximumf>, %102, %cst_38 [1] : vector<16x16xf32> to vector<16xf32>
    %104 = vector.shape_cast %103 : vector<16xf32> to vector<16x1xf32>
    %105 = vector.broadcast %104 : vector<16x1xf32> to vector<16x16xf32>
    %106 = arith.subf %102, %105 : vector<16x16xf32>
    %107 = math.exp %106 : vector<16x16xf32>
    %cst_39 = arith.constant dense<0.000000e+00> : vector<16xf32>
    %108 = vector.multi_reduction <add>, %107, %cst_39 [1] : vector<16x16xf32> to vector<16xf32>
    %109 = vector.shape_cast %108 : vector<16xf32> to vector<16x1xf32>
    %110 = tpu.reciprocal %109 {approx = true} : vector<16x1xf32> -> vector<16x1xf32>
    %111 = vector.broadcast %110 : vector<16x1xf32> to vector<16x16xf32>
    %112 = arith.mulf %107, %111 : vector<16x16xf32>
    %113 = vector.extract_strided_slice %99 {offsets = [0, 0], sizes = [16, 8], strides = [1, 1]} : vector<16x32xf32> to vector<16x8xf32>
    %cst_40 = arith.constant dense<0.000000e+00> : vector<16x8xf32>
    %114 = tpu.matmul %112, %113, %cst_40 {dimension_numbers = #tpu.dot_dimension_numbers<[1], [0], [0], [1], [0, 0, 1, 1], [], []>} : vector<16x16xf32>, vector<16x8xf32>, vector<16x8xf32> -> vector<16x8xf32>
    %115 = vector.extract_strided_slice %97 {offsets = [0, 8], sizes = [16, 8], strides = [1, 1]} : vector<16x32xf32> to vector<16x8xf32>
    %116 = vector.extract_strided_slice %98 {offsets = [0, 8], sizes = [16, 8], strides = [1, 1]} : vector<16x32xf32> to vector<16x8xf32>
    %cst_41 = arith.constant dense<0.000000e+00> : vector<16x16xf32>
    %117 = tpu.matmul %115, %116, %cst_41 {dimension_numbers = #tpu.dot_dimension_numbers<[1], [1], [0], [0], [0, 0, 1, 0], [], []>} : vector<16x8xf32>, vector<16x8xf32>, vector<16x16xf32> -> vector<16x16xf32>
    %cst_42 = arith.constant dense<0xFF800000> : vector<16xf32>
    %118 = vector.multi_reduction <maximumf>, %117, %cst_42 [1] : vector<16x16xf32> to vector<16xf32>
    %119 = vector.shape_cast %118 : vector<16xf32> to vector<16x1xf32>
    %120 = vector.broadcast %119 : vector<16x1xf32> to vector<16x16xf32>
    %121 = arith.subf %117, %120 : vector<16x16xf32>
    %122 = math.exp %121 : vector<16x16xf32>
    %cst_43 = arith.constant dense<0.000000e+00> : vector<16xf32>
    %123 = vector.multi_reduction <add>, %122, %cst_43 [1] : vector<16x16xf32> to vector<16xf32>
    %124 = vector.shape_cast %123 : vector<16xf32> to vector<16x1xf32>
    %125 = tpu.reciprocal %124 {approx = true} : vector<16x1xf32> -> vector<16x1xf32>
    %126 = vector.broadcast %125 : vector<16x1xf32> to vector<16x16xf32>
    %127 = arith.mulf %122, %126 : vector<16x16xf32>
    %128 = vector.extract_strided_slice %99 {offsets = [0, 8], sizes = [16, 8], strides = [1, 1]} : vector<16x32xf32> to vector<16x8xf32>
    %cst_44 = arith.constant dense<0.000000e+00> : vector<16x8xf32>
    %129 = tpu.matmul %127, %128, %cst_44 {dimension_numbers = #tpu.dot_dimension_numbers<[1], [0], [0], [1], [0, 0, 1, 1], [], []>} : vector<16x16xf32>, vector<16x8xf32>, vector<16x8xf32> -> vector<16x8xf32>
    %130 = vector.extract_strided_slice %97 {offsets = [0, 16], sizes = [16, 8], strides = [1, 1]} : vector<16x32xf32> to vector<16x8xf32>
    %131 = vector.extract_strided_slice %98 {offsets = [0, 16], sizes = [16, 8], strides = [1, 1]} : vector<16x32xf32> to vector<16x8xf32>
    %cst_45 = arith.constant dense<0.000000e+00> : vector<16x16xf32>
    %132 = tpu.matmul %130, %131, %cst_45 {dimension_numbers = #tpu.dot_dimension_numbers<[1], [1], [0], [0], [0, 0, 1, 0], [], []>} : vector<16x8xf32>, vector<16x8xf32>, vector<16x16xf32> -> vector<16x16xf32>
    %cst_46 = arith.constant dense<0xFF800000> : vector<16xf32>
    %133 = vector.multi_reduction <maximumf>, %132, %cst_46 [1] : vector<16x16xf32> to vector<16xf32>
    %134 = vector.shape_cast %133 : vector<16xf32> to vector<16x1xf32>
    %135 = vector.broadcast %134 : vector<16x1xf32> to vector<16x16xf32>
    %136 = arith.subf %132, %135 : vector<16x16xf32>
    %137 = math.exp %136 : vector<16x16xf32>
    %cst_47 = arith.constant dense<0.000000e+00> : vector<16xf32>
    %138 = vector.multi_reduction <add>, %137, %cst_47 [1] : vector<16x16xf32> to vector<16xf32>
    %139 = vector.shape_cast %138 : vector<16xf32> to vector<16x1xf32>
    %140 = tpu.reciprocal %139 {approx = true} : vector<16x1xf32> -> vector<16x1xf32>
    %141 = vector.broadcast %140 : vector<16x1xf32> to vector<16x16xf32>
    %142 = arith.mulf %137, %141 : vector<16x16xf32>
    %143 = vector.extract_strided_slice %99 {offsets = [0, 16], sizes = [16, 8], strides = [1, 1]} : vector<16x32xf32> to vector<16x8xf32>
    %cst_48 = arith.constant dense<0.000000e+00> : vector<16x8xf32>
    %144 = tpu.matmul %142, %143, %cst_48 {dimension_numbers = #tpu.dot_dimension_numbers<[1], [0], [0], [1], [0, 0, 1, 1], [], []>} : vector<16x16xf32>, vector<16x8xf32>, vector<16x8xf32> -> vector<16x8xf32>
    %145 = vector.extract_strided_slice %97 {offsets = [0, 24], sizes = [16, 8], strides = [1, 1]} : vector<16x32xf32> to vector<16x8xf32>
    %146 = vector.extract_strided_slice %98 {offsets = [0, 24], sizes = [16, 8], strides = [1, 1]} : vector<16x32xf32> to vector<16x8xf32>
    %cst_49 = arith.constant dense<0.000000e+00> : vector<16x16xf32>
    %147 = tpu.matmul %145, %146, %cst_49 {dimension_numbers = #tpu.dot_dimension_numbers<[1], [1], [0], [0], [0, 0, 1, 0], [], []>} : vector<16x8xf32>, vector<16x8xf32>, vector<16x16xf32> -> vector<16x16xf32>
    %cst_50 = arith.constant dense<0xFF800000> : vector<16xf32>
    %148 = vector.multi_reduction <maximumf>, %147, %cst_50 [1] : vector<16x16xf32> to vector<16xf32>
    %149 = vector.shape_cast %148 : vector<16xf32> to vector<16x1xf32>
    %150 = vector.broadcast %149 : vector<16x1xf32> to vector<16x16xf32>
    %151 = arith.subf %147, %150 : vector<16x16xf32>
    %152 = math.exp %151 : vector<16x16xf32>
    %cst_51 = arith.constant dense<0.000000e+00> : vector<16xf32>
    %153 = vector.multi_reduction <add>, %152, %cst_51 [1] : vector<16x16xf32> to vector<16xf32>
    %154 = vector.shape_cast %153 : vector<16xf32> to vector<16x1xf32>
    %155 = tpu.reciprocal %154 {approx = true} : vector<16x1xf32> -> vector<16x1xf32>
    %156 = vector.broadcast %155 : vector<16x1xf32> to vector<16x16xf32>
    %157 = arith.mulf %152, %156 : vector<16x16xf32>
    %158 = vector.extract_strided_slice %99 {offsets = [0, 24], sizes = [16, 8], strides = [1, 1]} : vector<16x32xf32> to vector<16x8xf32>
    %cst_52 = arith.constant dense<0.000000e+00> : vector<16x8xf32>
    %159 = tpu.matmul %157, %158, %cst_52 {dimension_numbers = #tpu.dot_dimension_numbers<[1], [0], [0], [1], [0, 0, 1, 1], [], []>} : vector<16x16xf32>, vector<16x8xf32>, vector<16x8xf32> -> vector<16x8xf32>
    %160 = tpu.concatenate %114, %129, %144, %159 in 1 : vector<16x8xf32>, vector<16x8xf32>, vector<16x8xf32>, vector<16x8xf32> -> vector<16x32xf32>
    %161 = tpu.concatenate %96, %160 in 0 : vector<16x32xf32>, vector<16x32xf32> -> vector<32x32xf32>
    %cst_53 = arith.constant dense<0.000000e+00> : vector<32x32xf32>
    %162 = tpu.matmul %161, %9, %cst_53 {dimension_numbers = #tpu.dot_dimension_numbers<[1], [0], [0], [1], [0, 0, 1, 1], [], []>} : vector<32x32xf32>, vector<32x32xf32>, vector<32x32xf32> -> vector<32x32xf32>
    %163 = vector.broadcast %11 : vector<1x32xf32> to vector<32x32xf32>
    %164 = arith.addf %162, %163 : vector<32x32xf32>
    %c0_54 = arith.constant 0 : index
    %c0_55 = arith.constant 0 : index
    %c0_56 = arith.constant 0 : index
    %c0_57 = arith.constant 0 : index
    %165 = vector.load %arg11[%c0_54, %c0_55, %c0_56, %c0_57] : memref<2x2x1x32xf32, #tpu.memory_space<vmem>>, vector<1x1x1x32xf32>
    %166 = vector.shape_cast %165 : vector<1x1x1x32xf32> to vector<1x32xf32>
    %c0_58 = arith.constant 0 : index
    %c0_59 = arith.constant 0 : index
    %c0_60 = arith.constant 0 : index
    %c0_61 = arith.constant 0 : index
    %167 = vector.load %arg12[%c0_58, %c0_59, %c0_60, %c0_61] : memref<2x2x1x32xf32, #tpu.memory_space<vmem>>, vector<1x1x1x32xf32>
    %168 = vector.shape_cast %167 : vector<1x1x1x32xf32> to vector<1x32xf32>
    %169 = arith.addf %0, %164 : vector<32x32xf32>
    %cst_62 = arith.constant dense<0.000000e+00> : vector<32xf32>
    %170 = vector.multi_reduction <add>, %169, %cst_62 [1] : vector<32x32xf32> to vector<32xf32>
    %171 = vector.shape_cast %170 : vector<32xf32> to vector<32x1xf32>
    %cst_63 = arith.constant 3.200000e+01 : f32
    %172 = vector.broadcast %cst_63 : f32 to vector<32x1xf32>
    %173 = arith.divf %171, %172 : vector<32x1xf32>
    %174 = vector.broadcast %173 : vector<32x1xf32> to vector<32x32xf32>
    %175 = arith.subf %169, %174 : vector<32x32xf32>
    %176 = arith.mulf %175, %175 : vector<32x32xf32>
    %cst_64 = arith.constant dense<0.000000e+00> : vector<32xf32>
    %177 = vector.multi_reduction <add>, %176, %cst_64 [1] : vector<32x32xf32> to vector<32xf32>
    %178 = vector.shape_cast %177 : vector<32xf32> to vector<32x1xf32>
    %cst_65 = arith.constant 3.200000e+01 : f32
    %179 = vector.broadcast %cst_65 : f32 to vector<32x1xf32>
    %180 = arith.divf %178, %179 : vector<32x1xf32>
    %181 = vector.broadcast %173 : vector<32x1xf32> to vector<32x32xf32>
    %182 = arith.subf %169, %181 : vector<32x32xf32>
    %cst_66 = arith.constant 9.99999974E-6 : f32
    %183 = vector.broadcast %cst_66 : f32 to vector<32x1xf32>
    %184 = arith.addf %180, %183 : vector<32x1xf32>
    %185 = math.rsqrt %184 : vector<32x1xf32>
    %186 = vector.broadcast %185 : vector<32x1xf32> to vector<32x32xf32>
    %187 = arith.mulf %182, %186 : vector<32x32xf32>
    %188 = vector.broadcast %166 : vector<1x32xf32> to vector<32x32xf32>
    %189 = arith.mulf %187, %188 : vector<32x32xf32>
    %190 = vector.broadcast %168 : vector<1x32xf32> to vector<32x32xf32>
    %191 = arith.addf %189, %190 : vector<32x32xf32>
    %c0_67 = arith.constant 0 : index
    %c0_68 = arith.constant 0 : index
    %c0_69 = arith.constant 0 : index
    %192 = vector.load %arg7[%c0_67, %c0_68, %c0_69] : memref<2x32x64xf32, #tpu.memory_space<vmem>>, vector<1x32x64xf32>
    %193 = vector.shape_cast %192 : vector<1x32x64xf32> to vector<32x64xf32>
    %cst_70 = arith.constant dense<0.000000e+00> : vector<32x64xf32>
    %194 = tpu.matmul %191, %193, %cst_70 {dimension_numbers = #tpu.dot_dimension_numbers<[1], [0], [0], [1], [0, 0, 1, 1], [], []>} : vector<32x32xf32>, vector<32x64xf32>, vector<32x64xf32> -> vector<32x64xf32>
    %c0_71 = arith.constant 0 : index
    %c0_72 = arith.constant 0 : index
    %c0_73 = arith.constant 0 : index
    %195 = vector.load %arg8[%c0_71, %c0_72, %c0_73] : memref<2x1x64xf32, #tpu.memory_space<vmem>>, vector<1x1x64xf32>
    %196 = vector.shape_cast %195 : vector<1x1x64xf32> to vector<1x64xf32>
    %197 = vector.broadcast %196 : vector<1x64xf32> to vector<32x64xf32>
    %198 = arith.addf %194, %197 : vector<32x64xf32>
    %cst_74 = arith.constant 0.000000e+00 : f32
    %199 = vector.broadcast %cst_74 : f32 to vector<32x64xf32>
    %200 = arith.maximumf %198, %199 : vector<32x64xf32>
    %c0_75 = arith.constant 0 : index
    %c0_76 = arith.constant 0 : index
    %c0_77 = arith.constant 0 : index
    %201 = vector.load %arg9[%c0_75, %c0_76, %c0_77] : memref<2x64x32xf32, #tpu.memory_space<vmem>>, vector<1x64x32xf32>
    %202 = vector.shape_cast %201 : vector<1x64x32xf32> to vector<64x32xf32>
    %cst_78 = arith.constant dense<0.000000e+00> : vector<32x32xf32>
    %203 = tpu.matmul %200, %202, %cst_78 {dimension_numbers = #tpu.dot_dimension_numbers<[1], [0], [0], [1], [0, 0, 1, 1], [], []>} : vector<32x64xf32>, vector<64x32xf32>, vector<32x32xf32> -> vector<32x32xf32>
    %c0_79 = arith.constant 0 : index
    %c0_80 = arith.constant 0 : index
    %c0_81 = arith.constant 0 : index
    %204 = vector.load %arg10[%c0_79, %c0_80, %c0_81] : memref<2x1x32xf32, #tpu.memory_space<vmem>>, vector<1x1x32xf32>
    %205 = vector.shape_cast %204 : vector<1x1x32xf32> to vector<1x32xf32>
    %206 = vector.broadcast %205 : vector<1x32xf32> to vector<32x32xf32>
    %207 = arith.addf %203, %206 : vector<32x32xf32>
    %c0_82 = arith.constant 0 : index
    %c1 = arith.constant 1 : index
    %c0_83 = arith.constant 0 : index
    %c0_84 = arith.constant 0 : index
    %208 = vector.load %arg11[%c0_82, %c1, %c0_83, %c0_84] : memref<2x2x1x32xf32, #tpu.memory_space<vmem>>, vector<1x1x1x32xf32>
    %209 = vector.shape_cast %208 : vector<1x1x1x32xf32> to vector<1x32xf32>
    %c0_85 = arith.constant 0 : index
    %c1_86 = arith.constant 1 : index
    %c0_87 = arith.constant 0 : index
    %c0_88 = arith.constant 0 : index
    %210 = vector.load %arg12[%c0_85, %c1_86, %c0_87, %c0_88] : memref<2x2x1x32xf32, #tpu.memory_space<vmem>>, vector<1x1x1x32xf32>
    %211 = vector.shape_cast %210 : vector<1x1x1x32xf32> to vector<1x32xf32>
    %212 = arith.addf %191, %207 : vector<32x32xf32>
    %cst_89 = arith.constant dense<0.000000e+00> : vector<32xf32>
    %213 = vector.multi_reduction <add>, %212, %cst_89 [1] : vector<32x32xf32> to vector<32xf32>
    %214 = vector.shape_cast %213 : vector<32xf32> to vector<32x1xf32>
    %cst_90 = arith.constant 3.200000e+01 : f32
    %215 = vector.broadcast %cst_90 : f32 to vector<32x1xf32>
    %216 = arith.divf %214, %215 : vector<32x1xf32>
    %217 = vector.broadcast %216 : vector<32x1xf32> to vector<32x32xf32>
    %218 = arith.subf %212, %217 : vector<32x32xf32>
    %219 = arith.mulf %218, %218 : vector<32x32xf32>
    %cst_91 = arith.constant dense<0.000000e+00> : vector<32xf32>
    %220 = vector.multi_reduction <add>, %219, %cst_91 [1] : vector<32x32xf32> to vector<32xf32>
    %221 = vector.shape_cast %220 : vector<32xf32> to vector<32x1xf32>
    %cst_92 = arith.constant 3.200000e+01 : f32
    %222 = vector.broadcast %cst_92 : f32 to vector<32x1xf32>
    %223 = arith.divf %221, %222 : vector<32x1xf32>
    %224 = vector.broadcast %216 : vector<32x1xf32> to vector<32x32xf32>
    %225 = arith.subf %212, %224 : vector<32x32xf32>
    %cst_93 = arith.constant 9.99999974E-6 : f32
    %226 = vector.broadcast %cst_93 : f32 to vector<32x1xf32>
    %227 = arith.addf %223, %226 : vector<32x1xf32>
    %228 = math.rsqrt %227 : vector<32x1xf32>
    %229 = vector.broadcast %228 : vector<32x1xf32> to vector<32x32xf32>
    %230 = arith.mulf %225, %229 : vector<32x32xf32>
    %231 = vector.broadcast %209 : vector<1x32xf32> to vector<32x32xf32>
    %232 = arith.mulf %230, %231 : vector<32x32xf32>
    %233 = vector.broadcast %211 : vector<1x32xf32> to vector<32x32xf32>
    %234 = arith.addf %232, %233 : vector<32x32xf32>
    %235 = arith.addf %234, %1 : vector<32x32xf32>
    %c1_94 = arith.constant 1 : index
    %c0_95 = arith.constant 0 : index
    %c0_96 = arith.constant 0 : index
    %c0_97 = arith.constant 0 : index
    %236 = vector.load %arg3[%c1_94, %c0_95, %c0_96, %c0_97] : memref<2x3x32x32xf32, #tpu.memory_space<vmem>>, vector<1x3x32x32xf32>
    %237 = vector.shape_cast %236 : vector<1x3x32x32xf32> to vector<3x32x32xf32>
    %c1_98 = arith.constant 1 : index
    %c0_99 = arith.constant 0 : index
    %c0_100 = arith.constant 0 : index
    %c0_101 = arith.constant 0 : index
    %238 = vector.load %arg4[%c1_98, %c0_99, %c0_100, %c0_101] : memref<2x3x1x32xf32, #tpu.memory_space<vmem>>, vector<1x3x1x32xf32>
    %239 = vector.shape_cast %238 : vector<1x3x1x32xf32> to vector<3x1x32xf32>
    %c1_102 = arith.constant 1 : index
    %c0_103 = arith.constant 0 : index
    %c0_104 = arith.constant 0 : index
    %240 = vector.load %arg5[%c1_102, %c0_103, %c0_104] : memref<2x32x32xf32, #tpu.memory_space<vmem>>, vector<1x32x32xf32>
    %241 = vector.shape_cast %240 : vector<1x32x32xf32> to vector<32x32xf32>
    %c1_105 = arith.constant 1 : index
    %c0_106 = arith.constant 0 : index
    %c0_107 = arith.constant 0 : index
    %242 = vector.load %arg6[%c1_105, %c0_106, %c0_107] : memref<2x1x32xf32, #tpu.memory_space<vmem>>, vector<1x1x32xf32>
    %243 = vector.shape_cast %242 : vector<1x1x32xf32> to vector<1x32xf32>
    %244 = vector.extract_strided_slice %237 {offsets = [0, 0, 0], sizes = [1, 32, 32], strides = [1, 1, 1]} : vector<3x32x32xf32> to vector<1x32x32xf32>
    %245 = vector.shape_cast %244 : vector<1x32x32xf32> to vector<32x32xf32>
    %cst_108 = arith.constant dense<0.000000e+00> : vector<32x32xf32>
    %246 = tpu.matmul %235, %245, %cst_108 {dimension_numbers = #tpu.dot_dimension_numbers<[1], [0], [0], [1], [0, 0, 1, 1], [], []>} : vector<32x32xf32>, vector<32x32xf32>, vector<32x32xf32> -> vector<32x32xf32>
    %247 = vector.extract_strided_slice %239 {offsets = [0, 0, 0], sizes = [1, 1, 32], strides = [1, 1, 1]} : vector<3x1x32xf32> to vector<1x1x32xf32>
    %248 = vector.shape_cast %247 : vector<1x1x32xf32> to vector<1x32xf32>
    %249 = vector.broadcast %248 : vector<1x32xf32> to vector<32x32xf32>
    %250 = arith.addf %246, %249 : vector<32x32xf32>
    %251 = vector.extract_strided_slice %237 {offsets = [1, 0, 0], sizes = [1, 32, 32], strides = [1, 1, 1]} : vector<3x32x32xf32> to vector<1x32x32xf32>
    %252 = vector.shape_cast %251 : vector<1x32x32xf32> to vector<32x32xf32>
    %cst_109 = arith.constant dense<0.000000e+00> : vector<32x32xf32>
    %253 = tpu.matmul %235, %252, %cst_109 {dimension_numbers = #tpu.dot_dimension_numbers<[1], [0], [0], [1], [0, 0, 1, 1], [], []>} : vector<32x32xf32>, vector<32x32xf32>, vector<32x32xf32> -> vector<32x32xf32>
    %254 = vector.extract_strided_slice %239 {offsets = [1, 0, 0], sizes = [1, 1, 32], strides = [1, 1, 1]} : vector<3x1x32xf32> to vector<1x1x32xf32>
    %255 = vector.shape_cast %254 : vector<1x1x32xf32> to vector<1x32xf32>
    %256 = vector.broadcast %255 : vector<1x32xf32> to vector<32x32xf32>
    %257 = arith.addf %253, %256 : vector<32x32xf32>
    %258 = vector.extract_strided_slice %237 {offsets = [2, 0, 0], sizes = [1, 32, 32], strides = [1, 1, 1]} : vector<3x32x32xf32> to vector<1x32x32xf32>
    %259 = vector.shape_cast %258 : vector<1x32x32xf32> to vector<32x32xf32>
    %cst_110 = arith.constant dense<0.000000e+00> : vector<32x32xf32>
    %260 = tpu.matmul %234, %259, %cst_110 {dimension_numbers = #tpu.dot_dimension_numbers<[1], [0], [0], [1], [0, 0, 1, 1], [], []>} : vector<32x32xf32>, vector<32x32xf32>, vector<32x32xf32> -> vector<32x32xf32>
    %261 = vector.extract_strided_slice %239 {offsets = [2, 0, 0], sizes = [1, 1, 32], strides = [1, 1, 1]} : vector<3x1x32xf32> to vector<1x1x32xf32>
    %262 = vector.shape_cast %261 : vector<1x1x32xf32> to vector<1x32xf32>
    %263 = vector.broadcast %262 : vector<1x32xf32> to vector<32x32xf32>
    %264 = arith.addf %260, %263 : vector<32x32xf32>
    %265 = vector.extract_strided_slice %250 {offsets = [0, 0], sizes = [16, 32], strides = [1, 1]} : vector<32x32xf32> to vector<16x32xf32>
    %266 = vector.extract_strided_slice %257 {offsets = [0, 0], sizes = [16, 32], strides = [1, 1]} : vector<32x32xf32> to vector<16x32xf32>
    %267 = vector.extract_strided_slice %264 {offsets = [0, 0], sizes = [16, 32], strides = [1, 1]} : vector<32x32xf32> to vector<16x32xf32>
    %268 = vector.extract_strided_slice %265 {offsets = [0, 0], sizes = [16, 8], strides = [1, 1]} : vector<16x32xf32> to vector<16x8xf32>
    %269 = vector.extract_strided_slice %266 {offsets = [0, 0], sizes = [16, 8], strides = [1, 1]} : vector<16x32xf32> to vector<16x8xf32>
    %cst_111 = arith.constant dense<0.000000e+00> : vector<16x16xf32>
    %270 = tpu.matmul %268, %269, %cst_111 {dimension_numbers = #tpu.dot_dimension_numbers<[1], [1], [0], [0], [0, 0, 1, 0], [], []>} : vector<16x8xf32>, vector<16x8xf32>, vector<16x16xf32> -> vector<16x16xf32>
    %cst_112 = arith.constant dense<0xFF800000> : vector<16xf32>
    %271 = vector.multi_reduction <maximumf>, %270, %cst_112 [1] : vector<16x16xf32> to vector<16xf32>
    %272 = vector.shape_cast %271 : vector<16xf32> to vector<16x1xf32>
    %273 = vector.broadcast %272 : vector<16x1xf32> to vector<16x16xf32>
    %274 = arith.subf %270, %273 : vector<16x16xf32>
    %275 = math.exp %274 : vector<16x16xf32>
    %cst_113 = arith.constant dense<0.000000e+00> : vector<16xf32>
    %276 = vector.multi_reduction <add>, %275, %cst_113 [1] : vector<16x16xf32> to vector<16xf32>
    %277 = vector.shape_cast %276 : vector<16xf32> to vector<16x1xf32>
    %278 = tpu.reciprocal %277 {approx = true} : vector<16x1xf32> -> vector<16x1xf32>
    %279 = vector.broadcast %278 : vector<16x1xf32> to vector<16x16xf32>
    %280 = arith.mulf %275, %279 : vector<16x16xf32>
    %281 = vector.extract_strided_slice %267 {offsets = [0, 0], sizes = [16, 8], strides = [1, 1]} : vector<16x32xf32> to vector<16x8xf32>
    %cst_114 = arith.constant dense<0.000000e+00> : vector<16x8xf32>
    %282 = tpu.matmul %280, %281, %cst_114 {dimension_numbers = #tpu.dot_dimension_numbers<[1], [0], [0], [1], [0, 0, 1, 1], [], []>} : vector<16x16xf32>, vector<16x8xf32>, vector<16x8xf32> -> vector<16x8xf32>
    %283 = vector.extract_strided_slice %265 {offsets = [0, 8], sizes = [16, 8], strides = [1, 1]} : vector<16x32xf32> to vector<16x8xf32>
    %284 = vector.extract_strided_slice %266 {offsets = [0, 8], sizes = [16, 8], strides = [1, 1]} : vector<16x32xf32> to vector<16x8xf32>
    %cst_115 = arith.constant dense<0.000000e+00> : vector<16x16xf32>
    %285 = tpu.matmul %283, %284, %cst_115 {dimension_numbers = #tpu.dot_dimension_numbers<[1], [1], [0], [0], [0, 0, 1, 0], [], []>} : vector<16x8xf32>, vector<16x8xf32>, vector<16x16xf32> -> vector<16x16xf32>
    %cst_116 = arith.constant dense<0xFF800000> : vector<16xf32>
    %286 = vector.multi_reduction <maximumf>, %285, %cst_116 [1] : vector<16x16xf32> to vector<16xf32>
    %287 = vector.shape_cast %286 : vector<16xf32> to vector<16x1xf32>
    %288 = vector.broadcast %287 : vector<16x1xf32> to vector<16x16xf32>
    %289 = arith.subf %285, %288 : vector<16x16xf32>
    %290 = math.exp %289 : vector<16x16xf32>
    %cst_117 = arith.constant dense<0.000000e+00> : vector<16xf32>
    %291 = vector.multi_reduction <add>, %290, %cst_117 [1] : vector<16x16xf32> to vector<16xf32>
    %292 = vector.shape_cast %291 : vector<16xf32> to vector<16x1xf32>
    %293 = tpu.reciprocal %292 {approx = true} : vector<16x1xf32> -> vector<16x1xf32>
    %294 = vector.broadcast %293 : vector<16x1xf32> to vector<16x16xf32>
    %295 = arith.mulf %290, %294 : vector<16x16xf32>
    %296 = vector.extract_strided_slice %267 {offsets = [0, 8], sizes = [16, 8], strides = [1, 1]} : vector<16x32xf32> to vector<16x8xf32>
    %cst_118 = arith.constant dense<0.000000e+00> : vector<16x8xf32>
    %297 = tpu.matmul %295, %296, %cst_118 {dimension_numbers = #tpu.dot_dimension_numbers<[1], [0], [0], [1], [0, 0, 1, 1], [], []>} : vector<16x16xf32>, vector<16x8xf32>, vector<16x8xf32> -> vector<16x8xf32>
    %298 = vector.extract_strided_slice %265 {offsets = [0, 16], sizes = [16, 8], strides = [1, 1]} : vector<16x32xf32> to vector<16x8xf32>
    %299 = vector.extract_strided_slice %266 {offsets = [0, 16], sizes = [16, 8], strides = [1, 1]} : vector<16x32xf32> to vector<16x8xf32>
    %cst_119 = arith.constant dense<0.000000e+00> : vector<16x16xf32>
    %300 = tpu.matmul %298, %299, %cst_119 {dimension_numbers = #tpu.dot_dimension_numbers<[1], [1], [0], [0], [0, 0, 1, 0], [], []>} : vector<16x8xf32>, vector<16x8xf32>, vector<16x16xf32> -> vector<16x16xf32>
    %cst_120 = arith.constant dense<0xFF800000> : vector<16xf32>
    %301 = vector.multi_reduction <maximumf>, %300, %cst_120 [1] : vector<16x16xf32> to vector<16xf32>
    %302 = vector.shape_cast %301 : vector<16xf32> to vector<16x1xf32>
    %303 = vector.broadcast %302 : vector<16x1xf32> to vector<16x16xf32>
    %304 = arith.subf %300, %303 : vector<16x16xf32>
    %305 = math.exp %304 : vector<16x16xf32>
    %cst_121 = arith.constant dense<0.000000e+00> : vector<16xf32>
    %306 = vector.multi_reduction <add>, %305, %cst_121 [1] : vector<16x16xf32> to vector<16xf32>
    %307 = vector.shape_cast %306 : vector<16xf32> to vector<16x1xf32>
    %308 = tpu.reciprocal %307 {approx = true} : vector<16x1xf32> -> vector<16x1xf32>
    %309 = vector.broadcast %308 : vector<16x1xf32> to vector<16x16xf32>
    %310 = arith.mulf %305, %309 : vector<16x16xf32>
    %311 = vector.extract_strided_slice %267 {offsets = [0, 16], sizes = [16, 8], strides = [1, 1]} : vector<16x32xf32> to vector<16x8xf32>
    %cst_122 = arith.constant dense<0.000000e+00> : vector<16x8xf32>
    %312 = tpu.matmul %310, %311, %cst_122 {dimension_numbers = #tpu.dot_dimension_numbers<[1], [0], [0], [1], [0, 0, 1, 1], [], []>} : vector<16x16xf32>, vector<16x8xf32>, vector<16x8xf32> -> vector<16x8xf32>
    %313 = vector.extract_strided_slice %265 {offsets = [0, 24], sizes = [16, 8], strides = [1, 1]} : vector<16x32xf32> to vector<16x8xf32>
    %314 = vector.extract_strided_slice %266 {offsets = [0, 24], sizes = [16, 8], strides = [1, 1]} : vector<16x32xf32> to vector<16x8xf32>
    %cst_123 = arith.constant dense<0.000000e+00> : vector<16x16xf32>
    %315 = tpu.matmul %313, %314, %cst_123 {dimension_numbers = #tpu.dot_dimension_numbers<[1], [1], [0], [0], [0, 0, 1, 0], [], []>} : vector<16x8xf32>, vector<16x8xf32>, vector<16x16xf32> -> vector<16x16xf32>
    %cst_124 = arith.constant dense<0xFF800000> : vector<16xf32>
    %316 = vector.multi_reduction <maximumf>, %315, %cst_124 [1] : vector<16x16xf32> to vector<16xf32>
    %317 = vector.shape_cast %316 : vector<16xf32> to vector<16x1xf32>
    %318 = vector.broadcast %317 : vector<16x1xf32> to vector<16x16xf32>
    %319 = arith.subf %315, %318 : vector<16x16xf32>
    %320 = math.exp %319 : vector<16x16xf32>
    %cst_125 = arith.constant dense<0.000000e+00> : vector<16xf32>
    %321 = vector.multi_reduction <add>, %320, %cst_125 [1] : vector<16x16xf32> to vector<16xf32>
    %322 = vector.shape_cast %321 : vector<16xf32> to vector<16x1xf32>
    %323 = tpu.reciprocal %322 {approx = true} : vector<16x1xf32> -> vector<16x1xf32>
    %324 = vector.broadcast %323 : vector<16x1xf32> to vector<16x16xf32>
    %325 = arith.mulf %320, %324 : vector<16x16xf32>
    %326 = vector.extract_strided_slice %267 {offsets = [0, 24], sizes = [16, 8], strides = [1, 1]} : vector<16x32xf32> to vector<16x8xf32>
    %cst_126 = arith.constant dense<0.000000e+00> : vector<16x8xf32>
    %327 = tpu.matmul %325, %326, %cst_126 {dimension_numbers = #tpu.dot_dimension_numbers<[1], [0], [0], [1], [0, 0, 1, 1], [], []>} : vector<16x16xf32>, vector<16x8xf32>, vector<16x8xf32> -> vector<16x8xf32>
    %328 = tpu.concatenate %282, %297, %312, %327 in 1 : vector<16x8xf32>, vector<16x8xf32>, vector<16x8xf32>, vector<16x8xf32> -> vector<16x32xf32>
    %329 = vector.extract_strided_slice %250 {offsets = [16, 0], sizes = [16, 32], strides = [1, 1]} : vector<32x32xf32> to vector<16x32xf32>
    %330 = vector.extract_strided_slice %257 {offsets = [16, 0], sizes = [16, 32], strides = [1, 1]} : vector<32x32xf32> to vector<16x32xf32>
    %331 = vector.extract_strided_slice %264 {offsets = [16, 0], sizes = [16, 32], strides = [1, 1]} : vector<32x32xf32> to vector<16x32xf32>
    %332 = vector.extract_strided_slice %329 {offsets = [0, 0], sizes = [16, 8], strides = [1, 1]} : vector<16x32xf32> to vector<16x8xf32>
    %333 = vector.extract_strided_slice %330 {offsets = [0, 0], sizes = [16, 8], strides = [1, 1]} : vector<16x32xf32> to vector<16x8xf32>
    %cst_127 = arith.constant dense<0.000000e+00> : vector<16x16xf32>
    %334 = tpu.matmul %332, %333, %cst_127 {dimension_numbers = #tpu.dot_dimension_numbers<[1], [1], [0], [0], [0, 0, 1, 0], [], []>} : vector<16x8xf32>, vector<16x8xf32>, vector<16x16xf32> -> vector<16x16xf32>
    %cst_128 = arith.constant dense<0xFF800000> : vector<16xf32>
    %335 = vector.multi_reduction <maximumf>, %334, %cst_128 [1] : vector<16x16xf32> to vector<16xf32>
    %336 = vector.shape_cast %335 : vector<16xf32> to vector<16x1xf32>
    %337 = vector.broadcast %336 : vector<16x1xf32> to vector<16x16xf32>
    %338 = arith.subf %334, %337 : vector<16x16xf32>
    %339 = math.exp %338 : vector<16x16xf32>
    %cst_129 = arith.constant dense<0.000000e+00> : vector<16xf32>
    %340 = vector.multi_reduction <add>, %339, %cst_129 [1] : vector<16x16xf32> to vector<16xf32>
    %341 = vector.shape_cast %340 : vector<16xf32> to vector<16x1xf32>
    %342 = tpu.reciprocal %341 {approx = true} : vector<16x1xf32> -> vector<16x1xf32>
    %343 = vector.broadcast %342 : vector<16x1xf32> to vector<16x16xf32>
    %344 = arith.mulf %339, %343 : vector<16x16xf32>
    %345 = vector.extract_strided_slice %331 {offsets = [0, 0], sizes = [16, 8], strides = [1, 1]} : vector<16x32xf32> to vector<16x8xf32>
    %cst_130 = arith.constant dense<0.000000e+00> : vector<16x8xf32>
    %346 = tpu.matmul %344, %345, %cst_130 {dimension_numbers = #tpu.dot_dimension_numbers<[1], [0], [0], [1], [0, 0, 1, 1], [], []>} : vector<16x16xf32>, vector<16x8xf32>, vector<16x8xf32> -> vector<16x8xf32>
    %347 = vector.extract_strided_slice %329 {offsets = [0, 8], sizes = [16, 8], strides = [1, 1]} : vector<16x32xf32> to vector<16x8xf32>
    %348 = vector.extract_strided_slice %330 {offsets = [0, 8], sizes = [16, 8], strides = [1, 1]} : vector<16x32xf32> to vector<16x8xf32>
    %cst_131 = arith.constant dense<0.000000e+00> : vector<16x16xf32>
    %349 = tpu.matmul %347, %348, %cst_131 {dimension_numbers = #tpu.dot_dimension_numbers<[1], [1], [0], [0], [0, 0, 1, 0], [], []>} : vector<16x8xf32>, vector<16x8xf32>, vector<16x16xf32> -> vector<16x16xf32>
    %cst_132 = arith.constant dense<0xFF800000> : vector<16xf32>
    %350 = vector.multi_reduction <maximumf>, %349, %cst_132 [1] : vector<16x16xf32> to vector<16xf32>
    %351 = vector.shape_cast %350 : vector<16xf32> to vector<16x1xf32>
    %352 = vector.broadcast %351 : vector<16x1xf32> to vector<16x16xf32>
    %353 = arith.subf %349, %352 : vector<16x16xf32>
    %354 = math.exp %353 : vector<16x16xf32>
    %cst_133 = arith.constant dense<0.000000e+00> : vector<16xf32>
    %355 = vector.multi_reduction <add>, %354, %cst_133 [1] : vector<16x16xf32> to vector<16xf32>
    %356 = vector.shape_cast %355 : vector<16xf32> to vector<16x1xf32>
    %357 = tpu.reciprocal %356 {approx = true} : vector<16x1xf32> -> vector<16x1xf32>
    %358 = vector.broadcast %357 : vector<16x1xf32> to vector<16x16xf32>
    %359 = arith.mulf %354, %358 : vector<16x16xf32>
    %360 = vector.extract_strided_slice %331 {offsets = [0, 8], sizes = [16, 8], strides = [1, 1]} : vector<16x32xf32> to vector<16x8xf32>
    %cst_134 = arith.constant dense<0.000000e+00> : vector<16x8xf32>
    %361 = tpu.matmul %359, %360, %cst_134 {dimension_numbers = #tpu.dot_dimension_numbers<[1], [0], [0], [1], [0, 0, 1, 1], [], []>} : vector<16x16xf32>, vector<16x8xf32>, vector<16x8xf32> -> vector<16x8xf32>
    %362 = vector.extract_strided_slice %329 {offsets = [0, 16], sizes = [16, 8], strides = [1, 1]} : vector<16x32xf32> to vector<16x8xf32>
    %363 = vector.extract_strided_slice %330 {offsets = [0, 16], sizes = [16, 8], strides = [1, 1]} : vector<16x32xf32> to vector<16x8xf32>
    %cst_135 = arith.constant dense<0.000000e+00> : vector<16x16xf32>
    %364 = tpu.matmul %362, %363, %cst_135 {dimension_numbers = #tpu.dot_dimension_numbers<[1], [1], [0], [0], [0, 0, 1, 0], [], []>} : vector<16x8xf32>, vector<16x8xf32>, vector<16x16xf32> -> vector<16x16xf32>
    %cst_136 = arith.constant dense<0xFF800000> : vector<16xf32>
    %365 = vector.multi_reduction <maximumf>, %364, %cst_136 [1] : vector<16x16xf32> to vector<16xf32>
    %366 = vector.shape_cast %365 : vector<16xf32> to vector<16x1xf32>
    %367 = vector.broadcast %366 : vector<16x1xf32> to vector<16x16xf32>
    %368 = arith.subf %364, %367 : vector<16x16xf32>
    %369 = math.exp %368 : vector<16x16xf32>
    %cst_137 = arith.constant dense<0.000000e+00> : vector<16xf32>
    %370 = vector.multi_reduction <add>, %369, %cst_137 [1] : vector<16x16xf32> to vector<16xf32>
    %371 = vector.shape_cast %370 : vector<16xf32> to vector<16x1xf32>
    %372 = tpu.reciprocal %371 {approx = true} : vector<16x1xf32> -> vector<16x1xf32>
    %373 = vector.broadcast %372 : vector<16x1xf32> to vector<16x16xf32>
    %374 = arith.mulf %369, %373 : vector<16x16xf32>
    %375 = vector.extract_strided_slice %331 {offsets = [0, 16], sizes = [16, 8], strides = [1, 1]} : vector<16x32xf32> to vector<16x8xf32>
    %cst_138 = arith.constant dense<0.000000e+00> : vector<16x8xf32>
    %376 = tpu.matmul %374, %375, %cst_138 {dimension_numbers = #tpu.dot_dimension_numbers<[1], [0], [0], [1], [0, 0, 1, 1], [], []>} : vector<16x16xf32>, vector<16x8xf32>, vector<16x8xf32> -> vector<16x8xf32>
    %377 = vector.extract_strided_slice %329 {offsets = [0, 24], sizes = [16, 8], strides = [1, 1]} : vector<16x32xf32> to vector<16x8xf32>
    %378 = vector.extract_strided_slice %330 {offsets = [0, 24], sizes = [16, 8], strides = [1, 1]} : vector<16x32xf32> to vector<16x8xf32>
    %cst_139 = arith.constant dense<0.000000e+00> : vector<16x16xf32>
    %379 = tpu.matmul %377, %378, %cst_139 {dimension_numbers = #tpu.dot_dimension_numbers<[1], [1], [0], [0], [0, 0, 1, 0], [], []>} : vector<16x8xf32>, vector<16x8xf32>, vector<16x16xf32> -> vector<16x16xf32>
    %cst_140 = arith.constant dense<0xFF800000> : vector<16xf32>
    %380 = vector.multi_reduction <maximumf>, %379, %cst_140 [1] : vector<16x16xf32> to vector<16xf32>
    %381 = vector.shape_cast %380 : vector<16xf32> to vector<16x1xf32>
    %382 = vector.broadcast %381 : vector<16x1xf32> to vector<16x16xf32>
    %383 = arith.subf %379, %382 : vector<16x16xf32>
    %384 = math.exp %383 : vector<16x16xf32>
    %cst_141 = arith.constant dense<0.000000e+00> : vector<16xf32>
    %385 = vector.multi_reduction <add>, %384, %cst_141 [1] : vector<16x16xf32> to vector<16xf32>
    %386 = vector.shape_cast %385 : vector<16xf32> to vector<16x1xf32>
    %387 = tpu.reciprocal %386 {approx = true} : vector<16x1xf32> -> vector<16x1xf32>
    %388 = vector.broadcast %387 : vector<16x1xf32> to vector<16x16xf32>
    %389 = arith.mulf %384, %388 : vector<16x16xf32>
    %390 = vector.extract_strided_slice %331 {offsets = [0, 24], sizes = [16, 8], strides = [1, 1]} : vector<16x32xf32> to vector<16x8xf32>
    %cst_142 = arith.constant dense<0.000000e+00> : vector<16x8xf32>
    %391 = tpu.matmul %389, %390, %cst_142 {dimension_numbers = #tpu.dot_dimension_numbers<[1], [0], [0], [1], [0, 0, 1, 1], [], []>} : vector<16x16xf32>, vector<16x8xf32>, vector<16x8xf32> -> vector<16x8xf32>
    %392 = tpu.concatenate %346, %361, %376, %391 in 1 : vector<16x8xf32>, vector<16x8xf32>, vector<16x8xf32>, vector<16x8xf32> -> vector<16x32xf32>
    %393 = tpu.concatenate %328, %392 in 0 : vector<16x32xf32>, vector<16x32xf32> -> vector<32x32xf32>
    %cst_143 = arith.constant dense<0.000000e+00> : vector<32x32xf32>
    %394 = tpu.matmul %393, %241, %cst_143 {dimension_numbers = #tpu.dot_dimension_numbers<[1], [0], [0], [1], [0, 0, 1, 1], [], []>} : vector<32x32xf32>, vector<32x32xf32>, vector<32x32xf32> -> vector<32x32xf32>
    %395 = vector.broadcast %243 : vector<1x32xf32> to vector<32x32xf32>
    %396 = arith.addf %394, %395 : vector<32x32xf32>
    %c1_144 = arith.constant 1 : index
    %c0_145 = arith.constant 0 : index
    %c0_146 = arith.constant 0 : index
    %c0_147 = arith.constant 0 : index
    %397 = vector.load %arg11[%c1_144, %c0_145, %c0_146, %c0_147] : memref<2x2x1x32xf32, #tpu.memory_space<vmem>>, vector<1x1x1x32xf32>
    %398 = vector.shape_cast %397 : vector<1x1x1x32xf32> to vector<1x32xf32>
    %c1_148 = arith.constant 1 : index
    %c0_149 = arith.constant 0 : index
    %c0_150 = arith.constant 0 : index
    %c0_151 = arith.constant 0 : index
    %399 = vector.load %arg12[%c1_148, %c0_149, %c0_150, %c0_151] : memref<2x2x1x32xf32, #tpu.memory_space<vmem>>, vector<1x1x1x32xf32>
    %400 = vector.shape_cast %399 : vector<1x1x1x32xf32> to vector<1x32xf32>
    %401 = arith.addf %234, %396 : vector<32x32xf32>
    %cst_152 = arith.constant dense<0.000000e+00> : vector<32xf32>
    %402 = vector.multi_reduction <add>, %401, %cst_152 [1] : vector<32x32xf32> to vector<32xf32>
    %403 = vector.shape_cast %402 : vector<32xf32> to vector<32x1xf32>
    %cst_153 = arith.constant 3.200000e+01 : f32
    %404 = vector.broadcast %cst_153 : f32 to vector<32x1xf32>
    %405 = arith.divf %403, %404 : vector<32x1xf32>
    %406 = vector.broadcast %405 : vector<32x1xf32> to vector<32x32xf32>
    %407 = arith.subf %401, %406 : vector<32x32xf32>
    %408 = arith.mulf %407, %407 : vector<32x32xf32>
    %cst_154 = arith.constant dense<0.000000e+00> : vector<32xf32>
    %409 = vector.multi_reduction <add>, %408, %cst_154 [1] : vector<32x32xf32> to vector<32xf32>
    %410 = vector.shape_cast %409 : vector<32xf32> to vector<32x1xf32>
    %cst_155 = arith.constant 3.200000e+01 : f32
    %411 = vector.broadcast %cst_155 : f32 to vector<32x1xf32>
    %412 = arith.divf %410, %411 : vector<32x1xf32>
    %413 = vector.broadcast %405 : vector<32x1xf32> to vector<32x32xf32>
    %414 = arith.subf %401, %413 : vector<32x32xf32>
    %cst_156 = arith.constant 9.99999974E-6 : f32
    %415 = vector.broadcast %cst_156 : f32 to vector<32x1xf32>
    %416 = arith.addf %412, %415 : vector<32x1xf32>
    %417 = math.rsqrt %416 : vector<32x1xf32>
    %418 = vector.broadcast %417 : vector<32x1xf32> to vector<32x32xf32>
    %419 = arith.mulf %414, %418 : vector<32x32xf32>
    %420 = vector.broadcast %398 : vector<1x32xf32> to vector<32x32xf32>
    %421 = arith.mulf %419, %420 : vector<32x32xf32>
    %422 = vector.broadcast %400 : vector<1x32xf32> to vector<32x32xf32>
    %423 = arith.addf %421, %422 : vector<32x32xf32>
    %c1_157 = arith.constant 1 : index
    %c0_158 = arith.constant 0 : index
    %c0_159 = arith.constant 0 : index
    %424 = vector.load %arg7[%c1_157, %c0_158, %c0_159] : memref<2x32x64xf32, #tpu.memory_space<vmem>>, vector<1x32x64xf32>
    %425 = vector.shape_cast %424 : vector<1x32x64xf32> to vector<32x64xf32>
    %cst_160 = arith.constant dense<0.000000e+00> : vector<32x64xf32>
    %426 = tpu.matmul %423, %425, %cst_160 {dimension_numbers = #tpu.dot_dimension_numbers<[1], [0], [0], [1], [0, 0, 1, 1], [], []>} : vector<32x32xf32>, vector<32x64xf32>, vector<32x64xf32> -> vector<32x64xf32>
    %c1_161 = arith.constant 1 : index
    %c0_162 = arith.constant 0 : index
    %c0_163 = arith.constant 0 : index
    %427 = vector.load %arg8[%c1_161, %c0_162, %c0_163] : memref<2x1x64xf32, #tpu.memory_space<vmem>>, vector<1x1x64xf32>
    %428 = vector.shape_cast %427 : vector<1x1x64xf32> to vector<1x64xf32>
    %429 = vector.broadcast %428 : vector<1x64xf32> to vector<32x64xf32>
    %430 = arith.addf %426, %429 : vector<32x64xf32>
    %cst_164 = arith.constant 0.000000e+00 : f32
    %431 = vector.broadcast %cst_164 : f32 to vector<32x64xf32>
    %432 = arith.maximumf %430, %431 : vector<32x64xf32>
    %c1_165 = arith.constant 1 : index
    %c0_166 = arith.constant 0 : index
    %c0_167 = arith.constant 0 : index
    %433 = vector.load %arg9[%c1_165, %c0_166, %c0_167] : memref<2x64x32xf32, #tpu.memory_space<vmem>>, vector<1x64x32xf32>
    %434 = vector.shape_cast %433 : vector<1x64x32xf32> to vector<64x32xf32>
    %cst_168 = arith.constant dense<0.000000e+00> : vector<32x32xf32>
    %435 = tpu.matmul %432, %434, %cst_168 {dimension_numbers = #tpu.dot_dimension_numbers<[1], [0], [0], [1], [0, 0, 1, 1], [], []>} : vector<32x64xf32>, vector<64x32xf32>, vector<32x32xf32> -> vector<32x32xf32>
    %c1_169 = arith.constant 1 : index
    %c0_170 = arith.constant 0 : index
    %c0_171 = arith.constant 0 : index
    %436 = vector.load %arg10[%c1_169, %c0_170, %c0_171] : memref<2x1x32xf32, #tpu.memory_space<vmem>>, vector<1x1x32xf32>
    %437 = vector.shape_cast %436 : vector<1x1x32xf32> to vector<1x32xf32>
    %438 = vector.broadcast %437 : vector<1x32xf32> to vector<32x32xf32>
    %439 = arith.addf %435, %438 : vector<32x32xf32>
    %c1_172 = arith.constant 1 : index
    %c1_173 = arith.constant 1 : index
    %c0_174 = arith.constant 0 : index
    %c0_175 = arith.constant 0 : index
    %440 = vector.load %arg11[%c1_172, %c1_173, %c0_174, %c0_175] : memref<2x2x1x32xf32, #tpu.memory_space<vmem>>, vector<1x1x1x32xf32>
    %441 = vector.shape_cast %440 : vector<1x1x1x32xf32> to vector<1x32xf32>
    %c1_176 = arith.constant 1 : index
    %c1_177 = arith.constant 1 : index
    %c0_178 = arith.constant 0 : index
    %c0_179 = arith.constant 0 : index
    %442 = vector.load %arg12[%c1_176, %c1_177, %c0_178, %c0_179] : memref<2x2x1x32xf32, #tpu.memory_space<vmem>>, vector<1x1x1x32xf32>
    %443 = vector.shape_cast %442 : vector<1x1x1x32xf32> to vector<1x32xf32>
    %444 = arith.addf %423, %439 : vector<32x32xf32>
    %cst_180 = arith.constant dense<0.000000e+00> : vector<32xf32>
    %445 = vector.multi_reduction <add>, %444, %cst_180 [1] : vector<32x32xf32> to vector<32xf32>
    %446 = vector.shape_cast %445 : vector<32xf32> to vector<32x1xf32>
    %cst_181 = arith.constant 3.200000e+01 : f32
    %447 = vector.broadcast %cst_181 : f32 to vector<32x1xf32>
    %448 = arith.divf %446, %447 : vector<32x1xf32>
    %449 = vector.broadcast %448 : vector<32x1xf32> to vector<32x32xf32>
    %450 = arith.subf %444, %449 : vector<32x32xf32>
    %451 = arith.mulf %450, %450 : vector<32x32xf32>
    %cst_182 = arith.constant dense<0.000000e+00> : vector<32xf32>
    %452 = vector.multi_reduction <add>, %451, %cst_182 [1] : vector<32x32xf32> to vector<32xf32>
    %453 = vector.shape_cast %452 : vector<32xf32> to vector<32x1xf32>
    %cst_183 = arith.constant 3.200000e+01 : f32
    %454 = vector.broadcast %cst_183 : f32 to vector<32x1xf32>
    %455 = arith.divf %453, %454 : vector<32x1xf32>
    %456 = vector.broadcast %448 : vector<32x1xf32> to vector<32x32xf32>
    %457 = arith.subf %444, %456 : vector<32x32xf32>
    %cst_184 = arith.constant 9.99999974E-6 : f32
    %458 = vector.broadcast %cst_184 : f32 to vector<32x1xf32>
    %459 = arith.addf %455, %458 : vector<32x1xf32>
    %460 = math.rsqrt %459 : vector<32x1xf32>
    %461 = vector.broadcast %460 : vector<32x1xf32> to vector<32x32xf32>
    %462 = arith.mulf %457, %461 : vector<32x32xf32>
    %463 = vector.broadcast %441 : vector<1x32xf32> to vector<32x32xf32>
    %464 = arith.mulf %462, %463 : vector<32x32xf32>
    %465 = vector.broadcast %443 : vector<1x32xf32> to vector<32x32xf32>
    %466 = arith.addf %464, %465 : vector<32x32xf32>
    %467 = tpu.concatenate %2, %2 in 0 : vector<8x32xf32>, vector<8x32xf32> -> vector<16x32xf32>
    %cst_185 = arith.constant 0.000000e+00 : f32
    %468 = vector.broadcast %cst_185 : f32 to vector<16x32xf32>
    %469 = arith.addf %466, %1 : vector<32x32xf32>
    %470 = arith.addf %468, %467 : vector<16x32xf32>
    %c0_186 = arith.constant 0 : index
    %c0_187 = arith.constant 0 : index
    %c0_188 = arith.constant 0 : index
    %c0_189 = arith.constant 0 : index
    %471 = vector.load %arg13[%c0_186, %c0_187, %c0_188, %c0_189] : memref<2x3x32x32xf32, #tpu.memory_space<vmem>>, vector<1x3x32x32xf32>
    %472 = vector.shape_cast %471 : vector<1x3x32x32xf32> to vector<3x32x32xf32>
    %c0_190 = arith.constant 0 : index
    %c0_191 = arith.constant 0 : index
    %c0_192 = arith.constant 0 : index
    %c0_193 = arith.constant 0 : index
    %473 = vector.load %arg14[%c0_190, %c0_191, %c0_192, %c0_193] : memref<2x3x1x32xf32, #tpu.memory_space<vmem>>, vector<1x3x1x32xf32>
    %474 = vector.shape_cast %473 : vector<1x3x1x32xf32> to vector<3x1x32xf32>
    %c0_194 = arith.constant 0 : index
    %c0_195 = arith.constant 0 : index
    %c0_196 = arith.constant 0 : index
    %475 = vector.load %arg15[%c0_194, %c0_195, %c0_196] : memref<2x32x32xf32, #tpu.memory_space<vmem>>, vector<1x32x32xf32>
    %476 = vector.shape_cast %475 : vector<1x32x32xf32> to vector<32x32xf32>
    %c0_197 = arith.constant 0 : index
    %c0_198 = arith.constant 0 : index
    %c0_199 = arith.constant 0 : index
    %477 = vector.load %arg16[%c0_197, %c0_198, %c0_199] : memref<2x1x32xf32, #tpu.memory_space<vmem>>, vector<1x1x32xf32>
    %478 = vector.shape_cast %477 : vector<1x1x32xf32> to vector<1x32xf32>
    %479 = vector.extract_strided_slice %472 {offsets = [0, 0, 0], sizes = [1, 32, 32], strides = [1, 1, 1]} : vector<3x32x32xf32> to vector<1x32x32xf32>
    %480 = vector.shape_cast %479 : vector<1x32x32xf32> to vector<32x32xf32>
    %cst_200 = arith.constant dense<0.000000e+00> : vector<16x32xf32>
    %481 = tpu.matmul %470, %480, %cst_200 {dimension_numbers = #tpu.dot_dimension_numbers<[1], [0], [0], [1], [0, 0, 1, 1], [], []>} : vector<16x32xf32>, vector<32x32xf32>, vector<16x32xf32> -> vector<16x32xf32>
    %482 = vector.extract_strided_slice %474 {offsets = [0, 0, 0], sizes = [1, 1, 32], strides = [1, 1, 1]} : vector<3x1x32xf32> to vector<1x1x32xf32>
    %483 = vector.shape_cast %482 : vector<1x1x32xf32> to vector<1x32xf32>
    %484 = vector.broadcast %483 : vector<1x32xf32> to vector<16x32xf32>
    %485 = arith.addf %481, %484 : vector<16x32xf32>
    %486 = vector.extract_strided_slice %472 {offsets = [1, 0, 0], sizes = [1, 32, 32], strides = [1, 1, 1]} : vector<3x32x32xf32> to vector<1x32x32xf32>
    %487 = vector.shape_cast %486 : vector<1x32x32xf32> to vector<32x32xf32>
    %cst_201 = arith.constant dense<0.000000e+00> : vector<16x32xf32>
    %488 = tpu.matmul %470, %487, %cst_201 {dimension_numbers = #tpu.dot_dimension_numbers<[1], [0], [0], [1], [0, 0, 1, 1], [], []>} : vector<16x32xf32>, vector<32x32xf32>, vector<16x32xf32> -> vector<16x32xf32>
    %489 = vector.extract_strided_slice %474 {offsets = [1, 0, 0], sizes = [1, 1, 32], strides = [1, 1, 1]} : vector<3x1x32xf32> to vector<1x1x32xf32>
    %490 = vector.shape_cast %489 : vector<1x1x32xf32> to vector<1x32xf32>
    %491 = vector.broadcast %490 : vector<1x32xf32> to vector<16x32xf32>
    %492 = arith.addf %488, %491 : vector<16x32xf32>
    %493 = vector.extract_strided_slice %472 {offsets = [2, 0, 0], sizes = [1, 32, 32], strides = [1, 1, 1]} : vector<3x32x32xf32> to vector<1x32x32xf32>
    %494 = vector.shape_cast %493 : vector<1x32x32xf32> to vector<32x32xf32>
    %cst_202 = arith.constant dense<0.000000e+00> : vector<16x32xf32>
    %495 = tpu.matmul %468, %494, %cst_202 {dimension_numbers = #tpu.dot_dimension_numbers<[1], [0], [0], [1], [0, 0, 1, 1], [], []>} : vector<16x32xf32>, vector<32x32xf32>, vector<16x32xf32> -> vector<16x32xf32>
    %496 = vector.extract_strided_slice %474 {offsets = [2, 0, 0], sizes = [1, 1, 32], strides = [1, 1, 1]} : vector<3x1x32xf32> to vector<1x1x32xf32>
    %497 = vector.shape_cast %496 : vector<1x1x32xf32> to vector<1x32xf32>
    %498 = vector.broadcast %497 : vector<1x32xf32> to vector<16x32xf32>
    %499 = arith.addf %495, %498 : vector<16x32xf32>
    %500 = vector.extract_strided_slice %485 {offsets = [0, 0], sizes = [8, 32], strides = [1, 1]} : vector<16x32xf32> to vector<8x32xf32>
    %501 = vector.extract_strided_slice %492 {offsets = [0, 0], sizes = [8, 32], strides = [1, 1]} : vector<16x32xf32> to vector<8x32xf32>
    %502 = vector.extract_strided_slice %499 {offsets = [0, 0], sizes = [8, 32], strides = [1, 1]} : vector<16x32xf32> to vector<8x32xf32>
    %503 = vector.extract_strided_slice %500 {offsets = [0, 0], sizes = [8, 8], strides = [1, 1]} : vector<8x32xf32> to vector<8x8xf32>
    %504 = vector.extract_strided_slice %501 {offsets = [0, 0], sizes = [8, 8], strides = [1, 1]} : vector<8x32xf32> to vector<8x8xf32>
    %cst_203 = arith.constant dense<0.000000e+00> : vector<8x8xf32>
    %505 = tpu.matmul %503, %504, %cst_203 {dimension_numbers = #tpu.dot_dimension_numbers<[1], [1], [0], [0], [0, 0, 1, 0], [], []>} : vector<8x8xf32>, vector<8x8xf32>, vector<8x8xf32> -> vector<8x8xf32>
    %cst_204 = arith.constant dense<0xFF800000> : vector<8xf32>
    %506 = vector.multi_reduction <maximumf>, %505, %cst_204 [1] : vector<8x8xf32> to vector<8xf32>
    %507 = vector.shape_cast %506 : vector<8xf32> to vector<8x1xf32>
    %508 = vector.broadcast %507 : vector<8x1xf32> to vector<8x8xf32>
    %509 = arith.subf %505, %508 : vector<8x8xf32>
    %510 = math.exp %509 : vector<8x8xf32>
    %cst_205 = arith.constant dense<0.000000e+00> : vector<8xf32>
    %511 = vector.multi_reduction <add>, %510, %cst_205 [1] : vector<8x8xf32> to vector<8xf32>
    %512 = vector.shape_cast %511 : vector<8xf32> to vector<8x1xf32>
    %513 = tpu.reciprocal %512 {approx = true} : vector<8x1xf32> -> vector<8x1xf32>
    %514 = vector.broadcast %513 : vector<8x1xf32> to vector<8x8xf32>
    %515 = arith.mulf %510, %514 : vector<8x8xf32>
    %516 = vector.extract_strided_slice %502 {offsets = [0, 0], sizes = [8, 8], strides = [1, 1]} : vector<8x32xf32> to vector<8x8xf32>
    %cst_206 = arith.constant dense<0.000000e+00> : vector<8x8xf32>
    %517 = tpu.matmul %515, %516, %cst_206 {dimension_numbers = #tpu.dot_dimension_numbers<[1], [0], [0], [1], [0, 0, 1, 1], [], []>} : vector<8x8xf32>, vector<8x8xf32>, vector<8x8xf32> -> vector<8x8xf32>
    %518 = vector.extract_strided_slice %500 {offsets = [0, 8], sizes = [8, 8], strides = [1, 1]} : vector<8x32xf32> to vector<8x8xf32>
    %519 = vector.extract_strided_slice %501 {offsets = [0, 8], sizes = [8, 8], strides = [1, 1]} : vector<8x32xf32> to vector<8x8xf32>
    %cst_207 = arith.constant dense<0.000000e+00> : vector<8x8xf32>
    %520 = tpu.matmul %518, %519, %cst_207 {dimension_numbers = #tpu.dot_dimension_numbers<[1], [1], [0], [0], [0, 0, 1, 0], [], []>} : vector<8x8xf32>, vector<8x8xf32>, vector<8x8xf32> -> vector<8x8xf32>
    %cst_208 = arith.constant dense<0xFF800000> : vector<8xf32>
    %521 = vector.multi_reduction <maximumf>, %520, %cst_208 [1] : vector<8x8xf32> to vector<8xf32>
    %522 = vector.shape_cast %521 : vector<8xf32> to vector<8x1xf32>
    %523 = vector.broadcast %522 : vector<8x1xf32> to vector<8x8xf32>
    %524 = arith.subf %520, %523 : vector<8x8xf32>
    %525 = math.exp %524 : vector<8x8xf32>
    %cst_209 = arith.constant dense<0.000000e+00> : vector<8xf32>
    %526 = vector.multi_reduction <add>, %525, %cst_209 [1] : vector<8x8xf32> to vector<8xf32>
    %527 = vector.shape_cast %526 : vector<8xf32> to vector<8x1xf32>
    %528 = tpu.reciprocal %527 {approx = true} : vector<8x1xf32> -> vector<8x1xf32>
    %529 = vector.broadcast %528 : vector<8x1xf32> to vector<8x8xf32>
    %530 = arith.mulf %525, %529 : vector<8x8xf32>
    %531 = vector.extract_strided_slice %502 {offsets = [0, 8], sizes = [8, 8], strides = [1, 1]} : vector<8x32xf32> to vector<8x8xf32>
    %cst_210 = arith.constant dense<0.000000e+00> : vector<8x8xf32>
    %532 = tpu.matmul %530, %531, %cst_210 {dimension_numbers = #tpu.dot_dimension_numbers<[1], [0], [0], [1], [0, 0, 1, 1], [], []>} : vector<8x8xf32>, vector<8x8xf32>, vector<8x8xf32> -> vector<8x8xf32>
    %533 = vector.extract_strided_slice %500 {offsets = [0, 16], sizes = [8, 8], strides = [1, 1]} : vector<8x32xf32> to vector<8x8xf32>
    %534 = vector.extract_strided_slice %501 {offsets = [0, 16], sizes = [8, 8], strides = [1, 1]} : vector<8x32xf32> to vector<8x8xf32>
    %cst_211 = arith.constant dense<0.000000e+00> : vector<8x8xf32>
    %535 = tpu.matmul %533, %534, %cst_211 {dimension_numbers = #tpu.dot_dimension_numbers<[1], [1], [0], [0], [0, 0, 1, 0], [], []>} : vector<8x8xf32>, vector<8x8xf32>, vector<8x8xf32> -> vector<8x8xf32>
    %cst_212 = arith.constant dense<0xFF800000> : vector<8xf32>
    %536 = vector.multi_reduction <maximumf>, %535, %cst_212 [1] : vector<8x8xf32> to vector<8xf32>
    %537 = vector.shape_cast %536 : vector<8xf32> to vector<8x1xf32>
    %538 = vector.broadcast %537 : vector<8x1xf32> to vector<8x8xf32>
    %539 = arith.subf %535, %538 : vector<8x8xf32>
    %540 = math.exp %539 : vector<8x8xf32>
    %cst_213 = arith.constant dense<0.000000e+00> : vector<8xf32>
    %541 = vector.multi_reduction <add>, %540, %cst_213 [1] : vector<8x8xf32> to vector<8xf32>
    %542 = vector.shape_cast %541 : vector<8xf32> to vector<8x1xf32>
    %543 = tpu.reciprocal %542 {approx = true} : vector<8x1xf32> -> vector<8x1xf32>
    %544 = vector.broadcast %543 : vector<8x1xf32> to vector<8x8xf32>
    %545 = arith.mulf %540, %544 : vector<8x8xf32>
    %546 = vector.extract_strided_slice %502 {offsets = [0, 16], sizes = [8, 8], strides = [1, 1]} : vector<8x32xf32> to vector<8x8xf32>
    %cst_214 = arith.constant dense<0.000000e+00> : vector<8x8xf32>
    %547 = tpu.matmul %545, %546, %cst_214 {dimension_numbers = #tpu.dot_dimension_numbers<[1], [0], [0], [1], [0, 0, 1, 1], [], []>} : vector<8x8xf32>, vector<8x8xf32>, vector<8x8xf32> -> vector<8x8xf32>
    %548 = vector.extract_strided_slice %500 {offsets = [0, 24], sizes = [8, 8], strides = [1, 1]} : vector<8x32xf32> to vector<8x8xf32>
    %549 = vector.extract_strided_slice %501 {offsets = [0, 24], sizes = [8, 8], strides = [1, 1]} : vector<8x32xf32> to vector<8x8xf32>
    %cst_215 = arith.constant dense<0.000000e+00> : vector<8x8xf32>
    %550 = tpu.matmul %548, %549, %cst_215 {dimension_numbers = #tpu.dot_dimension_numbers<[1], [1], [0], [0], [0, 0, 1, 0], [], []>} : vector<8x8xf32>, vector<8x8xf32>, vector<8x8xf32> -> vector<8x8xf32>
    %cst_216 = arith.constant dense<0xFF800000> : vector<8xf32>
    %551 = vector.multi_reduction <maximumf>, %550, %cst_216 [1] : vector<8x8xf32> to vector<8xf32>
    %552 = vector.shape_cast %551 : vector<8xf32> to vector<8x1xf32>
    %553 = vector.broadcast %552 : vector<8x1xf32> to vector<8x8xf32>
    %554 = arith.subf %550, %553 : vector<8x8xf32>
    %555 = math.exp %554 : vector<8x8xf32>
    %cst_217 = arith.constant dense<0.000000e+00> : vector<8xf32>
    %556 = vector.multi_reduction <add>, %555, %cst_217 [1] : vector<8x8xf32> to vector<8xf32>
    %557 = vector.shape_cast %556 : vector<8xf32> to vector<8x1xf32>
    %558 = tpu.reciprocal %557 {approx = true} : vector<8x1xf32> -> vector<8x1xf32>
    %559 = vector.broadcast %558 : vector<8x1xf32> to vector<8x8xf32>
    %560 = arith.mulf %555, %559 : vector<8x8xf32>
    %561 = vector.extract_strided_slice %502 {offsets = [0, 24], sizes = [8, 8], strides = [1, 1]} : vector<8x32xf32> to vector<8x8xf32>
    %cst_218 = arith.constant dense<0.000000e+00> : vector<8x8xf32>
    %562 = tpu.matmul %560, %561, %cst_218 {dimension_numbers = #tpu.dot_dimension_numbers<[1], [0], [0], [1], [0, 0, 1, 1], [], []>} : vector<8x8xf32>, vector<8x8xf32>, vector<8x8xf32> -> vector<8x8xf32>
    %563 = tpu.concatenate %517, %532, %547, %562 in 1 : vector<8x8xf32>, vector<8x8xf32>, vector<8x8xf32>, vector<8x8xf32> -> vector<8x32xf32>
    %564 = vector.extract_strided_slice %485 {offsets = [8, 0], sizes = [8, 32], strides = [1, 1]} : vector<16x32xf32> to vector<8x32xf32>
    %565 = vector.extract_strided_slice %492 {offsets = [8, 0], sizes = [8, 32], strides = [1, 1]} : vector<16x32xf32> to vector<8x32xf32>
    %566 = vector.extract_strided_slice %499 {offsets = [8, 0], sizes = [8, 32], strides = [1, 1]} : vector<16x32xf32> to vector<8x32xf32>
    %567 = vector.extract_strided_slice %564 {offsets = [0, 0], sizes = [8, 8], strides = [1, 1]} : vector<8x32xf32> to vector<8x8xf32>
    %568 = vector.extract_strided_slice %565 {offsets = [0, 0], sizes = [8, 8], strides = [1, 1]} : vector<8x32xf32> to vector<8x8xf32>
    %cst_219 = arith.constant dense<0.000000e+00> : vector<8x8xf32>
    %569 = tpu.matmul %567, %568, %cst_219 {dimension_numbers = #tpu.dot_dimension_numbers<[1], [1], [0], [0], [0, 0, 1, 0], [], []>} : vector<8x8xf32>, vector<8x8xf32>, vector<8x8xf32> -> vector<8x8xf32>
    %cst_220 = arith.constant dense<0xFF800000> : vector<8xf32>
    %570 = vector.multi_reduction <maximumf>, %569, %cst_220 [1] : vector<8x8xf32> to vector<8xf32>
    %571 = vector.shape_cast %570 : vector<8xf32> to vector<8x1xf32>
    %572 = vector.broadcast %571 : vector<8x1xf32> to vector<8x8xf32>
    %573 = arith.subf %569, %572 : vector<8x8xf32>
    %574 = math.exp %573 : vector<8x8xf32>
    %cst_221 = arith.constant dense<0.000000e+00> : vector<8xf32>
    %575 = vector.multi_reduction <add>, %574, %cst_221 [1] : vector<8x8xf32> to vector<8xf32>
    %576 = vector.shape_cast %575 : vector<8xf32> to vector<8x1xf32>
    %577 = tpu.reciprocal %576 {approx = true} : vector<8x1xf32> -> vector<8x1xf32>
    %578 = vector.broadcast %577 : vector<8x1xf32> to vector<8x8xf32>
    %579 = arith.mulf %574, %578 : vector<8x8xf32>
    %580 = vector.extract_strided_slice %566 {offsets = [0, 0], sizes = [8, 8], strides = [1, 1]} : vector<8x32xf32> to vector<8x8xf32>
    %cst_222 = arith.constant dense<0.000000e+00> : vector<8x8xf32>
    %581 = tpu.matmul %579, %580, %cst_222 {dimension_numbers = #tpu.dot_dimension_numbers<[1], [0], [0], [1], [0, 0, 1, 1], [], []>} : vector<8x8xf32>, vector<8x8xf32>, vector<8x8xf32> -> vector<8x8xf32>
    %582 = vector.extract_strided_slice %564 {offsets = [0, 8], sizes = [8, 8], strides = [1, 1]} : vector<8x32xf32> to vector<8x8xf32>
    %583 = vector.extract_strided_slice %565 {offsets = [0, 8], sizes = [8, 8], strides = [1, 1]} : vector<8x32xf32> to vector<8x8xf32>
    %cst_223 = arith.constant dense<0.000000e+00> : vector<8x8xf32>
    %584 = tpu.matmul %582, %583, %cst_223 {dimension_numbers = #tpu.dot_dimension_numbers<[1], [1], [0], [0], [0, 0, 1, 0], [], []>} : vector<8x8xf32>, vector<8x8xf32>, vector<8x8xf32> -> vector<8x8xf32>
    %cst_224 = arith.constant dense<0xFF800000> : vector<8xf32>
    %585 = vector.multi_reduction <maximumf>, %584, %cst_224 [1] : vector<8x8xf32> to vector<8xf32>
    %586 = vector.shape_cast %585 : vector<8xf32> to vector<8x1xf32>
    %587 = vector.broadcast %586 : vector<8x1xf32> to vector<8x8xf32>
    %588 = arith.subf %584, %587 : vector<8x8xf32>
    %589 = math.exp %588 : vector<8x8xf32>
    %cst_225 = arith.constant dense<0.000000e+00> : vector<8xf32>
    %590 = vector.multi_reduction <add>, %589, %cst_225 [1] : vector<8x8xf32> to vector<8xf32>
    %591 = vector.shape_cast %590 : vector<8xf32> to vector<8x1xf32>
    %592 = tpu.reciprocal %591 {approx = true} : vector<8x1xf32> -> vector<8x1xf32>
    %593 = vector.broadcast %592 : vector<8x1xf32> to vector<8x8xf32>
    %594 = arith.mulf %589, %593 : vector<8x8xf32>
    %595 = vector.extract_strided_slice %566 {offsets = [0, 8], sizes = [8, 8], strides = [1, 1]} : vector<8x32xf32> to vector<8x8xf32>
    %cst_226 = arith.constant dense<0.000000e+00> : vector<8x8xf32>
    %596 = tpu.matmul %594, %595, %cst_226 {dimension_numbers = #tpu.dot_dimension_numbers<[1], [0], [0], [1], [0, 0, 1, 1], [], []>} : vector<8x8xf32>, vector<8x8xf32>, vector<8x8xf32> -> vector<8x8xf32>
    %597 = vector.extract_strided_slice %564 {offsets = [0, 16], sizes = [8, 8], strides = [1, 1]} : vector<8x32xf32> to vector<8x8xf32>
    %598 = vector.extract_strided_slice %565 {offsets = [0, 16], sizes = [8, 8], strides = [1, 1]} : vector<8x32xf32> to vector<8x8xf32>
    %cst_227 = arith.constant dense<0.000000e+00> : vector<8x8xf32>
    %599 = tpu.matmul %597, %598, %cst_227 {dimension_numbers = #tpu.dot_dimension_numbers<[1], [1], [0], [0], [0, 0, 1, 0], [], []>} : vector<8x8xf32>, vector<8x8xf32>, vector<8x8xf32> -> vector<8x8xf32>
    %cst_228 = arith.constant dense<0xFF800000> : vector<8xf32>
    %600 = vector.multi_reduction <maximumf>, %599, %cst_228 [1] : vector<8x8xf32> to vector<8xf32>
    %601 = vector.shape_cast %600 : vector<8xf32> to vector<8x1xf32>
    %602 = vector.broadcast %601 : vector<8x1xf32> to vector<8x8xf32>
    %603 = arith.subf %599, %602 : vector<8x8xf32>
    %604 = math.exp %603 : vector<8x8xf32>
    %cst_229 = arith.constant dense<0.000000e+00> : vector<8xf32>
    %605 = vector.multi_reduction <add>, %604, %cst_229 [1] : vector<8x8xf32> to vector<8xf32>
    %606 = vector.shape_cast %605 : vector<8xf32> to vector<8x1xf32>
    %607 = tpu.reciprocal %606 {approx = true} : vector<8x1xf32> -> vector<8x1xf32>
    %608 = vector.broadcast %607 : vector<8x1xf32> to vector<8x8xf32>
    %609 = arith.mulf %604, %608 : vector<8x8xf32>
    %610 = vector.extract_strided_slice %566 {offsets = [0, 16], sizes = [8, 8], strides = [1, 1]} : vector<8x32xf32> to vector<8x8xf32>
    %cst_230 = arith.constant dense<0.000000e+00> : vector<8x8xf32>
    %611 = tpu.matmul %609, %610, %cst_230 {dimension_numbers = #tpu.dot_dimension_numbers<[1], [0], [0], [1], [0, 0, 1, 1], [], []>} : vector<8x8xf32>, vector<8x8xf32>, vector<8x8xf32> -> vector<8x8xf32>
    %612 = vector.extract_strided_slice %564 {offsets = [0, 24], sizes = [8, 8], strides = [1, 1]} : vector<8x32xf32> to vector<8x8xf32>
    %613 = vector.extract_strided_slice %565 {offsets = [0, 24], sizes = [8, 8], strides = [1, 1]} : vector<8x32xf32> to vector<8x8xf32>
    %cst_231 = arith.constant dense<0.000000e+00> : vector<8x8xf32>
    %614 = tpu.matmul %612, %613, %cst_231 {dimension_numbers = #tpu.dot_dimension_numbers<[1], [1], [0], [0], [0, 0, 1, 0], [], []>} : vector<8x8xf32>, vector<8x8xf32>, vector<8x8xf32> -> vector<8x8xf32>
    %cst_232 = arith.constant dense<0xFF800000> : vector<8xf32>
    %615 = vector.multi_reduction <maximumf>, %614, %cst_232 [1] : vector<8x8xf32> to vector<8xf32>
    %616 = vector.shape_cast %615 : vector<8xf32> to vector<8x1xf32>
    %617 = vector.broadcast %616 : vector<8x1xf32> to vector<8x8xf32>
    %618 = arith.subf %614, %617 : vector<8x8xf32>
    %619 = math.exp %618 : vector<8x8xf32>
    %cst_233 = arith.constant dense<0.000000e+00> : vector<8xf32>
    %620 = vector.multi_reduction <add>, %619, %cst_233 [1] : vector<8x8xf32> to vector<8xf32>
    %621 = vector.shape_cast %620 : vector<8xf32> to vector<8x1xf32>
    %622 = tpu.reciprocal %621 {approx = true} : vector<8x1xf32> -> vector<8x1xf32>
    %623 = vector.broadcast %622 : vector<8x1xf32> to vector<8x8xf32>
    %624 = arith.mulf %619, %623 : vector<8x8xf32>
    %625 = vector.extract_strided_slice %566 {offsets = [0, 24], sizes = [8, 8], strides = [1, 1]} : vector<8x32xf32> to vector<8x8xf32>
    %cst_234 = arith.constant dense<0.000000e+00> : vector<8x8xf32>
    %626 = tpu.matmul %624, %625, %cst_234 {dimension_numbers = #tpu.dot_dimension_numbers<[1], [0], [0], [1], [0, 0, 1, 1], [], []>} : vector<8x8xf32>, vector<8x8xf32>, vector<8x8xf32> -> vector<8x8xf32>
    %627 = tpu.concatenate %581, %596, %611, %626 in 1 : vector<8x8xf32>, vector<8x8xf32>, vector<8x8xf32>, vector<8x8xf32> -> vector<8x32xf32>
    %628 = tpu.concatenate %563, %627 in 0 : vector<8x32xf32>, vector<8x32xf32> -> vector<16x32xf32>
    %cst_235 = arith.constant dense<0.000000e+00> : vector<16x32xf32>
    %629 = tpu.matmul %628, %476, %cst_235 {dimension_numbers = #tpu.dot_dimension_numbers<[1], [0], [0], [1], [0, 0, 1, 1], [], []>} : vector<16x32xf32>, vector<32x32xf32>, vector<16x32xf32> -> vector<16x32xf32>
    %630 = vector.broadcast %478 : vector<1x32xf32> to vector<16x32xf32>
    %631 = arith.addf %629, %630 : vector<16x32xf32>
    %c0_236 = arith.constant 0 : index
    %c0_237 = arith.constant 0 : index
    %c0_238 = arith.constant 0 : index
    %c0_239 = arith.constant 0 : index
    %632 = vector.load %arg25[%c0_236, %c0_237, %c0_238, %c0_239] : memref<2x3x1x32xf32, #tpu.memory_space<vmem>>, vector<1x1x1x32xf32>
    %633 = vector.shape_cast %632 : vector<1x1x1x32xf32> to vector<1x32xf32>
    %c0_240 = arith.constant 0 : index
    %c0_241 = arith.constant 0 : index
    %c0_242 = arith.constant 0 : index
    %c0_243 = arith.constant 0 : index
    %634 = vector.load %arg26[%c0_240, %c0_241, %c0_242, %c0_243] : memref<2x3x1x32xf32, #tpu.memory_space<vmem>>, vector<1x1x1x32xf32>
    %635 = vector.shape_cast %634 : vector<1x1x1x32xf32> to vector<1x32xf32>
    %636 = arith.addf %468, %631 : vector<16x32xf32>
    %cst_244 = arith.constant dense<0.000000e+00> : vector<16xf32>
    %637 = vector.multi_reduction <add>, %636, %cst_244 [1] : vector<16x32xf32> to vector<16xf32>
    %638 = vector.shape_cast %637 : vector<16xf32> to vector<16x1xf32>
    %cst_245 = arith.constant 3.200000e+01 : f32
    %639 = vector.broadcast %cst_245 : f32 to vector<16x1xf32>
    %640 = arith.divf %638, %639 : vector<16x1xf32>
    %641 = vector.broadcast %640 : vector<16x1xf32> to vector<16x32xf32>
    %642 = arith.subf %636, %641 : vector<16x32xf32>
    %643 = arith.mulf %642, %642 : vector<16x32xf32>
    %cst_246 = arith.constant dense<0.000000e+00> : vector<16xf32>
    %644 = vector.multi_reduction <add>, %643, %cst_246 [1] : vector<16x32xf32> to vector<16xf32>
    %645 = vector.shape_cast %644 : vector<16xf32> to vector<16x1xf32>
    %cst_247 = arith.constant 3.200000e+01 : f32
    %646 = vector.broadcast %cst_247 : f32 to vector<16x1xf32>
    %647 = arith.divf %645, %646 : vector<16x1xf32>
    %648 = vector.broadcast %640 : vector<16x1xf32> to vector<16x32xf32>
    %649 = arith.subf %636, %648 : vector<16x32xf32>
    %cst_248 = arith.constant 9.99999974E-6 : f32
    %650 = vector.broadcast %cst_248 : f32 to vector<16x1xf32>
    %651 = arith.addf %647, %650 : vector<16x1xf32>
    %652 = math.rsqrt %651 : vector<16x1xf32>
    %653 = vector.broadcast %652 : vector<16x1xf32> to vector<16x32xf32>
    %654 = arith.mulf %649, %653 : vector<16x32xf32>
    %655 = vector.broadcast %633 : vector<1x32xf32> to vector<16x32xf32>
    %656 = arith.mulf %654, %655 : vector<16x32xf32>
    %657 = vector.broadcast %635 : vector<1x32xf32> to vector<16x32xf32>
    %658 = arith.addf %656, %657 : vector<16x32xf32>
    %659 = arith.addf %658, %467 : vector<16x32xf32>
    %c0_249 = arith.constant 0 : index
    %c0_250 = arith.constant 0 : index
    %c0_251 = arith.constant 0 : index
    %c0_252 = arith.constant 0 : index
    %660 = vector.load %arg17[%c0_249, %c0_250, %c0_251, %c0_252] : memref<2x3x32x32xf32, #tpu.memory_space<vmem>>, vector<1x3x32x32xf32>
    %661 = vector.shape_cast %660 : vector<1x3x32x32xf32> to vector<3x32x32xf32>
    %c0_253 = arith.constant 0 : index
    %c0_254 = arith.constant 0 : index
    %c0_255 = arith.constant 0 : index
    %c0_256 = arith.constant 0 : index
    %662 = vector.load %arg18[%c0_253, %c0_254, %c0_255, %c0_256] : memref<2x3x1x32xf32, #tpu.memory_space<vmem>>, vector<1x3x1x32xf32>
    %663 = vector.shape_cast %662 : vector<1x3x1x32xf32> to vector<3x1x32xf32>
    %c0_257 = arith.constant 0 : index
    %c0_258 = arith.constant 0 : index
    %c0_259 = arith.constant 0 : index
    %664 = vector.load %arg19[%c0_257, %c0_258, %c0_259] : memref<2x32x32xf32, #tpu.memory_space<vmem>>, vector<1x32x32xf32>
    %665 = vector.shape_cast %664 : vector<1x32x32xf32> to vector<32x32xf32>
    %c0_260 = arith.constant 0 : index
    %c0_261 = arith.constant 0 : index
    %c0_262 = arith.constant 0 : index
    %666 = vector.load %arg20[%c0_260, %c0_261, %c0_262] : memref<2x1x32xf32, #tpu.memory_space<vmem>>, vector<1x1x32xf32>
    %667 = vector.shape_cast %666 : vector<1x1x32xf32> to vector<1x32xf32>
    %668 = vector.extract_strided_slice %661 {offsets = [0, 0, 0], sizes = [1, 32, 32], strides = [1, 1, 1]} : vector<3x32x32xf32> to vector<1x32x32xf32>
    %669 = vector.shape_cast %668 : vector<1x32x32xf32> to vector<32x32xf32>
    %cst_263 = arith.constant dense<0.000000e+00> : vector<16x32xf32>
    %670 = tpu.matmul %659, %669, %cst_263 {dimension_numbers = #tpu.dot_dimension_numbers<[1], [0], [0], [1], [0, 0, 1, 1], [], []>} : vector<16x32xf32>, vector<32x32xf32>, vector<16x32xf32> -> vector<16x32xf32>
    %671 = vector.extract_strided_slice %663 {offsets = [0, 0, 0], sizes = [1, 1, 32], strides = [1, 1, 1]} : vector<3x1x32xf32> to vector<1x1x32xf32>
    %672 = vector.shape_cast %671 : vector<1x1x32xf32> to vector<1x32xf32>
    %673 = vector.broadcast %672 : vector<1x32xf32> to vector<16x32xf32>
    %674 = arith.addf %670, %673 : vector<16x32xf32>
    %675 = vector.extract_strided_slice %661 {offsets = [1, 0, 0], sizes = [1, 32, 32], strides = [1, 1, 1]} : vector<3x32x32xf32> to vector<1x32x32xf32>
    %676 = vector.shape_cast %675 : vector<1x32x32xf32> to vector<32x32xf32>
    %cst_264 = arith.constant dense<0.000000e+00> : vector<32x32xf32>
    %677 = tpu.matmul %469, %676, %cst_264 {dimension_numbers = #tpu.dot_dimension_numbers<[1], [0], [0], [1], [0, 0, 1, 1], [], []>} : vector<32x32xf32>, vector<32x32xf32>, vector<32x32xf32> -> vector<32x32xf32>
    %678 = vector.extract_strided_slice %663 {offsets = [1, 0, 0], sizes = [1, 1, 32], strides = [1, 1, 1]} : vector<3x1x32xf32> to vector<1x1x32xf32>
    %679 = vector.shape_cast %678 : vector<1x1x32xf32> to vector<1x32xf32>
    %680 = vector.broadcast %679 : vector<1x32xf32> to vector<32x32xf32>
    %681 = arith.addf %677, %680 : vector<32x32xf32>
    %682 = vector.extract_strided_slice %661 {offsets = [2, 0, 0], sizes = [1, 32, 32], strides = [1, 1, 1]} : vector<3x32x32xf32> to vector<1x32x32xf32>
    %683 = vector.shape_cast %682 : vector<1x32x32xf32> to vector<32x32xf32>
    %cst_265 = arith.constant dense<0.000000e+00> : vector<32x32xf32>
    %684 = tpu.matmul %466, %683, %cst_265 {dimension_numbers = #tpu.dot_dimension_numbers<[1], [0], [0], [1], [0, 0, 1, 1], [], []>} : vector<32x32xf32>, vector<32x32xf32>, vector<32x32xf32> -> vector<32x32xf32>
    %685 = vector.extract_strided_slice %663 {offsets = [2, 0, 0], sizes = [1, 1, 32], strides = [1, 1, 1]} : vector<3x1x32xf32> to vector<1x1x32xf32>
    %686 = vector.shape_cast %685 : vector<1x1x32xf32> to vector<1x32xf32>
    %687 = vector.broadcast %686 : vector<1x32xf32> to vector<32x32xf32>
    %688 = arith.addf %684, %687 : vector<32x32xf32>
    %689 = vector.extract_strided_slice %674 {offsets = [0, 0], sizes = [8, 32], strides = [1, 1]} : vector<16x32xf32> to vector<8x32xf32>
    %690 = vector.extract_strided_slice %681 {offsets = [0, 0], sizes = [16, 32], strides = [1, 1]} : vector<32x32xf32> to vector<16x32xf32>
    %691 = vector.extract_strided_slice %688 {offsets = [0, 0], sizes = [16, 32], strides = [1, 1]} : vector<32x32xf32> to vector<16x32xf32>
    %692 = vector.extract_strided_slice %689 {offsets = [0, 0], sizes = [8, 8], strides = [1, 1]} : vector<8x32xf32> to vector<8x8xf32>
    %693 = vector.extract_strided_slice %690 {offsets = [0, 0], sizes = [16, 8], strides = [1, 1]} : vector<16x32xf32> to vector<16x8xf32>
    %cst_266 = arith.constant dense<0.000000e+00> : vector<8x16xf32>
    %694 = tpu.matmul %692, %693, %cst_266 {dimension_numbers = #tpu.dot_dimension_numbers<[1], [1], [0], [0], [0, 0, 1, 0], [], []>} : vector<8x8xf32>, vector<16x8xf32>, vector<8x16xf32> -> vector<8x16xf32>
    %cst_267 = arith.constant dense<0xFF800000> : vector<8xf32>
    %695 = vector.multi_reduction <maximumf>, %694, %cst_267 [1] : vector<8x16xf32> to vector<8xf32>
    %696 = vector.shape_cast %695 : vector<8xf32> to vector<8x1xf32>
    %697 = vector.broadcast %696 : vector<8x1xf32> to vector<8x16xf32>
    %698 = arith.subf %694, %697 : vector<8x16xf32>
    %699 = math.exp %698 : vector<8x16xf32>
    %cst_268 = arith.constant dense<0.000000e+00> : vector<8xf32>
    %700 = vector.multi_reduction <add>, %699, %cst_268 [1] : vector<8x16xf32> to vector<8xf32>
    %701 = vector.shape_cast %700 : vector<8xf32> to vector<8x1xf32>
    %702 = tpu.reciprocal %701 {approx = true} : vector<8x1xf32> -> vector<8x1xf32>
    %703 = vector.broadcast %702 : vector<8x1xf32> to vector<8x16xf32>
    %704 = arith.mulf %699, %703 : vector<8x16xf32>
    %705 = vector.extract_strided_slice %691 {offsets = [0, 0], sizes = [16, 8], strides = [1, 1]} : vector<16x32xf32> to vector<16x8xf32>
    %cst_269 = arith.constant dense<0.000000e+00> : vector<8x8xf32>
    %706 = tpu.matmul %704, %705, %cst_269 {dimension_numbers = #tpu.dot_dimension_numbers<[1], [0], [0], [1], [0, 0, 1, 1], [], []>} : vector<8x16xf32>, vector<16x8xf32>, vector<8x8xf32> -> vector<8x8xf32>
    %707 = vector.extract_strided_slice %689 {offsets = [0, 8], sizes = [8, 8], strides = [1, 1]} : vector<8x32xf32> to vector<8x8xf32>
    %708 = vector.extract_strided_slice %690 {offsets = [0, 8], sizes = [16, 8], strides = [1, 1]} : vector<16x32xf32> to vector<16x8xf32>
    %cst_270 = arith.constant dense<0.000000e+00> : vector<8x16xf32>
    %709 = tpu.matmul %707, %708, %cst_270 {dimension_numbers = #tpu.dot_dimension_numbers<[1], [1], [0], [0], [0, 0, 1, 0], [], []>} : vector<8x8xf32>, vector<16x8xf32>, vector<8x16xf32> -> vector<8x16xf32>
    %cst_271 = arith.constant dense<0xFF800000> : vector<8xf32>
    %710 = vector.multi_reduction <maximumf>, %709, %cst_271 [1] : vector<8x16xf32> to vector<8xf32>
    %711 = vector.shape_cast %710 : vector<8xf32> to vector<8x1xf32>
    %712 = vector.broadcast %711 : vector<8x1xf32> to vector<8x16xf32>
    %713 = arith.subf %709, %712 : vector<8x16xf32>
    %714 = math.exp %713 : vector<8x16xf32>
    %cst_272 = arith.constant dense<0.000000e+00> : vector<8xf32>
    %715 = vector.multi_reduction <add>, %714, %cst_272 [1] : vector<8x16xf32> to vector<8xf32>
    %716 = vector.shape_cast %715 : vector<8xf32> to vector<8x1xf32>
    %717 = tpu.reciprocal %716 {approx = true} : vector<8x1xf32> -> vector<8x1xf32>
    %718 = vector.broadcast %717 : vector<8x1xf32> to vector<8x16xf32>
    %719 = arith.mulf %714, %718 : vector<8x16xf32>
    %720 = vector.extract_strided_slice %691 {offsets = [0, 8], sizes = [16, 8], strides = [1, 1]} : vector<16x32xf32> to vector<16x8xf32>
    %cst_273 = arith.constant dense<0.000000e+00> : vector<8x8xf32>
    %721 = tpu.matmul %719, %720, %cst_273 {dimension_numbers = #tpu.dot_dimension_numbers<[1], [0], [0], [1], [0, 0, 1, 1], [], []>} : vector<8x16xf32>, vector<16x8xf32>, vector<8x8xf32> -> vector<8x8xf32>
    %722 = vector.extract_strided_slice %689 {offsets = [0, 16], sizes = [8, 8], strides = [1, 1]} : vector<8x32xf32> to vector<8x8xf32>
    %723 = vector.extract_strided_slice %690 {offsets = [0, 16], sizes = [16, 8], strides = [1, 1]} : vector<16x32xf32> to vector<16x8xf32>
    %cst_274 = arith.constant dense<0.000000e+00> : vector<8x16xf32>
    %724 = tpu.matmul %722, %723, %cst_274 {dimension_numbers = #tpu.dot_dimension_numbers<[1], [1], [0], [0], [0, 0, 1, 0], [], []>} : vector<8x8xf32>, vector<16x8xf32>, vector<8x16xf32> -> vector<8x16xf32>
    %cst_275 = arith.constant dense<0xFF800000> : vector<8xf32>
    %725 = vector.multi_reduction <maximumf>, %724, %cst_275 [1] : vector<8x16xf32> to vector<8xf32>
    %726 = vector.shape_cast %725 : vector<8xf32> to vector<8x1xf32>
    %727 = vector.broadcast %726 : vector<8x1xf32> to vector<8x16xf32>
    %728 = arith.subf %724, %727 : vector<8x16xf32>
    %729 = math.exp %728 : vector<8x16xf32>
    %cst_276 = arith.constant dense<0.000000e+00> : vector<8xf32>
    %730 = vector.multi_reduction <add>, %729, %cst_276 [1] : vector<8x16xf32> to vector<8xf32>
    %731 = vector.shape_cast %730 : vector<8xf32> to vector<8x1xf32>
    %732 = tpu.reciprocal %731 {approx = true} : vector<8x1xf32> -> vector<8x1xf32>
    %733 = vector.broadcast %732 : vector<8x1xf32> to vector<8x16xf32>
    %734 = arith.mulf %729, %733 : vector<8x16xf32>
    %735 = vector.extract_strided_slice %691 {offsets = [0, 16], sizes = [16, 8], strides = [1, 1]} : vector<16x32xf32> to vector<16x8xf32>
    %cst_277 = arith.constant dense<0.000000e+00> : vector<8x8xf32>
    %736 = tpu.matmul %734, %735, %cst_277 {dimension_numbers = #tpu.dot_dimension_numbers<[1], [0], [0], [1], [0, 0, 1, 1], [], []>} : vector<8x16xf32>, vector<16x8xf32>, vector<8x8xf32> -> vector<8x8xf32>
    %737 = vector.extract_strided_slice %689 {offsets = [0, 24], sizes = [8, 8], strides = [1, 1]} : vector<8x32xf32> to vector<8x8xf32>
    %738 = vector.extract_strided_slice %690 {offsets = [0, 24], sizes = [16, 8], strides = [1, 1]} : vector<16x32xf32> to vector<16x8xf32>
    %cst_278 = arith.constant dense<0.000000e+00> : vector<8x16xf32>
    %739 = tpu.matmul %737, %738, %cst_278 {dimension_numbers = #tpu.dot_dimension_numbers<[1], [1], [0], [0], [0, 0, 1, 0], [], []>} : vector<8x8xf32>, vector<16x8xf32>, vector<8x16xf32> -> vector<8x16xf32>
    %cst_279 = arith.constant dense<0xFF800000> : vector<8xf32>
    %740 = vector.multi_reduction <maximumf>, %739, %cst_279 [1] : vector<8x16xf32> to vector<8xf32>
    %741 = vector.shape_cast %740 : vector<8xf32> to vector<8x1xf32>
    %742 = vector.broadcast %741 : vector<8x1xf32> to vector<8x16xf32>
    %743 = arith.subf %739, %742 : vector<8x16xf32>
    %744 = math.exp %743 : vector<8x16xf32>
    %cst_280 = arith.constant dense<0.000000e+00> : vector<8xf32>
    %745 = vector.multi_reduction <add>, %744, %cst_280 [1] : vector<8x16xf32> to vector<8xf32>
    %746 = vector.shape_cast %745 : vector<8xf32> to vector<8x1xf32>
    %747 = tpu.reciprocal %746 {approx = true} : vector<8x1xf32> -> vector<8x1xf32>
    %748 = vector.broadcast %747 : vector<8x1xf32> to vector<8x16xf32>
    %749 = arith.mulf %744, %748 : vector<8x16xf32>
    %750 = vector.extract_strided_slice %691 {offsets = [0, 24], sizes = [16, 8], strides = [1, 1]} : vector<16x32xf32> to vector<16x8xf32>
    %cst_281 = arith.constant dense<0.000000e+00> : vector<8x8xf32>
    %751 = tpu.matmul %749, %750, %cst_281 {dimension_numbers = #tpu.dot_dimension_numbers<[1], [0], [0], [1], [0, 0, 1, 1], [], []>} : vector<8x16xf32>, vector<16x8xf32>, vector<8x8xf32> -> vector<8x8xf32>
    %752 = tpu.concatenate %706, %721, %736, %751 in 1 : vector<8x8xf32>, vector<8x8xf32>, vector<8x8xf32>, vector<8x8xf32> -> vector<8x32xf32>
    %753 = vector.extract_strided_slice %674 {offsets = [8, 0], sizes = [8, 32], strides = [1, 1]} : vector<16x32xf32> to vector<8x32xf32>
    %754 = vector.extract_strided_slice %681 {offsets = [16, 0], sizes = [16, 32], strides = [1, 1]} : vector<32x32xf32> to vector<16x32xf32>
    %755 = vector.extract_strided_slice %688 {offsets = [16, 0], sizes = [16, 32], strides = [1, 1]} : vector<32x32xf32> to vector<16x32xf32>
    %756 = vector.extract_strided_slice %753 {offsets = [0, 0], sizes = [8, 8], strides = [1, 1]} : vector<8x32xf32> to vector<8x8xf32>
    %757 = vector.extract_strided_slice %754 {offsets = [0, 0], sizes = [16, 8], strides = [1, 1]} : vector<16x32xf32> to vector<16x8xf32>
    %cst_282 = arith.constant dense<0.000000e+00> : vector<8x16xf32>
    %758 = tpu.matmul %756, %757, %cst_282 {dimension_numbers = #tpu.dot_dimension_numbers<[1], [1], [0], [0], [0, 0, 1, 0], [], []>} : vector<8x8xf32>, vector<16x8xf32>, vector<8x16xf32> -> vector<8x16xf32>
    %cst_283 = arith.constant dense<0xFF800000> : vector<8xf32>
    %759 = vector.multi_reduction <maximumf>, %758, %cst_283 [1] : vector<8x16xf32> to vector<8xf32>
    %760 = vector.shape_cast %759 : vector<8xf32> to vector<8x1xf32>
    %761 = vector.broadcast %760 : vector<8x1xf32> to vector<8x16xf32>
    %762 = arith.subf %758, %761 : vector<8x16xf32>
    %763 = math.exp %762 : vector<8x16xf32>
    %cst_284 = arith.constant dense<0.000000e+00> : vector<8xf32>
    %764 = vector.multi_reduction <add>, %763, %cst_284 [1] : vector<8x16xf32> to vector<8xf32>
    %765 = vector.shape_cast %764 : vector<8xf32> to vector<8x1xf32>
    %766 = tpu.reciprocal %765 {approx = true} : vector<8x1xf32> -> vector<8x1xf32>
    %767 = vector.broadcast %766 : vector<8x1xf32> to vector<8x16xf32>
    %768 = arith.mulf %763, %767 : vector<8x16xf32>
    %769 = vector.extract_strided_slice %755 {offsets = [0, 0], sizes = [16, 8], strides = [1, 1]} : vector<16x32xf32> to vector<16x8xf32>
    %cst_285 = arith.constant dense<0.000000e+00> : vector<8x8xf32>
    %770 = tpu.matmul %768, %769, %cst_285 {dimension_numbers = #tpu.dot_dimension_numbers<[1], [0], [0], [1], [0, 0, 1, 1], [], []>} : vector<8x16xf32>, vector<16x8xf32>, vector<8x8xf32> -> vector<8x8xf32>
    %771 = vector.extract_strided_slice %753 {offsets = [0, 8], sizes = [8, 8], strides = [1, 1]} : vector<8x32xf32> to vector<8x8xf32>
    %772 = vector.extract_strided_slice %754 {offsets = [0, 8], sizes = [16, 8], strides = [1, 1]} : vector<16x32xf32> to vector<16x8xf32>
    %cst_286 = arith.constant dense<0.000000e+00> : vector<8x16xf32>
    %773 = tpu.matmul %771, %772, %cst_286 {dimension_numbers = #tpu.dot_dimension_numbers<[1], [1], [0], [0], [0, 0, 1, 0], [], []>} : vector<8x8xf32>, vector<16x8xf32>, vector<8x16xf32> -> vector<8x16xf32>
    %cst_287 = arith.constant dense<0xFF800000> : vector<8xf32>
    %774 = vector.multi_reduction <maximumf>, %773, %cst_287 [1] : vector<8x16xf32> to vector<8xf32>
    %775 = vector.shape_cast %774 : vector<8xf32> to vector<8x1xf32>
    %776 = vector.broadcast %775 : vector<8x1xf32> to vector<8x16xf32>
    %777 = arith.subf %773, %776 : vector<8x16xf32>
    %778 = math.exp %777 : vector<8x16xf32>
    %cst_288 = arith.constant dense<0.000000e+00> : vector<8xf32>
    %779 = vector.multi_reduction <add>, %778, %cst_288 [1] : vector<8x16xf32> to vector<8xf32>
    %780 = vector.shape_cast %779 : vector<8xf32> to vector<8x1xf32>
    %781 = tpu.reciprocal %780 {approx = true} : vector<8x1xf32> -> vector<8x1xf32>
    %782 = vector.broadcast %781 : vector<8x1xf32> to vector<8x16xf32>
    %783 = arith.mulf %778, %782 : vector<8x16xf32>
    %784 = vector.extract_strided_slice %755 {offsets = [0, 8], sizes = [16, 8], strides = [1, 1]} : vector<16x32xf32> to vector<16x8xf32>
    %cst_289 = arith.constant dense<0.000000e+00> : vector<8x8xf32>
    %785 = tpu.matmul %783, %784, %cst_289 {dimension_numbers = #tpu.dot_dimension_numbers<[1], [0], [0], [1], [0, 0, 1, 1], [], []>} : vector<8x16xf32>, vector<16x8xf32>, vector<8x8xf32> -> vector<8x8xf32>
    %786 = vector.extract_strided_slice %753 {offsets = [0, 16], sizes = [8, 8], strides = [1, 1]} : vector<8x32xf32> to vector<8x8xf32>
    %787 = vector.extract_strided_slice %754 {offsets = [0, 16], sizes = [16, 8], strides = [1, 1]} : vector<16x32xf32> to vector<16x8xf32>
    %cst_290 = arith.constant dense<0.000000e+00> : vector<8x16xf32>
    %788 = tpu.matmul %786, %787, %cst_290 {dimension_numbers = #tpu.dot_dimension_numbers<[1], [1], [0], [0], [0, 0, 1, 0], [], []>} : vector<8x8xf32>, vector<16x8xf32>, vector<8x16xf32> -> vector<8x16xf32>
    %cst_291 = arith.constant dense<0xFF800000> : vector<8xf32>
    %789 = vector.multi_reduction <maximumf>, %788, %cst_291 [1] : vector<8x16xf32> to vector<8xf32>
    %790 = vector.shape_cast %789 : vector<8xf32> to vector<8x1xf32>
    %791 = vector.broadcast %790 : vector<8x1xf32> to vector<8x16xf32>
    %792 = arith.subf %788, %791 : vector<8x16xf32>
    %793 = math.exp %792 : vector<8x16xf32>
    %cst_292 = arith.constant dense<0.000000e+00> : vector<8xf32>
    %794 = vector.multi_reduction <add>, %793, %cst_292 [1] : vector<8x16xf32> to vector<8xf32>
    %795 = vector.shape_cast %794 : vector<8xf32> to vector<8x1xf32>
    %796 = tpu.reciprocal %795 {approx = true} : vector<8x1xf32> -> vector<8x1xf32>
    %797 = vector.broadcast %796 : vector<8x1xf32> to vector<8x16xf32>
    %798 = arith.mulf %793, %797 : vector<8x16xf32>
    %799 = vector.extract_strided_slice %755 {offsets = [0, 16], sizes = [16, 8], strides = [1, 1]} : vector<16x32xf32> to vector<16x8xf32>
    %cst_293 = arith.constant dense<0.000000e+00> : vector<8x8xf32>
    %800 = tpu.matmul %798, %799, %cst_293 {dimension_numbers = #tpu.dot_dimension_numbers<[1], [0], [0], [1], [0, 0, 1, 1], [], []>} : vector<8x16xf32>, vector<16x8xf32>, vector<8x8xf32> -> vector<8x8xf32>
    %801 = vector.extract_strided_slice %753 {offsets = [0, 24], sizes = [8, 8], strides = [1, 1]} : vector<8x32xf32> to vector<8x8xf32>
    %802 = vector.extract_strided_slice %754 {offsets = [0, 24], sizes = [16, 8], strides = [1, 1]} : vector<16x32xf32> to vector<16x8xf32>
    %cst_294 = arith.constant dense<0.000000e+00> : vector<8x16xf32>
    %803 = tpu.matmul %801, %802, %cst_294 {dimension_numbers = #tpu.dot_dimension_numbers<[1], [1], [0], [0], [0, 0, 1, 0], [], []>} : vector<8x8xf32>, vector<16x8xf32>, vector<8x16xf32> -> vector<8x16xf32>
    %cst_295 = arith.constant dense<0xFF800000> : vector<8xf32>
    %804 = vector.multi_reduction <maximumf>, %803, %cst_295 [1] : vector<8x16xf32> to vector<8xf32>
    %805 = vector.shape_cast %804 : vector<8xf32> to vector<8x1xf32>
    %806 = vector.broadcast %805 : vector<8x1xf32> to vector<8x16xf32>
    %807 = arith.subf %803, %806 : vector<8x16xf32>
    %808 = math.exp %807 : vector<8x16xf32>
    %cst_296 = arith.constant dense<0.000000e+00> : vector<8xf32>
    %809 = vector.multi_reduction <add>, %808, %cst_296 [1] : vector<8x16xf32> to vector<8xf32>
    %810 = vector.shape_cast %809 : vector<8xf32> to vector<8x1xf32>
    %811 = tpu.reciprocal %810 {approx = true} : vector<8x1xf32> -> vector<8x1xf32>
    %812 = vector.broadcast %811 : vector<8x1xf32> to vector<8x16xf32>
    %813 = arith.mulf %808, %812 : vector<8x16xf32>
    %814 = vector.extract_strided_slice %755 {offsets = [0, 24], sizes = [16, 8], strides = [1, 1]} : vector<16x32xf32> to vector<16x8xf32>
    %cst_297 = arith.constant dense<0.000000e+00> : vector<8x8xf32>
    %815 = tpu.matmul %813, %814, %cst_297 {dimension_numbers = #tpu.dot_dimension_numbers<[1], [0], [0], [1], [0, 0, 1, 1], [], []>} : vector<8x16xf32>, vector<16x8xf32>, vector<8x8xf32> -> vector<8x8xf32>
    %816 = tpu.concatenate %770, %785, %800, %815 in 1 : vector<8x8xf32>, vector<8x8xf32>, vector<8x8xf32>, vector<8x8xf32> -> vector<8x32xf32>
    %817 = tpu.concatenate %752, %816 in 0 : vector<8x32xf32>, vector<8x32xf32> -> vector<16x32xf32>
    %cst_298 = arith.constant dense<0.000000e+00> : vector<16x32xf32>
    %818 = tpu.matmul %817, %665, %cst_298 {dimension_numbers = #tpu.dot_dimension_numbers<[1], [0], [0], [1], [0, 0, 1, 1], [], []>} : vector<16x32xf32>, vector<32x32xf32>, vector<16x32xf32> -> vector<16x32xf32>
    %819 = vector.broadcast %667 : vector<1x32xf32> to vector<16x32xf32>
    %820 = arith.addf %818, %819 : vector<16x32xf32>
    %c0_299 = arith.constant 0 : index
    %c1_300 = arith.constant 1 : index
    %c0_301 = arith.constant 0 : index
    %c0_302 = arith.constant 0 : index
    %821 = vector.load %arg25[%c0_299, %c1_300, %c0_301, %c0_302] : memref<2x3x1x32xf32, #tpu.memory_space<vmem>>, vector<1x1x1x32xf32>
    %822 = vector.shape_cast %821 : vector<1x1x1x32xf32> to vector<1x32xf32>
    %c0_303 = arith.constant 0 : index
    %c1_304 = arith.constant 1 : index
    %c0_305 = arith.constant 0 : index
    %c0_306 = arith.constant 0 : index
    %823 = vector.load %arg26[%c0_303, %c1_304, %c0_305, %c0_306] : memref<2x3x1x32xf32, #tpu.memory_space<vmem>>, vector<1x1x1x32xf32>
    %824 = vector.shape_cast %823 : vector<1x1x1x32xf32> to vector<1x32xf32>
    %825 = arith.addf %658, %820 : vector<16x32xf32>
    %cst_307 = arith.constant dense<0.000000e+00> : vector<16xf32>
    %826 = vector.multi_reduction <add>, %825, %cst_307 [1] : vector<16x32xf32> to vector<16xf32>
    %827 = vector.shape_cast %826 : vector<16xf32> to vector<16x1xf32>
    %cst_308 = arith.constant 3.200000e+01 : f32
    %828 = vector.broadcast %cst_308 : f32 to vector<16x1xf32>
    %829 = arith.divf %827, %828 : vector<16x1xf32>
    %830 = vector.broadcast %829 : vector<16x1xf32> to vector<16x32xf32>
    %831 = arith.subf %825, %830 : vector<16x32xf32>
    %832 = arith.mulf %831, %831 : vector<16x32xf32>
    %cst_309 = arith.constant dense<0.000000e+00> : vector<16xf32>
    %833 = vector.multi_reduction <add>, %832, %cst_309 [1] : vector<16x32xf32> to vector<16xf32>
    %834 = vector.shape_cast %833 : vector<16xf32> to vector<16x1xf32>
    %cst_310 = arith.constant 3.200000e+01 : f32
    %835 = vector.broadcast %cst_310 : f32 to vector<16x1xf32>
    %836 = arith.divf %834, %835 : vector<16x1xf32>
    %837 = vector.broadcast %829 : vector<16x1xf32> to vector<16x32xf32>
    %838 = arith.subf %825, %837 : vector<16x32xf32>
    %cst_311 = arith.constant 9.99999974E-6 : f32
    %839 = vector.broadcast %cst_311 : f32 to vector<16x1xf32>
    %840 = arith.addf %836, %839 : vector<16x1xf32>
    %841 = math.rsqrt %840 : vector<16x1xf32>
    %842 = vector.broadcast %841 : vector<16x1xf32> to vector<16x32xf32>
    %843 = arith.mulf %838, %842 : vector<16x32xf32>
    %844 = vector.broadcast %822 : vector<1x32xf32> to vector<16x32xf32>
    %845 = arith.mulf %843, %844 : vector<16x32xf32>
    %846 = vector.broadcast %824 : vector<1x32xf32> to vector<16x32xf32>
    %847 = arith.addf %845, %846 : vector<16x32xf32>
    %c0_312 = arith.constant 0 : index
    %c0_313 = arith.constant 0 : index
    %c0_314 = arith.constant 0 : index
    %848 = vector.load %arg21[%c0_312, %c0_313, %c0_314] : memref<2x32x64xf32, #tpu.memory_space<vmem>>, vector<1x32x64xf32>
    %849 = vector.shape_cast %848 : vector<1x32x64xf32> to vector<32x64xf32>
    %cst_315 = arith.constant dense<0.000000e+00> : vector<16x64xf32>
    %850 = tpu.matmul %847, %849, %cst_315 {dimension_numbers = #tpu.dot_dimension_numbers<[1], [0], [0], [1], [0, 0, 1, 1], [], []>} : vector<16x32xf32>, vector<32x64xf32>, vector<16x64xf32> -> vector<16x64xf32>
    %c0_316 = arith.constant 0 : index
    %c0_317 = arith.constant 0 : index
    %c0_318 = arith.constant 0 : index
    %851 = vector.load %arg22[%c0_316, %c0_317, %c0_318] : memref<2x1x64xf32, #tpu.memory_space<vmem>>, vector<1x1x64xf32>
    %852 = vector.shape_cast %851 : vector<1x1x64xf32> to vector<1x64xf32>
    %853 = vector.broadcast %852 : vector<1x64xf32> to vector<16x64xf32>
    %854 = arith.addf %850, %853 : vector<16x64xf32>
    %cst_319 = arith.constant 0.000000e+00 : f32
    %855 = vector.broadcast %cst_319 : f32 to vector<16x64xf32>
    %856 = arith.maximumf %854, %855 : vector<16x64xf32>
    %c0_320 = arith.constant 0 : index
    %c0_321 = arith.constant 0 : index
    %c0_322 = arith.constant 0 : index
    %857 = vector.load %arg23[%c0_320, %c0_321, %c0_322] : memref<2x64x32xf32, #tpu.memory_space<vmem>>, vector<1x64x32xf32>
    %858 = vector.shape_cast %857 : vector<1x64x32xf32> to vector<64x32xf32>
    %cst_323 = arith.constant dense<0.000000e+00> : vector<16x32xf32>
    %859 = tpu.matmul %856, %858, %cst_323 {dimension_numbers = #tpu.dot_dimension_numbers<[1], [0], [0], [1], [0, 0, 1, 1], [], []>} : vector<16x64xf32>, vector<64x32xf32>, vector<16x32xf32> -> vector<16x32xf32>
    %c0_324 = arith.constant 0 : index
    %c0_325 = arith.constant 0 : index
    %c0_326 = arith.constant 0 : index
    %860 = vector.load %arg24[%c0_324, %c0_325, %c0_326] : memref<2x1x32xf32, #tpu.memory_space<vmem>>, vector<1x1x32xf32>
    %861 = vector.shape_cast %860 : vector<1x1x32xf32> to vector<1x32xf32>
    %862 = vector.broadcast %861 : vector<1x32xf32> to vector<16x32xf32>
    %863 = arith.addf %859, %862 : vector<16x32xf32>
    %c0_327 = arith.constant 0 : index
    %c2 = arith.constant 2 : index
    %c0_328 = arith.constant 0 : index
    %c0_329 = arith.constant 0 : index
    %864 = vector.load %arg25[%c0_327, %c2, %c0_328, %c0_329] : memref<2x3x1x32xf32, #tpu.memory_space<vmem>>, vector<1x1x1x32xf32>
    %865 = vector.shape_cast %864 : vector<1x1x1x32xf32> to vector<1x32xf32>
    %c0_330 = arith.constant 0 : index
    %c2_331 = arith.constant 2 : index
    %c0_332 = arith.constant 0 : index
    %c0_333 = arith.constant 0 : index
    %866 = vector.load %arg26[%c0_330, %c2_331, %c0_332, %c0_333] : memref<2x3x1x32xf32, #tpu.memory_space<vmem>>, vector<1x1x1x32xf32>
    %867 = vector.shape_cast %866 : vector<1x1x1x32xf32> to vector<1x32xf32>
    %868 = arith.addf %847, %863 : vector<16x32xf32>
    %cst_334 = arith.constant dense<0.000000e+00> : vector<16xf32>
    %869 = vector.multi_reduction <add>, %868, %cst_334 [1] : vector<16x32xf32> to vector<16xf32>
    %870 = vector.shape_cast %869 : vector<16xf32> to vector<16x1xf32>
    %cst_335 = arith.constant 3.200000e+01 : f32
    %871 = vector.broadcast %cst_335 : f32 to vector<16x1xf32>
    %872 = arith.divf %870, %871 : vector<16x1xf32>
    %873 = vector.broadcast %872 : vector<16x1xf32> to vector<16x32xf32>
    %874 = arith.subf %868, %873 : vector<16x32xf32>
    %875 = arith.mulf %874, %874 : vector<16x32xf32>
    %cst_336 = arith.constant dense<0.000000e+00> : vector<16xf32>
    %876 = vector.multi_reduction <add>, %875, %cst_336 [1] : vector<16x32xf32> to vector<16xf32>
    %877 = vector.shape_cast %876 : vector<16xf32> to vector<16x1xf32>
    %cst_337 = arith.constant 3.200000e+01 : f32
    %878 = vector.broadcast %cst_337 : f32 to vector<16x1xf32>
    %879 = arith.divf %877, %878 : vector<16x1xf32>
    %880 = vector.broadcast %872 : vector<16x1xf32> to vector<16x32xf32>
    %881 = arith.subf %868, %880 : vector<16x32xf32>
    %cst_338 = arith.constant 9.99999974E-6 : f32
    %882 = vector.broadcast %cst_338 : f32 to vector<16x1xf32>
    %883 = arith.addf %879, %882 : vector<16x1xf32>
    %884 = math.rsqrt %883 : vector<16x1xf32>
    %885 = vector.broadcast %884 : vector<16x1xf32> to vector<16x32xf32>
    %886 = arith.mulf %881, %885 : vector<16x32xf32>
    %887 = vector.broadcast %865 : vector<1x32xf32> to vector<16x32xf32>
    %888 = arith.mulf %886, %887 : vector<16x32xf32>
    %889 = vector.broadcast %867 : vector<1x32xf32> to vector<16x32xf32>
    %890 = arith.addf %888, %889 : vector<16x32xf32>
    %891 = arith.addf %890, %467 : vector<16x32xf32>
    %c1_339 = arith.constant 1 : index
    %c0_340 = arith.constant 0 : index
    %c0_341 = arith.constant 0 : index
    %c0_342 = arith.constant 0 : index
    %892 = vector.load %arg13[%c1_339, %c0_340, %c0_341, %c0_342] : memref<2x3x32x32xf32, #tpu.memory_space<vmem>>, vector<1x3x32x32xf32>
    %893 = vector.shape_cast %892 : vector<1x3x32x32xf32> to vector<3x32x32xf32>
    %c1_343 = arith.constant 1 : index
    %c0_344 = arith.constant 0 : index
    %c0_345 = arith.constant 0 : index
    %c0_346 = arith.constant 0 : index
    %894 = vector.load %arg14[%c1_343, %c0_344, %c0_345, %c0_346] : memref<2x3x1x32xf32, #tpu.memory_space<vmem>>, vector<1x3x1x32xf32>
    %895 = vector.shape_cast %894 : vector<1x3x1x32xf32> to vector<3x1x32xf32>
    %c1_347 = arith.constant 1 : index
    %c0_348 = arith.constant 0 : index
    %c0_349 = arith.constant 0 : index
    %896 = vector.load %arg15[%c1_347, %c0_348, %c0_349] : memref<2x32x32xf32, #tpu.memory_space<vmem>>, vector<1x32x32xf32>
    %897 = vector.shape_cast %896 : vector<1x32x32xf32> to vector<32x32xf32>
    %c1_350 = arith.constant 1 : index
    %c0_351 = arith.constant 0 : index
    %c0_352 = arith.constant 0 : index
    %898 = vector.load %arg16[%c1_350, %c0_351, %c0_352] : memref<2x1x32xf32, #tpu.memory_space<vmem>>, vector<1x1x32xf32>
    %899 = vector.shape_cast %898 : vector<1x1x32xf32> to vector<1x32xf32>
    %900 = vector.extract_strided_slice %893 {offsets = [0, 0, 0], sizes = [1, 32, 32], strides = [1, 1, 1]} : vector<3x32x32xf32> to vector<1x32x32xf32>
    %901 = vector.shape_cast %900 : vector<1x32x32xf32> to vector<32x32xf32>
    %cst_353 = arith.constant dense<0.000000e+00> : vector<16x32xf32>
    %902 = tpu.matmul %891, %901, %cst_353 {dimension_numbers = #tpu.dot_dimension_numbers<[1], [0], [0], [1], [0, 0, 1, 1], [], []>} : vector<16x32xf32>, vector<32x32xf32>, vector<16x32xf32> -> vector<16x32xf32>
    %903 = vector.extract_strided_slice %895 {offsets = [0, 0, 0], sizes = [1, 1, 32], strides = [1, 1, 1]} : vector<3x1x32xf32> to vector<1x1x32xf32>
    %904 = vector.shape_cast %903 : vector<1x1x32xf32> to vector<1x32xf32>
    %905 = vector.broadcast %904 : vector<1x32xf32> to vector<16x32xf32>
    %906 = arith.addf %902, %905 : vector<16x32xf32>
    %907 = vector.extract_strided_slice %893 {offsets = [1, 0, 0], sizes = [1, 32, 32], strides = [1, 1, 1]} : vector<3x32x32xf32> to vector<1x32x32xf32>
    %908 = vector.shape_cast %907 : vector<1x32x32xf32> to vector<32x32xf32>
    %cst_354 = arith.constant dense<0.000000e+00> : vector<16x32xf32>
    %909 = tpu.matmul %891, %908, %cst_354 {dimension_numbers = #tpu.dot_dimension_numbers<[1], [0], [0], [1], [0, 0, 1, 1], [], []>} : vector<16x32xf32>, vector<32x32xf32>, vector<16x32xf32> -> vector<16x32xf32>
    %910 = vector.extract_strided_slice %895 {offsets = [1, 0, 0], sizes = [1, 1, 32], strides = [1, 1, 1]} : vector<3x1x32xf32> to vector<1x1x32xf32>
    %911 = vector.shape_cast %910 : vector<1x1x32xf32> to vector<1x32xf32>
    %912 = vector.broadcast %911 : vector<1x32xf32> to vector<16x32xf32>
    %913 = arith.addf %909, %912 : vector<16x32xf32>
    %914 = vector.extract_strided_slice %893 {offsets = [2, 0, 0], sizes = [1, 32, 32], strides = [1, 1, 1]} : vector<3x32x32xf32> to vector<1x32x32xf32>
    %915 = vector.shape_cast %914 : vector<1x32x32xf32> to vector<32x32xf32>
    %cst_355 = arith.constant dense<0.000000e+00> : vector<16x32xf32>
    %916 = tpu.matmul %890, %915, %cst_355 {dimension_numbers = #tpu.dot_dimension_numbers<[1], [0], [0], [1], [0, 0, 1, 1], [], []>} : vector<16x32xf32>, vector<32x32xf32>, vector<16x32xf32> -> vector<16x32xf32>
    %917 = vector.extract_strided_slice %895 {offsets = [2, 0, 0], sizes = [1, 1, 32], strides = [1, 1, 1]} : vector<3x1x32xf32> to vector<1x1x32xf32>
    %918 = vector.shape_cast %917 : vector<1x1x32xf32> to vector<1x32xf32>
    %919 = vector.broadcast %918 : vector<1x32xf32> to vector<16x32xf32>
    %920 = arith.addf %916, %919 : vector<16x32xf32>
    %921 = vector.extract_strided_slice %906 {offsets = [0, 0], sizes = [8, 32], strides = [1, 1]} : vector<16x32xf32> to vector<8x32xf32>
    %922 = vector.extract_strided_slice %913 {offsets = [0, 0], sizes = [8, 32], strides = [1, 1]} : vector<16x32xf32> to vector<8x32xf32>
    %923 = vector.extract_strided_slice %920 {offsets = [0, 0], sizes = [8, 32], strides = [1, 1]} : vector<16x32xf32> to vector<8x32xf32>
    %924 = vector.extract_strided_slice %921 {offsets = [0, 0], sizes = [8, 8], strides = [1, 1]} : vector<8x32xf32> to vector<8x8xf32>
    %925 = vector.extract_strided_slice %922 {offsets = [0, 0], sizes = [8, 8], strides = [1, 1]} : vector<8x32xf32> to vector<8x8xf32>
    %cst_356 = arith.constant dense<0.000000e+00> : vector<8x8xf32>
    %926 = tpu.matmul %924, %925, %cst_356 {dimension_numbers = #tpu.dot_dimension_numbers<[1], [1], [0], [0], [0, 0, 1, 0], [], []>} : vector<8x8xf32>, vector<8x8xf32>, vector<8x8xf32> -> vector<8x8xf32>
    %cst_357 = arith.constant dense<0xFF800000> : vector<8xf32>
    %927 = vector.multi_reduction <maximumf>, %926, %cst_357 [1] : vector<8x8xf32> to vector<8xf32>
    %928 = vector.shape_cast %927 : vector<8xf32> to vector<8x1xf32>
    %929 = vector.broadcast %928 : vector<8x1xf32> to vector<8x8xf32>
    %930 = arith.subf %926, %929 : vector<8x8xf32>
    %931 = math.exp %930 : vector<8x8xf32>
    %cst_358 = arith.constant dense<0.000000e+00> : vector<8xf32>
    %932 = vector.multi_reduction <add>, %931, %cst_358 [1] : vector<8x8xf32> to vector<8xf32>
    %933 = vector.shape_cast %932 : vector<8xf32> to vector<8x1xf32>
    %934 = tpu.reciprocal %933 {approx = true} : vector<8x1xf32> -> vector<8x1xf32>
    %935 = vector.broadcast %934 : vector<8x1xf32> to vector<8x8xf32>
    %936 = arith.mulf %931, %935 : vector<8x8xf32>
    %937 = vector.extract_strided_slice %923 {offsets = [0, 0], sizes = [8, 8], strides = [1, 1]} : vector<8x32xf32> to vector<8x8xf32>
    %cst_359 = arith.constant dense<0.000000e+00> : vector<8x8xf32>
    %938 = tpu.matmul %936, %937, %cst_359 {dimension_numbers = #tpu.dot_dimension_numbers<[1], [0], [0], [1], [0, 0, 1, 1], [], []>} : vector<8x8xf32>, vector<8x8xf32>, vector<8x8xf32> -> vector<8x8xf32>
    %939 = vector.extract_strided_slice %921 {offsets = [0, 8], sizes = [8, 8], strides = [1, 1]} : vector<8x32xf32> to vector<8x8xf32>
    %940 = vector.extract_strided_slice %922 {offsets = [0, 8], sizes = [8, 8], strides = [1, 1]} : vector<8x32xf32> to vector<8x8xf32>
    %cst_360 = arith.constant dense<0.000000e+00> : vector<8x8xf32>
    %941 = tpu.matmul %939, %940, %cst_360 {dimension_numbers = #tpu.dot_dimension_numbers<[1], [1], [0], [0], [0, 0, 1, 0], [], []>} : vector<8x8xf32>, vector<8x8xf32>, vector<8x8xf32> -> vector<8x8xf32>
    %cst_361 = arith.constant dense<0xFF800000> : vector<8xf32>
    %942 = vector.multi_reduction <maximumf>, %941, %cst_361 [1] : vector<8x8xf32> to vector<8xf32>
    %943 = vector.shape_cast %942 : vector<8xf32> to vector<8x1xf32>
    %944 = vector.broadcast %943 : vector<8x1xf32> to vector<8x8xf32>
    %945 = arith.subf %941, %944 : vector<8x8xf32>
    %946 = math.exp %945 : vector<8x8xf32>
    %cst_362 = arith.constant dense<0.000000e+00> : vector<8xf32>
    %947 = vector.multi_reduction <add>, %946, %cst_362 [1] : vector<8x8xf32> to vector<8xf32>
    %948 = vector.shape_cast %947 : vector<8xf32> to vector<8x1xf32>
    %949 = tpu.reciprocal %948 {approx = true} : vector<8x1xf32> -> vector<8x1xf32>
    %950 = vector.broadcast %949 : vector<8x1xf32> to vector<8x8xf32>
    %951 = arith.mulf %946, %950 : vector<8x8xf32>
    %952 = vector.extract_strided_slice %923 {offsets = [0, 8], sizes = [8, 8], strides = [1, 1]} : vector<8x32xf32> to vector<8x8xf32>
    %cst_363 = arith.constant dense<0.000000e+00> : vector<8x8xf32>
    %953 = tpu.matmul %951, %952, %cst_363 {dimension_numbers = #tpu.dot_dimension_numbers<[1], [0], [0], [1], [0, 0, 1, 1], [], []>} : vector<8x8xf32>, vector<8x8xf32>, vector<8x8xf32> -> vector<8x8xf32>
    %954 = vector.extract_strided_slice %921 {offsets = [0, 16], sizes = [8, 8], strides = [1, 1]} : vector<8x32xf32> to vector<8x8xf32>
    %955 = vector.extract_strided_slice %922 {offsets = [0, 16], sizes = [8, 8], strides = [1, 1]} : vector<8x32xf32> to vector<8x8xf32>
    %cst_364 = arith.constant dense<0.000000e+00> : vector<8x8xf32>
    %956 = tpu.matmul %954, %955, %cst_364 {dimension_numbers = #tpu.dot_dimension_numbers<[1], [1], [0], [0], [0, 0, 1, 0], [], []>} : vector<8x8xf32>, vector<8x8xf32>, vector<8x8xf32> -> vector<8x8xf32>
    %cst_365 = arith.constant dense<0xFF800000> : vector<8xf32>
    %957 = vector.multi_reduction <maximumf>, %956, %cst_365 [1] : vector<8x8xf32> to vector<8xf32>
    %958 = vector.shape_cast %957 : vector<8xf32> to vector<8x1xf32>
    %959 = vector.broadcast %958 : vector<8x1xf32> to vector<8x8xf32>
    %960 = arith.subf %956, %959 : vector<8x8xf32>
    %961 = math.exp %960 : vector<8x8xf32>
    %cst_366 = arith.constant dense<0.000000e+00> : vector<8xf32>
    %962 = vector.multi_reduction <add>, %961, %cst_366 [1] : vector<8x8xf32> to vector<8xf32>
    %963 = vector.shape_cast %962 : vector<8xf32> to vector<8x1xf32>
    %964 = tpu.reciprocal %963 {approx = true} : vector<8x1xf32> -> vector<8x1xf32>
    %965 = vector.broadcast %964 : vector<8x1xf32> to vector<8x8xf32>
    %966 = arith.mulf %961, %965 : vector<8x8xf32>
    %967 = vector.extract_strided_slice %923 {offsets = [0, 16], sizes = [8, 8], strides = [1, 1]} : vector<8x32xf32> to vector<8x8xf32>
    %cst_367 = arith.constant dense<0.000000e+00> : vector<8x8xf32>
    %968 = tpu.matmul %966, %967, %cst_367 {dimension_numbers = #tpu.dot_dimension_numbers<[1], [0], [0], [1], [0, 0, 1, 1], [], []>} : vector<8x8xf32>, vector<8x8xf32>, vector<8x8xf32> -> vector<8x8xf32>
    %969 = vector.extract_strided_slice %921 {offsets = [0, 24], sizes = [8, 8], strides = [1, 1]} : vector<8x32xf32> to vector<8x8xf32>
    %970 = vector.extract_strided_slice %922 {offsets = [0, 24], sizes = [8, 8], strides = [1, 1]} : vector<8x32xf32> to vector<8x8xf32>
    %cst_368 = arith.constant dense<0.000000e+00> : vector<8x8xf32>
    %971 = tpu.matmul %969, %970, %cst_368 {dimension_numbers = #tpu.dot_dimension_numbers<[1], [1], [0], [0], [0, 0, 1, 0], [], []>} : vector<8x8xf32>, vector<8x8xf32>, vector<8x8xf32> -> vector<8x8xf32>
    %cst_369 = arith.constant dense<0xFF800000> : vector<8xf32>
    %972 = vector.multi_reduction <maximumf>, %971, %cst_369 [1] : vector<8x8xf32> to vector<8xf32>
    %973 = vector.shape_cast %972 : vector<8xf32> to vector<8x1xf32>
    %974 = vector.broadcast %973 : vector<8x1xf32> to vector<8x8xf32>
    %975 = arith.subf %971, %974 : vector<8x8xf32>
    %976 = math.exp %975 : vector<8x8xf32>
    %cst_370 = arith.constant dense<0.000000e+00> : vector<8xf32>
    %977 = vector.multi_reduction <add>, %976, %cst_370 [1] : vector<8x8xf32> to vector<8xf32>
    %978 = vector.shape_cast %977 : vector<8xf32> to vector<8x1xf32>
    %979 = tpu.reciprocal %978 {approx = true} : vector<8x1xf32> -> vector<8x1xf32>
    %980 = vector.broadcast %979 : vector<8x1xf32> to vector<8x8xf32>
    %981 = arith.mulf %976, %980 : vector<8x8xf32>
    %982 = vector.extract_strided_slice %923 {offsets = [0, 24], sizes = [8, 8], strides = [1, 1]} : vector<8x32xf32> to vector<8x8xf32>
    %cst_371 = arith.constant dense<0.000000e+00> : vector<8x8xf32>
    %983 = tpu.matmul %981, %982, %cst_371 {dimension_numbers = #tpu.dot_dimension_numbers<[1], [0], [0], [1], [0, 0, 1, 1], [], []>} : vector<8x8xf32>, vector<8x8xf32>, vector<8x8xf32> -> vector<8x8xf32>
    %984 = tpu.concatenate %938, %953, %968, %983 in 1 : vector<8x8xf32>, vector<8x8xf32>, vector<8x8xf32>, vector<8x8xf32> -> vector<8x32xf32>
    %985 = vector.extract_strided_slice %906 {offsets = [8, 0], sizes = [8, 32], strides = [1, 1]} : vector<16x32xf32> to vector<8x32xf32>
    %986 = vector.extract_strided_slice %913 {offsets = [8, 0], sizes = [8, 32], strides = [1, 1]} : vector<16x32xf32> to vector<8x32xf32>
    %987 = vector.extract_strided_slice %920 {offsets = [8, 0], sizes = [8, 32], strides = [1, 1]} : vector<16x32xf32> to vector<8x32xf32>
    %988 = vector.extract_strided_slice %985 {offsets = [0, 0], sizes = [8, 8], strides = [1, 1]} : vector<8x32xf32> to vector<8x8xf32>
    %989 = vector.extract_strided_slice %986 {offsets = [0, 0], sizes = [8, 8], strides = [1, 1]} : vector<8x32xf32> to vector<8x8xf32>
    %cst_372 = arith.constant dense<0.000000e+00> : vector<8x8xf32>
    %990 = tpu.matmul %988, %989, %cst_372 {dimension_numbers = #tpu.dot_dimension_numbers<[1], [1], [0], [0], [0, 0, 1, 0], [], []>} : vector<8x8xf32>, vector<8x8xf32>, vector<8x8xf32> -> vector<8x8xf32>
    %cst_373 = arith.constant dense<0xFF800000> : vector<8xf32>
    %991 = vector.multi_reduction <maximumf>, %990, %cst_373 [1] : vector<8x8xf32> to vector<8xf32>
    %992 = vector.shape_cast %991 : vector<8xf32> to vector<8x1xf32>
    %993 = vector.broadcast %992 : vector<8x1xf32> to vector<8x8xf32>
    %994 = arith.subf %990, %993 : vector<8x8xf32>
    %995 = math.exp %994 : vector<8x8xf32>
    %cst_374 = arith.constant dense<0.000000e+00> : vector<8xf32>
    %996 = vector.multi_reduction <add>, %995, %cst_374 [1] : vector<8x8xf32> to vector<8xf32>
    %997 = vector.shape_cast %996 : vector<8xf32> to vector<8x1xf32>
    %998 = tpu.reciprocal %997 {approx = true} : vector<8x1xf32> -> vector<8x1xf32>
    %999 = vector.broadcast %998 : vector<8x1xf32> to vector<8x8xf32>
    %1000 = arith.mulf %995, %999 : vector<8x8xf32>
    %1001 = vector.extract_strided_slice %987 {offsets = [0, 0], sizes = [8, 8], strides = [1, 1]} : vector<8x32xf32> to vector<8x8xf32>
    %cst_375 = arith.constant dense<0.000000e+00> : vector<8x8xf32>
    %1002 = tpu.matmul %1000, %1001, %cst_375 {dimension_numbers = #tpu.dot_dimension_numbers<[1], [0], [0], [1], [0, 0, 1, 1], [], []>} : vector<8x8xf32>, vector<8x8xf32>, vector<8x8xf32> -> vector<8x8xf32>
    %1003 = vector.extract_strided_slice %985 {offsets = [0, 8], sizes = [8, 8], strides = [1, 1]} : vector<8x32xf32> to vector<8x8xf32>
    %1004 = vector.extract_strided_slice %986 {offsets = [0, 8], sizes = [8, 8], strides = [1, 1]} : vector<8x32xf32> to vector<8x8xf32>
    %cst_376 = arith.constant dense<0.000000e+00> : vector<8x8xf32>
    %1005 = tpu.matmul %1003, %1004, %cst_376 {dimension_numbers = #tpu.dot_dimension_numbers<[1], [1], [0], [0], [0, 0, 1, 0], [], []>} : vector<8x8xf32>, vector<8x8xf32>, vector<8x8xf32> -> vector<8x8xf32>
    %cst_377 = arith.constant dense<0xFF800000> : vector<8xf32>
    %1006 = vector.multi_reduction <maximumf>, %1005, %cst_377 [1] : vector<8x8xf32> to vector<8xf32>
    %1007 = vector.shape_cast %1006 : vector<8xf32> to vector<8x1xf32>
    %1008 = vector.broadcast %1007 : vector<8x1xf32> to vector<8x8xf32>
    %1009 = arith.subf %1005, %1008 : vector<8x8xf32>
    %1010 = math.exp %1009 : vector<8x8xf32>
    %cst_378 = arith.constant dense<0.000000e+00> : vector<8xf32>
    %1011 = vector.multi_reduction <add>, %1010, %cst_378 [1] : vector<8x8xf32> to vector<8xf32>
    %1012 = vector.shape_cast %1011 : vector<8xf32> to vector<8x1xf32>
    %1013 = tpu.reciprocal %1012 {approx = true} : vector<8x1xf32> -> vector<8x1xf32>
    %1014 = vector.broadcast %1013 : vector<8x1xf32> to vector<8x8xf32>
    %1015 = arith.mulf %1010, %1014 : vector<8x8xf32>
    %1016 = vector.extract_strided_slice %987 {offsets = [0, 8], sizes = [8, 8], strides = [1, 1]} : vector<8x32xf32> to vector<8x8xf32>
    %cst_379 = arith.constant dense<0.000000e+00> : vector<8x8xf32>
    %1017 = tpu.matmul %1015, %1016, %cst_379 {dimension_numbers = #tpu.dot_dimension_numbers<[1], [0], [0], [1], [0, 0, 1, 1], [], []>} : vector<8x8xf32>, vector<8x8xf32>, vector<8x8xf32> -> vector<8x8xf32>
    %1018 = vector.extract_strided_slice %985 {offsets = [0, 16], sizes = [8, 8], strides = [1, 1]} : vector<8x32xf32> to vector<8x8xf32>
    %1019 = vector.extract_strided_slice %986 {offsets = [0, 16], sizes = [8, 8], strides = [1, 1]} : vector<8x32xf32> to vector<8x8xf32>
    %cst_380 = arith.constant dense<0.000000e+00> : vector<8x8xf32>
    %1020 = tpu.matmul %1018, %1019, %cst_380 {dimension_numbers = #tpu.dot_dimension_numbers<[1], [1], [0], [0], [0, 0, 1, 0], [], []>} : vector<8x8xf32>, vector<8x8xf32>, vector<8x8xf32> -> vector<8x8xf32>
    %cst_381 = arith.constant dense<0xFF800000> : vector<8xf32>
    %1021 = vector.multi_reduction <maximumf>, %1020, %cst_381 [1] : vector<8x8xf32> to vector<8xf32>
    %1022 = vector.shape_cast %1021 : vector<8xf32> to vector<8x1xf32>
    %1023 = vector.broadcast %1022 : vector<8x1xf32> to vector<8x8xf32>
    %1024 = arith.subf %1020, %1023 : vector<8x8xf32>
    %1025 = math.exp %1024 : vector<8x8xf32>
    %cst_382 = arith.constant dense<0.000000e+00> : vector<8xf32>
    %1026 = vector.multi_reduction <add>, %1025, %cst_382 [1] : vector<8x8xf32> to vector<8xf32>
    %1027 = vector.shape_cast %1026 : vector<8xf32> to vector<8x1xf32>
    %1028 = tpu.reciprocal %1027 {approx = true} : vector<8x1xf32> -> vector<8x1xf32>
    %1029 = vector.broadcast %1028 : vector<8x1xf32> to vector<8x8xf32>
    %1030 = arith.mulf %1025, %1029 : vector<8x8xf32>
    %1031 = vector.extract_strided_slice %987 {offsets = [0, 16], sizes = [8, 8], strides = [1, 1]} : vector<8x32xf32> to vector<8x8xf32>
    %cst_383 = arith.constant dense<0.000000e+00> : vector<8x8xf32>
    %1032 = tpu.matmul %1030, %1031, %cst_383 {dimension_numbers = #tpu.dot_dimension_numbers<[1], [0], [0], [1], [0, 0, 1, 1], [], []>} : vector<8x8xf32>, vector<8x8xf32>, vector<8x8xf32> -> vector<8x8xf32>
    %1033 = vector.extract_strided_slice %985 {offsets = [0, 24], sizes = [8, 8], strides = [1, 1]} : vector<8x32xf32> to vector<8x8xf32>
    %1034 = vector.extract_strided_slice %986 {offsets = [0, 24], sizes = [8, 8], strides = [1, 1]} : vector<8x32xf32> to vector<8x8xf32>
    %cst_384 = arith.constant dense<0.000000e+00> : vector<8x8xf32>
    %1035 = tpu.matmul %1033, %1034, %cst_384 {dimension_numbers = #tpu.dot_dimension_numbers<[1], [1], [0], [0], [0, 0, 1, 0], [], []>} : vector<8x8xf32>, vector<8x8xf32>, vector<8x8xf32> -> vector<8x8xf32>
    %cst_385 = arith.constant dense<0xFF800000> : vector<8xf32>
    %1036 = vector.multi_reduction <maximumf>, %1035, %cst_385 [1] : vector<8x8xf32> to vector<8xf32>
    %1037 = vector.shape_cast %1036 : vector<8xf32> to vector<8x1xf32>
    %1038 = vector.broadcast %1037 : vector<8x1xf32> to vector<8x8xf32>
    %1039 = arith.subf %1035, %1038 : vector<8x8xf32>
    %1040 = math.exp %1039 : vector<8x8xf32>
    %cst_386 = arith.constant dense<0.000000e+00> : vector<8xf32>
    %1041 = vector.multi_reduction <add>, %1040, %cst_386 [1] : vector<8x8xf32> to vector<8xf32>
    %1042 = vector.shape_cast %1041 : vector<8xf32> to vector<8x1xf32>
    %1043 = tpu.reciprocal %1042 {approx = true} : vector<8x1xf32> -> vector<8x1xf32>
    %1044 = vector.broadcast %1043 : vector<8x1xf32> to vector<8x8xf32>
    %1045 = arith.mulf %1040, %1044 : vector<8x8xf32>
    %1046 = vector.extract_strided_slice %987 {offsets = [0, 24], sizes = [8, 8], strides = [1, 1]} : vector<8x32xf32> to vector<8x8xf32>
    %cst_387 = arith.constant dense<0.000000e+00> : vector<8x8xf32>
    %1047 = tpu.matmul %1045, %1046, %cst_387 {dimension_numbers = #tpu.dot_dimension_numbers<[1], [0], [0], [1], [0, 0, 1, 1], [], []>} : vector<8x8xf32>, vector<8x8xf32>, vector<8x8xf32> -> vector<8x8xf32>
    %1048 = tpu.concatenate %1002, %1017, %1032, %1047 in 1 : vector<8x8xf32>, vector<8x8xf32>, vector<8x8xf32>, vector<8x8xf32> -> vector<8x32xf32>
    %1049 = tpu.concatenate %984, %1048 in 0 : vector<8x32xf32>, vector<8x32xf32> -> vector<16x32xf32>
    %cst_388 = arith.constant dense<0.000000e+00> : vector<16x32xf32>
    %1050 = tpu.matmul %1049, %897, %cst_388 {dimension_numbers = #tpu.dot_dimension_numbers<[1], [0], [0], [1], [0, 0, 1, 1], [], []>} : vector<16x32xf32>, vector<32x32xf32>, vector<16x32xf32> -> vector<16x32xf32>
    %1051 = vector.broadcast %899 : vector<1x32xf32> to vector<16x32xf32>
    %1052 = arith.addf %1050, %1051 : vector<16x32xf32>
    %c1_389 = arith.constant 1 : index
    %c0_390 = arith.constant 0 : index
    %c0_391 = arith.constant 0 : index
    %c0_392 = arith.constant 0 : index
    %1053 = vector.load %arg25[%c1_389, %c0_390, %c0_391, %c0_392] : memref<2x3x1x32xf32, #tpu.memory_space<vmem>>, vector<1x1x1x32xf32>
    %1054 = vector.shape_cast %1053 : vector<1x1x1x32xf32> to vector<1x32xf32>
    %c1_393 = arith.constant 1 : index
    %c0_394 = arith.constant 0 : index
    %c0_395 = arith.constant 0 : index
    %c0_396 = arith.constant 0 : index
    %1055 = vector.load %arg26[%c1_393, %c0_394, %c0_395, %c0_396] : memref<2x3x1x32xf32, #tpu.memory_space<vmem>>, vector<1x1x1x32xf32>
    %1056 = vector.shape_cast %1055 : vector<1x1x1x32xf32> to vector<1x32xf32>
    %1057 = arith.addf %890, %1052 : vector<16x32xf32>
    %cst_397 = arith.constant dense<0.000000e+00> : vector<16xf32>
    %1058 = vector.multi_reduction <add>, %1057, %cst_397 [1] : vector<16x32xf32> to vector<16xf32>
    %1059 = vector.shape_cast %1058 : vector<16xf32> to vector<16x1xf32>
    %cst_398 = arith.constant 3.200000e+01 : f32
    %1060 = vector.broadcast %cst_398 : f32 to vector<16x1xf32>
    %1061 = arith.divf %1059, %1060 : vector<16x1xf32>
    %1062 = vector.broadcast %1061 : vector<16x1xf32> to vector<16x32xf32>
    %1063 = arith.subf %1057, %1062 : vector<16x32xf32>
    %1064 = arith.mulf %1063, %1063 : vector<16x32xf32>
    %cst_399 = arith.constant dense<0.000000e+00> : vector<16xf32>
    %1065 = vector.multi_reduction <add>, %1064, %cst_399 [1] : vector<16x32xf32> to vector<16xf32>
    %1066 = vector.shape_cast %1065 : vector<16xf32> to vector<16x1xf32>
    %cst_400 = arith.constant 3.200000e+01 : f32
    %1067 = vector.broadcast %cst_400 : f32 to vector<16x1xf32>
    %1068 = arith.divf %1066, %1067 : vector<16x1xf32>
    %1069 = vector.broadcast %1061 : vector<16x1xf32> to vector<16x32xf32>
    %1070 = arith.subf %1057, %1069 : vector<16x32xf32>
    %cst_401 = arith.constant 9.99999974E-6 : f32
    %1071 = vector.broadcast %cst_401 : f32 to vector<16x1xf32>
    %1072 = arith.addf %1068, %1071 : vector<16x1xf32>
    %1073 = math.rsqrt %1072 : vector<16x1xf32>
    %1074 = vector.broadcast %1073 : vector<16x1xf32> to vector<16x32xf32>
    %1075 = arith.mulf %1070, %1074 : vector<16x32xf32>
    %1076 = vector.broadcast %1054 : vector<1x32xf32> to vector<16x32xf32>
    %1077 = arith.mulf %1075, %1076 : vector<16x32xf32>
    %1078 = vector.broadcast %1056 : vector<1x32xf32> to vector<16x32xf32>
    %1079 = arith.addf %1077, %1078 : vector<16x32xf32>
    %1080 = arith.addf %1079, %467 : vector<16x32xf32>
    %c1_402 = arith.constant 1 : index
    %c0_403 = arith.constant 0 : index
    %c0_404 = arith.constant 0 : index
    %c0_405 = arith.constant 0 : index
    %1081 = vector.load %arg17[%c1_402, %c0_403, %c0_404, %c0_405] : memref<2x3x32x32xf32, #tpu.memory_space<vmem>>, vector<1x3x32x32xf32>
    %1082 = vector.shape_cast %1081 : vector<1x3x32x32xf32> to vector<3x32x32xf32>
    %c1_406 = arith.constant 1 : index
    %c0_407 = arith.constant 0 : index
    %c0_408 = arith.constant 0 : index
    %c0_409 = arith.constant 0 : index
    %1083 = vector.load %arg18[%c1_406, %c0_407, %c0_408, %c0_409] : memref<2x3x1x32xf32, #tpu.memory_space<vmem>>, vector<1x3x1x32xf32>
    %1084 = vector.shape_cast %1083 : vector<1x3x1x32xf32> to vector<3x1x32xf32>
    %c1_410 = arith.constant 1 : index
    %c0_411 = arith.constant 0 : index
    %c0_412 = arith.constant 0 : index
    %1085 = vector.load %arg19[%c1_410, %c0_411, %c0_412] : memref<2x32x32xf32, #tpu.memory_space<vmem>>, vector<1x32x32xf32>
    %1086 = vector.shape_cast %1085 : vector<1x32x32xf32> to vector<32x32xf32>
    %c1_413 = arith.constant 1 : index
    %c0_414 = arith.constant 0 : index
    %c0_415 = arith.constant 0 : index
    %1087 = vector.load %arg20[%c1_413, %c0_414, %c0_415] : memref<2x1x32xf32, #tpu.memory_space<vmem>>, vector<1x1x32xf32>
    %1088 = vector.shape_cast %1087 : vector<1x1x32xf32> to vector<1x32xf32>
    %1089 = vector.extract_strided_slice %1082 {offsets = [0, 0, 0], sizes = [1, 32, 32], strides = [1, 1, 1]} : vector<3x32x32xf32> to vector<1x32x32xf32>
    %1090 = vector.shape_cast %1089 : vector<1x32x32xf32> to vector<32x32xf32>
    %cst_416 = arith.constant dense<0.000000e+00> : vector<16x32xf32>
    %1091 = tpu.matmul %1080, %1090, %cst_416 {dimension_numbers = #tpu.dot_dimension_numbers<[1], [0], [0], [1], [0, 0, 1, 1], [], []>} : vector<16x32xf32>, vector<32x32xf32>, vector<16x32xf32> -> vector<16x32xf32>
    %1092 = vector.extract_strided_slice %1084 {offsets = [0, 0, 0], sizes = [1, 1, 32], strides = [1, 1, 1]} : vector<3x1x32xf32> to vector<1x1x32xf32>
    %1093 = vector.shape_cast %1092 : vector<1x1x32xf32> to vector<1x32xf32>
    %1094 = vector.broadcast %1093 : vector<1x32xf32> to vector<16x32xf32>
    %1095 = arith.addf %1091, %1094 : vector<16x32xf32>
    %1096 = vector.extract_strided_slice %1082 {offsets = [1, 0, 0], sizes = [1, 32, 32], strides = [1, 1, 1]} : vector<3x32x32xf32> to vector<1x32x32xf32>
    %1097 = vector.shape_cast %1096 : vector<1x32x32xf32> to vector<32x32xf32>
    %cst_417 = arith.constant dense<0.000000e+00> : vector<32x32xf32>
    %1098 = tpu.matmul %469, %1097, %cst_417 {dimension_numbers = #tpu.dot_dimension_numbers<[1], [0], [0], [1], [0, 0, 1, 1], [], []>} : vector<32x32xf32>, vector<32x32xf32>, vector<32x32xf32> -> vector<32x32xf32>
    %1099 = vector.extract_strided_slice %1084 {offsets = [1, 0, 0], sizes = [1, 1, 32], strides = [1, 1, 1]} : vector<3x1x32xf32> to vector<1x1x32xf32>
    %1100 = vector.shape_cast %1099 : vector<1x1x32xf32> to vector<1x32xf32>
    %1101 = vector.broadcast %1100 : vector<1x32xf32> to vector<32x32xf32>
    %1102 = arith.addf %1098, %1101 : vector<32x32xf32>
    %1103 = vector.extract_strided_slice %1082 {offsets = [2, 0, 0], sizes = [1, 32, 32], strides = [1, 1, 1]} : vector<3x32x32xf32> to vector<1x32x32xf32>
    %1104 = vector.shape_cast %1103 : vector<1x32x32xf32> to vector<32x32xf32>
    %cst_418 = arith.constant dense<0.000000e+00> : vector<32x32xf32>
    %1105 = tpu.matmul %466, %1104, %cst_418 {dimension_numbers = #tpu.dot_dimension_numbers<[1], [0], [0], [1], [0, 0, 1, 1], [], []>} : vector<32x32xf32>, vector<32x32xf32>, vector<32x32xf32> -> vector<32x32xf32>
    %1106 = vector.extract_strided_slice %1084 {offsets = [2, 0, 0], sizes = [1, 1, 32], strides = [1, 1, 1]} : vector<3x1x32xf32> to vector<1x1x32xf32>
    %1107 = vector.shape_cast %1106 : vector<1x1x32xf32> to vector<1x32xf32>
    %1108 = vector.broadcast %1107 : vector<1x32xf32> to vector<32x32xf32>
    %1109 = arith.addf %1105, %1108 : vector<32x32xf32>
    %1110 = vector.extract_strided_slice %1095 {offsets = [0, 0], sizes = [8, 32], strides = [1, 1]} : vector<16x32xf32> to vector<8x32xf32>
    %1111 = vector.extract_strided_slice %1102 {offsets = [0, 0], sizes = [16, 32], strides = [1, 1]} : vector<32x32xf32> to vector<16x32xf32>
    %1112 = vector.extract_strided_slice %1109 {offsets = [0, 0], sizes = [16, 32], strides = [1, 1]} : vector<32x32xf32> to vector<16x32xf32>
    %1113 = vector.extract_strided_slice %1110 {offsets = [0, 0], sizes = [8, 8], strides = [1, 1]} : vector<8x32xf32> to vector<8x8xf32>
    %1114 = vector.extract_strided_slice %1111 {offsets = [0, 0], sizes = [16, 8], strides = [1, 1]} : vector<16x32xf32> to vector<16x8xf32>
    %cst_419 = arith.constant dense<0.000000e+00> : vector<8x16xf32>
    %1115 = tpu.matmul %1113, %1114, %cst_419 {dimension_numbers = #tpu.dot_dimension_numbers<[1], [1], [0], [0], [0, 0, 1, 0], [], []>} : vector<8x8xf32>, vector<16x8xf32>, vector<8x16xf32> -> vector<8x16xf32>
    %cst_420 = arith.constant dense<0xFF800000> : vector<8xf32>
    %1116 = vector.multi_reduction <maximumf>, %1115, %cst_420 [1] : vector<8x16xf32> to vector<8xf32>
    %1117 = vector.shape_cast %1116 : vector<8xf32> to vector<8x1xf32>
    %1118 = vector.broadcast %1117 : vector<8x1xf32> to vector<8x16xf32>
    %1119 = arith.subf %1115, %1118 : vector<8x16xf32>
    %1120 = math.exp %1119 : vector<8x16xf32>
    %cst_421 = arith.constant dense<0.000000e+00> : vector<8xf32>
    %1121 = vector.multi_reduction <add>, %1120, %cst_421 [1] : vector<8x16xf32> to vector<8xf32>
    %1122 = vector.shape_cast %1121 : vector<8xf32> to vector<8x1xf32>
    %1123 = tpu.reciprocal %1122 {approx = true} : vector<8x1xf32> -> vector<8x1xf32>
    %1124 = vector.broadcast %1123 : vector<8x1xf32> to vector<8x16xf32>
    %1125 = arith.mulf %1120, %1124 : vector<8x16xf32>
    %1126 = vector.extract_strided_slice %1112 {offsets = [0, 0], sizes = [16, 8], strides = [1, 1]} : vector<16x32xf32> to vector<16x8xf32>
    %cst_422 = arith.constant dense<0.000000e+00> : vector<8x8xf32>
    %1127 = tpu.matmul %1125, %1126, %cst_422 {dimension_numbers = #tpu.dot_dimension_numbers<[1], [0], [0], [1], [0, 0, 1, 1], [], []>} : vector<8x16xf32>, vector<16x8xf32>, vector<8x8xf32> -> vector<8x8xf32>
    %1128 = vector.extract_strided_slice %1110 {offsets = [0, 8], sizes = [8, 8], strides = [1, 1]} : vector<8x32xf32> to vector<8x8xf32>
    %1129 = vector.extract_strided_slice %1111 {offsets = [0, 8], sizes = [16, 8], strides = [1, 1]} : vector<16x32xf32> to vector<16x8xf32>
    %cst_423 = arith.constant dense<0.000000e+00> : vector<8x16xf32>
    %1130 = tpu.matmul %1128, %1129, %cst_423 {dimension_numbers = #tpu.dot_dimension_numbers<[1], [1], [0], [0], [0, 0, 1, 0], [], []>} : vector<8x8xf32>, vector<16x8xf32>, vector<8x16xf32> -> vector<8x16xf32>
    %cst_424 = arith.constant dense<0xFF800000> : vector<8xf32>
    %1131 = vector.multi_reduction <maximumf>, %1130, %cst_424 [1] : vector<8x16xf32> to vector<8xf32>
    %1132 = vector.shape_cast %1131 : vector<8xf32> to vector<8x1xf32>
    %1133 = vector.broadcast %1132 : vector<8x1xf32> to vector<8x16xf32>
    %1134 = arith.subf %1130, %1133 : vector<8x16xf32>
    %1135 = math.exp %1134 : vector<8x16xf32>
    %cst_425 = arith.constant dense<0.000000e+00> : vector<8xf32>
    %1136 = vector.multi_reduction <add>, %1135, %cst_425 [1] : vector<8x16xf32> to vector<8xf32>
    %1137 = vector.shape_cast %1136 : vector<8xf32> to vector<8x1xf32>
    %1138 = tpu.reciprocal %1137 {approx = true} : vector<8x1xf32> -> vector<8x1xf32>
    %1139 = vector.broadcast %1138 : vector<8x1xf32> to vector<8x16xf32>
    %1140 = arith.mulf %1135, %1139 : vector<8x16xf32>
    %1141 = vector.extract_strided_slice %1112 {offsets = [0, 8], sizes = [16, 8], strides = [1, 1]} : vector<16x32xf32> to vector<16x8xf32>
    %cst_426 = arith.constant dense<0.000000e+00> : vector<8x8xf32>
    %1142 = tpu.matmul %1140, %1141, %cst_426 {dimension_numbers = #tpu.dot_dimension_numbers<[1], [0], [0], [1], [0, 0, 1, 1], [], []>} : vector<8x16xf32>, vector<16x8xf32>, vector<8x8xf32> -> vector<8x8xf32>
    %1143 = vector.extract_strided_slice %1110 {offsets = [0, 16], sizes = [8, 8], strides = [1, 1]} : vector<8x32xf32> to vector<8x8xf32>
    %1144 = vector.extract_strided_slice %1111 {offsets = [0, 16], sizes = [16, 8], strides = [1, 1]} : vector<16x32xf32> to vector<16x8xf32>
    %cst_427 = arith.constant dense<0.000000e+00> : vector<8x16xf32>
    %1145 = tpu.matmul %1143, %1144, %cst_427 {dimension_numbers = #tpu.dot_dimension_numbers<[1], [1], [0], [0], [0, 0, 1, 0], [], []>} : vector<8x8xf32>, vector<16x8xf32>, vector<8x16xf32> -> vector<8x16xf32>
    %cst_428 = arith.constant dense<0xFF800000> : vector<8xf32>
    %1146 = vector.multi_reduction <maximumf>, %1145, %cst_428 [1] : vector<8x16xf32> to vector<8xf32>
    %1147 = vector.shape_cast %1146 : vector<8xf32> to vector<8x1xf32>
    %1148 = vector.broadcast %1147 : vector<8x1xf32> to vector<8x16xf32>
    %1149 = arith.subf %1145, %1148 : vector<8x16xf32>
    %1150 = math.exp %1149 : vector<8x16xf32>
    %cst_429 = arith.constant dense<0.000000e+00> : vector<8xf32>
    %1151 = vector.multi_reduction <add>, %1150, %cst_429 [1] : vector<8x16xf32> to vector<8xf32>
    %1152 = vector.shape_cast %1151 : vector<8xf32> to vector<8x1xf32>
    %1153 = tpu.reciprocal %1152 {approx = true} : vector<8x1xf32> -> vector<8x1xf32>
    %1154 = vector.broadcast %1153 : vector<8x1xf32> to vector<8x16xf32>
    %1155 = arith.mulf %1150, %1154 : vector<8x16xf32>
    %1156 = vector.extract_strided_slice %1112 {offsets = [0, 16], sizes = [16, 8], strides = [1, 1]} : vector<16x32xf32> to vector<16x8xf32>
    %cst_430 = arith.constant dense<0.000000e+00> : vector<8x8xf32>
    %1157 = tpu.matmul %1155, %1156, %cst_430 {dimension_numbers = #tpu.dot_dimension_numbers<[1], [0], [0], [1], [0, 0, 1, 1], [], []>} : vector<8x16xf32>, vector<16x8xf32>, vector<8x8xf32> -> vector<8x8xf32>
    %1158 = vector.extract_strided_slice %1110 {offsets = [0, 24], sizes = [8, 8], strides = [1, 1]} : vector<8x32xf32> to vector<8x8xf32>
    %1159 = vector.extract_strided_slice %1111 {offsets = [0, 24], sizes = [16, 8], strides = [1, 1]} : vector<16x32xf32> to vector<16x8xf32>
    %cst_431 = arith.constant dense<0.000000e+00> : vector<8x16xf32>
    %1160 = tpu.matmul %1158, %1159, %cst_431 {dimension_numbers = #tpu.dot_dimension_numbers<[1], [1], [0], [0], [0, 0, 1, 0], [], []>} : vector<8x8xf32>, vector<16x8xf32>, vector<8x16xf32> -> vector<8x16xf32>
    %cst_432 = arith.constant dense<0xFF800000> : vector<8xf32>
    %1161 = vector.multi_reduction <maximumf>, %1160, %cst_432 [1] : vector<8x16xf32> to vector<8xf32>
    %1162 = vector.shape_cast %1161 : vector<8xf32> to vector<8x1xf32>
    %1163 = vector.broadcast %1162 : vector<8x1xf32> to vector<8x16xf32>
    %1164 = arith.subf %1160, %1163 : vector<8x16xf32>
    %1165 = math.exp %1164 : vector<8x16xf32>
    %cst_433 = arith.constant dense<0.000000e+00> : vector<8xf32>
    %1166 = vector.multi_reduction <add>, %1165, %cst_433 [1] : vector<8x16xf32> to vector<8xf32>
    %1167 = vector.shape_cast %1166 : vector<8xf32> to vector<8x1xf32>
    %1168 = tpu.reciprocal %1167 {approx = true} : vector<8x1xf32> -> vector<8x1xf32>
    %1169 = vector.broadcast %1168 : vector<8x1xf32> to vector<8x16xf32>
    %1170 = arith.mulf %1165, %1169 : vector<8x16xf32>
    %1171 = vector.extract_strided_slice %1112 {offsets = [0, 24], sizes = [16, 8], strides = [1, 1]} : vector<16x32xf32> to vector<16x8xf32>
    %cst_434 = arith.constant dense<0.000000e+00> : vector<8x8xf32>
    %1172 = tpu.matmul %1170, %1171, %cst_434 {dimension_numbers = #tpu.dot_dimension_numbers<[1], [0], [0], [1], [0, 0, 1, 1], [], []>} : vector<8x16xf32>, vector<16x8xf32>, vector<8x8xf32> -> vector<8x8xf32>
    %1173 = tpu.concatenate %1127, %1142, %1157, %1172 in 1 : vector<8x8xf32>, vector<8x8xf32>, vector<8x8xf32>, vector<8x8xf32> -> vector<8x32xf32>
    %1174 = vector.extract_strided_slice %1095 {offsets = [8, 0], sizes = [8, 32], strides = [1, 1]} : vector<16x32xf32> to vector<8x32xf32>
    %1175 = vector.extract_strided_slice %1102 {offsets = [16, 0], sizes = [16, 32], strides = [1, 1]} : vector<32x32xf32> to vector<16x32xf32>
    %1176 = vector.extract_strided_slice %1109 {offsets = [16, 0], sizes = [16, 32], strides = [1, 1]} : vector<32x32xf32> to vector<16x32xf32>
    %1177 = vector.extract_strided_slice %1174 {offsets = [0, 0], sizes = [8, 8], strides = [1, 1]} : vector<8x32xf32> to vector<8x8xf32>
    %1178 = vector.extract_strided_slice %1175 {offsets = [0, 0], sizes = [16, 8], strides = [1, 1]} : vector<16x32xf32> to vector<16x8xf32>
    %cst_435 = arith.constant dense<0.000000e+00> : vector<8x16xf32>
    %1179 = tpu.matmul %1177, %1178, %cst_435 {dimension_numbers = #tpu.dot_dimension_numbers<[1], [1], [0], [0], [0, 0, 1, 0], [], []>} : vector<8x8xf32>, vector<16x8xf32>, vector<8x16xf32> -> vector<8x16xf32>
    %cst_436 = arith.constant dense<0xFF800000> : vector<8xf32>
    %1180 = vector.multi_reduction <maximumf>, %1179, %cst_436 [1] : vector<8x16xf32> to vector<8xf32>
    %1181 = vector.shape_cast %1180 : vector<8xf32> to vector<8x1xf32>
    %1182 = vector.broadcast %1181 : vector<8x1xf32> to vector<8x16xf32>
    %1183 = arith.subf %1179, %1182 : vector<8x16xf32>
    %1184 = math.exp %1183 : vector<8x16xf32>
    %cst_437 = arith.constant dense<0.000000e+00> : vector<8xf32>
    %1185 = vector.multi_reduction <add>, %1184, %cst_437 [1] : vector<8x16xf32> to vector<8xf32>
    %1186 = vector.shape_cast %1185 : vector<8xf32> to vector<8x1xf32>
    %1187 = tpu.reciprocal %1186 {approx = true} : vector<8x1xf32> -> vector<8x1xf32>
    %1188 = vector.broadcast %1187 : vector<8x1xf32> to vector<8x16xf32>
    %1189 = arith.mulf %1184, %1188 : vector<8x16xf32>
    %1190 = vector.extract_strided_slice %1176 {offsets = [0, 0], sizes = [16, 8], strides = [1, 1]} : vector<16x32xf32> to vector<16x8xf32>
    %cst_438 = arith.constant dense<0.000000e+00> : vector<8x8xf32>
    %1191 = tpu.matmul %1189, %1190, %cst_438 {dimension_numbers = #tpu.dot_dimension_numbers<[1], [0], [0], [1], [0, 0, 1, 1], [], []>} : vector<8x16xf32>, vector<16x8xf32>, vector<8x8xf32> -> vector<8x8xf32>
    %1192 = vector.extract_strided_slice %1174 {offsets = [0, 8], sizes = [8, 8], strides = [1, 1]} : vector<8x32xf32> to vector<8x8xf32>
    %1193 = vector.extract_strided_slice %1175 {offsets = [0, 8], sizes = [16, 8], strides = [1, 1]} : vector<16x32xf32> to vector<16x8xf32>
    %cst_439 = arith.constant dense<0.000000e+00> : vector<8x16xf32>
    %1194 = tpu.matmul %1192, %1193, %cst_439 {dimension_numbers = #tpu.dot_dimension_numbers<[1], [1], [0], [0], [0, 0, 1, 0], [], []>} : vector<8x8xf32>, vector<16x8xf32>, vector<8x16xf32> -> vector<8x16xf32>
    %cst_440 = arith.constant dense<0xFF800000> : vector<8xf32>
    %1195 = vector.multi_reduction <maximumf>, %1194, %cst_440 [1] : vector<8x16xf32> to vector<8xf32>
    %1196 = vector.shape_cast %1195 : vector<8xf32> to vector<8x1xf32>
    %1197 = vector.broadcast %1196 : vector<8x1xf32> to vector<8x16xf32>
    %1198 = arith.subf %1194, %1197 : vector<8x16xf32>
    %1199 = math.exp %1198 : vector<8x16xf32>
    %cst_441 = arith.constant dense<0.000000e+00> : vector<8xf32>
    %1200 = vector.multi_reduction <add>, %1199, %cst_441 [1] : vector<8x16xf32> to vector<8xf32>
    %1201 = vector.shape_cast %1200 : vector<8xf32> to vector<8x1xf32>
    %1202 = tpu.reciprocal %1201 {approx = true} : vector<8x1xf32> -> vector<8x1xf32>
    %1203 = vector.broadcast %1202 : vector<8x1xf32> to vector<8x16xf32>
    %1204 = arith.mulf %1199, %1203 : vector<8x16xf32>
    %1205 = vector.extract_strided_slice %1176 {offsets = [0, 8], sizes = [16, 8], strides = [1, 1]} : vector<16x32xf32> to vector<16x8xf32>
    %cst_442 = arith.constant dense<0.000000e+00> : vector<8x8xf32>
    %1206 = tpu.matmul %1204, %1205, %cst_442 {dimension_numbers = #tpu.dot_dimension_numbers<[1], [0], [0], [1], [0, 0, 1, 1], [], []>} : vector<8x16xf32>, vector<16x8xf32>, vector<8x8xf32> -> vector<8x8xf32>
    %1207 = vector.extract_strided_slice %1174 {offsets = [0, 16], sizes = [8, 8], strides = [1, 1]} : vector<8x32xf32> to vector<8x8xf32>
    %1208 = vector.extract_strided_slice %1175 {offsets = [0, 16], sizes = [16, 8], strides = [1, 1]} : vector<16x32xf32> to vector<16x8xf32>
    %cst_443 = arith.constant dense<0.000000e+00> : vector<8x16xf32>
    %1209 = tpu.matmul %1207, %1208, %cst_443 {dimension_numbers = #tpu.dot_dimension_numbers<[1], [1], [0], [0], [0, 0, 1, 0], [], []>} : vector<8x8xf32>, vector<16x8xf32>, vector<8x16xf32> -> vector<8x16xf32>
    %cst_444 = arith.constant dense<0xFF800000> : vector<8xf32>
    %1210 = vector.multi_reduction <maximumf>, %1209, %cst_444 [1] : vector<8x16xf32> to vector<8xf32>
    %1211 = vector.shape_cast %1210 : vector<8xf32> to vector<8x1xf32>
    %1212 = vector.broadcast %1211 : vector<8x1xf32> to vector<8x16xf32>
    %1213 = arith.subf %1209, %1212 : vector<8x16xf32>
    %1214 = math.exp %1213 : vector<8x16xf32>
    %cst_445 = arith.constant dense<0.000000e+00> : vector<8xf32>
    %1215 = vector.multi_reduction <add>, %1214, %cst_445 [1] : vector<8x16xf32> to vector<8xf32>
    %1216 = vector.shape_cast %1215 : vector<8xf32> to vector<8x1xf32>
    %1217 = tpu.reciprocal %1216 {approx = true} : vector<8x1xf32> -> vector<8x1xf32>
    %1218 = vector.broadcast %1217 : vector<8x1xf32> to vector<8x16xf32>
    %1219 = arith.mulf %1214, %1218 : vector<8x16xf32>
    %1220 = vector.extract_strided_slice %1176 {offsets = [0, 16], sizes = [16, 8], strides = [1, 1]} : vector<16x32xf32> to vector<16x8xf32>
    %cst_446 = arith.constant dense<0.000000e+00> : vector<8x8xf32>
    %1221 = tpu.matmul %1219, %1220, %cst_446 {dimension_numbers = #tpu.dot_dimension_numbers<[1], [0], [0], [1], [0, 0, 1, 1], [], []>} : vector<8x16xf32>, vector<16x8xf32>, vector<8x8xf32> -> vector<8x8xf32>
    %1222 = vector.extract_strided_slice %1174 {offsets = [0, 24], sizes = [8, 8], strides = [1, 1]} : vector<8x32xf32> to vector<8x8xf32>
    %1223 = vector.extract_strided_slice %1175 {offsets = [0, 24], sizes = [16, 8], strides = [1, 1]} : vector<16x32xf32> to vector<16x8xf32>
    %cst_447 = arith.constant dense<0.000000e+00> : vector<8x16xf32>
    %1224 = tpu.matmul %1222, %1223, %cst_447 {dimension_numbers = #tpu.dot_dimension_numbers<[1], [1], [0], [0], [0, 0, 1, 0], [], []>} : vector<8x8xf32>, vector<16x8xf32>, vector<8x16xf32> -> vector<8x16xf32>
    %cst_448 = arith.constant dense<0xFF800000> : vector<8xf32>
    %1225 = vector.multi_reduction <maximumf>, %1224, %cst_448 [1] : vector<8x16xf32> to vector<8xf32>
    %1226 = vector.shape_cast %1225 : vector<8xf32> to vector<8x1xf32>
    %1227 = vector.broadcast %1226 : vector<8x1xf32> to vector<8x16xf32>
    %1228 = arith.subf %1224, %1227 : vector<8x16xf32>
    %1229 = math.exp %1228 : vector<8x16xf32>
    %cst_449 = arith.constant dense<0.000000e+00> : vector<8xf32>
    %1230 = vector.multi_reduction <add>, %1229, %cst_449 [1] : vector<8x16xf32> to vector<8xf32>
    %1231 = vector.shape_cast %1230 : vector<8xf32> to vector<8x1xf32>
    %1232 = tpu.reciprocal %1231 {approx = true} : vector<8x1xf32> -> vector<8x1xf32>
    %1233 = vector.broadcast %1232 : vector<8x1xf32> to vector<8x16xf32>
    %1234 = arith.mulf %1229, %1233 : vector<8x16xf32>
    %1235 = vector.extract_strided_slice %1176 {offsets = [0, 24], sizes = [16, 8], strides = [1, 1]} : vector<16x32xf32> to vector<16x8xf32>
    %cst_450 = arith.constant dense<0.000000e+00> : vector<8x8xf32>
    %1236 = tpu.matmul %1234, %1235, %cst_450 {dimension_numbers = #tpu.dot_dimension_numbers<[1], [0], [0], [1], [0, 0, 1, 1], [], []>} : vector<8x16xf32>, vector<16x8xf32>, vector<8x8xf32> -> vector<8x8xf32>
    %1237 = tpu.concatenate %1191, %1206, %1221, %1236 in 1 : vector<8x8xf32>, vector<8x8xf32>, vector<8x8xf32>, vector<8x8xf32> -> vector<8x32xf32>
    %1238 = tpu.concatenate %1173, %1237 in 0 : vector<8x32xf32>, vector<8x32xf32> -> vector<16x32xf32>
    %cst_451 = arith.constant dense<0.000000e+00> : vector<16x32xf32>
    %1239 = tpu.matmul %1238, %1086, %cst_451 {dimension_numbers = #tpu.dot_dimension_numbers<[1], [0], [0], [1], [0, 0, 1, 1], [], []>} : vector<16x32xf32>, vector<32x32xf32>, vector<16x32xf32> -> vector<16x32xf32>
    %1240 = vector.broadcast %1088 : vector<1x32xf32> to vector<16x32xf32>
    %1241 = arith.addf %1239, %1240 : vector<16x32xf32>
    %c1_452 = arith.constant 1 : index
    %c1_453 = arith.constant 1 : index
    %c0_454 = arith.constant 0 : index
    %c0_455 = arith.constant 0 : index
    %1242 = vector.load %arg25[%c1_452, %c1_453, %c0_454, %c0_455] : memref<2x3x1x32xf32, #tpu.memory_space<vmem>>, vector<1x1x1x32xf32>
    %1243 = vector.shape_cast %1242 : vector<1x1x1x32xf32> to vector<1x32xf32>
    %c1_456 = arith.constant 1 : index
    %c1_457 = arith.constant 1 : index
    %c0_458 = arith.constant 0 : index
    %c0_459 = arith.constant 0 : index
    %1244 = vector.load %arg26[%c1_456, %c1_457, %c0_458, %c0_459] : memref<2x3x1x32xf32, #tpu.memory_space<vmem>>, vector<1x1x1x32xf32>
    %1245 = vector.shape_cast %1244 : vector<1x1x1x32xf32> to vector<1x32xf32>
    %1246 = arith.addf %1079, %1241 : vector<16x32xf32>
    %cst_460 = arith.constant dense<0.000000e+00> : vector<16xf32>
    %1247 = vector.multi_reduction <add>, %1246, %cst_460 [1] : vector<16x32xf32> to vector<16xf32>
    %1248 = vector.shape_cast %1247 : vector<16xf32> to vector<16x1xf32>
    %cst_461 = arith.constant 3.200000e+01 : f32
    %1249 = vector.broadcast %cst_461 : f32 to vector<16x1xf32>
    %1250 = arith.divf %1248, %1249 : vector<16x1xf32>
    %1251 = vector.broadcast %1250 : vector<16x1xf32> to vector<16x32xf32>
    %1252 = arith.subf %1246, %1251 : vector<16x32xf32>
    %1253 = arith.mulf %1252, %1252 : vector<16x32xf32>
    %cst_462 = arith.constant dense<0.000000e+00> : vector<16xf32>
    %1254 = vector.multi_reduction <add>, %1253, %cst_462 [1] : vector<16x32xf32> to vector<16xf32>
    %1255 = vector.shape_cast %1254 : vector<16xf32> to vector<16x1xf32>
    %cst_463 = arith.constant 3.200000e+01 : f32
    %1256 = vector.broadcast %cst_463 : f32 to vector<16x1xf32>
    %1257 = arith.divf %1255, %1256 : vector<16x1xf32>
    %1258 = vector.broadcast %1250 : vector<16x1xf32> to vector<16x32xf32>
    %1259 = arith.subf %1246, %1258 : vector<16x32xf32>
    %cst_464 = arith.constant 9.99999974E-6 : f32
    %1260 = vector.broadcast %cst_464 : f32 to vector<16x1xf32>
    %1261 = arith.addf %1257, %1260 : vector<16x1xf32>
    %1262 = math.rsqrt %1261 : vector<16x1xf32>
    %1263 = vector.broadcast %1262 : vector<16x1xf32> to vector<16x32xf32>
    %1264 = arith.mulf %1259, %1263 : vector<16x32xf32>
    %1265 = vector.broadcast %1243 : vector<1x32xf32> to vector<16x32xf32>
    %1266 = arith.mulf %1264, %1265 : vector<16x32xf32>
    %1267 = vector.broadcast %1245 : vector<1x32xf32> to vector<16x32xf32>
    %1268 = arith.addf %1266, %1267 : vector<16x32xf32>
    %c1_465 = arith.constant 1 : index
    %c0_466 = arith.constant 0 : index
    %c0_467 = arith.constant 0 : index
    %1269 = vector.load %arg21[%c1_465, %c0_466, %c0_467] : memref<2x32x64xf32, #tpu.memory_space<vmem>>, vector<1x32x64xf32>
    %1270 = vector.shape_cast %1269 : vector<1x32x64xf32> to vector<32x64xf32>
    %cst_468 = arith.constant dense<0.000000e+00> : vector<16x64xf32>
    %1271 = tpu.matmul %1268, %1270, %cst_468 {dimension_numbers = #tpu.dot_dimension_numbers<[1], [0], [0], [1], [0, 0, 1, 1], [], []>} : vector<16x32xf32>, vector<32x64xf32>, vector<16x64xf32> -> vector<16x64xf32>
    %c1_469 = arith.constant 1 : index
    %c0_470 = arith.constant 0 : index
    %c0_471 = arith.constant 0 : index
    %1272 = vector.load %arg22[%c1_469, %c0_470, %c0_471] : memref<2x1x64xf32, #tpu.memory_space<vmem>>, vector<1x1x64xf32>
    %1273 = vector.shape_cast %1272 : vector<1x1x64xf32> to vector<1x64xf32>
    %1274 = vector.broadcast %1273 : vector<1x64xf32> to vector<16x64xf32>
    %1275 = arith.addf %1271, %1274 : vector<16x64xf32>
    %cst_472 = arith.constant 0.000000e+00 : f32
    %1276 = vector.broadcast %cst_472 : f32 to vector<16x64xf32>
    %1277 = arith.maximumf %1275, %1276 : vector<16x64xf32>
    %c1_473 = arith.constant 1 : index
    %c0_474 = arith.constant 0 : index
    %c0_475 = arith.constant 0 : index
    %1278 = vector.load %arg23[%c1_473, %c0_474, %c0_475] : memref<2x64x32xf32, #tpu.memory_space<vmem>>, vector<1x64x32xf32>
    %1279 = vector.shape_cast %1278 : vector<1x64x32xf32> to vector<64x32xf32>
    %cst_476 = arith.constant dense<0.000000e+00> : vector<16x32xf32>
    %1280 = tpu.matmul %1277, %1279, %cst_476 {dimension_numbers = #tpu.dot_dimension_numbers<[1], [0], [0], [1], [0, 0, 1, 1], [], []>} : vector<16x64xf32>, vector<64x32xf32>, vector<16x32xf32> -> vector<16x32xf32>
    %c1_477 = arith.constant 1 : index
    %c0_478 = arith.constant 0 : index
    %c0_479 = arith.constant 0 : index
    %1281 = vector.load %arg24[%c1_477, %c0_478, %c0_479] : memref<2x1x32xf32, #tpu.memory_space<vmem>>, vector<1x1x32xf32>
    %1282 = vector.shape_cast %1281 : vector<1x1x32xf32> to vector<1x32xf32>
    %1283 = vector.broadcast %1282 : vector<1x32xf32> to vector<16x32xf32>
    %1284 = arith.addf %1280, %1283 : vector<16x32xf32>
    %c1_480 = arith.constant 1 : index
    %c2_481 = arith.constant 2 : index
    %c0_482 = arith.constant 0 : index
    %c0_483 = arith.constant 0 : index
    %1285 = vector.load %arg25[%c1_480, %c2_481, %c0_482, %c0_483] : memref<2x3x1x32xf32, #tpu.memory_space<vmem>>, vector<1x1x1x32xf32>
    %1286 = vector.shape_cast %1285 : vector<1x1x1x32xf32> to vector<1x32xf32>
    %c1_484 = arith.constant 1 : index
    %c2_485 = arith.constant 2 : index
    %c0_486 = arith.constant 0 : index
    %c0_487 = arith.constant 0 : index
    %1287 = vector.load %arg26[%c1_484, %c2_485, %c0_486, %c0_487] : memref<2x3x1x32xf32, #tpu.memory_space<vmem>>, vector<1x1x1x32xf32>
    %1288 = vector.shape_cast %1287 : vector<1x1x1x32xf32> to vector<1x32xf32>
    %1289 = arith.addf %1268, %1284 : vector<16x32xf32>
    %cst_488 = arith.constant dense<0.000000e+00> : vector<16xf32>
    %1290 = vector.multi_reduction <add>, %1289, %cst_488 [1] : vector<16x32xf32> to vector<16xf32>
    %1291 = vector.shape_cast %1290 : vector<16xf32> to vector<16x1xf32>
    %cst_489 = arith.constant 3.200000e+01 : f32
    %1292 = vector.broadcast %cst_489 : f32 to vector<16x1xf32>
    %1293 = arith.divf %1291, %1292 : vector<16x1xf32>
    %1294 = vector.broadcast %1293 : vector<16x1xf32> to vector<16x32xf32>
    %1295 = arith.subf %1289, %1294 : vector<16x32xf32>
    %1296 = arith.mulf %1295, %1295 : vector<16x32xf32>
    %cst_490 = arith.constant dense<0.000000e+00> : vector<16xf32>
    %1297 = vector.multi_reduction <add>, %1296, %cst_490 [1] : vector<16x32xf32> to vector<16xf32>
    %1298 = vector.shape_cast %1297 : vector<16xf32> to vector<16x1xf32>
    %cst_491 = arith.constant 3.200000e+01 : f32
    %1299 = vector.broadcast %cst_491 : f32 to vector<16x1xf32>
    %1300 = arith.divf %1298, %1299 : vector<16x1xf32>
    %1301 = vector.broadcast %1293 : vector<16x1xf32> to vector<16x32xf32>
    %1302 = arith.subf %1289, %1301 : vector<16x32xf32>
    %cst_492 = arith.constant 9.99999974E-6 : f32
    %1303 = vector.broadcast %cst_492 : f32 to vector<16x1xf32>
    %1304 = arith.addf %1300, %1303 : vector<16x1xf32>
    %1305 = math.rsqrt %1304 : vector<16x1xf32>
    %1306 = vector.broadcast %1305 : vector<16x1xf32> to vector<16x32xf32>
    %1307 = arith.mulf %1302, %1306 : vector<16x32xf32>
    %1308 = vector.broadcast %1286 : vector<1x32xf32> to vector<16x32xf32>
    %1309 = arith.mulf %1307, %1308 : vector<16x32xf32>
    %1310 = vector.broadcast %1288 : vector<1x32xf32> to vector<16x32xf32>
    %1311 = arith.addf %1309, %1310 : vector<16x32xf32>
    %c0_493 = arith.constant 0 : index
    %c0_494 = arith.constant 0 : index
    %1312 = vector.load %arg27[%c0_493, %c0_494] : memref<16x32xf32, #tpu.memory_space<vmem>>, vector<16x32xf32>
    tpu.vector_store %arg27[%c0_493, %c0_494], %1311 {strides = array<i32>} : memref<16x32xf32, #tpu.memory_space<vmem>>, vector<16x32xf32>,
    return
  }
}

</mosaic_0001>

<bundles_post_ra>
// kernel: transformer_forward.1
= control target key start
LH: loop header
LB: loop body
LE: loop exit
PB: predicated region body
PF: predicated region fallthrough
CT: control target
= control target key end

     0   :  { %s9883_s0 = inlined_call_operand.hbm [shape: f32[32,32], index: 0, kind: input, shape index: {}]   ;;  %s9884_s1 = inlined_call_operand.hbm [shape: f32[32,32], index: 1, kind: input, shape index: {}]   ;;  %s9885_s2 = inlined_call_operand.vmem [shape: f32[8,32], index: 2, kind: input, shape index: {}]   ;;  %s9886_s3 = inlined_call_operand.vmem [shape: f32[2,3,32,32], index: 3, kind: input, shape index: {}]   ;;  %s9887_s4 = inlined_call_operand.vmem [shape: f32[2,3,1,32], index: 4, kind: input, shape index: {}]   ;;  %s9888_s5 = inlined_call_operand.vmem [shape: f32[2,32,32], index: 5, kind: input, shape index: {}]   ;;  %s9889_s6 = inlined_call_operand.hbm [shape: f32[2,1,32], index: 6, kind: input, shape index: {}]   ;;  %s9890_s7 = inlined_call_operand.vmem [shape: f32[2,32,64], index: 7, kind: input, shape index: {}]   ;;  %s9891_s8 = inlined_call_operand.hbm [shape: f32[2,1,64], index: 8, kind: input, shape index: {}]   ;;  %s9892_s9 = inlined_call_operand.vmem [shape: f32[2,64,32], index: 9, kind: input, shape index: {}]   ;;  %s9893_s10 = inlined_call_operand.hbm [shape: f32[2,1,32], index: 10, kind: input, shape index: {}]   ;;  %s9894_s11 = inlined_call_operand.vmem [shape: f32[2,2,1,32], index: 11, kind: input, shape index: {}]   ;;  %s9895_s12 = inlined_call_operand.hbm [shape: f32[2,2,1,32], index: 12, kind: input, shape index: {}]   ;;  %s9896_s13 = inlined_call_operand.hbm [shape: f32[2,3,32,32], index: 13, kind: input, shape index: {}]   ;;  %s9897_s14 = inlined_call_operand.hbm [shape: f32[2,3,1,32], index: 14, kind: input, shape index: {}]   ;;  %s9898_s15 = inlined_call_operand.hbm [shape: f32[2,32,32], index: 15, kind: input, shape index: {}]   ;;  %s9899_s16 = inlined_call_operand.hbm [shape: f32[2,1,32], index: 16, kind: input, shape index: {}]   ;;  %s9900_s17 = inlined_call_operand.hbm [shape: f32[2,3,32,32], index: 17, kind: input, shape index: {}]   ;;  %s9901_s18 = inlined_call_operand.hbm [shape: f32[2,3,1,32], index: 18, kind: input, shape index: {}]   ;;  %s9902_s19 = inlined_call_operand.hbm [shape: f32[2,32,32], index: 19, kind: input, shape index: {}]   ;;  %s9903_s20 = inlined_call_operand.hbm [shape: f32[2,1,32], index: 20, kind: input, shape index: {}]   ;;  %s9904_s21 = inlined_call_operand.hbm [shape: f32[2,32,64], index: 21, kind: input, shape index: {}]   ;;  %s9905_s22 = inlined_call_operand.hbm [shape: f32[2,1,64], index: 22, kind: input, shape index: {}]   ;;  %s9906_s23 = inlined_call_operand.vmem [shape: f32[2,64,32], index: 23, kind: input, shape index: {}]   ;;  %s9907_s24 = inlined_call_operand.hbm [shape: f32[2,1,32], index: 24, kind: input, shape index: {}]   ;;  %s9908_s25 = inlined_call_operand.hbm [shape: f32[2,3,1,32], index: 25, kind: input, shape index: {}]   ;;  %s9909_s26 = inlined_call_operand.hbm [shape: f32[2,3,1,32], index: 26, kind: input, shape index: {}]   ;;  %s9910_s27 = inlined_call_operand.hbm [shape: f32[16,32], index: 27, kind: output, shape index: {}]  }
   0x1   :  { %9920 = sst [smem:[#allocation44_spill]] %s9883_s0 }
   0x2   :  { %9921 = sst [smem:[#allocation45_spill]] %s9884_s1 }
   0x3   :  { %9922 = sst [smem:[#allocation46_spill]] %s9885_s2 }
   0x4   :  { %9923 = sst [smem:[#allocation47_spill]] %s9886_s3 }
   0x5   :  { %9924 = sst [smem:[#allocation48_spill]] %s9887_s4 }
   0x6   :  { %9925 = sst [smem:[#allocation49_spill]] %s9888_s5 }
   0x7   :  { %9926 = sst [smem:[#allocation50_spill]] %s9889_s6 }
   0x8   :  { %9927 = sst [smem:[#allocation51_spill]] %s9890_s7 }
   0x9   :  { %9928 = sst [smem:[#allocation52_spill]] %s9891_s8 }
   0xa   :  { %9929 = sst [smem:[#allocation53_spill]] %s9892_s9 }
   0xb   :  { %9930 = sst [smem:[#allocation54_spill]] %s9893_s10 }
   0xc   :  { %9931 = sst [smem:[#allocation55_spill]] %s9894_s11 }
   0xd   :  { %32 = vsyncpa [#allocation3], 0 }
   0xe   :  { %33 = vsyncpa [#allocation6], 0 }
   0xf   :  { %34 = vsyncpa [#allocation9], 0 }
  0x10   :  { %35 = vsyncpa [#allocation12], 0 }
  0x11   :  { %36 = vsyncpa [#allocation15], 0 }
  0x12   :  { %37 = vsyncpa [#allocation18], 0 }
  0x13   :  { %38 = vsyncpa [#allocation21], 0 }
  0x14   :  { %39 = vsyncpa [#allocation24], 0 }
  0x15   :  { %40 = vsyncpa [#allocation27], 0 }
  0x16   :  { %41 = vsyncpa [#allocation30], 0 }
  0x17   :  { %42 = vsyncpa [#allocation4], 0  ;;  %s9932_s8 = sld [smem:[#allocation45_spill]]  ;;  %s7882_s9 = smov [#allocation5]  }
  0x18   :  { %s62_s5 = sshll.u32 %s7882_s9, 4  ;;  %s9918_s28 = smov 128   ;;  %s63_s5 = int_to_ptr.vmem [resolvable:$true] %s62_s5 }
  0x19   :  { %s7884_s0 = smov 8   ;;  %s9933_s1 = sld [smem:[#allocation52_spill]] }
  0x1a   :  { %s7885_s11 = smov [#allocation8]   ;;  %s126_s4 = sshll.u32 %s9895_s12, 4  ;;  %s127_s4 = int_to_ptr.hbm [resolvable:$true] %s126_s4 }
  0x1b   :  { %s98_s2 = sshll.u32 %s7885_s11, 4  ;;  %s7887_s9 = smov 1   ;;  %s99_s2 = int_to_ptr.vmem [resolvable:$true] %s98_s2 }
  0x1c   :  { %s152_s10 = sshll.u32 %s9897_s14, 4  ;;  %s7888_s29 = smov [#allocation11]   ;;  %s153_s10 = int_to_ptr.hbm [resolvable:$true] %s152_s10 }
  0x1d   :  { %s60_s30 = sshll.u32 %s9932_s8, 4  ;;  %s7886_s8 = smov 16   ;;  %s61_s30 = int_to_ptr.hbm [resolvable:$true] %s60_s30 }
  0x1e   :  { %68 = dma.hbm_to_vmem [thread:$0]  %s61_s30, 512, %s63_s5, [#allocation6], %s9918_s28, %s9918_s28, %s7884_s0  }
  0x1f   :  { %s96_s6 = sshll.u32 %s9933_s1, 4  ;;  %s128_s1 = sshll.u32 %s7888_s29, 4  ;;  %s97_s6 = int_to_ptr.hbm [resolvable:$true] %s96_s6  ;;  %s129_s1 = int_to_ptr.vmem [resolvable:$true] %s128_s1 }
  0x20   :  { %104 = dma.hbm_to_vmem [thread:$0]  %s97_s6, 32, %s99_s2, [#allocation9], %s7886_s8, %s7886_s8, %s7887_s9  }
  0x21   :  { %134 = dma.hbm_to_vmem [thread:$0]  %s127_s4, 64, %s129_s1, [#allocation12], %s7886_s8, %s7886_s8, %s7887_s9  }
  0x22   :  { %s7889_s12 = smov [#allocation14]   ;;  %s178_s28 = sshll.u32 %s9899_s16, 4  ;;  %s179_s28 = int_to_ptr.hbm [resolvable:$true] %s178_s28 }
  0x23   :  { %s154_s11 = sshll.u32 %s7889_s12, 4  ;;  %s204_s2 = sshll.u32 %s9901_s18, 4  ;;  %s155_s11 = int_to_ptr.vmem [resolvable:$true] %s154_s11  ;;  %s205_s2 = int_to_ptr.hbm [resolvable:$true] %s204_s2 }
  0x24   :  { %160 = dma.hbm_to_vmem [thread:$0]  %s153_s10, 96, %s155_s11, [#allocation15], %s7886_s8, %s7886_s8, %s7887_s9  }
  0x25   :  { %s7890_s30 = smov [#allocation17]   ;;  %s7891_s4 = smov [#allocation20]  }
  0x26   :  { %s180_s5 = sshll.u32 %s7890_s30, 4  ;;  %s206_s16 = sshll.u32 %s7891_s4, 4  ;;  %s181_s5 = int_to_ptr.vmem [resolvable:$true] %s180_s5  ;;  %s207_s16 = int_to_ptr.vmem [resolvable:$true] %s206_s16 }
  0x27   :  { %186 = dma.hbm_to_vmem [thread:$0]  %s179_s28, 32, %s181_s5, [#allocation18], %s7886_s8, %s7886_s8, %s7887_s9  }
  0x28   :  { %s230_s12 = sshll.u32 %s9903_s20, 4  ;;  %s256_s11 = sshll.u32 %s9905_s22, 4  ;;  %s231_s12 = int_to_ptr.hbm [resolvable:$true] %s230_s12  ;;  %s257_s11 = int_to_ptr.hbm [resolvable:$true] %s256_s11 }
  0x29   :  { %212 = dma.hbm_to_vmem [thread:$0]  %s205_s2, 96, %s207_s16, [#allocation21], %s7886_s8, %s7886_s8, %s7887_s9  }
  0x2a   :  { %s7892_s3 = smov [#allocation23]   ;;  %s7893_s28 = smov [#allocation26]  }
  0x2b   :  { %s232_s7 = sshll.u32 %s7892_s3, 4  ;;  %s258_s20 = sshll.u32 %s7893_s28, 4  ;;  %s233_s7 = int_to_ptr.vmem [resolvable:$true] %s232_s7  ;;  %s259_s20 = int_to_ptr.vmem [resolvable:$true] %s258_s20 }
  0x2c   :  { %238 = dma.hbm_to_vmem [thread:$0]  %s231_s12, 32, %s233_s7, [#allocation24], %s7886_s8, %s7886_s8, %s7887_s9  }
  0x2d   :  { %s284_s30 = sshll.u32 %s9908_s25, 4  ;;  %s9934_s5 = sld [smem:[#allocation44_spill]]  ;;  %s285_s30 = int_to_ptr.hbm [resolvable:$true] %s284_s30 }
  0x2e   :  { %264 = dma.hbm_to_vmem [thread:$0]  %s257_s11, 32, %s259_s20, [#allocation27], %s7886_s8, %s7886_s8, %s7887_s9  }
  0x2f   :  { %s7894_s16 = smov [#allocation29]   ;;  %s7895_s1 = smov [#allocation2]  }
  0x30   :  { %s286_s29 = sshll.u32 %s7894_s16, 4  ;;  %s49_s25 = sshll.u32 %s7895_s1, 4  ;;  %s287_s29 = int_to_ptr.vmem [resolvable:$true] %s286_s29  ;;  %s50_s25 = int_to_ptr.vmem [resolvable:$true] %s49_s25 }
  0x31   :  { %292 = dma.hbm_to_vmem [thread:$0]  %s285_s30, 96, %s287_s29, [#allocation30], %s7886_s8, %s7886_s8, %s7887_s9  }
  0x32   :  { %s9935_s10 = sld [smem:[#allocation50_spill]]  ;;  %s9936_s11 = smov 128  }
  0x33   :  { %s47_s4 = sshll.u32 %s9934_s5, 4  ;;  %s9937_s20 = sld [smem:[#allocation54_spill]]  ;;  %s48_s4 = int_to_ptr.hbm [resolvable:$true] %s47_s4 }
  0x34   :  { %55 = dma.hbm_to_vmem [thread:$0]  %s48_s4, 512, %s50_s25, [#allocation3], %s9936_s11, %s9936_s11, %s7884_s0  }
  0x35   :  { %s7896_s6 = smov [#allocation7]   ;;  %s7897_s30 = smov [#allocation10]  }
  0x36   :  { %s83_s22 = sshll.u32 %s7896_s6, 4  ;;  %s113_s2 = sshll.u32 %s7897_s30, 4  ;;  %s84_s22 = int_to_ptr.vmem [resolvable:$true] %s83_s22  ;;  %s114_s2 = int_to_ptr.vmem [resolvable:$true] %s113_s2 }
  0x37   :  { %s139_s29 = sshll.u32 %s9896_s13, 4  ;;  %s165_s25 = sshll.u32 %s9898_s15, 4  ;;  %s140_s29 = int_to_ptr.hbm [resolvable:$true] %s139_s29  ;;  %s166_s25 = int_to_ptr.hbm [resolvable:$true] %s165_s25 }
  0x38   :  { %s81_s3 = sshll.u32 %s9935_s10, 4  ;;  %s7898_s12 = smov [#allocation13]   ;;  %s82_s3 = int_to_ptr.hbm [resolvable:$true] %s81_s3 }
  0x39   :  { %s111_s14 = sshll.u32 %s9937_s20, 4  ;;  %s141_s18 = sshll.u32 %s7898_s12, 4  ;;  %s112_s14 = int_to_ptr.hbm [resolvable:$true] %s111_s14  ;;  %s142_s18 = int_to_ptr.vmem [resolvable:$true] %s141_s18 }
  0x3a   :  { %89 = dma.hbm_to_vmem [thread:$0]  %s82_s3, 32, %s84_s22, [#allocation6], %s7886_s8, %s7886_s8, %s7887_s9  }
  0x3b   :  { %119 = dma.hbm_to_vmem [thread:$0]  %s112_s14, 32, %s114_s2, [#allocation9], %s7886_s8, %s7886_s8, %s7887_s9  }
  0x3c   :  { %147 = dma.hbm_to_vmem [thread:$0]  %s140_s29, 3072, %s142_s18, [#allocation12], %s9936_s11, %s9936_s11, %s7884_s0  }
  0x3d   :  { %s7899_s10 = smov [#allocation16]   ;;  %s191_s28 = sshll.u32 %s9900_s17, 4  ;;  %s192_s28 = int_to_ptr.hbm [resolvable:$true] %s191_s28 }
  0x3e   :  { %s167_s13 = sshll.u32 %s7899_s10, 4  ;;  %s217_s14 = sshll.u32 %s9902_s19, 4  ;;  %s168_s13 = int_to_ptr.vmem [resolvable:$true] %s167_s13  ;;  %s218_s14 = int_to_ptr.hbm [resolvable:$true] %s217_s14 }
  0x3f   :  { %173 = dma.hbm_to_vmem [thread:$0]  %s166_s25, 1024, %s168_s13, [#allocation15], %s9936_s11, %s9936_s11, %s7884_s0  }
  0x40   :  { %s7900_s6 = smov [#allocation19]   ;;  %s7901_s30 = smov [#allocation22]  }
  0x41   :  { %s193_s22 = sshll.u32 %s7900_s6, 4  ;;  %s219_s17 = sshll.u32 %s7901_s30, 4  ;;  %s194_s22 = int_to_ptr.vmem [resolvable:$true] %s193_s22  ;;  %s220_s17 = int_to_ptr.vmem [resolvable:$true] %s219_s17 }
  0x42   :  { %199 = dma.hbm_to_vmem [thread:$0]  %s192_s28, 3072, %s194_s22, [#allocation18], %s9936_s11, %s9936_s11, %s7884_s0  }
  0x43   :  { %s243_s16 = sshll.u32 %s9904_s21, 4  ;;  %s271_s4 = sshll.u32 %s9907_s24, 4  ;;  %s244_s16 = int_to_ptr.hbm [resolvable:$true] %s243_s16  ;;  %s272_s4 = int_to_ptr.hbm [resolvable:$true] %s271_s4 }
  0x44   :  { %225 = dma.hbm_to_vmem [thread:$0]  %s218_s14, 1024, %s220_s17, [#allocation21], %s9936_s11, %s9936_s11, %s7884_s0  }
  0x45   :  { %s7902_s1 = smov [#allocation25]   ;;  %s7903_s12 = smov [#allocation28]  }
  0x46   :  { %s245_s25 = sshll.u32 %s7902_s1, 4  ;;  %s273_s21 = sshll.u32 %s7903_s12, 4  ;;  %s246_s25 = int_to_ptr.vmem [resolvable:$true] %s245_s25  ;;  %s274_s21 = int_to_ptr.vmem [resolvable:$true] %s273_s21 }
  0x47   :  { %251 = dma.hbm_to_vmem [thread:$0]  %s244_s16, 1024, %s246_s25, [#allocation24], %s9936_s11, %s9936_s11, %s7884_s0  }
  0x48   :  { %s297_s13 = sshll.u32 %s9909_s26, 4  ;;  %s7904_s24 = smov [#allocation31]   ;;  %s298_s13 = int_to_ptr.hbm [resolvable:$true] %s297_s13 }
  0x49   :  { %279 = dma.hbm_to_vmem [thread:$0]  %s272_s4, 32, %s274_s21, [#allocation27], %s7886_s8, %s7886_s8, %s7887_s9  }
  0x4a   :  { %s299_s3 = sshll.u32 %s7904_s24, 4  ;;  %s300_s3 = int_to_ptr.vmem [resolvable:$true] %s299_s3 }
  0x4b   :  { %305 = dma.hbm_to_vmem [thread:$0]  %s298_s13, 96, %s300_s3, [#allocation30], %s7886_s8, %s7886_s8, %s7887_s9  }
  0x4c   :  { %7860 = dma.done.wait [#allocation3], 512  }
  0x4d   :  { %7861 = vsyncadd [#allocation3], 4294966784 }
  0x4e   :  { %7862 = dma.done.wait [#allocation6], 544  }
  0x4f   :  { %7863 = vsyncadd [#allocation6], 4294966752 }
  0x50   :  { %7864 = dma.done.wait [#allocation9], 64  }
  0x51   :  { %7865 = vsyncadd [#allocation9], 4294967232 }
  0x52   :  { %7866 = dma.done.wait [#allocation12], 3136  }
  0x53   :  { %7867 = vsyncadd [#allocation12], 4294964160 }
  0x54   :  { %7868 = dma.done.wait [#allocation15], 1120  }
  0x55   :  { %7869 = vsyncadd [#allocation15], 4294966176 }
  0x56   :  { %7870 = dma.done.wait [#allocation18], 3104  }
  0x57   :  { %7871 = vsyncadd [#allocation18], 4294964192 }
  0x58   :  { %7872 = dma.done.wait [#allocation21], 1120  }
  0x59   :  { %7873 = vsyncadd [#allocation21], 4294966176 }
  0x5a   :  { %7874 = dma.done.wait [#allocation24], 1056  }
  0x5b   :  { %7875 = vsyncadd [#allocation24], 4294966240 }
  0x5c   :  { %7876 = dma.done.wait [#allocation27], 64  }
  0x5d   :  { %7877 = vsyncadd [#allocation27], 4294967232 }
  0x5e   :  { %7878 = dma.done.wait [#allocation30], 192  }
  0x5f   :  { %7879 = vsyncadd [#allocation30], 4294967104  ;;  %s9938_s7 = sld [smem:[#allocation47_spill]]  ;;  %v382_v2 = vld [vmem:[#allocation2] sm:$0xff]  ;;  %v385_v10 = vld [vmem:[#allocation2 + $0x18] sm:$0xff]  ;;  %vm418_vm0 = vcmask 261120  }
  0x60   :  { %v386_v3 = vld [vmem:[#allocation5] sm:$0xff]  ;;  %v389_v11 = vld [vmem:[#allocation5 + $0x18] sm:$0xff]  ;;  %v383_v14 = vld [vmem:[#allocation2 + $0x8] sm:$0xff]  ;;  %s9939_s9 = sld [smem:[#allocation48_spill]]  ;;  %s7905_s28 = smov 112   ;;  %vm536_vm1 = vcmask 64512  }
  0x61   :  { %v391_v8 = vadd.f32 %v386_v3, %v382_v2  ;;  %v394_v12 = vadd.f32 %v389_v11, %v385_v10  ;;  %v387_v15 = vld [vmem:[#allocation5 + $0x8] sm:$0xff]  ;;  %v8206_v21 = vld [vmem:[#allocation2 + $0x10] sm:$0xff]  ;;  %s7906_s15 = smov 120   ;;  %s7907_s6 = smov 104   ;;  %vm572_vm2 = vcmask 130048   ;;  %vm942_vm3 = vcmask 195584  }
  0x62   :  { %v392_v20 = vadd.f32 %v387_v15, %v383_v14  ;;  %v388_v22 = vld [vmem:[#allocation5 + $0x10] sm:$0xff]  ;;  %s7908_s17 = smov 24   ;;  %s9940_s16 = sld [smem:[#allocation49_spill]] }
  0x63   :  { %v393_v23 = vadd.f32 %v388_v22, %v8206_v21  ;;  %s9941_s10 = sld [smem:[#allocation51_spill]] }
  0x64   :  { %s9942_s2 = sld [smem:[#allocation55_spill]] }
  0x65   :  { %v402_v0 = vld [vmem:[%s9938_s7 + $0x38] sm:$0xff]  ;;  %v401_v1 = vld [vmem:[%s9938_s7 + $0x30] sm:$0xff]  ;;  %v400_v4 = vld [vmem:[%s9938_s7 + $0x28] sm:$0xff]  ;;  %s9943_s29 = sld [smem:[#allocation53_spill]] }
  0x66   :  { %475 = vmatpush.msra.mxu1 %v402_v0  ;;  %6842 = vmatpush.msra.mxu2 %v402_v0  ;;  %v398_v5 = vld [vmem:[%s9938_s7 + $0x18] sm:$0xff]  ;;  %v397_v6 = vld [vmem:[%s9938_s7 + $0x10] sm:$0xff]  ;;  %v399_v7 = vld [vmem:[%s9938_s7 + $0x20] sm:$0xff]  ;;  %s9944_s18 = sld [smem:[#allocation46_spill]] }
  0x67   :  { %443 = vmatpush.msra.mxu0 %v398_v5  ;;  %v396_v9 = vld [vmem:[%s9938_s7 + $0x8] sm:$0xff]  ;;  %v395_v13 = vld [vmem:[%s9938_s7] sm:$0xff]  ;;  %v406_v16 = vld [vmem:[%s9938_s7 + $0x58] sm:$0xff] }
  0x68   :  { %476 = vmatpush.msra.mxu1 %v401_v1  ;;  %6843 = vmatpush.msra.mxu2 %v401_v1  ;;  %v405_v17 = vld [vmem:[%s9938_s7 + $0x50] sm:$0xff]  ;;  %v404_v18 = vld [vmem:[%s9938_s7 + $0x48] sm:$0xff]  ;;  %v403_v19 = vld [vmem:[%s9938_s7 + $0x40] sm:$0xff] }
  0x69   :  { %444 = vmatpush.msra.mxu0 %v397_v6  ;;  %v7001_v24 = vld [vmem:[%s9939_s9 + $0x1] ss:$0 sm:$0xff]  ;;  %v7002_v27 = vld [vmem:[%s9939_s9] ss:$0 sm:$0xff]  ;;  %v8245_v39 = vld [vmem:[%s9939_s9 + $0x2] ss:$0 sm:$0xff] }
  0x6a   :  { %477 = vmatpush.msra.mxu1 %v400_v4  ;;  %6844 = vmatpush.msra.mxu2 %v400_v4 }
  0x6b   :  { %445 = vmatpush.msra.mxu0 %v396_v9 }
  0x6c   :  { %478 = vmatpush.msra.mxu1 %v399_v7  ;;  %6845 = vmatpush.msra.mxu2 %v399_v7 }
  0x6d   :  { %6502 = vmatmul.msk.f32.vlgmr.msra.gmra.mxu1 %vm418_vm0, %v391_v8  ;;  %446 = vmatpush.msra.mxu0 %v395_v13 }
  0x6e   :  { %6505 = vmatmul.msk.f32.vlgmr.msra.gmra.mxu2 %vm418_vm0, %v394_v12  ;;  %6498 = vmatmul.msk.f32.vlgmr.msra.gmra.mxu0 %vm418_vm0, %v391_v8 }
  0x6f   :  { %519 = vmatpush.msrb.mxu2 %v406_v16 }
  0x71   :  { %520 = vmatpush.msrb.mxu2 %v405_v17 }
  0x73   :  { %521 = vmatpush.msrb.mxu2 %v404_v18 }
  0x75   :  { %6503 = vmatmul.msk.f32.gmra.mxu1 %vm418_vm0, %v392_v20  ;;  %522 = vmatpush.msrb.mxu2 %v403_v19 }
  0x76   :  { %6506 = vmatmul.msk.f32.vlgmr.msrb.gmra.mxu2 %vm418_vm0, %v382_v2  ;;  %6499 = vmatmul.msk.f32.gmra.mxu0 %vm418_vm0, %v392_v20 }
  0x7d   :  { %6504 = vmatmul.msk.f32.gmra.mxu1 %vm418_vm0, %v393_v23 }
  0x7e   :  { %6507 = vmatmul.msk.f32.gmra.mxu2 %vm418_vm0, %v383_v14  ;;  %6500 = vmatmul.msk.f32.gmra.mxu0 %vm418_vm0, %v393_v23 }
  0x86   :  { %6508 = vmatmul.msk.f32.gmra.mxu2 %vm418_vm0, %v8206_v21  ;;  %6501 = vmatmul.msk.f32.gmra.mxu0 %vm418_vm0, %v394_v12 }
  0x8e   :  { %6509 = vmatmul.msk.f32.gmra.mxu2 %vm418_vm0, %v385_v10 }
  0xea   :  { %v480_v25 = vpop.f32.mrf.mxu1 }
  0xeb   :  { %v481_v26 = vadd.f32 %v7001_v24, %v480_v25  ;;  %v448_v28 = vpop.f32.mrf.mxu0 }
  0xec   :  { %v449_v29 = vadd.f32 %v7002_v27, %v448_v28 }
  0xed   :  { %726 = vrot.lane.b32.xlu2 %v481_v26, %s7905_s28  ;;  %628 = vrot.lane.b32.xlu1 %v481_v26, %s7906_s15 }
  0xf1   :  { %v489_v34 = vpop.f32.mrf.mxu2 }
  0xf2   :  { %v483_v30 = vpop.f32.mrf.mxu1  ;;  %v490_v37 = vadd.f32 %v7001_v24, %v489_v34 }
  0xf3   :  { %v484_v31 = vadd.f32 %v7001_v24, %v483_v30  ;;  %v451_v32 = vpop.f32.mrf.mxu0 }
  0xf4   :  { %v452_v33 = vadd.f32 %v7002_v27, %v451_v32 }
  0xf5   :  { %630 = vrot.lane.b32.xlu0 %v484_v31, %s7906_s15  ;;  %6510 = vmatpush.xpose.msk.msra.mxu3 %vm536_vm1, %v484_v31 }
  0xf6   :  { %624 = vrot.lane.b32.xlu1 %v449_v29, %s7906_s15  ;;  %722 = vrot.lane.b32.xlu2 %v449_v29, %s7905_s28 }
  0xf9   :  { %6511 = vmatpush.xpose.msk.msra.mxu3 %vm536_vm1, %v481_v26  ;;  %v524_v36 = vpop.f32.mrf.mxu2 }
  0xfa   :  { %v486_v35 = vpop.f32.mrf.mxu1  ;;  %v525_v44 = vadd.f32 %v8245_v39, %v524_v36 }
  0xfb   :  { %v487_v38 = vadd.f32 %v7001_v24, %v486_v35  ;;  %v454_v40 = vpop.f32.mrf.mxu0 }
  0xfc   :  { %6512 = vmatmul.msk.f32.vlgmr.msra.gmra.mxu3 %vm536_vm1, %v449_v29  ;;  %v455_v43 = vadd.f32 %v7002_v27, %v454_v40 }
  0xfd   :  { %728 = vrot.lane.b32.xlu0 %v484_v31, %s7905_s28 }
  0xfe   :  { %824 = vrot.lane.b32.xlu1 %v484_v31, %s7907_s6  ;;  %724 = vrot.lane.b32.xlu2 %v452_v33, %s7905_s28 }
 0x101   :  { %v527_v41 = vpop.f32.mrf.mxu2 }
 0x102   :  { %v528_v42 = vadd.f32 %v8245_v39, %v527_v41 }
 0x103   :  { %v457_v45 = vpop.f32.mrf.mxu0 }
 0x104   :  { %6513 = vmatmul.msk.f32.gmra.mxu3 %vm536_vm1, %v452_v33  ;;  %v458_v46 = vadd.f32 %v7002_v27, %v457_v45  ;;  %v6886_v47 = vpack.i.bf16 %v525_v44, %v528_v42 }
 0x105   :  { %626 = vrot.lane.b32.xlu0 %v452_v33, %s7906_s15  ;;  %615 = vmatpush.msrb.mxu3 %v528_v42 }
 0x106   :  { %818 = vrot.lane.b32.xlu1 %v449_v29, %s7907_s6  ;;  %820 = vrot.lane.b32.xlu2 %v452_v33, %s7907_s6 }
 0x107   :  { %616 = vmatpush.msrb.mxu3 %v525_v44 }
 0x109   :  { %v8295_v22 = vpop.f32.mrf.mxu2 }
 0x10d   :  { %822 = vrot.lane.b32.xlu0 %v481_v26, %s7907_s6 }
 0x10e   :  { %1135 = vrot.lane.b32.xlu1 %v490_v37, %s7905_s28  ;;  %1035 = vrot.lane.b32.xlu2 %v487_v38, %s7906_s15 }
 0x111   :  { %v8298_v25 = vpop.f32.mrf.mxu2 }
 0x115   :  { %1037 = vrot.lane.b32.xlu0 %v490_v37, %s7906_s15 }
 0x116   :  { %1133 = vrot.lane.b32.xlu1 %v487_v38, %s7905_s28  ;;  %1129 = vrot.lane.b32.xlu2 %v455_v43, %s7905_s28 }
 0x11d   :  { %1031 = vrot.lane.b32.xlu0 %v455_v43, %s7906_s15 }
 0x11e   :  { %1231 = vrot.lane.b32.xlu1 %v490_v37, %s7907_s6  ;;  %1131 = vrot.lane.b32.xlu2 %v458_v46, %s7905_s28 }
 0x125   :  { %1033 = vrot.lane.b32.xlu0 %v458_v46, %s7906_s15 }
 0x126   :  { %1225 = vrot.lane.b32.xlu1 %v455_v43, %s7907_s6  ;;  %1227 = vrot.lane.b32.xlu2 %v458_v46, %s7907_s6 }
 0x12d   :  { %1229 = vrot.lane.b32.xlu0 %v487_v38, %s7907_s6 }
 0x12e   :  { %6887 = vrot.lane.b32.xlu2 %v6886_v47, %s7907_s6  ;;  %6882 = vrot.lane.b32.xlu1 %v6886_v47, %s7905_s28 }
 0x135   :  { %6877 = vrot.lane.b32.xlu0 %v6886_v47, %s7906_s15 }
 0x147   :  { %v727_v48 = vpop.permute.xlu2 %726 }
 0x150   :  { %v723_v50 = vpop.permute.xlu2 %722 }
 0x158   :  { %v725_v53 = vpop.permute.xlu2 %724 }
 0x15f   :  { %v629_v49 = vpop.permute.xlu1 %628 }
 0x160   :  { %v821_v57 = vpop.permute.xlu2 %820 }
 0x167   :  { %v631_v51 = vpop.permute.xlu0 %630 }
 0x168   :  { %v625_v52 = vpop.permute.xlu1 %624  ;;  %6516 = vmatpush.xpose.msk.msrb.mxu0 %vm536_vm1, %v631_v51  ;;  %v1036_v63 = vpop.permute.xlu2 %1035 }
 0x16c   :  { %6517 = vmatpush.xpose.msk.msrb.mxu0 %vm536_vm1, %v629_v49 }
 0x16f   :  { %v729_v54 = vpop.permute.xlu0 %728  ;;  %6518 = vmatmul.msk.f32.vlgmr.msrb.gmra.mxu0 %vm536_vm1, %v625_v52 }
 0x170   :  { %v825_v55 = vpop.permute.xlu1 %824  ;;  %6522 = vmatpush.xpose.msk.msra.mxu2 %vm536_vm1, %v729_v54  ;;  %v1130_v4 = vpop.permute.xlu2 %1129 }
 0x171   :  { %6528 = vmatpush.xpose.msk.msra.mxu0 %vm536_vm1, %v825_v55 }
 0x174   :  { %6523 = vmatpush.xpose.msk.msra.mxu2 %vm536_vm1, %v727_v48 }
 0x177   :  { %v627_v56 = vpop.permute.xlu0 %626  ;;  %6524 = vmatmul.msk.f32.vlgmr.msra.gmra.mxu2 %vm536_vm1, %v723_v50 }
 0x178   :  { %6534 = vmatpush.xpose.msk.msrb.mxu2 %vm536_vm1, %v490_v37  ;;  %6519 = vmatmul.msk.f32.gmra.mxu0 %vm536_vm1, %v627_v56  ;;  %v819_v58 = vpop.permute.xlu1 %818  ;;  %v1132_v7 = vpop.permute.xlu2 %1131 }
 0x17c   :  { %6535 = vmatpush.xpose.msk.msrb.mxu2 %vm536_vm1, %v487_v38 }
 0x17f   :  { %v823_v59 = vpop.permute.xlu0 %822  ;;  %v566_v60 = vpop.f32.mrf.mxu3  ;;  %6525 = vmatmul.msk.f32.gmra.mxu2 %vm536_vm1, %v725_v53 }
 0x180   :  { %6529 = vmatpush.xpose.msk.msra.mxu0 %vm536_vm1, %v823_v59  ;;  %v573_v61 = vsel %vm572_vm2, %v566_v60, -inf  ;;  %v1136_v62 = vpop.permute.xlu1 %1135  ;;  %v1228_v10 = vpop.permute.xlu2 %1227 }
 0x181   :  { %574 = vmax.xlane.f32.xlu0 %v573_v61  ;;  %6546 = vmatpush.xpose.msk.msra.mxu2 %vm536_vm1, %v1136_v62 }
 0x183   :  { %6530 = vmatmul.msk.f32.vlgmr.msra.gmra.mxu0 %vm536_vm1, %v819_v58 }
 0x187   :  { %v1038_v0 = vpop.permute.xlu0 %1037  ;;  %v8277_v1 = vpop.f32.mrf.mxu3  ;;  %6536 = vmatmul.msk.f32.vlgmr.msrb.gmra.mxu2 %vm536_vm1, %v455_v43 }
 0x188   :  { %v576_v2 = vsel %vm572_vm2, %v8277_v1, -inf  ;;  %6540 = vmatpush.xpose.msk.msrb.mxu0 %vm536_vm1, %v1038_v0  ;;  %v1134_v3 = vpop.permute.xlu1 %1133  ;;  %v6888_v15 = vpop.permute.xlu2 %6887 }
 0x189   :  { %577 = vmax.xlane.f32.xlu2 %v576_v2  ;;  %6547 = vmatpush.xpose.msk.msra.mxu2 %vm536_vm1, %v1134_v3  ;;  %v6889_v19 = vunpack.i.l.bf16 %v6888_v15  ;;  %v6890_v20 = vunpack.i.h.bf16 %v6888_v15 }
 0x18b   :  { %6531 = vmatmul.msk.f32.gmra.mxu0 %vm536_vm1, %v821_v57 }
 0x18c   :  { %6541 = vmatpush.xpose.msk.msrb.mxu0 %vm536_vm1, %v1036_v63 }
 0x18f   :  { %v1032_v5 = vpop.permute.xlu0 %1031  ;;  %6537 = vmatmul.msk.f32.gmra.mxu2 %vm536_vm1, %v458_v46 }
 0x190   :  { %v1232_v6 = vpop.permute.xlu1 %1231 }
 0x191   :  { %6552 = vmatpush.xpose.msk.msra.mxu0 %vm536_vm1, %v1232_v6 }
 0x193   :  { %6542 = vmatmul.msk.f32.vlgmr.msrb.gmra.mxu0 %vm536_vm1, %v1032_v5 }
 0x197   :  { %v1034_v8 = vpop.permute.xlu0 %1033  ;;  %6548 = vmatmul.msk.f32.vlgmr.msra.gmra.mxu2 %vm536_vm1, %v1130_v4 }
 0x198   :  { %v1226_v9 = vpop.permute.xlu1 %1225 }
 0x19b   :  { %6543 = vmatmul.msk.f32.gmra.mxu0 %vm536_vm1, %v1034_v8 }
 0x19f   :  { %v1230_v11 = vpop.permute.xlu0 %1229  ;;  %6549 = vmatmul.msk.f32.gmra.mxu2 %vm536_vm1, %v1132_v7 }
 0x1a0   :  { %6553 = vmatpush.xpose.msk.msra.mxu0 %vm536_vm1, %v1230_v11  ;;  %v6883_v12 = vpop.permute.xlu1 %6882 }
 0x1a1   :  { %v6885_v13 = vunpack.i.h.bf16 %v6883_v12  ;;  %v6884_v14 = vunpack.i.l.bf16 %v6883_v12 }
 0x1a3   :  { %6554 = vmatmul.msk.f32.vlgmr.msra.gmra.mxu0 %vm536_vm1, %v1226_v9  ;;  %809 = vmatpush.msra.mxu3 %v6884_v14 }
 0x1a5   :  { %810 = vmatpush.msra.mxu3 %v6885_v13 }
 0x1a7   :  { %v6878_v16 = vpop.permute.xlu0 %6877 }
 0x1a8   :  { %v6879_v17 = vunpack.i.l.bf16 %v6878_v16  ;;  %v6880_v18 = vunpack.i.h.bf16 %v6878_v16 }
 0x1aa   :  { %713 = vmatpush.msrb.mxu1 %v6879_v17 }
 0x1ab   :  { %6555 = vmatmul.msk.f32.gmra.mxu0 %vm536_vm1, %v1228_v10 }
 0x1ac   :  { %714 = vmatpush.msrb.mxu1 %v6880_v18 }
 0x1ae   :  { %905 = vmatpush.msra.mxu1 %v6889_v19 }
 0x1b0   :  { %906 = vmatpush.msra.mxu1 %v6890_v20 }
 0x1ec   :  { %v657_v23 = vpop.f32.mrf.mxu0 }
 0x1ed   :  { %v663_v24 = vsel %vm572_vm2, %v657_v23, -inf }
 0x1ee   :  { %664 = vmax.xlane.f32.xlu1 %v663_v24 }
 0x1f4   :  { %v575_v26 = vpop.xlane.xlu0 %574 }
 0x1f5   :  { %v579_v27 = vsub.f32 %v566_v60, %v575_v26  ;;  %v660_v28 = vpop.f32.mrf.mxu0 }
 0x1f6   :  { %v666_v29 = vsel %vm572_vm2, %v660_v28, -inf }
 0x1f7   :  { %v581_v30 = vmul.f32 1.442695, %v579_v27  ;;  %667 = vmax.xlane.f32.xlu2 %v666_v29  ;;  %v534_v29 = vadd.f32 %v8245_v39, %v8298_v25 }
 0x1f9   :  { %7053 = vpow2.f32 %v581_v30 }
 0x1fa   :  { %v755_v31 = vpop.f32.mrf.mxu2 }
 0x1fb   :  { %v761_v32 = vsel %vm572_vm2, %v755_v31, -inf }
 0x1fc   :  { %762 = vmax.xlane.f32.xlu0 %v761_v32  ;;  %v578_v33 = vpop.xlane.xlu2 %577 }
 0x1fd   :  { %v580_v37 = vsub.f32 %v8277_v1, %v578_v33  ;;  %v531_v33 = vadd.f32 %v8245_v39, %v8295_v22 }
 0x1ff   :  { %v8302_v34 = vpop.eup %7053  ;;  %v583_v42 = vmul.f32 1.442695, %v580_v37 }
 0x200   :  { %v8304_v35 = vpop.f32.mrf.mxu0  ;;  %v585_v40 = vsel %vm572_vm2, %v8302_v34, 0.0 }
 0x201   :  { %v857_v36 = vsel %vm572_vm2, %v8304_v35, -inf  ;;  %7055 = vpow2.f32 %v583_v42 }
 0x202   :  { %v8309_v38 = vpop.f32.mrf.mxu2  ;;  %858 = vmax.xlane.f32.xlu1 %v857_v36 }
 0x203   :  { %v764_v41 = vsel %vm572_vm2, %v8309_v38, -inf }
 0x204   :  { %586 = vadd.xlane.f32.xlu0 %v585_v40  ;;  %765 = vmax.xlane.f32.xlu2 %v764_v41 }
 0x207   :  { %v8323_v47 = vpop.eup %7055 }
 0x208   :  { %v8315_v43 = vpop.f32.mrf.mxu0  ;;  %v588_v52 = vsel %vm572_vm2, %v8323_v47, 0.0 }
 0x209   :  { %v860_v46 = vsel %vm572_vm2, %v8315_v43, -inf }
 0x20a   :  { %v8317_v44 = vpop.f32.mrf.mxu2 }
 0x20b   :  { %v980_v45 = vsel %vm572_vm2, %v8317_v44, -inf }
 0x20c   :  { %981 = vmax.xlane.f32.xlu1 %v980_v45  ;;  %861 = vmax.xlane.f32.xlu0 %v860_v46 }
 0x210   :  { %v8325_v48 = vpop.f32.mrf.mxu0 }
 0x211   :  { %v1070_v49 = vsel %vm572_vm2, %v8325_v48, -inf }
 0x212   :  { %v8329_v50 = vpop.f32.mrf.mxu2  ;;  %1071 = vmax.xlane.f32.xlu2 %v1070_v49 }
 0x213   :  { %v983_v51 = vsel %vm572_vm2, %v8329_v50, -inf }
 0x214   :  { %984 = vmax.xlane.f32.xlu0 %v983_v51  ;;  %589 = vadd.xlane.f32.xlu1 %v588_v52 }
 0x218   :  { %v8335_v53 = vpop.f32.mrf.mxu0 }
 0x219   :  { %v1073_v54 = vsel %vm572_vm2, %v8335_v53, -inf }
 0x21a   :  { %v8339_v55 = vpop.f32.mrf.mxu2 }
 0x21b   :  { %v1168_v56 = vsel %vm572_vm2, %v8339_v55, -inf }
 0x21c   :  { %1169 = vmax.xlane.f32.xlu2 %v1168_v56  ;;  %1074 = vmax.xlane.f32.xlu1 %v1073_v54 }
 0x220   :  { %v8343_v57 = vpop.f32.mrf.mxu0 }
 0x221   :  { %v1264_v58 = vsel %vm572_vm2, %v8343_v57, -inf }
 0x222   :  { %v8347_v59 = vpop.f32.mrf.mxu2 }
 0x223   :  { %v1171_v60 = vsel %vm572_vm2, %v8347_v59, -inf }
 0x224   :  { %1172 = vmax.xlane.f32.xlu2 %v1171_v60  ;;  %1265 = vmax.xlane.f32.xlu1 %v1264_v58 }
 0x228   :  { %v8351_v61 = vpop.f32.mrf.mxu0 }
 0x229   :  { %v1267_v62 = vsel %vm572_vm2, %v8351_v61, -inf }
 0x22c   :  { %1268 = vmax.xlane.f32.xlu2 %v1267_v62 }
 0x261   :  { %v665_v63 = vpop.xlane.xlu1 %664 }
 0x262   :  { %v669_v0 = vsub.f32 %v657_v23, %v665_v63 }
 0x264   :  { %v671_v1 = vmul.f32 1.442695, %v669_v0 }
 0x266   :  { %7057 = vpow2.f32 %v671_v1 }
 0x26a   :  { %v668_v2 = vpop.xlane.xlu2 %667 }
 0x26b   :  { %v670_v3 = vsub.f32 %v660_v28, %v668_v2  ;;  %v6896_v2 = vpack.i.bf16 %v531_v33, %v534_v29 }
 0x26c   :  { %v8355_v4 = vpop.eup %7057 }
 0x26d   :  { %v673_v5 = vmul.f32 1.442695, %v670_v3  ;;  %v675_v6 = vsel %vm572_vm2, %v8355_v4, 0.0 }
 0x26e   :  { %676 = vadd.xlane.f32.xlu0 %v675_v6 }
 0x26f   :  { %7059 = vpow2.f32 %v673_v5  ;;  %v763_v7 = vpop.xlane.xlu0 %762 }
 0x270   :  { %v767_v8 = vsub.f32 %v755_v31, %v763_v7 }
 0x272   :  { %v769_v9 = vmul.f32 1.442695, %v767_v8 }
 0x274   :  { %7061 = vpow2.f32 %v769_v9 }
 0x275   :  { %v8359_v10 = vpop.eup %7059  ;;  %v859_v11 = vpop.xlane.xlu1 %858 }
 0x276   :  { %v863_v12 = vsub.f32 %v8304_v35, %v859_v11  ;;  %v678_v13 = vsel %vm572_vm2, %v8359_v10, 0.0 }
 0x277   :  { %v587_v14 = vpop.xlane.xlu0 %586  ;;  %679 = vadd.xlane.f32.xlu1 %v678_v13  ;;  %v766_v15 = vpop.xlane.xlu2 %765 }
 0x278   :  { %v865_v16 = vmul.f32 1.442695, %v863_v12  ;;  %7063 = vrcp.f32 %v587_v14  ;;  %v768_v17 = vsub.f32 %v8309_v38, %v766_v15 }
 0x27a   :  { %v8365_v18 = vpop.eup %7061  ;;  %7065 = vpow2.f32 %v865_v16  ;;  %v771_v19 = vmul.f32 1.442695, %v768_v17 }
 0x27b   :  { %v773_v20 = vsel %vm572_vm2, %v8365_v18, 0.0 }
 0x27c   :  { %7067 = vpow2.f32 %v771_v19  ;;  %774 = vadd.xlane.f32.xlu2 %v773_v20 }
 0x27e   :  { %v7064_v23 = vpop.eup %7063 }
 0x27f   :  { %v982_v24 = vpop.xlane.xlu1 %981  ;;  %v862_v26 = vpop.xlane.xlu0 %861  ;;  %v593_v27 = vmul.f32 %v7064_v23, %v8302_v34 }
 0x280   :  { %v8370_v28 = vpop.eup %7065  ;;  %v986_v30 = vsub.f32 %v8317_v44, %v982_v24  ;;  %v864_v31 = vsub.f32 %v8315_v43, %v862_v26 }
 0x281   :  { %6514 = vmatmul.msk.f32.vlgmr.msrb.gmra.mxu3 %vm572_vm2, %v593_v27  ;;  %v869_v34 = vsel %vm572_vm2, %v8370_v28, 0.0 }
 0x282   :  { %v8377_v32 = vpop.eup %7067  ;;  %v988_v35 = vmul.f32 1.442695, %v986_v30  ;;  %v867_v36 = vmul.f32 1.442695, %v864_v31  ;;  %1022 = vmatpush.msrb.mxu3 %v534_v29 }
 0x283   :  { %v776_v25 = vsel %vm572_vm2, %v8377_v32, 0.0 }
 0x284   :  { %7069 = vpow2.f32 %v988_v35  ;;  %1023 = vmatpush.msrb.mxu3 %v531_v33  ;;  %870 = vadd.xlane.f32.xlu2 %v869_v34 }
 0x285   :  { %7071 = vpow2.f32 %v867_v36  ;;  %777 = vadd.xlane.f32.xlu0 %v776_v25  ;;  %v1072_v37 = vpop.xlane.xlu2 %1071 }
 0x286   :  { %v1076_v22 = vsub.f32 %v8325_v48, %v1072_v37 }
 0x287   :  { %v985_v38 = vpop.xlane.xlu0 %984  ;;  %v590_v40 = vpop.xlane.xlu1 %589 }
 0x288   :  { %v987_v41 = vsub.f32 %v8329_v50, %v985_v38  ;;  %7073 = vrcp.f32 %v590_v40  ;;  %v1078_v49 = vmul.f32 1.442695, %v1076_v22 }
 0x28a   :  { %v8386_v39 = vpop.eup %7069  ;;  %v990_v42 = vmul.f32 1.442695, %v987_v41 }
 0x28b   :  { %v8389_v43 = vpop.eup %7071  ;;  %v992_v44 = vsel %vm572_vm2, %v8386_v39, 0.0 }
 0x28c   :  { %7075 = vpow2.f32 %v990_v42  ;;  %993 = vadd.xlane.f32.xlu2 %v992_v44  ;;  %v872_v45 = vsel %vm572_vm2, %v8389_v43, 0.0 }
 0x28d   :  { %873 = vadd.xlane.f32.xlu1 %v872_v45  ;;  %7077 = vpow2.f32 %v1078_v49 }
 0x28e   :  { %v7074_v46 = vpop.eup %7073 }
 0x28f   :  { %v1170_v50 = vpop.xlane.xlu2 %1169  ;;  %v594_v51 = vmul.f32 %v7074_v46, %v8323_v47  ;;  %v1075_v56 = vpop.xlane.xlu1 %1074 }
 0x290   :  { %v1174_v52 = vsub.f32 %v8339_v55, %v1170_v50  ;;  %v1077_v62 = vsub.f32 %v8335_v53, %v1075_v56 }
 0x291   :  { %6515 = vmatmul.msk.f32.gmra.mxu3 %vm572_vm2, %v594_v51 }
 0x292   :  { %v8397_v48 = vpop.eup %7075  ;;  %v1176_v58 = vmul.f32 1.442695, %v1174_v52  ;;  %v1080_v63 = vmul.f32 1.442695, %v1077_v62 }
 0x293   :  { %v995_v54 = vsel %vm572_vm2, %v8397_v48, 0.0  ;;  %v8402_v60 = vpop.eup %7077 }
 0x294   :  { %996 = vadd.xlane.f32.xlu0 %v995_v54  ;;  %7079 = vpow2.f32 %v1176_v58  ;;  %v1082_v47 = vsel %vm572_vm2, %v8402_v60, 0.0 }
 0x295   :  { %7081 = vpow2.f32 %v1080_v63 }
 0x297   :  { %v1266_v0 = vpop.xlane.xlu1 %1265  ;;  %v1173_v7 = vpop.xlane.xlu2 %1172 }
 0x298   :  { %v1270_v55 = vsub.f32 %v8343_v57, %v1266_v0  ;;  %v1175_v12 = vsub.f32 %v8347_v59, %v1173_v7 }
 0x29a   :  { %v8407_v1 = vpop.eup %7079  ;;  %v1272_v53 = vmul.f32 1.442695, %v1270_v55  ;;  %v1178_v14 = vmul.f32 1.442695, %v1175_v12 }
 0x29b   :  { %v1180_v3 = vsel %vm572_vm2, %v8407_v1, 0.0  ;;  %v8414_v5 = vpop.eup %7081 }
 0x29c   :  { %1083 = vadd.xlane.f32.xlu0 %v1082_v47  ;;  %7083 = vpow2.f32 %v1272_v53  ;;  %v1085_v6 = vsel %vm572_vm2, %v8414_v5, 0.0 }
 0x29f   :  { %v1269_v9 = vpop.xlane.xlu2 %1268 }
 0x2a0   :  { %v1271_v11 = vsub.f32 %v8351_v61, %v1269_v9 }
 0x2a2   :  { %v8418_v8 = vpop.eup %7083  ;;  %v1274_v13 = vmul.f32 1.442695, %v1271_v11 }
 0x2a3   :  { %v1276_v57 = vsel %vm572_vm2, %v8418_v8, 0.0 }
 0x2a4   :  { %6897 = vrot.lane.b32.xlu2 %v6896_v2, %s7905_s28  ;;  %1181 = vadd.xlane.f32.xlu0 %v1180_v3  ;;  %7085 = vpow2.f32 %v1274_v13 }
 0x2a5   :  { %7087 = vpow2.f32 %v1178_v14 }
 0x2a6   :  { %6892 = vrot.lane.b32.xlu1 %v6896_v2, %s7906_s15 }
 0x2aa   :  { %v8425_v15 = vpop.eup %7085 }
 0x2ab   :  { %v8427_v16 = vpop.eup %7087  ;;  %v1279_v17 = vsel %vm572_vm2, %v8425_v15, 0.0 }
 0x2ac   :  { %1086 = vadd.xlane.f32.xlu0 %v1085_v6  ;;  %v1183_v19 = vsel %vm572_vm2, %v8427_v16, 0.0 }
 0x2b4   :  { %1277 = vadd.xlane.f32.xlu0 %v1276_v57 }
 0x2c8   :  { %6902 = vrot.lane.b32.xlu0 %v6896_v2, %s7907_s6 }
 0x2cd   :  { %1280 = vadd.xlane.f32.xlu2 %v1279_v17 }
 0x2d0   :  { %1184 = vadd.xlane.f32.xlu1 %v1183_v19 }
 0x2e1   :  { %v677_v61 = vpop.xlane.xlu0 %676 }
 0x2e2   :  { %7089 = vrcp.f32 %v677_v61 }
 0x2e8   :  { %v7090_v59 = vpop.eup %7089 }
 0x2e9   :  { %v683_v20 = vmul.f32 %v7090_v59, %v8355_v4 }
 0x2ea   :  { %v680_v23 = vpop.xlane.xlu1 %679 }
 0x2eb   :  { %7091 = vrcp.f32 %v680_v23  ;;  %6520 = vmatmul.msk.f32.vlgmr.msrb.gmra.mxu1 %vm572_vm2, %v683_v20 }
 0x2ef   :  { %v775_v24 = vpop.xlane.xlu2 %774 }
 0x2f0   :  { %7093 = vrcp.f32 %v775_v24  ;;  %v413_v24 = vld [vmem:[%s9940_s16 + $0x18] sm:$0xff] }
 0x2f1   :  { %v7092_v26 = vpop.eup %7091  ;;  %1378 = vmatpush.msrb.mxu2 %v413_v24 }
 0x2f2   :  { %v684_v27 = vmul.f32 %v7092_v26, %v8359_v10  ;;  %v412_v26 = vld [vmem:[%s9940_s16 + $0x10] sm:$0xff] }
 0x2f3   :  { %1379 = vmatpush.msrb.mxu2 %v412_v26 }
 0x2f4   :  { %6521 = vmatmul.msk.f32.gmra.mxu1 %vm572_vm2, %v684_v27  ;;  %v411_v27 = vld [vmem:[%s9940_s16 + $0x8] sm:$0xff] }
 0x2f5   :  { %1380 = vmatpush.msrb.mxu2 %v411_v27 }
 0x2f6   :  { %v7094_v29 = vpop.eup %7093 }
 0x2f7   :  { %v781_v30 = vmul.f32 %v7094_v29, %v8365_v18  ;;  %v871_v31 = vpop.xlane.xlu2 %870  ;;  %v410_v29 = vld [vmem:[%s9940_s16] sm:$0xff] }
 0x2f8   :  { %v778_v33 = vpop.xlane.xlu0 %777  ;;  %7095 = vrcp.f32 %v871_v31  ;;  %1381 = vmatpush.msrb.mxu2 %v410_v29 }
 0x2f9   :  { %7097 = vrcp.f32 %v778_v33  ;;  %6526 = vmatmul.msk.f32.vlgmr.msra.gmra.mxu3 %vm572_vm2, %v781_v30 }
 0x2fe   :  { %v7096_v4 = vpop.eup %7095 }
 0x2ff   :  { %v7098_v35 = vpop.eup %7097  ;;  %v877_v36 = vmul.f32 %v7096_v4, %v8370_v28  ;;  %v994_v34 = vpop.xlane.xlu2 %993 }
 0x300   :  { %v874_v25 = vpop.xlane.xlu1 %873  ;;  %7099 = vrcp.f32 %v994_v34  ;;  %v782_v10 = vmul.f32 %v7098_v35, %v8377_v32 }
 0x301   :  { %7101 = vrcp.f32 %v874_v25  ;;  %6532 = vmatmul.msk.f32.vlgmr.msra.gmra.mxu1 %vm572_vm2, %v877_v36 }
 0x302   :  { %6527 = vmatmul.msk.f32.gmra.mxu3 %vm572_vm2, %v782_v10 }
 0x306   :  { %v7100_v18 = vpop.eup %7099 }
 0x307   :  { %v7102_v37 = vpop.eup %7101  ;;  %v1000_v38 = vmul.f32 %v7100_v18, %v8386_v39  ;;  %v997_v40 = vpop.xlane.xlu0 %996 }
 0x308   :  { %v6898_v41 = vpop.permute.xlu2 %6897  ;;  %7103 = vrcp.f32 %v997_v40  ;;  %v878_v28 = vmul.f32 %v7102_v37, %v8389_v43 }
 0x309   :  { %v6899_v22 = vunpack.i.l.bf16 %v6898_v41  ;;  %v6900_v32 = vunpack.i.h.bf16 %v6898_v41 }
 0x30a   :  { %6533 = vmatmul.msk.f32.gmra.mxu1 %vm572_vm2, %v878_v28  ;;  %6538 = vmatmul.msk.f32.vlgmr.msrb.gmra.mxu3 %vm572_vm2, %v1000_v38 }
 0x30b   :  { %1216 = vmatpush.msra.mxu3 %v6899_v22 }
 0x30d   :  { %1217 = vmatpush.msra.mxu3 %v6900_v32 }
 0x30e   :  { %v7104_v42 = vpop.eup %7103 }
 0x30f   :  { %v1084_v44 = vpop.xlane.xlu0 %1083  ;;  %v1001_v45 = vmul.f32 %v7104_v42, %v8397_v48 }
 0x310   :  { %7105 = vrcp.f32 %v1084_v44 }
 0x312   :  { %6539 = vmatmul.msk.f32.gmra.mxu3 %vm572_vm2, %v1001_v45 }
 0x316   :  { %v7106_v49 = vpop.eup %7105 }
 0x317   :  { %v1182_v39 = vpop.xlane.xlu0 %1181  ;;  %v1090_v51 = vmul.f32 %v7106_v49, %v8402_v60 }
 0x318   :  { %v6893_v46 = vpop.permute.xlu1 %6892  ;;  %7107 = vrcp.f32 %v1182_v39 }
 0x319   :  { %v6894_v50 = vunpack.i.l.bf16 %v6893_v46  ;;  %v6895_v43 = vunpack.i.h.bf16 %v6893_v46 }
 0x31b   :  { %1120 = vmatpush.msrb.mxu1 %v6894_v50 }
 0x31d   :  { %1121 = vmatpush.msrb.mxu1 %v6895_v43  ;;  %v7004_v43 = vld [vmem:[#allocation7] ss:$0 sm:$0xff] }
 0x31e   :  { %v7108_v52 = vpop.eup %7107  ;;  %6544 = vmatmul.msk.f32.vlgmr.msrb.gmra.mxu1 %vm572_vm2, %v1090_v51 }
 0x31f   :  { %v1188_v54 = vmul.f32 %v7108_v52, %v8407_v1  ;;  %v1087_v56 = vpop.xlane.xlu0 %1086 }
 0x320   :  { %7109 = vrcp.f32 %v1087_v56 }
 0x321   :  { %6550 = vmatmul.msk.f32.vlgmr.msra.gmra.mxu3 %vm572_vm2, %v1188_v54  ;;  %v7367_v54 = vld [vmem:[#allocation2] sm:$0xff] }
 0x326   :  { %v7110_v48 = vpop.eup %7109 }
 0x327   :  { %v1091_v58 = vmul.f32 %v7110_v48, %v8414_v5  ;;  %v1278_v62 = vpop.xlane.xlu0 %1277 }
 0x328   :  { %7111 = vrcp.f32 %v1278_v62 }
 0x329   :  { %6545 = vmatmul.msk.f32.gmra.mxu1 %vm572_vm2, %v1091_v58 }
 0x32e   :  { %v7112_v63 = vpop.eup %7111 }
 0x32f   :  { %v1284_v55 = vmul.f32 %v7112_v63, %v8418_v8  ;;  %v618_v8 = vpop.f32.mrf.mxu3 }
 0x337   :  { %v621_v9 = vpop.f32.mrf.mxu3 }
 0x33a   :  { %v6903_v47 = vpop.permute.xlu0 %6902 }
 0x33b   :  { %v6904_v60 = vunpack.i.l.bf16 %v6903_v47  ;;  %v6905_v0 = vunpack.i.h.bf16 %v6903_v47  ;;  %v7368_v47 = vld [vmem:[#allocation2 + $0x8] sm:$0xff] }
 0x33d   :  { %1312 = vmatpush.msra.mxu1 %v6904_v60 }
 0x33f   :  { %1313 = vmatpush.msra.mxu1 %v6905_v0 }
 0x340   :  { %6556 = vmatmul.msk.f32.vlgmr.msra.gmra.mxu1 %vm572_vm2, %v1284_v55  ;;  %v1281_v1 = vpop.xlane.xlu2 %1280 }
 0x341   :  { %7113 = vrcp.f32 %v1281_v1 }
 0x343   :  { %v1185_v2 = vpop.xlane.xlu1 %1184 }
 0x344   :  { %7115 = vrcp.f32 %v1185_v2 }
 0x347   :  { %v7114_v3 = vpop.eup %7113 }
 0x348   :  { %v1285_v53 = vmul.f32 %v7114_v3, %v8425_v15 }
 0x34a   :  { %v7116_v5 = vpop.eup %7115  ;;  %6557 = vmatmul.msk.f32.gmra.mxu1 %vm572_vm2, %v1285_v53 }
 0x34b   :  { %v1189_v6 = vmul.f32 %v7116_v5, %v8427_v16  ;;  %v7369_v5 = vld [vmem:[#allocation2 + $0x18] sm:$0xff] }
 0x34d   :  { %6551 = vmatmul.msk.f32.gmra.mxu3 %vm572_vm2, %v1189_v6 }
 0x368   :  { %v716_v7 = vpop.f32.mrf.mxu1 }
 0x369   :  { %916 = vrot.lane.b32.xlu0 %v716_v7, %s7884_s0 }
 0x371   :  { %v719_v57 = vpop.f32.mrf.mxu1 }
 0x372   :  { %918 = vrot.lane.b32.xlu1 %v719_v57, %s7884_s0 }
 0x37c   :  { %v812_v11 = vpop.f32.mrf.mxu3 }
 0x37d   :  { %924 = vrot.lane.b32.xlu0 %v812_v11, %s7886_s8 }
 0x37e   :  { %v908_v12 = vpop.f32.mrf.mxu1 }
 0x385   :  { %932 = vrot.lane.b32.xlu0 %v908_v12, %s7908_s17  ;;  %v815_v14 = vpop.f32.mrf.mxu3 }
 0x387   :  { %v911_v13 = vpop.f32.mrf.mxu1 }
 0x388   :  { %934 = vrot.lane.b32.xlu2 %v911_v13, %s7908_s17 }
 0x38d   :  { %926 = vrot.lane.b32.xlu0 %v815_v14, %s7886_s8  ;;  %v1025_v15 = vpop.f32.mrf.mxu3 }
 0x395   :  { %v1028_v17 = vpop.f32.mrf.mxu3 }
 0x39b   :  { %v1123_v16 = vpop.f32.mrf.mxu1 }
 0x39c   :  { %1323 = vrot.lane.b32.xlu0 %v1123_v16, %s7884_s0 }
 0x3a4   :  { %v1219_v19 = vpop.f32.mrf.mxu3 }
 0x3a5   :  { %1331 = vrot.lane.b32.xlu0 %v1219_v19, %s7886_s8 }
 0x3a6   :  { %v1126_v61 = vpop.f32.mrf.mxu1 }
 0x3ad   :  { %1325 = vrot.lane.b32.xlu0 %v1126_v61, %s7884_s0 }
 0x3bd   :  { %v1315_v59 = vpop.f32.mrf.mxu1 }
 0x3be   :  { %1339 = vrot.lane.b32.xlu1 %v1315_v59, %s7908_s17 }
 0x3c7   :  { %v1318_v20 = vpop.f32.mrf.mxu1 }
 0x3c8   :  { %1341 = vrot.lane.b32.xlu2 %v1318_v20, %s7908_s17 }
 0x3d0   :  { %v1222_v23 = vpop.f32.mrf.mxu3 }
 0x3d1   :  { %1333 = vrot.lane.b32.xlu1 %v1222_v23, %s7886_s8 }
 0x3db   :  { %v917_v30 = vpop.permute.xlu0 %916 }
 0x3dc   :  { %v938_v33 = vsel %vm536_vm1, %v618_v8, %v917_v30  ;;  %v7909_v8 = vmov 32.0  }
 0x3dd   :  { %7117 = vrcp.f32 %v7909_v8 }
 0x3e2   :  { %v935_v18 = vpop.permute.xlu2 %934 }
 0x3e3   :  { %v7118_v57 = vpop.eup %7117 }
 0x3e4   :  { %v919_v34 = vpop.permute.xlu1 %918  ;;  %vm1418_vm4 = vweird.f32 %v7118_v57 }
 0x3e5   :  { %v939_v25 = vsel %vm536_vm1, %v621_v9, %v919_v34  ;;  %v1414_v9 = vmul.f32 32.0, %v7118_v57 }
 0x3e7   :  { %v1415_v11 = vsub.f32 1.0, %v1414_v9  ;;  %v1570_v9 = vld [vmem:[%s9943_s29 + $0x38] sm:$0xff] }
 0x3e8   :  { %1596 = vmatpush.msrb.mxu0 %v1570_v9 }
 0x3e9   :  { %v1416_v12 = vmul.f32 %v7118_v57, %v1415_v11  ;;  %v1569_v11 = vld [vmem:[%s9943_s29 + $0x30] sm:$0xff] }
 0x3ea   :  { %1597 = vmatpush.msrb.mxu0 %v1569_v11 }
 0x3eb   :  { %v1417_v13 = vadd.f32 %v7118_v57, %v1416_v12 }
 0x3ed   :  { %v8506_v14 = vsel %vm1418_vm4, %v7118_v57, %v1417_v13  ;;  %v1568_v13 = vld [vmem:[%s9943_s29 + $0x28] sm:$0xff] }
 0x3ee   :  { %1598 = vmatpush.msrb.mxu0 %v1568_v13 }
 0x3ef   :  { %v925_v31 = vpop.permute.xlu0 %924 }
 0x3f0   :  { %v940_v4 = vsel %vm572_vm2, %v938_v33, %v925_v31 }
 0x3f7   :  { %v933_v35 = vpop.permute.xlu0 %932 }
 0x3f8   :  { %v943_v36 = vsel %vm942_vm3, %v940_v4, %v933_v35 }
 0x3f9   :  { %6558 = vmatmul.msk.f32.vlgmr.msrb.gmra.mxu2 %vm418_vm0, %v943_v36 }
 0x3ff   :  { %v927_v10 = vpop.permute.xlu0 %926 }
 0x400   :  { %v941_v37 = vsel %vm572_vm2, %v939_v25, %v927_v10  ;;  %v1513_v25 = vld [vmem:[%s9941_s10 + $0x18] sm:$0xff]  ;;  %v1512_v10 = vld [vmem:[%s9941_s10 + $0x10] sm:$0xff] }
 0x401   :  { %v944_v38 = vsel %vm942_vm3, %v941_v37, %v935_v18  ;;  %1542 = vmatpush.msrb.mxu3 %v1513_v25  ;;  %v1511_v18 = vld [vmem:[%s9941_s10 + $0x8] sm:$0xff]  ;;  %v1510_v37 = vld [vmem:[%s9941_s10] sm:$0xff] }
 0x402   :  { %6559 = vmatmul.msk.f32.gmra.mxu2 %vm418_vm0, %v944_v38 }
 0x403   :  { %1543 = vmatpush.msrb.mxu3 %v1512_v10  ;;  %v1565_v10 = vld [vmem:[%s9943_s29 + $0x10] sm:$0xff] }
 0x405   :  { %1544 = vmatpush.msrb.mxu3 %v1511_v18  ;;  %v1564_v18 = vld [vmem:[%s9943_s29 + $0x8] sm:$0xff] }
 0x407   :  { %1545 = vmatpush.msrb.mxu3 %v1510_v37  ;;  %v1563_v37 = vld [vmem:[%s9943_s29] sm:$0xff] }
 0x40e   :  { %v1324_v40 = vpop.permute.xlu0 %1323 }
 0x40f   :  { %v1345_v22 = vsel %vm536_vm1, %v1025_v15, %v1324_v40 }
 0x417   :  { %v1332_v41 = vpop.permute.xlu0 %1331 }
 0x418   :  { %v1347_v28 = vsel %vm572_vm2, %v1345_v22, %v1332_v41 }
 0x41f   :  { %v1326_v44 = vpop.permute.xlu0 %1325 }
 0x420   :  { %v1346_v45 = vsel %vm536_vm1, %v1028_v17, %v1326_v44 }
 0x422   :  { %v1342_v46 = vpop.permute.xlu2 %1341 }
 0x430   :  { %v1340_v32 = vpop.permute.xlu1 %1339 }
 0x431   :  { %v1349_v42 = vsel %vm942_vm3, %v1347_v28, %v1340_v32 }
 0x432   :  { %6560 = vmatmul.msk.f32.gmra.mxu2 %vm418_vm0, %v1349_v42 }
 0x443   :  { %v1334_v39 = vpop.permute.xlu1 %1333 }
 0x444   :  { %v1348_v49 = vsel %vm572_vm2, %v1346_v45, %v1334_v39 }
 0x445   :  { %v1350_v50 = vsel %vm942_vm3, %v1348_v49, %v1342_v46 }
 0x446   :  { %6561 = vmatmul.msk.f32.gmra.mxu2 %vm418_vm0, %v1350_v50 }
 0x47c   :  { %v1383_v51 = vpop.f32.mrf.mxu2 }
 0x47d   :  { %v1384_v52 = vadd.f32 %v7004_v43, %v1383_v51 }
 0x47f   :  { %v1397_v56 = vadd.f32 %v7367_v54, %v1384_v52 }
 0x481   :  { %v1401_v48 = vsel %vm418_vm0, %v1397_v56, 0.0 }
 0x482   :  { %1402 = vadd.xlane.f32.xlu0 %v1401_v48  ;;  %v7006_v48 = vld [vmem:[#allocation11] ss:$0 sm:$0xff] }
 0x485   :  { %v1386_v58 = vpop.f32.mrf.mxu2 }
 0x486   :  { %v1387_v62 = vadd.f32 %v7004_v43, %v1386_v58 }
 0x488   :  { %v1398_v63 = vadd.f32 %v7368_v47, %v1387_v62 }
 0x48a   :  { %v1404_v60 = vsel %vm418_vm0, %v1398_v63, 0.0 }
 0x48b   :  { %1405 = vadd.xlane.f32.xlu1 %v1404_v60 }
 0x4b5   :  { %v1389_v0 = vpop.f32.mrf.mxu2 }
 0x4b6   :  { %v1390_v55 = vadd.f32 %v7004_v43, %v1389_v0 }
 0x4b8   :  { %v1399_v1 = vadd.f32 %v1390_v55, %v8206_v21 }
 0x4ba   :  { %v1407_v2 = vsel %vm418_vm0, %v1399_v1, 0.0 }
 0x4bb   :  { %1408 = vadd.xlane.f32.xlu2 %v1407_v2 }
 0x4c9   :  { %v1392_v3 = vpop.f32.mrf.mxu2 }
 0x4ca   :  { %v1393_v53 = vadd.f32 %v7004_v43, %v1392_v3  ;;  %v8541_v43 = vld [vmem:[%s9942_s2] ss:$0 sm:$0xff] }
 0x4cc   :  { %v1400_v6 = vadd.f32 %v7369_v5, %v1393_v53 }
 0x4ce   :  { %v1410_v7 = vsel %vm418_vm0, %v1400_v6, 0.0 }
 0x4cf   :  { %1411 = vadd.xlane.f32.xlu0 %v1410_v7 }
 0x4f5   :  { %v1403_v21 = vpop.xlane.xlu0 %1402 }
 0x4f6   :  { %v1420_v15 = vmul.f32 %v8506_v14, %v1403_v21 }
 0x4f8   :  { %v1424_v16 = vsub.f32 %v1397_v56, %v1420_v15 }
 0x4fa   :  { %v1428_v17 = vmul.f32 %v1424_v16, %v1424_v16 }
 0x4fc   :  { %v1432_v19 = vsel %vm418_vm0, %v1428_v17, 0.0  ;;  %v1567_v17 = vld [vmem:[%s9943_s29 + $0x20] sm:$0xff] }
 0x4fd   :  { %1433 = vadd.xlane.f32.xlu1 %v1432_v19  ;;  %1599 = vmatpush.msrb.mxu0 %v1567_v17 }
 0x4fe   :  { %v1406_v61 = vpop.xlane.xlu1 %1405 }
 0x4ff   :  { %v1421_v59 = vmul.f32 %v8506_v14, %v1406_v61 }
 0x501   :  { %v1425_v20 = vsub.f32 %v1398_v63, %v1421_v59 }
 0x503   :  { %v1429_v23 = vmul.f32 %v1425_v20, %v1425_v20 }
 0x505   :  { %v1435_v24 = vsel %vm418_vm0, %v1429_v23, 0.0 }
 0x506   :  { %1436 = vadd.xlane.f32.xlu2 %v1435_v24 }
 0x52e   :  { %v1409_v26 = vpop.xlane.xlu2 %1408 }
 0x52f   :  { %v1422_v27 = vmul.f32 %v8506_v14, %v1409_v26 }
 0x531   :  { %v8513_v29 = vsub.f32 %v1399_v1, %v1422_v27 }
 0x533   :  { %v1430_v30 = vmul.f32 %v8513_v29, %v8513_v29 }
 0x535   :  { %v1438_v31 = vsel %vm418_vm0, %v1430_v30, 0.0 }
 0x536   :  { %1439 = vadd.xlane.f32.xlu0 %v1438_v31 }
 0x542   :  { %v1412_v33 = vpop.xlane.xlu0 %1411 }
 0x543   :  { %v1423_v4 = vmul.f32 %v8506_v14, %v1412_v33 }
 0x545   :  { %v8519_v35 = vsub.f32 %v1400_v6, %v1423_v4 }
 0x547   :  { %v1431_v36 = vmul.f32 %v8519_v35, %v8519_v35 }
 0x549   :  { %v1441_v34 = vsel %vm418_vm0, %v1431_v36, 0.0 }
 0x54a   :  { %1442 = vadd.xlane.f32.xlu1 %v1441_v34 }
 0x570   :  { %v1434_v38 = vpop.xlane.xlu1 %1433 }
 0x571   :  { %v1444_v40 = vmul.f32 %v1434_v38, %v8506_v14 }
 0x573   :  { %v1448_v41 = vadd.f32 1e-05, %v1444_v40 }
 0x575   :  { %7119 = vrsqrt.f32 %v1448_v41  ;;  %vm1458_vm6 = vweird.f32 %v1448_v41 }
 0x579   :  { %v1437_v22 = vpop.xlane.xlu2 %1436 }
 0x57a   :  { %v1445_v28 = vmul.f32 %v1437_v22, %v8506_v14 }
 0x57b   :  { %v7120_v32 = vpop.eup %7119 }
 0x57c   :  { %v1453_v42 = vmul.f32 %v7120_v32, %v1448_v41  ;;  %v1449_v44 = vadd.f32 1e-05, %v1445_v28  ;;  %vm1459_vm5 = vweird.f32 %v7120_v32 }
 0x57d   :  { %vm1460_vm7 = vmor %vm1458_vm6, %vm1459_vm5  ;;  %vm1575_vm5 = vcmask 523264  }
 0x57e   :  { %v1454_v45 = vmul.f32 %v7120_v32, %v1453_v42  ;;  %7121 = vrsqrt.f32 %v1449_v44  ;;  %vm1468_vm9 = vweird.f32 %v1449_v44 }
 0x580   :  { %v1455_v39 = vmul.f32 0.5, %v1454_v45 }
 0x582   :  { %v1456_v46 = vsub.f32 1.5, %v1455_v39 }
 0x584   :  { %v7122_v49 = vpop.eup %7121  ;;  %v1457_v50 = vmul.f32 %v7120_v32, %v1456_v46 }
 0x585   :  { %v1463_v51 = vmul.f32 %v7122_v49, %v1449_v44  ;;  %vm1469_vm8 = vweird.f32 %v7122_v49 }
 0x586   :  { %v1461_v52 = vsel %vm1460_vm7, %v7120_v32, %v1457_v50  ;;  %vm1470_vm10 = vmor %vm1468_vm9, %vm1469_vm8  ;;  %v7008_v50 = vld [vmem:[#allocation10] ss:$0 sm:$0xff] }
 0x587   :  { %v1492_v54 = vmul.f32 %v1461_v52, %v1424_v16  ;;  %v1464_v56 = vmul.f32 %v7122_v49, %v1463_v51 }
 0x589   :  { %v1499_v58 = vmul.f32 %v8541_v43, %v1492_v54  ;;  %v1465_v62 = vmul.f32 0.5, %v1464_v56 }
 0x58b   :  { %v1466_v47 = vsub.f32 1.5, %v1465_v62  ;;  %v8544_v63 = vadd.f32 %v7006_v48, %v1499_v58 }
 0x58d   :  { %v1467_v60 = vmul.f32 %v7122_v49, %v1466_v47  ;;  %6562 = vmatmul.msk.f32.vlgmr.msrb.gmra.mxu3 %vm418_vm0, %v8544_v63 }
 0x58f   :  { %v1471_v0 = vsel %vm1470_vm10, %v7122_v49, %v1467_v60 }
 0x590   :  { %v1493_v55 = vmul.f32 %v1471_v0, %v1425_v20  ;;  %v1566_v20 = vld [vmem:[%s9943_s29 + $0x18] sm:$0xff] }
 0x591   :  { %1600 = vmatpush.msrb.mxu0 %v1566_v20 }
 0x592   :  { %v1500_v1 = vmul.f32 %v8541_v43, %v1493_v55 }
 0x593   :  { %1601 = vmatpush.msrb.mxu0 %v1565_v10  ;;  %v6571_v10 = vld [vmem:[%s9938_s7 + $0x60] sm:$0xff] }
 0x594   :  { %v8549_v2 = vadd.f32 %v7006_v48, %v1500_v1 }
 0x595   :  { %1602 = vmatpush.msrb.mxu0 %v1564_v18  ;;  %v6575_v18 = vld [vmem:[%s9938_s7 + $0x80] sm:$0xff] }
 0x596   :  { %6563 = vmatmul.msk.f32.gmra.mxu3 %vm418_vm0, %v8549_v2 }
 0x597   :  { %1603 = vmatpush.msrb.mxu0 %v1563_v37 }
 0x5a9   :  { %v1440_v3 = vpop.xlane.xlu0 %1439 }
 0x5aa   :  { %v1446_v53 = vmul.f32 %v1440_v3, %v8506_v14 }
 0x5ac   :  { %v1450_v5 = vadd.f32 1e-05, %v1446_v53 }
 0x5ae   :  { %7123 = vrsqrt.f32 %v1450_v5  ;;  %vm1478_vm12 = vweird.f32 %v1450_v5 }
 0x5b4   :  { %v7124_v6 = vpop.eup %7123 }
 0x5b5   :  { %v1473_v7 = vmul.f32 %v7124_v6, %v1450_v5  ;;  %vm1479_vm11 = vweird.f32 %v7124_v6 }
 0x5b6   :  { %vm1480_vm13 = vmor %vm1478_vm12, %vm1479_vm11 }
 0x5b7   :  { %v1474_v8 = vmul.f32 %v7124_v6, %v1473_v7 }
 0x5b9   :  { %v1475_v57 = vmul.f32 0.5, %v1474_v8 }
 0x5bb   :  { %v1476_v12 = vsub.f32 1.5, %v1475_v57 }
 0x5bd   :  { %v1477_v21 = vmul.f32 %v7124_v6, %v1476_v12  ;;  %v1443_v15 = vpop.xlane.xlu1 %1442 }
 0x5be   :  { %v1447_v16 = vmul.f32 %v1443_v15, %v8506_v14 }
 0x5bf   :  { %v1481_v19 = vsel %vm1480_vm13, %v7124_v6, %v1477_v21 }
 0x5c0   :  { %v1451_v61 = vadd.f32 1e-05, %v1447_v16  ;;  %v1494_v59 = vmul.f32 %v1481_v19, %v8513_v29 }
 0x5c2   :  { %7125 = vrsqrt.f32 %v1451_v61  ;;  %v1501_v23 = vmul.f32 %v8541_v43, %v1494_v59  ;;  %vm1488_vm15 = vweird.f32 %v1451_v61 }
 0x5c4   :  { %v1508_v24 = vadd.f32 %v7006_v48, %v1501_v23 }
 0x5c6   :  { %6564 = vmatmul.msk.f32.gmra.mxu3 %vm418_vm0, %v1508_v24 }
 0x5c8   :  { %v7126_v26 = vpop.eup %7125 }
 0x5c9   :  { %v1483_v27 = vmul.f32 %v7126_v26, %v1451_v61  ;;  %vm1489_vm14 = vweird.f32 %v7126_v26 }
 0x5ca   :  { %vm1490_vm4 = vmor %vm1488_vm15, %vm1489_vm14 }
 0x5cb   :  { %v1484_v30 = vmul.f32 %v7126_v26, %v1483_v27  ;;  %v6574_v27 = vld [vmem:[%s9938_s7 + $0x78] sm:$0xff] }
 0x5cc   :  { %1782 = vmatpush.msrb.mxu1 %v6574_v27 }
 0x5cd   :  { %v1485_v31 = vmul.f32 0.5, %v1484_v30  ;;  %v6578_v30 = vld [vmem:[%s9938_s7 + $0x98] sm:$0xff] }
 0x5ce   :  { %1814 = vmatpush.msra.mxu2 %v6578_v30 }
 0x5cf   :  { %v1486_v33 = vsub.f32 1.5, %v1485_v31  ;;  %v6581_v31 = vld [vmem:[%s9938_s7 + $0xb0] sm:$0xff] }
 0x5d1   :  { %v1487_v4 = vmul.f32 %v7126_v26, %v1486_v33  ;;  %v6573_v33 = vld [vmem:[%s9938_s7 + $0x70] sm:$0xff] }
 0x5d2   :  { %1783 = vmatpush.msrb.mxu1 %v6573_v33 }
 0x5d3   :  { %v1491_v29 = vsel %vm1490_vm4, %v7126_v26, %v1487_v4  ;;  %v6582_v26 = vld [vmem:[%s9938_s7 + $0xb8] sm:$0xff]  ;;  %v6577_v4 = vld [vmem:[%s9938_s7 + $0x90] sm:$0xff] }
 0x5d4   :  { %v1495_v36 = vmul.f32 %v1491_v29, %v8519_v35  ;;  %v7007_v35 = vld [vmem:[#allocation8] ss:$0 sm:$0xff]  ;;  %1858 = vmatpush.msra.mxu3 %v6582_v26  ;;  %v6580_v29 = vld [vmem:[%s9938_s7 + $0xa8] sm:$0xff]  ;;  %1815 = vmatpush.msra.mxu2 %v6577_v4 }
 0x5d6   :  { %v1502_v34 = vmul.f32 %v8541_v43, %v1495_v36  ;;  %1859 = vmatpush.msra.mxu3 %v6581_v31  ;;  %v6572_v36 = vld [vmem:[%s9938_s7 + $0x68] sm:$0xff] }
 0x5d7   :  { %1784 = vmatpush.msrb.mxu1 %v6572_v36 }
 0x5d8   :  { %v1509_v25 = vadd.f32 %v7006_v48, %v1502_v34  ;;  %1860 = vmatpush.msra.mxu3 %v6580_v29  ;;  %v6576_v34 = vld [vmem:[%s9938_s7 + $0x88] sm:$0xff] }
 0x5d9   :  { %1816 = vmatpush.msra.mxu2 %v6576_v34  ;;  %1785 = vmatpush.msrb.mxu1 %v6571_v10  ;;  %v7373_v10 = vld [vmem:[#allocation5 + $0x18] sm:$0xff] }
 0x5da   :  { %6565 = vmatmul.msk.f32.gmra.mxu3 %vm418_vm0, %v1509_v25 }
 0x5db   :  { %1817 = vmatpush.msra.mxu2 %v6575_v18 }
 0x610   :  { %v1547_v38 = vpop.f32.mrf.mxu3 }
 0x611   :  { %v1548_v40 = vadd.f32 %v7007_v35, %v1547_v38 }
 0x613   :  { %v1559_v41 = vmax.f32 %v1548_v40, 0.0 }
 0x615   :  { %6566 = vmatmul.msk.f32.vlgmr.msrb.gmra.mxu0 %vm1575_vm5, %v1559_v41 }
 0x619   :  { %v1550_v22 = vpop.f32.mrf.mxu3 }
 0x61a   :  { %v1551_v28 = vadd.f32 %v7007_v35, %v1550_v22 }
 0x61c   :  { %v1560_v32 = vmax.f32 %v1551_v28, 0.0 }
 0x61e   :  { %6567 = vmatmul.msk.f32.gmra.mxu0 %vm1575_vm5, %v1560_v32 }
 0x649   :  { %v1553_v42 = vpop.f32.mrf.mxu3 }
 0x64a   :  { %v1554_v44 = vadd.f32 %v7007_v35, %v1553_v42 }
 0x64c   :  { %v1561_v45 = vmax.f32 %v1554_v44, 0.0 }
 0x64e   :  { %6568 = vmatmul.msk.f32.gmra.mxu0 %vm1575_vm5, %v1561_v45 }
 0x65d   :  { %v1556_v39 = vpop.f32.mrf.mxu3 }
 0x65e   :  { %v1557_v46 = vadd.f32 %v7007_v35, %v1556_v39 }
 0x660   :  { %v1562_v49 = vmax.f32 %v1557_v46, 0.0 }
 0x662   :  { %6569 = vmatmul.msk.f32.gmra.mxu0 %vm1575_vm5, %v1562_v49  ;;  %v8660_v49 = vld [vmem:[%s9942_s2 + $0x1] ss:$0 sm:$0xff] }
 0x692   :  { %v1605_v43 = vpop.f32.mrf.mxu0 }
 0x693   :  { %v1606_v51 = vadd.f32 %v7008_v50, %v1605_v43 }
 0x695   :  { %v1621_v52 = vadd.f32 %v1606_v51, %v8544_v63 }
 0x697   :  { %v1625_v54 = vsel %vm418_vm0, %v1621_v52, 0.0 }
 0x698   :  { %1626 = vadd.xlane.f32.xlu2 %v1625_v54  ;;  %v7010_v54 = vld [vmem:[#allocation11 + $0x1] ss:$0 sm:$0xff] }
 0x69b   :  { %v1608_v56 = vpop.f32.mrf.mxu0 }
 0x69c   :  { %v1609_v48 = vadd.f32 %v7008_v50, %v1608_v56 }
 0x69e   :  { %v1622_v58 = vadd.f32 %v1609_v48, %v8549_v2 }
 0x6a0   :  { %v1628_v62 = vsel %vm418_vm0, %v1622_v58, 0.0 }
 0x6a1   :  { %1629 = vadd.xlane.f32.xlu0 %v1628_v62 }
 0x6cb   :  { %v1611_v47 = vpop.f32.mrf.mxu0 }
 0x6cc   :  { %v1612_v60 = vadd.f32 %v7008_v50, %v1611_v47 }
 0x6ce   :  { %v1623_v0 = vadd.f32 %v1612_v60, %v1508_v24  ;;  %v7370_v60 = vld [vmem:[#allocation5] sm:$0xff] }
 0x6d0   :  { %v1631_v55 = vsel %vm418_vm0, %v1623_v0, 0.0 }
 0x6d1   :  { %1632 = vadd.xlane.f32.xlu1 %v1631_v55 }
 0x6df   :  { %v1614_v1 = vpop.f32.mrf.mxu0 }
 0x6e0   :  { %v1615_v3 = vadd.f32 %v7008_v50, %v1614_v1 }
 0x6e2   :  { %v1624_v53 = vadd.f32 %v1615_v3, %v1509_v25  ;;  %v6579_v25 = vld [vmem:[%s9938_s7 + $0xa0] sm:$0xff]  ;;  %s6476_s7 = sshll.u32 %s9910_s27, 4  ;;  %s6477_s7 = int_to_ptr.hbm [resolvable:$true] %s6476_s7 }
 0x6e3   :  { %1861 = vmatpush.msra.mxu3 %v6579_v25 }
 0x6e4   :  { %v1634_v63 = vsel %vm418_vm0, %v1624_v53, 0.0 }
 0x6e5   :  { %1635 = vadd.xlane.f32.xlu2 %v1634_v63  ;;  %v7371_v63 = vld [vmem:[#allocation5 + $0x8] sm:$0xff] }
 0x70b   :  { %v1627_v5 = vpop.xlane.xlu2 %1626 }
 0x70c   :  { %v1637_v6 = vmul.f32 %v1627_v5, %v8506_v14 }
 0x70e   :  { %v8596_v7 = vsub.f32 %v1621_v52, %v1637_v6 }
 0x710   :  { %v1645_v2 = vmul.f32 %v8596_v7, %v8596_v7 }
 0x712   :  { %v1649_v8 = vsel %vm418_vm0, %v1645_v2, 0.0 }
 0x713   :  { %1650 = vadd.xlane.f32.xlu0 %v1649_v8 }
 0x714   :  { %v1630_v57 = vpop.xlane.xlu0 %1629 }
 0x715   :  { %v1638_v9 = vmul.f32 %v1630_v57, %v8506_v14 }
 0x717   :  { %v8602_v11 = vsub.f32 %v1622_v58, %v1638_v9 }
 0x719   :  { %v1646_v12 = vmul.f32 %v8602_v11, %v8602_v11 }
 0x71b   :  { %v1652_v13 = vsel %vm418_vm0, %v1646_v12, 0.0 }
 0x71c   :  { %1653 = vadd.xlane.f32.xlu1 %v1652_v13 }
 0x744   :  { %v1633_v21 = vpop.xlane.xlu1 %1632 }
 0x745   :  { %v1639_v15 = vmul.f32 %v1633_v21, %v8506_v14 }
 0x747   :  { %v8608_v16 = vsub.f32 %v1623_v0, %v1639_v15 }
 0x749   :  { %v1647_v17 = vmul.f32 %v8608_v16, %v8608_v16 }
 0x74b   :  { %v1655_v19 = vsel %vm418_vm0, %v1647_v17, 0.0 }
 0x74c   :  { %1656 = vadd.xlane.f32.xlu2 %v1655_v19 }
 0x758   :  { %v1636_v61 = vpop.xlane.xlu2 %1635 }
 0x759   :  { %v1640_v59 = vmul.f32 %v1636_v61, %v8506_v14 }
 0x75b   :  { %v8614_v20 = vsub.f32 %v1624_v53, %v1640_v59 }
 0x75d   :  { %v1648_v23 = vmul.f32 %v8614_v20, %v8614_v20 }
 0x75f   :  { %v1658_v24 = vsel %vm418_vm0, %v1648_v23, 0.0 }
 0x760   :  { %1659 = vadd.xlane.f32.xlu0 %v1658_v24  ;;  %v7372_v24 = vld [vmem:[#allocation5 + $0x10] sm:$0xff] }
 0x786   :  { %v1651_v37 = vpop.xlane.xlu0 %1650 }
 0x787   :  { %v1661_v35 = vmul.f32 %v1651_v37, %v8506_v14  ;;  %v7011_v37 = vld [vmem:[%s9939_s9 + $0x3] ss:$0 sm:$0xff] }
 0x789   :  { %v1665_v38 = vadd.f32 1e-05, %v1661_v35 }
 0x78b   :  { %7127 = vrsqrt.f32 %v1665_v38  ;;  %vm1675_vm7 = vweird.f32 %v1665_v38 }
 0x78f   :  { %v1654_v40 = vpop.xlane.xlu1 %1653 }
 0x790   :  { %v1662_v41 = vmul.f32 %v1654_v40, %v8506_v14  ;;  %v7013_v40 = vld [vmem:[%s9939_s9 + $0x4] ss:$0 sm:$0xff] }
 0x791   :  { %v7128_v22 = vpop.eup %7127 }
 0x792   :  { %v1670_v28 = vmul.f32 %v7128_v22, %v1665_v38  ;;  %v1666_v32 = vadd.f32 1e-05, %v1662_v41  ;;  %vm1676_vm6 = vweird.f32 %v7128_v22 }
 0x793   :  { %vm1677_vm8 = vmor %vm1675_vm7, %vm1676_vm6 }
 0x794   :  { %v1671_v42 = vmul.f32 %v7128_v22, %v1670_v28  ;;  %7129 = vrsqrt.f32 %v1666_v32  ;;  %vm1685_vm10 = vweird.f32 %v1666_v32  ;;  %v8710_v28 = vld [vmem:[%s9939_s9 + $0x5] ss:$0 sm:$0xff] }
 0x796   :  { %v1672_v44 = vmul.f32 0.5, %v1671_v42 }
 0x798   :  { %v1673_v45 = vsub.f32 1.5, %v1672_v44 }
 0x79a   :  { %v7130_v39 = vpop.eup %7129  ;;  %v1674_v46 = vmul.f32 %v7128_v22, %v1673_v45 }
 0x79b   :  { %v1680_v50 = vmul.f32 %v7130_v39, %v1666_v32  ;;  %vm1686_vm9 = vweird.f32 %v7130_v39 }
 0x79c   :  { %v1678_v43 = vsel %vm1677_vm8, %v7128_v22, %v1674_v46  ;;  %vm1687_vm11 = vmor %vm1685_vm10, %vm1686_vm9 }
 0x79d   :  { %v1709_v51 = vmul.f32 %v1678_v43, %v8596_v7  ;;  %v1681_v52 = vmul.f32 %v7130_v39, %v1680_v50 }
 0x79f   :  { %v1716_v56 = vmul.f32 %v8660_v49, %v1709_v51  ;;  %v1682_v48 = vmul.f32 0.5, %v1681_v52 }
 0x7a1   :  { %v1683_v58 = vsub.f32 1.5, %v1682_v48  ;;  %v8664_v62 = vadd.f32 %v7010_v54, %v1716_v56 }
 0x7a3   :  { %v1684_v47 = vmul.f32 %v7130_v39, %v1683_v58  ;;  %6598 = vmatmul.msk.f32.vlgmr.msra.gmra.mxu3 %vm418_vm0, %v8664_v62  ;;  %v1727_v0 = vadd.f32 %v7370_v60, %v8664_v62 }
 0x7a5   :  { %6590 = vmatmul.msk.f32.vlgmr.msrb.gmra.mxu1 %vm418_vm0, %v1727_v0  ;;  %6594 = vmatmul.msk.f32.vlgmr.msra.gmra.mxu2 %vm418_vm0, %v1727_v0  ;;  %v1688_v55 = vsel %vm1687_vm11, %v7130_v39, %v1684_v47 }
 0x7a6   :  { %v1710_v1 = vmul.f32 %v1688_v55, %v8602_v11 }
 0x7a8   :  { %v1717_v3 = vmul.f32 %v8660_v49, %v1710_v1 }
 0x7aa   :  { %v8673_v53 = vadd.f32 %v7010_v54, %v1717_v3 }
 0x7ac   :  { %6599 = vmatmul.msk.f32.gmra.mxu3 %vm418_vm0, %v8673_v53  ;;  %v1728_v5 = vadd.f32 %v7371_v63, %v8673_v53 }
 0x7ae   :  { %6591 = vmatmul.msk.f32.gmra.mxu1 %vm418_vm0, %v1728_v5  ;;  %6595 = vmatmul.msk.f32.gmra.mxu2 %vm418_vm0, %v1728_v5 }
 0x7bf   :  { %v1657_v6 = vpop.xlane.xlu2 %1656 }
 0x7c0   :  { %v1663_v7 = vmul.f32 %v1657_v6, %v8506_v14 }
 0x7c2   :  { %v1667_v2 = vadd.f32 1e-05, %v1663_v7 }
 0x7c4   :  { %7131 = vrsqrt.f32 %v1667_v2  ;;  %vm1695_vm13 = vweird.f32 %v1667_v2 }
 0x7ca   :  { %v7132_v8 = vpop.eup %7131 }
 0x7cb   :  { %v1690_v57 = vmul.f32 %v7132_v8, %v1667_v2  ;;  %vm1696_vm12 = vweird.f32 %v7132_v8 }
 0x7cc   :  { %vm1697_vm14 = vmor %vm1695_vm13, %vm1696_vm12 }
 0x7cd   :  { %v1691_v9 = vmul.f32 %v7132_v8, %v1690_v57 }
 0x7cf   :  { %v1692_v11 = vmul.f32 0.5, %v1691_v9 }
 0x7d1   :  { %v1693_v12 = vsub.f32 1.5, %v1692_v11 }
 0x7d3   :  { %v1694_v13 = vmul.f32 %v7132_v8, %v1693_v12  ;;  %v1660_v21 = vpop.xlane.xlu0 %1659 }
 0x7d4   :  { %v1664_v15 = vmul.f32 %v1660_v21, %v8506_v14 }
 0x7d5   :  { %v1698_v17 = vsel %vm1697_vm14, %v7132_v8, %v1694_v13 }
 0x7d6   :  { %v1668_v19 = vadd.f32 1e-05, %v1664_v15  ;;  %v1711_v61 = vmul.f32 %v1698_v17, %v8608_v16 }
 0x7d8   :  { %7133 = vrsqrt.f32 %v1668_v19  ;;  %v1718_v59 = vmul.f32 %v8660_v49, %v1711_v61  ;;  %vm1705_vm4 = vweird.f32 %v1668_v19 }
 0x7da   :  { %v8684_v23 = vadd.f32 %v7010_v54, %v1718_v59 }
 0x7dc   :  { %6600 = vmatmul.msk.f32.gmra.mxu3 %vm418_vm0, %v8684_v23  ;;  %v1729_v26 = vadd.f32 %v7372_v24, %v8684_v23 }
 0x7de   :  { %v7134_v27 = vpop.eup %7133  ;;  %6592 = vmatmul.msk.f32.gmra.mxu1 %vm418_vm0, %v1729_v26  ;;  %6596 = vmatmul.msk.f32.gmra.mxu2 %vm418_vm0, %v1729_v26 }
 0x7df   :  { %v1700_v30 = vmul.f32 %v7134_v27, %v1668_v19  ;;  %vm1706_vm15 = vweird.f32 %v7134_v27 }
 0x7e0   :  { %vm1707_vm6 = vmor %vm1705_vm4, %vm1706_vm15 }
 0x7e1   :  { %v1701_v31 = vmul.f32 %v7134_v27, %v1700_v30 }
 0x7e3   :  { %v1702_v33 = vmul.f32 0.5, %v1701_v31 }
 0x7e5   :  { %v1703_v16 = vsub.f32 1.5, %v1702_v33 }
 0x7e7   :  { %v1704_v4 = vmul.f32 %v7134_v27, %v1703_v16 }
 0x7e9   :  { %v1708_v29 = vsel %vm1707_vm6, %v7134_v27, %v1704_v4 }
 0x7ea   :  { %v1712_v36 = vmul.f32 %v1708_v29, %v8614_v20 }
 0x7ec   :  { %v1719_v34 = vmul.f32 %v8660_v49, %v1712_v36 }
 0x7ee   :  { %v8693_v25 = vadd.f32 %v7010_v54, %v1719_v34 }
 0x7f0   :  { %6601 = vmatmul.msk.f32.gmra.mxu3 %vm418_vm0, %v8693_v25  ;;  %v1730_v18 = vadd.f32 %v7373_v10, %v8693_v25 }
 0x7f2   :  { %6593 = vmatmul.msk.f32.gmra.mxu1 %vm418_vm0, %v1730_v18  ;;  %6597 = vmatmul.msk.f32.gmra.mxu2 %vm418_vm0, %v1730_v18 }
 0x822   :  { %v1787_v35 = vpop.f32.mrf.mxu1 }
 0x823   :  { %v1788_v20 = vadd.f32 %v7011_v37, %v1787_v35 }
 0x825   :  { %1961 = vrot.lane.b32.xlu0 %v1788_v20, %s7906_s15 }
 0x826   :  { %v1863_v38 = vpop.f32.mrf.mxu3 }
 0x827   :  { %v1864_v42 = vadd.f32 %v8710_v28, %v1863_v38 }
 0x828   :  { %v1819_v41 = vpop.f32.mrf.mxu2 }
 0x829   :  { %v1820_v22 = vadd.f32 %v7013_v40, %v1819_v41 }
 0x82b   :  { %v1790_v45 = vpop.f32.mrf.mxu1 }
 0x82c   :  { %v1791_v50 = vadd.f32 %v7011_v37, %v1790_v45 }
 0x82d   :  { %1965 = vrot.lane.b32.xlu0 %v1820_v22, %s7906_s15 }
 0x82f   :  { %v1866_v32 = vpop.f32.mrf.mxu3 }
 0x830   :  { %v1867_v44 = vadd.f32 %v8710_v28, %v1866_v32 }
 0x831   :  { %v1822_v39 = vpop.f32.mrf.mxu2 }
 0x832   :  { %v1823_v46 = vadd.f32 %v7013_v40, %v1822_v39  ;;  %1952 = vmatpush.msra.mxu1 %v1867_v44  ;;  %v6906_v49 = vpack.i.bf16 %v1864_v42, %v1867_v44 }
 0x834   :  { %1953 = vmatpush.msra.mxu1 %v1864_v42  ;;  %2065 = vrot.lane.b32.xlu2 %v1823_v46, %s7905_s28 }
 0x835   :  { %1967 = vrot.lane.b32.xlu1 %v1823_v46, %s7906_s15  ;;  %6602 = vmatpush.xpose.msk.msra.mxu0 %vm536_vm1, %v1823_v46 }
 0x836   :  { %1963 = vrot.lane.b32.xlu0 %v1791_v50, %s7906_s15 }
 0x839   :  { %6603 = vmatpush.xpose.msk.msra.mxu0 %vm536_vm1, %v1820_v22 }
 0x83c   :  { %6604 = vmatmul.msk.f32.vlgmr.msra.gmra.mxu0 %vm536_vm1, %v1788_v20  ;;  %2059 = vrot.lane.b32.xlu2 %v1788_v20, %s7905_s28 }
 0x83d   :  { %2063 = vrot.lane.b32.xlu1 %v1820_v22, %s7905_s28 }
 0x83e   :  { %2159 = vrot.lane.b32.xlu0 %v1820_v22, %s7907_s6 }
 0x844   :  { %6605 = vmatmul.msk.f32.gmra.mxu0 %vm536_vm1, %v1791_v50  ;;  %2061 = vrot.lane.b32.xlu2 %v1791_v50, %s7905_s28 }
 0x845   :  { %2161 = vrot.lane.b32.xlu1 %v1823_v46, %s7907_s6 }
 0x84c   :  { %2157 = vrot.lane.b32.xlu2 %v1791_v50, %s7907_s6 }
 0x84d   :  { %2155 = vrot.lane.b32.xlu1 %v1788_v20, %s7907_s6 }
 0x85b   :  { %v1793_v52 = vpop.f32.mrf.mxu1 }
 0x85c   :  { %v1794_v54 = vadd.f32 %v7011_v37, %v1793_v52 }
 0x85f   :  { %v1869_v11 = vpop.f32.mrf.mxu3 }
 0x860   :  { %v1870_v59 = vadd.f32 %v8710_v28, %v1869_v11 }
 0x861   :  { %v1825_v43 = vpop.f32.mrf.mxu2 }
 0x862   :  { %v1826_v51 = vadd.f32 %v7013_v40, %v1825_v43 }
 0x864   :  { %2371 = vrot.lane.b32.xlu2 %v1826_v51, %s7906_s15 }
 0x86c   :  { %2465 = vrot.lane.b32.xlu2 %v1794_v54, %s7905_s28 }
 0x86f   :  { %v1796_v56 = vpop.f32.mrf.mxu1 }
 0x870   :  { %v1797_v48 = vadd.f32 %v7011_v37, %v1796_v56 }
 0x873   :  { %v1872_v17 = vpop.f32.mrf.mxu3 }
 0x874   :  { %2467 = vrot.lane.b32.xlu2 %v1797_v48, %s7905_s28  ;;  %v1873_v61 = vadd.f32 %v8710_v28, %v1872_v17 }
 0x875   :  { %v1828_v58 = vpop.f32.mrf.mxu2 }
 0x876   :  { %v1829_v47 = vadd.f32 %v7013_v40, %v1828_v58  ;;  %v8767_v24 = vpack.i.bf16 %v1870_v59, %v1873_v61 }
 0x878   :  { %2471 = vrot.lane.b32.xlu1 %v1829_v47, %s7905_s28  ;;  %2373 = vrot.lane.b32.xlu0 %v1829_v47, %s7906_s15 }
 0x87c   :  { %2563 = vrot.lane.b32.xlu2 %v1797_v48, %s7907_s6 }
 0x880   :  { %2469 = vrot.lane.b32.xlu1 %v1826_v51, %s7905_s28  ;;  %2367 = vrot.lane.b32.xlu0 %v1794_v54, %s7906_s15 }
 0x884   :  { %6907 = vrot.lane.b32.xlu2 %v6906_v49, %s7906_s15 }
 0x888   :  { %2567 = vrot.lane.b32.xlu1 %v1829_v47, %s7907_s6  ;;  %2369 = vrot.lane.b32.xlu0 %v1797_v48, %s7906_s15 }
 0x88c   :  { %6917 = vrot.lane.b32.xlu2 %v6906_v49, %s7907_s6 }
 0x88e   :  { %v2066_v60 = vpop.permute.xlu2 %2065 }
 0x88f   :  { %6614 = vmatpush.xpose.msk.msrb.mxu2 %vm536_vm1, %v2066_v60 }
 0x890   :  { %2561 = vrot.lane.b32.xlu1 %v1794_v54, %s7907_s6  ;;  %2565 = vrot.lane.b32.xlu0 %v1826_v51, %s7907_s6 }
 0x896   :  { %v2060_v55 = vpop.permute.xlu2 %2059 }
 0x897   :  { %v1962_v0 = vpop.permute.xlu0 %1961 }
 0x898   :  { %6912 = vrot.lane.b32.xlu1 %v6906_v49, %s7905_s28 }
 0x89e   :  { %v2062_v63 = vpop.permute.xlu2 %2061 }
 0x89f   :  { %v1966_v1 = vpop.permute.xlu0 %1965 }
 0x8a6   :  { %v2158_v7 = vpop.permute.xlu2 %2157 }
 0x8a7   :  { %v1968_v3 = vpop.permute.xlu1 %1967 }
 0x8a8   :  { %6608 = vmatpush.xpose.msk.msrb.mxu0 %vm536_vm1, %v1968_v3  ;;  %v1964_v6 = vpop.permute.xlu0 %1963 }
 0x8ac   :  { %6609 = vmatpush.xpose.msk.msrb.mxu0 %vm536_vm1, %v1966_v1 }
 0x8af   :  { %v2064_v5 = vpop.permute.xlu1 %2063  ;;  %6610 = vmatmul.msk.f32.vlgmr.msrb.gmra.mxu0 %vm536_vm1, %v1962_v0 }
 0x8b0   :  { %6615 = vmatpush.xpose.msk.msrb.mxu2 %vm536_vm1, %v2064_v5  ;;  %v2160_v9 = vpop.permute.xlu0 %2159 }
 0x8b3   :  { %6616 = vmatmul.msk.f32.vlgmr.msrb.gmra.mxu2 %vm536_vm1, %v2060_v55 }
 0x8b4   :  { %6626 = vmatpush.xpose.msk.msra.mxu2 %vm536_vm1, %v1829_v47 }
 0x8b7   :  { %v2162_v2 = vpop.permute.xlu1 %2161  ;;  %6611 = vmatmul.msk.f32.gmra.mxu0 %vm536_vm1, %v1964_v6 }
 0x8b8   :  { %6627 = vmatpush.xpose.msk.msra.mxu2 %vm536_vm1, %v1826_v51  ;;  %6620 = vmatpush.xpose.msk.msra.mxu0 %vm536_vm1, %v2162_v2 }
 0x8b9   :  { %v1904_v8 = vpop.f32.mrf.mxu0 }
 0x8ba   :  { %v1910_v57 = vsel %vm572_vm2, %v1904_v8, -inf }
 0x8bb   :  { %6617 = vmatmul.msk.f32.gmra.mxu2 %vm536_vm1, %v2062_v63  ;;  %1911 = vmax.xlane.f32.xlu0 %v1910_v57 }
 0x8bc   :  { %6621 = vmatpush.xpose.msk.msra.mxu0 %vm536_vm1, %v2160_v9 }
 0x8be   :  { %v2372_v12 = vpop.permute.xlu2 %2371 }
 0x8bf   :  { %v2156_v13 = vpop.permute.xlu1 %2155 }
 0x8c0   :  { %6622 = vmatmul.msk.f32.vlgmr.msra.gmra.mxu0 %vm536_vm1, %v2156_v13 }
 0x8c1   :  { %v8758_v21 = vpop.f32.mrf.mxu0 }
 0x8c2   :  { %v1913_v15 = vsel %vm572_vm2, %v8758_v21, -inf }
 0x8c3   :  { %6628 = vmatmul.msk.f32.vlgmr.msra.gmra.mxu2 %vm536_vm1, %v1794_v54  ;;  %1914 = vmax.xlane.f32.xlu1 %v1913_v15 }
 0x8c6   :  { %v2466_v19 = vpop.permute.xlu2 %2465 }
 0x8c8   :  { %6623 = vmatmul.msk.f32.gmra.mxu0 %vm536_vm1, %v2158_v7 }
 0x8cb   :  { %6629 = vmatmul.msk.f32.gmra.mxu2 %vm536_vm1, %v1797_v48 }
 0x8ce   :  { %v2468_v26 = vpop.permute.xlu2 %2467 }
 0x8cf   :  { %6922 = vrot.lane.b32.xlu0 %v8767_v24, %s7906_s15 }
 0x8d6   :  { %v2564_v27 = vpop.permute.xlu2 %2563 }
 0x8de   :  { %v6908_v30 = vpop.permute.xlu2 %6907 }
 0x8df   :  { %v6909_v31 = vunpack.i.l.bf16 %v6908_v30  ;;  %v6910_v33 = vunpack.i.h.bf16 %v6908_v30 }
 0x8e1   :  { %2050 = vmatpush.msrb.mxu1 %v6909_v31 }
 0x8e3   :  { %2051 = vmatpush.msrb.mxu1 %v6910_v33 }
 0x8e6   :  { %v6918_v17 = vpop.permute.xlu2 %6917 }
 0x8ea   :  { %v2472_v16 = vpop.permute.xlu1 %2471  ;;  %v2374_v4 = vpop.permute.xlu0 %2373 }
 0x8eb   :  { %6632 = vmatpush.xpose.msk.msrb.mxu0 %vm536_vm1, %v2374_v4  ;;  %6638 = vmatpush.xpose.msk.msrb.mxu2 %vm536_vm1, %v2472_v16 }
 0x8ef   :  { %6633 = vmatpush.xpose.msk.msrb.mxu0 %vm536_vm1, %v2372_v12 }
 0x8f2   :  { %v2470_v29 = vpop.permute.xlu1 %2469  ;;  %v2368_v36 = vpop.permute.xlu0 %2367 }
 0x8f3   :  { %6634 = vmatmul.msk.f32.vlgmr.msrb.gmra.mxu0 %vm536_vm1, %v2368_v36  ;;  %6639 = vmatpush.xpose.msk.msrb.mxu2 %vm536_vm1, %v2470_v29 }
 0x8f6   :  { %6640 = vmatmul.msk.f32.vlgmr.msrb.gmra.mxu2 %vm536_vm1, %v2466_v19 }
 0x8fa   :  { %v2568_v34 = vpop.permute.xlu1 %2567  ;;  %v2370_v10 = vpop.permute.xlu0 %2369 }
 0x8fb   :  { %6635 = vmatmul.msk.f32.gmra.mxu0 %vm536_vm1, %v2370_v10 }
 0x8fc   :  { %6644 = vmatpush.xpose.msk.msra.mxu0 %vm536_vm1, %v2568_v34 }
 0x8fe   :  { %6641 = vmatmul.msk.f32.gmra.mxu2 %vm536_vm1, %v2468_v26 }
 0x902   :  { %v2562_v18 = vpop.permute.xlu1 %2561  ;;  %v2566_v37 = vpop.permute.xlu0 %2565 }
 0x903   :  { %6645 = vmatpush.xpose.msk.msra.mxu0 %vm536_vm1, %v2566_v37 }
 0x906   :  { %6646 = vmatmul.msk.f32.vlgmr.msra.gmra.mxu0 %vm536_vm1, %v2562_v18 }
 0x90a   :  { %v6913_v35 = vpop.permute.xlu1 %6912 }
 0x90b   :  { %v6914_v20 = vunpack.i.l.bf16 %v6913_v35  ;;  %v6915_v38 = vunpack.i.h.bf16 %v6913_v35 }
 0x90d   :  { %2146 = vmatpush.msrb.mxu3 %v6914_v20 }
 0x90e   :  { %6647 = vmatmul.msk.f32.gmra.mxu0 %vm536_vm1, %v2564_v27 }
 0x90f   :  { %2147 = vmatpush.msrb.mxu3 %v6915_v38 }
 0x911   :  { %2358 = vmatpush.msra.mxu3 %v1873_v61 }
 0x913   :  { %2359 = vmatpush.msra.mxu3 %v1870_v59 }
 0x92c   :  { %v1994_v40 = vpop.f32.mrf.mxu0 }
 0x92d   :  { %v2000_v41 = vsel %vm572_vm2, %v1994_v40, -inf }
 0x92e   :  { %v1912_v22 = vpop.xlane.xlu0 %1911  ;;  %2001 = vmax.xlane.f32.xlu2 %v2000_v41 }
 0x92f   :  { %v1916_v28 = vsub.f32 %v1904_v8, %v1912_v22 }
 0x931   :  { %v1918_v32 = vmul.f32 1.442695, %v1916_v28  ;;  %v6919_v28 = vunpack.i.l.bf16 %v6918_v17 }
 0x933   :  { %7135 = vpow2.f32 %v1918_v32 }
 0x934   :  { %v1997_v42 = vpop.f32.mrf.mxu0 }
 0x935   :  { %v2003_v44 = vsel %vm572_vm2, %v1997_v42, -inf }
 0x936   :  { %v2092_v45 = vpop.f32.mrf.mxu2  ;;  %2004 = vmax.xlane.f32.xlu0 %v2003_v44  ;;  %v1915_v39 = vpop.xlane.xlu1 %1914  ;;  %v6920_v44 = vunpack.i.h.bf16 %v6918_v17 }
 0x937   :  { %v2098_v46 = vsel %vm572_vm2, %v2092_v45, -inf  ;;  %v1917_v50 = vsub.f32 %v8758_v21, %v1915_v39 }
 0x938   :  { %2099 = vmax.xlane.f32.xlu2 %v2098_v46 }
 0x939   :  { %v8786_v49 = vpop.eup %7135  ;;  %v1920_v51 = vmul.f32 1.442695, %v1917_v50 }
 0x93a   :  { %v1922_v43 = vsel %vm572_vm2, %v8786_v49, 0.0 }
 0x93b   :  { %1923 = vadd.xlane.f32.xlu1 %v1922_v43  ;;  %7137 = vpow2.f32 %v1920_v51 }
 0x93d   :  { %v8791_v52 = vpop.f32.mrf.mxu0 }
 0x93e   :  { %v2095_v54 = vpop.f32.mrf.mxu2  ;;  %v2194_v48 = vsel %vm572_vm2, %v8791_v52, -inf }
 0x93f   :  { %v2101_v56 = vsel %vm572_vm2, %v2095_v54, -inf }
 0x940   :  { %2102 = vmax.xlane.f32.xlu0 %v2101_v56 }
 0x941   :  { %v8802_v0 = vpop.eup %7137  ;;  %v8836_v19 = vpop.permute.xlu0 %6922 }
 0x942   :  { %v1925_v55 = vsel %vm572_vm2, %v8802_v0, 0.0 }
 0x943   :  { %2195 = vmax.xlane.f32.xlu1 %v2194_v48 }
 0x945   :  { %v8796_v58 = vpop.f32.mrf.mxu0 }
 0x946   :  { %v8798_v47 = vpop.f32.mrf.mxu2  ;;  %v2197_v60 = vsel %vm572_vm2, %v8796_v58, -inf }
 0x947   :  { %2198 = vmax.xlane.f32.xlu2 %v2197_v60  ;;  %v2316_v63 = vsel %vm572_vm2, %v8798_v47, -inf }
 0x94b   :  { %1926 = vadd.xlane.f32.xlu1 %v1925_v55 }
 0x94e   :  { %v8806_v1 = vpop.f32.mrf.mxu2 }
 0x94f   :  { %v2319_v3 = vsel %vm572_vm2, %v8806_v1, -inf }
 0x950   :  { %2320 = vmax.xlane.f32.xlu2 %v2319_v3 }
 0x953   :  { %2317 = vmax.xlane.f32.xlu1 %v2316_v63 }
 0x970   :  { %v8812_v5 = vpop.f32.mrf.mxu0 }
 0x971   :  { %v2406_v6 = vsel %vm572_vm2, %v8812_v5, -inf }
 0x972   :  { %2407 = vmax.xlane.f32.xlu0 %v2406_v6 }
 0x978   :  { %v8816_v7 = vpop.f32.mrf.mxu0 }
 0x979   :  { %v8818_v2 = vpop.f32.mrf.mxu2  ;;  %v2409_v8 = vsel %vm572_vm2, %v8816_v7, -inf }
 0x97a   :  { %2410 = vmax.xlane.f32.xlu0 %v2409_v8  ;;  %v2504_v57 = vsel %vm572_vm2, %v8818_v2, -inf }
 0x97b   :  { %2505 = vmax.xlane.f32.xlu2 %v2504_v57 }
 0x981   :  { %v8824_v9 = vpop.f32.mrf.mxu2 }
 0x982   :  { %v2507_v11 = vsel %vm572_vm2, %v8824_v9, -inf }
 0x983   :  { %v8828_v12 = vpop.f32.mrf.mxu0  ;;  %2508 = vmax.xlane.f32.xlu2 %v2507_v11 }
 0x984   :  { %v2600_v13 = vsel %vm572_vm2, %v8828_v12, -inf }
 0x985   :  { %2601 = vmax.xlane.f32.xlu0 %v2600_v13 }
 0x98b   :  { %v8832_v21 = vpop.f32.mrf.mxu0 }
 0x98c   :  { %v2603_v15 = vsel %vm572_vm2, %v8832_v21, -inf }
 0x98d   :  { %2604 = vmax.xlane.f32.xlu0 %v2603_v15 }
 0x9a1   :  { %v2002_v61 = vpop.xlane.xlu2 %2001 }
 0x9a2   :  { %v2006_v59 = vsub.f32 %v1994_v40, %v2002_v61 }
 0x9a4   :  { %v2008_v26 = vmul.f32 1.442695, %v2006_v59 }
 0x9a6   :  { %7139 = vpow2.f32 %v2008_v26 }
 0x9a9   :  { %v2005_v27 = vpop.xlane.xlu0 %2004 }
 0x9aa   :  { %v2007_v30 = vsub.f32 %v1997_v42, %v2005_v27 }
 0x9ab   :  { %v2100_v31 = vpop.xlane.xlu2 %2099 }
 0x9ac   :  { %v8838_v33 = vpop.eup %7139  ;;  %v2010_v16 = vmul.f32 1.442695, %v2007_v30  ;;  %v2104_v4 = vsub.f32 %v2092_v45, %v2100_v31 }
 0x9ad   :  { %v2012_v29 = vsel %vm572_vm2, %v8838_v33, 0.0 }
 0x9ae   :  { %7141 = vpow2.f32 %v2010_v16  ;;  %v2106_v36 = vmul.f32 1.442695, %v2104_v4  ;;  %2013 = vadd.xlane.f32.xlu1 %v2012_v29  ;;  %v1924_v34 = vpop.xlane.xlu1 %1923 }
 0x9af   :  { %7143 = vrcp.f32 %v1924_v34 }
 0x9b0   :  { %7145 = vpow2.f32 %v2106_v36 }
 0x9b3   :  { %v2103_v10 = vpop.xlane.xlu0 %2102 }
 0x9b4   :  { %v8842_v18 = vpop.eup %7141  ;;  %v2105_v37 = vsub.f32 %v2095_v54, %v2103_v10 }
 0x9b5   :  { %v7144_v35 = vpop.eup %7143  ;;  %v2015_v20 = vsel %vm572_vm2, %v8842_v18, 0.0 }
 0x9b6   :  { %v8846_v38 = vpop.eup %7145  ;;  %v1930_v40 = vmul.f32 %v7144_v35, %v8786_v49  ;;  %v2108_v41 = vmul.f32 1.442695, %v2105_v37  ;;  %2016 = vadd.xlane.f32.xlu1 %v2015_v20  ;;  %v2196_v22 = vpop.xlane.xlu1 %2195 }
 0x9b7   :  { %v2200_v32 = vsub.f32 %v8791_v52, %v2196_v22  ;;  %v2110_v42 = vsel %vm572_vm2, %v8846_v38, 0.0 }
 0x9b8   :  { %7147 = vpow2.f32 %v2108_v41  ;;  %2111 = vadd.xlane.f32.xlu0 %v2110_v42  ;;  %6606 = vmatmul.msk.f32.vlgmr.msra.gmra.mxu1 %vm572_vm2, %v1930_v40 }
 0x9b9   :  { %2242 = vmatpush.msra.mxu1 %v6919_v28  ;;  %v2202_v45 = vmul.f32 1.442695, %v2200_v32 }
 0x9ba   :  { %v2199_v39 = vpop.xlane.xlu2 %2198 }
 0x9bb   :  { %2243 = vmatpush.msra.mxu1 %v6920_v44  ;;  %7149 = vpow2.f32 %v2202_v45  ;;  %v2201_v49 = vsub.f32 %v8796_v58, %v2199_v39 }
 0x9bd   :  { %v2204_v51 = vmul.f32 1.442695, %v2201_v49  ;;  %v6924_v49 = vunpack.i.l.bf16 %v8836_v19 }
 0x9be   :  { %v8853_v46 = vpop.eup %7147  ;;  %v1927_v50 = vpop.xlane.xlu1 %1926 }
 0x9bf   :  { %v2113_v43 = vsel %vm572_vm2, %v8853_v46, 0.0  ;;  %7151 = vrcp.f32 %v1927_v50 }
 0x9c0   :  { %2114 = vadd.xlane.f32.xlu0 %v2113_v43  ;;  %7153 = vpow2.f32 %v2204_v51  ;;  %v6925_v43 = vunpack.i.h.bf16 %v8836_v19 }
 0x9c1   :  { %v8858_v54 = vpop.eup %7149 }
 0x9c2   :  { %v2206_v58 = vsel %vm572_vm2, %v8858_v54, 0.0 }
 0x9c3   :  { %v2321_v52 = vpop.xlane.xlu2 %2320 }
 0x9c4   :  { %v2323_v48 = vsub.f32 %v8806_v1, %v2321_v52 }
 0x9c5   :  { %v7152_v56 = vpop.eup %7151 }
 0x9c6   :  { %v2318_v60 = vpop.xlane.xlu1 %2317  ;;  %v1931_v3 = vmul.f32 %v7152_v56, %v8802_v0  ;;  %v2326_v6 = vmul.f32 1.442695, %v2323_v48  ;;  %v8866_v8 = vpop.eup %7153 }
 0x9c7   :  { %v2322_v55 = vsub.f32 %v8798_v47, %v2318_v60  ;;  %v2209_v1 = vsel %vm572_vm2, %v8866_v8, 0.0 }
 0x9c8   :  { %2207 = vadd.xlane.f32.xlu0 %v2206_v58  ;;  %6607 = vmatmul.msk.f32.gmra.mxu1 %vm572_vm2, %v1931_v3 }
 0x9c9   :  { %v2324_v63 = vmul.f32 1.442695, %v2322_v55 }
 0x9cb   :  { %7155 = vpow2.f32 %v2324_v63 }
 0x9cc   :  { %7157 = vpow2.f32 %v2326_v6 }
 0x9d0   :  { %2210 = vadd.xlane.f32.xlu0 %v2209_v1 }
 0x9d1   :  { %v8870_v57 = vpop.eup %7155 }
 0x9d2   :  { %v2328_v47 = vsel %vm572_vm2, %v8870_v57, 0.0  ;;  %v8874_v0 = vpop.eup %7157 }
 0x9d3   :  { %2329 = vadd.xlane.f32.xlu2 %v2328_v47  ;;  %v2331_v11 = vsel %vm572_vm2, %v8874_v0, 0.0 }
 0x9d8   :  { %2332 = vadd.xlane.f32.xlu0 %v2331_v11 }
 0x9e5   :  { %v2408_v13 = vpop.xlane.xlu0 %2407 }
 0x9e6   :  { %v2412_v15 = vsub.f32 %v8812_v5, %v2408_v13 }
 0x9e8   :  { %v2414_v17 = vmul.f32 1.442695, %v2412_v15 }
 0x9ea   :  { %7159 = vpow2.f32 %v2414_v17 }
 0x9ed   :  { %v2411_v61 = vpop.xlane.xlu0 %2410 }
 0x9ee   :  { %v2413_v59 = vsub.f32 %v8816_v7, %v2411_v61  ;;  %v2506_v26 = vpop.xlane.xlu2 %2505 }
 0x9ef   :  { %v2510_v27 = vsub.f32 %v8818_v2, %v2506_v26 }
 0x9f0   :  { %v8881_v30 = vpop.eup %7159  ;;  %v2416_v31 = vmul.f32 1.442695, %v2413_v59 }
 0x9f1   :  { %v2512_v16 = vmul.f32 1.442695, %v2510_v27  ;;  %v2418_v4 = vsel %vm572_vm2, %v8881_v30, 0.0 }
 0x9f2   :  { %7161 = vpow2.f32 %v2416_v31  ;;  %2419 = vadd.xlane.f32.xlu1 %v2418_v4 }
 0x9f3   :  { %7163 = vpow2.f32 %v2512_v16 }
 0x9f6   :  { %v2509_v29 = vpop.xlane.xlu2 %2508 }
 0x9f7   :  { %v2511_v5 = vsub.f32 %v8824_v9, %v2509_v29 }
 0x9f8   :  { %v8886_v36 = vpop.eup %7161  ;;  %v2602_v34 = vpop.xlane.xlu0 %2601 }
 0x9f9   :  { %v8888_v7 = vpop.eup %7163  ;;  %v2514_v10 = vmul.f32 1.442695, %v2511_v5  ;;  %v2606_v2 = vsub.f32 %v8828_v12, %v2602_v34  ;;  %v2421_v37 = vsel %vm572_vm2, %v8886_v36, 0.0 }
 0x9fa   :  { %2422 = vadd.xlane.f32.xlu0 %v2421_v37  ;;  %v2516_v35 = vsel %vm572_vm2, %v8888_v7, 0.0 }
 0x9fb   :  { %7165 = vpow2.f32 %v2514_v10  ;;  %2517 = vadd.xlane.f32.xlu2 %v2516_v35  ;;  %v2608_v20 = vmul.f32 1.442695, %v2606_v2 }
 0x9fd   :  { %7167 = vpow2.f32 %v2608_v20 }
 0xa00   :  { %v2605_v22 = vpop.xlane.xlu0 %2604 }
 0xa01   :  { %v8895_v40 = vpop.eup %7165  ;;  %v2607_v32 = vsub.f32 %v8832_v21, %v2605_v22 }
 0xa02   :  { %v2519_v9 = vsel %vm572_vm2, %v8895_v40, 0.0 }
 0xa03   :  { %2520 = vadd.xlane.f32.xlu2 %v2519_v9  ;;  %v8899_v41 = vpop.eup %7167  ;;  %v2610_v42 = vmul.f32 1.442695, %v2607_v32 }
 0xa04   :  { %v2612_v12 = vsel %vm572_vm2, %v8899_v41, 0.0 }
 0xa0b   :  { %6927 = vrot.lane.b32.xlu1 %v8767_v24, %s7905_s28  ;;  %2613 = vadd.xlane.f32.xlu2 %v2612_v12 }
 0xa21   :  { %v2014_v28 = vpop.xlane.xlu1 %2013 }
 0xa22   :  { %7169 = vrcp.f32 %v2014_v28 }
 0xa23   :  { %6932 = vrot.lane.b32.xlu2 %v8767_v24, %s7907_s6 }
 0xa28   :  { %v7170_v44 = vpop.eup %7169 }
 0xa29   :  { %v2020_v45 = vmul.f32 %v7170_v44, %v8838_v33  ;;  %v2017_v39 = vpop.xlane.xlu1 %2016 }
 0xa2a   :  { %7171 = vrcp.f32 %v2017_v39 }
 0xa2b   :  { %7173 = vpow2.f32 %v2610_v42  ;;  %v2112_v50 = vpop.xlane.xlu0 %2111  ;;  %6612 = vmatmul.msk.f32.vlgmr.msrb.gmra.mxu1 %vm572_vm2, %v2020_v45 }
 0xa2c   :  { %7175 = vrcp.f32 %v2112_v50  ;;  %2456 = vmatpush.msrb.mxu1 %v6924_v49 }
 0xa2e   :  { %2457 = vmatpush.msrb.mxu1 %v6925_v43 }
 0xa30   :  { %v7172_v21 = vpop.eup %7171 }
 0xa31   :  { %v8912_v51 = vpop.eup %7173  ;;  %v2021_v24 = vmul.f32 %v7172_v21, %v8842_v18  ;;  %v6589_v21 = vld [vmem:[%s9940_s16 + $0x38] sm:$0xff] }
 0xa32   :  { %v7176_v52 = vpop.eup %7175  ;;  %v2615_v48 = vsel %vm572_vm2, %v8912_v51, 0.0  ;;  %2714 = vmatpush.msra.mxu2 %v6589_v21 }
 0xa33   :  { %v2118_v33 = vmul.f32 %v7176_v52, %v8846_v38  ;;  %v2115_v56 = vpop.xlane.xlu0 %2114  ;;  %6613 = vmatmul.msk.f32.gmra.mxu1 %vm572_vm2, %v2021_v24  ;;  %v6587_v52 = vld [vmem:[%s9940_s16 + $0x28] sm:$0xff] }
 0xa34   :  { %7177 = vrcp.f32 %v2115_v56 }
 0xa35   :  { %6618 = vmatmul.msk.f32.vlgmr.msrb.gmra.mxu3 %vm572_vm2, %v2118_v33  ;;  %2616 = vadd.xlane.f32.xlu1 %v2615_v48  ;;  %v6586_v33 = vld [vmem:[%s9940_s16 + $0x20] sm:$0xff] }
 0xa3a   :  { %v7178_v19 = vpop.eup %7177 }
 0xa3b   :  { %v2208_v60 = vpop.xlane.xlu0 %2207  ;;  %v2119_v55 = vmul.f32 %v7178_v19, %v8853_v46 }
 0xa3c   :  { %7179 = vrcp.f32 %v2208_v60 }
 0xa3d   :  { %6619 = vmatmul.msk.f32.gmra.mxu3 %vm572_vm2, %v2119_v55 }
 0xa42   :  { %v7180_v18 = vpop.eup %7179 }
 0xa43   :  { %v2214_v38 = vmul.f32 %v7180_v18, %v8858_v54  ;;  %v2211_v58 = vpop.xlane.xlu0 %2210 }
 0xa44   :  { %7181 = vrcp.f32 %v2211_v58 }
 0xa45   :  { %6624 = vmatmul.msk.f32.vlgmr.msra.gmra.mxu1 %vm572_vm2, %v2214_v38 }
 0xa46   :  { %v2330_v3 = vpop.xlane.xlu2 %2329 }
 0xa47   :  { %7183 = vrcp.f32 %v2330_v3 }
 0xa4a   :  { %v7182_v63 = vpop.eup %7181 }
 0xa4b   :  { %v2333_v6 = vpop.xlane.xlu0 %2332  ;;  %v2215_v1 = vmul.f32 %v7182_v63, %v8866_v8 }
 0xa4c   :  { %7185 = vrcp.f32 %v2333_v6 }
 0xa4d   :  { %v7184_v47 = vpop.eup %7183  ;;  %6625 = vmatmul.msk.f32.gmra.mxu1 %vm572_vm2, %v2215_v1 }
 0xa4e   :  { %v2336_v46 = vmul.f32 %v7184_v47, %v8870_v57 }
 0xa50   :  { %6630 = vmatmul.msk.f32.vlgmr.msra.gmra.mxu3 %vm572_vm2, %v2336_v46 }
 0xa52   :  { %v7186_v11 = vpop.eup %7185 }
 0xa53   :  { %v2337_v54 = vmul.f32 %v7186_v11, %v8874_v0 }
 0xa58   :  { %6631 = vmatmul.msk.f32.gmra.mxu3 %vm572_vm2, %v2337_v54 }
 0xa65   :  { %v2420_v13 = vpop.xlane.xlu1 %2419 }
 0xa66   :  { %7187 = vrcp.f32 %v2420_v13 }
 0xa6c   :  { %v7188_v15 = vpop.eup %7187 }
 0xa6d   :  { %v2426_v17 = vmul.f32 %v7188_v15, %v8881_v30  ;;  %v2423_v61 = vpop.xlane.xlu0 %2422 }
 0xa6e   :  { %7189 = vrcp.f32 %v2423_v61  ;;  %v2518_v8 = vpop.xlane.xlu2 %2517 }
 0xa6f   :  { %6636 = vmatmul.msk.f32.vlgmr.msrb.gmra.mxu1 %vm572_vm2, %v2426_v17  ;;  %7191 = vrcp.f32 %v2518_v8 }
 0xa74   :  { %v7190_v59 = vpop.eup %7189 }
 0xa75   :  { %v2427_v57 = vmul.f32 %v7190_v59, %v8886_v36  ;;  %v7192_v27 = vpop.eup %7191 }
 0xa76   :  { %v2521_v26 = vpop.xlane.xlu2 %2520  ;;  %v2524_v30 = vmul.f32 %v7192_v27, %v8888_v7  ;;  %v1955_v7 = vpop.f32.mrf.mxu1  ;;  %v7014_v27 = vld [vmem:[#allocation7 + $0x1] ss:$0 sm:$0xff] }
 0xa77   :  { %6637 = vmatmul.msk.f32.gmra.mxu1 %vm572_vm2, %v2427_v57  ;;  %7193 = vrcp.f32 %v2521_v26 }
 0xa7d   :  { %v6928_v0 = vpop.permute.xlu1 %6927  ;;  %v7194_v29 = vpop.eup %7193 }
 0xa7e   :  { %v6929_v31 = vunpack.i.l.bf16 %v6928_v0  ;;  %v2614_v16 = vpop.xlane.xlu2 %2613  ;;  %v6930_v4 = vunpack.i.h.bf16 %v6928_v0  ;;  %v2525_v2 = vmul.f32 %v7194_v29, %v8895_v40  ;;  %v1958_v35 = vpop.f32.mrf.mxu1 }
 0xa7f   :  { %7195 = vrcp.f32 %v2614_v16 }
 0xa80   :  { %2552 = vmatpush.msrb.mxu3 %v6929_v31 }
 0xa82   :  { %2553 = vmatpush.msrb.mxu3 %v6930_v4 }
 0xa83   :  { %6642 = vmatmul.msk.f32.vlgmr.msrb.gmra.mxu3 %vm572_vm2, %v2524_v30 }
 0xa85   :  { %v7196_v36 = vpop.eup %7195 }
 0xa86   :  { %v6933_v5 = vpop.permute.xlu2 %6932  ;;  %v2620_v37 = vmul.f32 %v7196_v36, %v8899_v41 }
 0xa87   :  { %v6934_v34 = vunpack.i.l.bf16 %v6933_v5  ;;  %v6935_v10 = vunpack.i.h.bf16 %v6933_v5 }
 0xa89   :  { %2648 = vmatpush.msra.mxu1 %v6934_v34 }
 0xa8b   :  { %6643 = vmatmul.msk.f32.gmra.mxu3 %vm572_vm2, %v2525_v2  ;;  %2649 = vmatpush.msra.mxu1 %v6935_v10  ;;  %v3069_v10 = vld [vmem:[#allocation13 + $0x18] sm:$0xff]  ;;  %v3068_v2 = vld [vmem:[#allocation13 + $0x10] sm:$0xff] }
 0xa8c   :  { %6648 = vmatmul.msk.f32.vlgmr.msra.gmra.mxu1 %vm572_vm2, %v2620_v37  ;;  %v3067_v37 = vld [vmem:[#allocation13 + $0x8] sm:$0xff] }
 0xa8d   :  { %3104 = vmatpush.msrb.mxu1 %v3069_v10 }
 0xa8f   :  { %3105 = vmatpush.msrb.mxu1 %v3068_v2 }
 0xa91   :  { %3106 = vmatpush.msrb.mxu1 %v3067_v37 }
 0xaa8   :  { %v2053_v20 = vpop.f32.mrf.mxu1  ;;  %v2617_v9 = vpop.xlane.xlu1 %2616 }
 0xaa9   :  { %7197 = vrcp.f32 %v2617_v9  ;;  %2253 = vrot.lane.b32.xlu0 %v2053_v20, %s7884_s0  ;;  %v3072_v20 = vld [vmem:[#allocation13 + $0x30] sm:$0xff]  ;;  %v3070_v9 = vld [vmem:[#allocation13 + $0x20] sm:$0xff] }
 0xaaf   :  { %v7198_v12 = vpop.eup %7197 }
 0xab0   :  { %v2056_v22 = vpop.f32.mrf.mxu1  ;;  %v2621_v28 = vmul.f32 %v7198_v12, %v8912_v51  ;;  %v6588_v51 = vld [vmem:[%s9940_s16 + $0x30] sm:$0xff] }
 0xab1   :  { %2255 = vrot.lane.b32.xlu2 %v2056_v22, %s7884_s0  ;;  %2715 = vmatpush.msra.mxu2 %v6588_v51 }
 0xab2   :  { %6649 = vmatmul.msk.f32.gmra.mxu1 %vm572_vm2, %v2621_v28 }
 0xab3   :  { %2716 = vmatpush.msra.mxu2 %v6587_v52 }
 0xab5   :  { %2717 = vmatpush.msra.mxu2 %v6586_v33 }
 0xab8   :  { %v2149_v40 = vpop.f32.mrf.mxu3 }
 0xab9   :  { %2261 = vrot.lane.b32.xlu2 %v2149_v40, %s7886_s8 }
 0xac0   :  { %v2152_v32 = vpop.f32.mrf.mxu3 }
 0xac2   :  { %v2245_v41 = vpop.f32.mrf.mxu1 }
 0xac3   :  { %2269 = vrot.lane.b32.xlu0 %v2245_v41, %s7908_s17 }
 0xaca   :  { %v2248_v42 = vpop.f32.mrf.mxu1 }
 0xacb   :  { %2263 = vrot.lane.b32.xlu0 %v2152_v32, %s7886_s8  ;;  %2271 = vrot.lane.b32.xlu2 %v2248_v42, %s7908_s17 }
 0xad3   :  { %v2361_v45 = vpop.f32.mrf.mxu3 }
 0xadb   :  { %v2364_v39 = vpop.f32.mrf.mxu3 }
 0xaec   :  { %v2459_v44 = vpop.f32.mrf.mxu1 }
 0xaed   :  { %2659 = vrot.lane.b32.xlu1 %v2459_v44, %s7884_s0 }
 0xaf4   :  { %v2462_v49 = vpop.f32.mrf.mxu1 }
 0xb06   :  { %v2555_v50 = vpop.f32.mrf.mxu3 }
 0xb07   :  { %2667 = vrot.lane.b32.xlu0 %v2555_v50, %s7886_s8 }
 0xb09   :  { %v2651_v43 = vpop.f32.mrf.mxu1 }
 0xb0a   :  { %2675 = vrot.lane.b32.xlu2 %v2651_v43, %s7908_s17 }
 0xb0b   :  { %v2256_v56 = vpop.permute.xlu2 %2255 }
 0xb0c   :  { %v2276_v3 = vsel %vm536_vm1, %v1958_v35, %v2256_v56  ;;  %v3073_v35 = vld [vmem:[#allocation13 + $0x38] sm:$0xff]  ;;  %v7016_v56 = vld [vmem:[#allocation14 + $0x1] ss:$0 sm:$0xff] }
 0xb0e   :  { %v2558_v24 = vpop.f32.mrf.mxu3 }
 0xb0f   :  { %2661 = vrot.lane.b32.xlu0 %v2462_v49, %s7884_s0 }
 0xb12   :  { %2669 = vrot.lane.b32.xlu2 %v2558_v24, %s7886_s8 }
 0xb13   :  { %v2262_v55 = vpop.permute.xlu2 %2261 }
 0xb1b   :  { %v2254_v48 = vpop.permute.xlu0 %2253 }
 0xb1c   :  { %v2275_v60 = vsel %vm536_vm1, %v1955_v7, %v2254_v48  ;;  %v3066_v7 = vld [vmem:[#allocation13] sm:$0xff] }
 0xb1d   :  { %v2277_v18 = vsel %vm572_vm2, %v2275_v60, %v2262_v55  ;;  %3107 = vmatpush.msrb.mxu1 %v3066_v7  ;;  %v9062_v7 = vld [vmem:[%s9942_s2 + $0x2] ss:$0 sm:$0xff] }
 0xb1f   :  { %3130 = vmatpush.msra.mxu1 %v3073_v35 }
 0xb21   :  { %3131 = vmatpush.msra.mxu1 %v3072_v20  ;;  %v9064_v20 = vld [vmem:[#allocation11 + $0x2] ss:$0 sm:$0xff] }
 0xb25   :  { %v2272_v6 = vpop.permute.xlu2 %2271 }
 0xb2f   :  { %v2654_v19 = vpop.f32.mrf.mxu1 }
 0xb30   :  { %2677 = vrot.lane.b32.xlu0 %v2654_v19, %s7908_s17 }
 0xb35   :  { %v2270_v38 = vpop.permute.xlu0 %2269 }
 0xb36   :  { %v2279_v58 = vsel %vm942_vm3, %v2277_v18, %v2270_v38 }
 0xb37   :  { %6650 = vmatmul.msk.f32.vlgmr.msra.gmra.mxu2 %vm418_vm0, %v2279_v58 }
 0xb3d   :  { %v2264_v63 = vpop.permute.xlu0 %2263 }
 0xb3e   :  { %v2278_v1 = vsel %vm572_vm2, %v2276_v3, %v2264_v63  ;;  %v7015_v3 = vld [vmem:[#allocation14] ss:$0 sm:$0xff] }
 0xb3f   :  { %v2280_v47 = vsel %vm942_vm3, %v2278_v1, %v2272_v6 }
 0xb40   :  { %6651 = vmatmul.msk.f32.gmra.mxu2 %vm418_vm0, %v2280_v47 }
 0xb5f   :  { %v2660_v46 = vpop.permute.xlu1 %2659 }
 0xb60   :  { %v2681_v11 = vsel %vm536_vm1, %v2361_v45, %v2660_v46  ;;  %v6658_v46 = vld [vmem:[%s9941_s10 + $0x38] sm:$0xff] }
 0xb61   :  { %2875 = vmatpush.msra.mxu3 %v6658_v46  ;;  %v6670_v46 = vld [vmem:[%s9943_s29 + $0x78] sm:$0xff] }
 0xb62   :  { %2930 = vmatpush.msrb.mxu0 %v6670_v46 }
 0xb64   :  { %v2676_v13 = vpop.permute.xlu2 %2675 }
 0xb6c   :  { %v2670_v59 = vpop.permute.xlu2 %2669 }
 0xb79   :  { %v2668_v54 = vpop.permute.xlu0 %2667 }
 0xb7a   :  { %v2683_v15 = vsel %vm572_vm2, %v2681_v11, %v2668_v54 }
 0xb7b   :  { %v2685_v17 = vsel %vm942_vm3, %v2683_v15, %v2676_v13  ;;  %v6657_v13 = vld [vmem:[%s9941_s10 + $0x30] sm:$0xff] }
 0xb7c   :  { %6652 = vmatmul.msk.f32.gmra.mxu2 %vm418_vm0, %v2685_v17  ;;  %2876 = vmatpush.msra.mxu3 %v6657_v13  ;;  %v6668_v13 = vld [vmem:[%s9943_s29 + $0x68] sm:$0xff] }
 0xb81   :  { %v2662_v61 = vpop.permute.xlu0 %2661 }
 0xb82   :  { %v2682_v8 = vsel %vm536_vm1, %v2364_v39, %v2662_v61  ;;  %v6656_v61 = vld [vmem:[%s9941_s10 + $0x28] sm:$0xff] }
 0xb83   :  { %v2684_v26 = vsel %vm572_vm2, %v2682_v8, %v2670_v59  ;;  %2877 = vmatpush.msra.mxu3 %v6656_v61  ;;  %v6655_v8 = vld [vmem:[%s9941_s10 + $0x20] sm:$0xff]  ;;  %v6665_v61 = vld [vmem:[%s9943_s29 + $0x50] sm:$0xff] }
 0xb85   :  { %2878 = vmatpush.msra.mxu3 %v6655_v8 }
 0xba2   :  { %v2678_v57 = vpop.permute.xlu0 %2677 }
 0xba3   :  { %v2686_v0 = vsel %vm942_vm3, %v2684_v26, %v2678_v57 }
 0xba4   :  { %6653 = vmatmul.msk.f32.gmra.mxu2 %vm418_vm0, %v2686_v0 }
 0xbba   :  { %v2719_v31 = vpop.f32.mrf.mxu2 }
 0xbbb   :  { %v2720_v16 = vadd.f32 %v7014_v27, %v2719_v31  ;;  %v3076_v31 = vld [vmem:[#allocation13 + $0x50] sm:$0xff] }
 0xbbd   :  { %v2735_v4 = vadd.f32 %v2720_v16, %v8664_v62  ;;  %v390_v62 = vld [vmem:[%s9944_s18] sm:$0xff] }
 0xbbe   :  { %6676 = vmatmul.msk.f32.vlgmr.msrb.gmra.mxu1 %vm418_vm0, %v390_v62 }
 0xbbf   :  { %v2739_v30 = vsel %vm418_vm0, %v2735_v4, 0.0 }
 0xbc0   :  { %2740 = vadd.xlane.f32.xlu2 %v2739_v30 }
 0xbc3   :  { %v2722_v29 = vpop.f32.mrf.mxu2 }
 0xbc4   :  { %v2723_v5 = vadd.f32 %v7014_v27, %v2722_v29 }
 0xbc6   :  { %v2736_v36 = vadd.f32 %v2723_v5, %v8673_v53  ;;  %v3071_v53 = vld [vmem:[#allocation13 + $0x28] sm:$0xff]  ;;  %6677 = vmatmul.msk.f32.gmra.mxu1 %vm418_vm0, %v390_v62 }
 0xbc7   :  { %3132 = vmatpush.msra.mxu1 %v3071_v53 }
 0xbc8   :  { %v2742_v34 = vsel %vm418_vm0, %v2736_v36, 0.0 }
 0xbc9   :  { %2743 = vadd.xlane.f32.xlu1 %v2742_v34  ;;  %3133 = vmatpush.msra.mxu1 %v3070_v9 }
 0xbce   :  { %6678 = vmatmul.msk.f32.vlgmr.msra.gmra.mxu1 %vm418_vm0, %v390_v62 }
 0xbd6   :  { %6679 = vmatmul.msk.f32.gmra.mxu1 %vm418_vm0, %v390_v62 }
 0xbff   :  { %v2725_v12 = vpop.f32.mrf.mxu2 }
 0xc00   :  { %v2726_v22 = vadd.f32 %v7014_v27, %v2725_v12 }
 0xc02   :  { %v2737_v28 = vadd.f32 %v2726_v22, %v8684_v23 }
 0xc04   :  { %v2745_v40 = vsel %vm418_vm0, %v2737_v28, 0.0 }
 0xc05   :  { %2746 = vadd.xlane.f32.xlu0 %v2745_v40 }
 0xc27   :  { %v2728_v41 = vpop.f32.mrf.mxu2 }
 0xc28   :  { %v2729_v32 = vadd.f32 %v7014_v27, %v2728_v41  ;;  %v3077_v27 = vld [vmem:[#allocation13 + $0x58] sm:$0xff] }
 0xc29   :  { %3159 = vmatpush.msrb.mxu2 %v3077_v27 }
 0xc2a   :  { %v2738_v42 = vadd.f32 %v2729_v32, %v8693_v25 }
 0xc2b   :  { %3160 = vmatpush.msrb.mxu2 %v3076_v31 }
 0xc2c   :  { %v2748_v44 = vsel %vm418_vm0, %v2738_v42, 0.0 }
 0xc2d   :  { %2749 = vadd.xlane.f32.xlu2 %v2748_v44 }
 0xc33   :  { %v2741_v45 = vpop.xlane.xlu2 %2740 }
 0xc34   :  { %v2751_v39 = vmul.f32 %v2741_v45, %v8506_v14  ;;  %v3075_v45 = vld [vmem:[#allocation13 + $0x48] sm:$0xff] }
 0xc35   :  { %3161 = vmatpush.msrb.mxu2 %v3075_v45 }
 0xc36   :  { %v8998_v49 = vsub.f32 %v2735_v4, %v2751_v39 }
 0xc38   :  { %v2759_v50 = vmul.f32 %v8998_v49, %v8998_v49 }
 0xc3a   :  { %v2763_v23 = vsel %vm418_vm0, %v2759_v50, 0.0 }
 0xc3b   :  { %2764 = vadd.xlane.f32.xlu1 %v2763_v23  ;;  %v3109_v52 = vpop.f32.mrf.mxu1  ;;  %v7910_v23 = vmov 0.0  }
 0xc3c   :  { %v2744_v43 = vpop.xlane.xlu1 %2743  ;;  %v9017_v63 = vadd.f32 %v7015_v3, %v3109_v52 }
 0xc3d   :  { %v2752_v21 = vmul.f32 %v2744_v43, %v8506_v14 }
 0xc3f   :  { %v9004_v51 = vsub.f32 %v2736_v36, %v2752_v21 }
 0xc41   :  { %v2760_v25 = vmul.f32 %v9004_v51, %v9004_v51 }
 0xc43   :  { %v2766_v24 = vsel %vm418_vm0, %v2760_v25, 0.0  ;;  %v3112_v33 = vpop.f32.mrf.mxu1 }
 0xc44   :  { %2767 = vadd.xlane.f32.xlu2 %v2766_v24  ;;  %v9050_v59 = vadd.f32 %v7015_v3, %v3112_v33 }
 0xc4b   :  { %v3135_v48 = vpop.f32.mrf.mxu1 }
 0xc4c   :  { %v3136_v19 = vadd.f32 %v7016_v56, %v3135_v48 }
 0xc4e   :  { %6680 = vmatpush.xpose.msk.msrb.mxu3 %vm536_vm1, %v3136_v19 }
 0xc53   :  { %v3138_v54 = vpop.f32.mrf.mxu1 }
 0xc54   :  { %v9036_v15 = vadd.f32 %v7016_v56, %v3138_v54 }
 0xc5c   :  { %3298 = vrot.lane.b32.xlu2 %v3136_v19, %s7905_s28 }
 0xc64   :  { %3363 = vrot.lane.b32.xlu2 %v3136_v19, %s7907_s6 }
 0xc6c   :  { %3569 = vrot.lane.b32.xlu2 %v9036_v15, %s7905_s28 }
 0xc74   :  { %3501 = vrot.lane.b32.xlu2 %v9050_v59, %s7906_s15 }
 0xc78   :  { %v2747_v60 = vpop.xlane.xlu0 %2746 }
 0xc79   :  { %v2753_v55 = vmul.f32 %v2747_v60, %v8506_v14 }
 0xc7b   :  { %v9011_v18 = vsub.f32 %v2737_v28, %v2753_v55 }
 0xc7d   :  { %v2761_v38 = vmul.f32 %v9011_v18, %v9011_v18 }
 0xc7f   :  { %v2769_v58 = vsel %vm418_vm0, %v2761_v38, 0.0 }
 0xc80   :  { %2770 = vadd.xlane.f32.xlu0 %v2769_v58 }
 0xc94   :  { %3296 = vrot.lane.b32.xlu0 %v9017_v63, %s7905_s28 }
 0xc9c   :  { %3230 = vrot.lane.b32.xlu0 %v9017_v63, %s7906_s15 }
 0xca0   :  { %v2750_v6 = vpop.xlane.xlu2 %2749 }
 0xca1   :  { %v2754_v1 = vmul.f32 %v2750_v6, %v8506_v14 }
 0xca3   :  { %v9024_v47 = vsub.f32 %v2738_v42, %v2754_v1 }
 0xca4   :  { %3361 = vrot.lane.b32.xlu0 %v9017_v63, %s7907_s6 }
 0xca5   :  { %v2762_v11 = vmul.f32 %v9024_v47, %v9024_v47 }
 0xca7   :  { %v2772_v17 = vsel %vm418_vm0, %v2762_v11, 0.0 }
 0xca8   :  { %2773 = vadd.xlane.f32.xlu1 %v2772_v17  ;;  %v6666_v17 = vld [vmem:[%s9943_s29 + $0x58] sm:$0xff] }
 0xcac   :  { %3503 = vrot.lane.b32.xlu0 %v9036_v15, %s7906_s15 }
 0xcae   :  { %v2765_v57 = vpop.xlane.xlu1 %2764 }
 0xcaf   :  { %v2775_v26 = vmul.f32 %v2765_v57, %v8506_v14  ;;  %v6664_v57 = vld [vmem:[%s9943_s29 + $0x48] sm:$0xff] }
 0xcb1   :  { %v2779_v0 = vadd.f32 1e-05, %v2775_v26 }
 0xcb3   :  { %7199 = vrsqrt.f32 %v2779_v0  ;;  %vm2789_vm8 = vweird.f32 %v2779_v0 }
 0xcb4   :  { %3632 = vrot.lane.b32.xlu0 %v9050_v59, %s7907_s6 }
 0xcb7   :  { %v2768_v16 = vpop.xlane.xlu2 %2767 }
 0xcb8   :  { %v2776_v4 = vmul.f32 %v2768_v16, %v8506_v14 }
 0xcb9   :  { %v7200_v30 = vpop.eup %7199 }
 0xcba   :  { %v2784_v29 = vmul.f32 %v7200_v30, %v2779_v0  ;;  %v2780_v5 = vadd.f32 1e-05, %v2776_v4  ;;  %vm2790_vm7 = vweird.f32 %v7200_v30  ;;  %v6663_v0 = vld [vmem:[%s9943_s29 + $0x40] sm:$0xff] }
 0xcbb   :  { %vm2791_vm9 = vmor %vm2789_vm8, %vm2790_vm7 }
 0xcbc   :  { %v2785_v36 = vmul.f32 %v7200_v30, %v2784_v29  ;;  %7201 = vrsqrt.f32 %v2780_v5  ;;  %vm2799_vm11 = vweird.f32 %v2780_v5 }
 0xcbe   :  { %v2786_v34 = vmul.f32 0.5, %v2785_v36 }
 0xcbf   :  { %v3299_v50 = vpop.permute.xlu2 %3298 }
 0xcc0   :  { %v2787_v10 = vsub.f32 1.5, %v2786_v34 }
 0xcc1   :  { %3232 = vrot.lane.b32.xlu1 %v3136_v19, %s7906_s15 }
 0xcc2   :  { %v7202_v2 = vpop.eup %7201  ;;  %v2788_v37 = vmul.f32 %v7200_v30, %v2787_v10  ;;  %v7019_v10 = vld [vmem:[#allocation8 + $0x1] ss:$0 sm:$0xff] }
 0xcc3   :  { %v2794_v62 = vmul.f32 %v7202_v2, %v2780_v5  ;;  %vm2800_vm10 = vweird.f32 %v7202_v2 }
 0xcc4   :  { %v2792_v35 = vsel %vm2791_vm9, %v7200_v30, %v2788_v37  ;;  %vm2801_vm12 = vmor %vm2799_vm11, %vm2800_vm10 }
 0xcc5   :  { %v2823_v53 = vmul.f32 %v2792_v35, %v8998_v49  ;;  %v2795_v9 = vmul.f32 %v7202_v2, %v2794_v62  ;;  %v3074_v49 = vld [vmem:[#allocation13 + $0x40] sm:$0xff] }
 0xcc6   :  { %3162 = vmatpush.msrb.mxu2 %v3074_v49 }
 0xcc7   :  { %v2830_v12 = vmul.f32 %v9062_v7, %v2823_v53  ;;  %v2796_v22 = vmul.f32 0.5, %v2795_v9  ;;  %3163 = vmatmul.f32.vlgmr.msrb.gmra.mxu2 %v7910_v23  ;;  %v9088_v25 = vpop.permute.xlu2 %3363 }
 0xcc8   :  { %6686 = vmatpush.xpose.msk.msra.mxu2 %vm536_vm1, %v3299_v50 }
 0xcc9   :  { %v9069_v28 = vadd.f32 %v9064_v20, %v2830_v12  ;;  %v2797_v40 = vsub.f32 1.5, %v2796_v22  ;;  %3567 = vrot.lane.b32.xlu1 %v9050_v59, %s7905_s28 }
 0xccb   :  { %v2798_v41 = vmul.f32 %v7202_v2, %v2797_v40  ;;  %6659 = vmatmul.msk.f32.vlgmr.msra.gmra.mxu3 %vm418_vm0, %v9069_v28 }
 0xccc   :  { %6692 = vmatpush.xpose.msk.msrb.mxu2 %vm536_vm1, %v9036_v15 }
 0xccd   :  { %v2802_v32 = vsel %vm2801_vm12, %v7202_v2, %v2798_v41 }
 0xcce   :  { %v2824_v42 = vmul.f32 %v2802_v32, %v9004_v51 }
 0xccf   :  { %3166 = vmatmul.f32.gmra.mxu2 %v7910_v23  ;;  %v3570_v55 = vpop.permute.xlu2 %3569 }
 0xcd0   :  { %v2831_v44 = vmul.f32 %v9062_v7, %v2824_v42 }
 0xcd1   :  { %3634 = vrot.lane.b32.xlu1 %v9036_v15, %s7907_s6  ;;  %v6667_v15 = vld [vmem:[%s9943_s29 + $0x60] sm:$0xff] }
 0xcd2   :  { %v9080_v39 = vadd.f32 %v9064_v20, %v2831_v44 }
 0xcd4   :  { %6660 = vmatmul.msk.f32.gmra.mxu3 %vm418_vm0, %v9080_v39 }
 0xcf3   :  { %v2771_v43 = vpop.xlane.xlu0 %2770 }
 0xcf4   :  { %v2777_v21 = vmul.f32 %v2771_v43, %v8506_v14 }
 0xcf6   :  { %v2781_v51 = vadd.f32 1e-05, %v2777_v21 }
 0xcf8   :  { %7203 = vrsqrt.f32 %v2781_v51  ;;  %vm2809_vm14 = vweird.f32 %v2781_v51 }
 0xcfe   :  { %v7204_v24 = vpop.eup %7203 }
 0xcff   :  { %v2804_v52 = vmul.f32 %v7204_v24, %v2781_v51  ;;  %vm2810_vm13 = vweird.f32 %v7204_v24 }
 0xd00   :  { %vm2811_vm15 = vmor %vm2809_vm14, %vm2810_vm13 }
 0xd01   :  { %v2805_v33 = vmul.f32 %v7204_v24, %v2804_v52 }
 0xd03   :  { %v2806_v56 = vmul.f32 0.5, %v2805_v33 }
 0xd05   :  { %v2807_v48 = vsub.f32 1.5, %v2806_v56  ;;  %v3502_v56 = vpop.permute.xlu2 %3501 }
 0xd06   :  { %v3297_v19 = vpop.permute.xlu0 %3296 }
 0xd07   :  { %v2808_v60 = vmul.f32 %v7204_v24, %v2807_v48  ;;  %6687 = vmatmul.msk.f32.vlgmr.msra.gmra.mxu2 %vm536_vm1, %v3297_v19 }
 0xd08   :  { %6698 = vmatpush.xpose.msk.msra.mxu2 %vm536_vm1, %v3570_v55 }
 0xd09   :  { %v2812_v38 = vsel %vm2811_vm15, %v7204_v24, %v2808_v60 }
 0xd0a   :  { %v2825_v58 = vmul.f32 %v2812_v38, %v9011_v18  ;;  %v6669_v18 = vld [vmem:[%s9943_s29 + $0x70] sm:$0xff] }
 0xd0b   :  { %2931 = vmatpush.msrb.mxu0 %v6669_v18 }
 0xd0c   :  { %v2832_v3 = vmul.f32 %v9062_v7, %v2825_v58 }
 0xd0d   :  { %2932 = vmatpush.msrb.mxu0 %v6668_v13 }
 0xd0e   :  { %v9095_v6 = vadd.f32 %v9064_v20, %v2832_v3  ;;  %v3231_v45 = vpop.permute.xlu0 %3230 }
 0xd0f   :  { %6693 = vmatmul.msk.f32.vlgmr.msrb.gmra.mxu2 %vm536_vm1, %v9050_v59  ;;  %2933 = vmatpush.msrb.mxu0 %v6667_v15 }
 0xd10   :  { %6661 = vmatmul.msk.f32.gmra.mxu3 %vm418_vm0, %v9095_v6 }
 0xd11   :  { %2934 = vmatpush.msrb.mxu0 %v6666_v17 }
 0xd13   :  { %2935 = vmatpush.msrb.mxu0 %v6665_v61 }
 0xd15   :  { %2936 = vmatpush.msrb.mxu0 %v6664_v57 }
 0xd16   :  { %v3362_v23 = vpop.permute.xlu0 %3361 }
 0xd17   :  { %2937 = vmatpush.msrb.mxu0 %v6663_v0 }
 0xd1b   :  { %v2774_v1 = vpop.xlane.xlu1 %2773 }
 0xd1c   :  { %v2778_v11 = vmul.f32 %v2774_v1, %v8506_v14 }
 0xd1e   :  { %v2782_v54 = vadd.f32 1e-05, %v2778_v11  ;;  %v3504_v24 = vpop.permute.xlu0 %3503 }
 0xd20   :  { %7205 = vrsqrt.f32 %v2782_v54  ;;  %vm2819_vm6 = vweird.f32 %v2782_v54 }
 0xd26   :  { %v7206_v8 = vpop.eup %7205  ;;  %v3633_v48 = vpop.permute.xlu0 %3632 }
 0xd27   :  { %v2814_v59 = vmul.f32 %v7206_v8, %v2782_v54  ;;  %vm2820_vm4 = vweird.f32 %v7206_v8 }
 0xd28   :  { %vm2821_vm7 = vmor %vm2819_vm6, %vm2820_vm4 }
 0xd29   :  { %v2815_v26 = vmul.f32 %v7206_v8, %v2814_v59 }
 0xd2b   :  { %v2816_v27 = vmul.f32 0.5, %v2815_v26 }
 0xd2d   :  { %v2817_v31 = vsub.f32 1.5, %v2816_v27 }
 0xd2f   :  { %v2818_v16 = vmul.f32 %v7206_v8, %v2817_v31 }
 0xd31   :  { %v2822_v4 = vsel %vm2821_vm7, %v7206_v8, %v2818_v16 }
 0xd32   :  { %v2826_v30 = vmul.f32 %v2822_v4, %v9024_v47 }
 0xd33   :  { %v3233_v29 = vpop.permute.xlu1 %3232 }
 0xd34   :  { %v2833_v5 = vmul.f32 %v9062_v7, %v2826_v30  ;;  %6683 = vmatpush.xpose.msk.msra.mxu0 %vm536_vm1, %v3233_v29  ;;  %v9140_v7 = vld [vmem:[#allocation14 + $0x2] ss:$0 sm:$0xff] }
 0xd36   :  { %v9130_v36 = vadd.f32 %v9064_v20, %v2833_v5 }
 0xd38   :  { %6662 = vmatmul.msk.f32.gmra.mxu3 %vm418_vm0, %v9130_v36 }
 0xd3b   :  { %v3568_v34 = vpop.permute.xlu1 %3567 }
 0xd3c   :  { %6699 = vmatmul.msk.f32.vlgmr.msra.gmra.mxu2 %vm536_vm1, %v3568_v34 }
 0xd40   :  { %6681 = vmatmul.msk.f32.vlgmr.msrb.gmra.mxu3 %vm536_vm1, %v9017_v63 }
 0xd43   :  { %v3635_v33 = vpop.permute.xlu1 %3634 }
 0xd4a   :  { %v3164_v20 = vpop.f32.mrf.mxu2 }
 0xd4b   :  { %v9143_v53 = vadd.f32 %v9140_v7, %v3164_v20 }
 0xd4d   :  { %3225 = vmatpush.msra.mxu3 %v9143_v53 }
 0xd4e   :  { %v2880_v2 = vpop.f32.mrf.mxu3 }
 0xd4f   :  { %v2881_v47 = vadd.f32 %v7019_v10, %v2880_v2 }
 0xd51   :  { %v2892_v37 = vmax.f32 %v2881_v47, 0.0 }
 0xd52   :  { %v9147_v63 = vpop.f32.mrf.mxu2 }
 0xd53   :  { %6671 = vmatmul.msk.f32.vlgmr.msrb.gmra.mxu0 %vm1575_vm5, %v2892_v37 }
 0xd54   :  { %6689 = vmatpush.xpose.msk.msrb.mxu0 %vm536_vm1, %v9088_v25 }
 0xd57   :  { %v2883_v62 = vpop.f32.mrf.mxu3 }
 0xd58   :  { %v2884_v35 = vadd.f32 %v7019_v10, %v2883_v62 }
 0xd5a   :  { %v2893_v9 = vmax.f32 %v2884_v35, 0.0  ;;  %v3168_v35 = vadd.f32 %v9140_v7, %v9147_v63 }
 0xd5c   :  { %6672 = vmatmul.msk.f32.gmra.mxu0 %vm1575_vm5, %v2893_v9 }
 0xd8a   :  { %v3321_v12 = vpop.f32.mrf.mxu2 }
 0xd8b   :  { %v3324_v22 = vsel %vm536_vm1, %v3321_v12, -inf }
 0xd8c   :  { %3325 = vmax.xlane.f32.xlu0 %v3324_v22 }
 0xd92   :  { %v9150_v40 = vpop.f32.mrf.mxu2 }
 0xd93   :  { %v2886_v41 = vpop.f32.mrf.mxu3  ;;  %v3467_v32 = vsel %vm536_vm1, %v9150_v40, -inf }
 0xd94   :  { %v2887_v42 = vadd.f32 %v7019_v10, %v2886_v41  ;;  %3468 = vmax.xlane.f32.xlu1 %v3467_v32 }
 0xd96   :  { %v2894_v44 = vmax.f32 %v2887_v42, 0.0 }
 0xd98   :  { %6673 = vmatmul.msk.f32.gmra.mxu0 %vm1575_vm5, %v2894_v44 }
 0xdbb   :  { %v2889_v49 = vpop.f32.mrf.mxu3 }
 0xdbc   :  { %v2890_v50 = vadd.f32 %v7019_v10, %v2889_v49 }
 0xdbe   :  { %v2895_v43 = vmax.f32 %v2890_v50, 0.0 }
 0xdbf   :  { %v3592_v21 = vpop.f32.mrf.mxu2 }
 0xdc0   :  { %6674 = vmatmul.msk.f32.gmra.mxu0 %vm1575_vm5, %v2895_v43  ;;  %v3595_v51 = vsel %vm536_vm1, %v3592_v21, -inf }
 0xdc1   :  { %3596 = vmax.xlane.f32.xlu2 %v3595_v51 }
 0xdc3   :  { %v3193_v25 = vpop.f32.mrf.mxu3 }
 0xdc4   :  { %v3196_v52 = vsel %vm536_vm1, %v3193_v25, -inf }
 0xdc8   :  { %6684 = vmatmul.msk.f32.vlgmr.msra.gmra.mxu0 %vm536_vm1, %v3231_v45 }
 0xdc9   :  { %6695 = vmatpush.xpose.msk.msra.mxu0 %vm536_vm1, %v3504_v24  ;;  %3197 = vmax.xlane.f32.xlu2 %v3196_v52 }
 0xdd0   :  { %6690 = vmatmul.msk.f32.vlgmr.msrb.gmra.mxu0 %vm536_vm1, %v3362_v23  ;;  %v9168_v3 = vpop.f32.mrf.mxu0 }
 0xdd1   :  { %6701 = vmatpush.xpose.msk.msrb.mxu0 %vm536_vm1, %v3635_v33 }
 0xdd8   :  { %6696 = vmatmul.msk.f32.vlgmr.msra.gmra.mxu0 %vm536_vm1, %v3502_v56 }
 0xdd9   :  { %v9170_v1 = vpop.f32.mrf.mxu0 }
 0xde0   :  { %6702 = vmatmul.msk.f32.vlgmr.msrb.gmra.mxu0 %vm536_vm1, %v3633_v48 }
 0xdff   :  { %v3326_v19 = vpop.xlane.xlu0 %3325 }
 0xe00   :  { %v3327_v60 = vsub.f32 %v3321_v12, %v3326_v19 }
 0xe02   :  { %v3328_v55 = vmul.f32 1.442695, %v3327_v60 }
 0xe04   :  { %7207 = vpow2.f32 %v3328_v55 }
 0xe07   :  { %v3469_v4 = vpop.xlane.xlu1 %3468 }
 0xe08   :  { %v3470_v30 = vsub.f32 %v9150_v40, %v3469_v4 }
 0xe0a   :  { %v9164_v38 = vpop.eup %7207  ;;  %v3471_v29 = vmul.f32 1.442695, %v3470_v30 }
 0xe0b   :  { %v3330_v58 = vsel %vm536_vm1, %v9164_v38, 0.0 }
 0xe0c   :  { %3331 = vadd.xlane.f32.xlu1 %v3330_v58 }
 0xe15   :  { %v9172_v11 = vpop.f32.mrf.mxu0 }
 0xe34   :  { %v3597_v46 = vpop.xlane.xlu2 %3596 }
 0xe35   :  { %v3598_v10 = vsub.f32 %v3592_v21, %v3597_v46 }
 0xe37   :  { %v3599_v2 = vmul.f32 1.442695, %v3598_v10 }
 0xe3c   :  { %v3198_v18 = vpop.xlane.xlu2 %3197 }
 0xe3d   :  { %v3199_v54 = vsub.f32 %v3193_v25, %v3198_v18  ;;  %v9174_v13 = vpop.f32.mrf.mxu0 }
 0xe3f   :  { %v3200_v15 = vmul.f32 1.442695, %v3199_v54 }
 0xe41   :  { %7209 = vpow2.f32 %v3200_v15 }
 0xe42   :  { %7211 = vpow2.f32 %v3471_v29 }
 0xe43   :  { %7213 = vpow2.f32 %v3599_v2 }
 0xe45   :  { %v3255_v17 = vpop.f32.mrf.mxu0 }
 0xe46   :  { %v3258_v61 = vsel %vm536_vm1, %v3255_v17, -inf }
 0xe47   :  { %v7210_v8 = vpop.eup %7209  ;;  %3259 = vmax.xlane.f32.xlu1 %v3258_v61 }
 0xe48   :  { %v3202_v59 = vsel %vm536_vm1, %v7210_v8, 0.0  ;;  %v7212_v5 = vpop.eup %7211 }
 0xe49   :  { %3203 = vadd.xlane.f32.xlu0 %v3202_v59  ;;  %v3473_v34 = vsel %vm536_vm1, %v7212_v5, 0.0  ;;  %v7214_v47 = vpop.eup %7213 }
 0xe4a   :  { %v3601_v37 = vsel %vm536_vm1, %v7214_v47, 0.0 }
 0xe4d   :  { %v3386_v57 = vpop.f32.mrf.mxu0 }
 0xe4e   :  { %v3389_v26 = vsel %vm536_vm1, %v3386_v57, -inf }
 0xe4f   :  { %3390 = vmax.xlane.f32.xlu2 %v3389_v26 }
 0xe55   :  { %v3526_v0 = vpop.f32.mrf.mxu0 }
 0xe56   :  { %v3529_v27 = vsel %vm536_vm1, %v3526_v0, -inf }
 0xe57   :  { %3530 = vmax.xlane.f32.xlu0 %v3529_v27 }
 0xe5d   :  { %v3657_v31 = vpop.f32.mrf.mxu0 }
 0xe5e   :  { %v3660_v16 = vsel %vm536_vm1, %v3657_v31, -inf }
 0xe5f   :  { %3661 = vmax.xlane.f32.xlu1 %v3660_v16 }
 0xe67   :  { %3270 = vrot.lane.b32.xlu2 %v9143_v53, %s7906_s15 }
 0xe6b   :  { %3400 = vrot.lane.b32.xlu0 %v9143_v53, %s7907_s6 }
 0xe78   :  { %3335 = vrot.lane.b32.xlu1 %v9143_v53, %s7905_s28 }
 0xe7f   :  { %v3332_v62 = vpop.xlane.xlu1 %3331 }
 0xe90   :  { %3474 = vadd.xlane.f32.xlu2 %v3473_v34 }
 0xea2   :  { %3602 = vadd.xlane.f32.xlu1 %v3601_v37 }
 0xeba   :  { %v3260_v20 = vpop.xlane.xlu1 %3259 }
 0xebb   :  { %v3261_v53 = vsub.f32 %v3255_v17, %v3260_v20  ;;  %3606 = vrot.lane.b32.xlu1 %v3168_v35, %s7905_s28  ;;  %v7021_v20 = vld [vmem:[#allocation10 + $0x1] ss:$0 sm:$0xff] }
 0xebc   :  { %v3204_v9 = vpop.xlane.xlu0 %3203 }
 0xebd   :  { %v3262_v12 = vmul.f32 1.442695, %v3261_v53  ;;  %7215 = vrcp.f32 %v3204_v9  ;;  %v2943_v53 = vadd.f32 %v7021_v20, %v9170_v1  ;;  %v2940_v1 = vadd.f32 %v7021_v20, %v9168_v3 }
 0xebf   :  { %7217 = vpow2.f32 %v3262_v12  ;;  %v2956_v9 = vadd.f32 %v2943_v53, %v9080_v39  ;;  %v2949_v12 = vadd.f32 %v7021_v20, %v9174_v13  ;;  %v2955_v39 = vadd.f32 %v2940_v1, %v9069_v28  ;;  %v3810_v53 = vld [vmem:[#allocation19 + $0x30] sm:$0xff] }
 0xec0   :  { %v2946_v13 = vadd.f32 %v7021_v20, %v9172_v11  ;;  %v3814_v20 = vld [vmem:[#allocation19 + $0x50] sm:$0xff] }
 0xec2   :  { %v3391_v22 = vpop.xlane.xlu2 %3390 }
 0xec3   :  { %v7216_v40 = vpop.eup %7215  ;;  %v3392_v41 = vsub.f32 %v3386_v57, %v3391_v22 }
 0xec4   :  { %v3206_v32 = vmul.f32 %v7216_v40, %v7210_v8  ;;  %v2962_v40 = vsel %vm418_vm0, %v2956_v9, 0.0 }
 0xec5   :  { %v7218_v42 = vpop.eup %7217  ;;  %v3393_v44 = vmul.f32 1.442695, %v3392_v41  ;;  %v2958_v41 = vadd.f32 %v2949_v12, %v9130_v36  ;;  %v3084_v36 = vld [vmem:[#allocation16 + $0x18] sm:$0xff]  ;;  %v3809_v12 = vld [vmem:[#allocation19 + $0x28] sm:$0xff] }
 0xec6   :  { %6682 = vmatmul.msk.f32.vlgmr.msra.gmra.mxu3 %vm536_vm1, %v3206_v32  ;;  %v3264_v45 = vsel %vm536_vm1, %v7218_v42, 0.0  ;;  %3733 = vmatpush.msrb.mxu2 %v3084_v36 }
 0xec7   :  { %7219 = vpow2.f32 %v3393_v44  ;;  %3265 = vadd.xlane.f32.xlu2 %v3264_v45  ;;  %v2959_v44 = vsel %vm418_vm0, %v2955_v39, 0.0  ;;  %v2957_v45 = vadd.f32 %v2946_v13, %v9095_v6 }
 0xeca   :  { %v3531_v7 = vpop.xlane.xlu0 %3530  ;;  %v3271_v63 = vpop.permute.xlu2 %3270 }
 0xecb   :  { %v3532_v49 = vsub.f32 %v3526_v0, %v3531_v7  ;;  %3291 = vmatpush.msrb.mxu1 %v3271_v63  ;;  %v2965_v7 = vsel %vm418_vm0, %v2957_v45, 0.0  ;;  %v3083_v63 = vld [vmem:[#allocation16 + $0x10] sm:$0xff] }
 0xecc   :  { %3734 = vmatpush.msrb.mxu2 %v3083_v63 }
 0xecd   :  { %v7220_v50 = vpop.eup %7219  ;;  %v3533_v23 = vmul.f32 1.442695, %v3532_v49  ;;  %v3082_v49 = vld [vmem:[#allocation16 + $0x8] sm:$0xff] }
 0xece   :  { %v3395_v43 = vsel %vm536_vm1, %v7220_v50, 0.0  ;;  %3735 = vmatpush.msrb.mxu2 %v3082_v49 }
 0xecf   :  { %7221 = vpow2.f32 %v3533_v23  ;;  %3396 = vadd.xlane.f32.xlu0 %v3395_v43 }
 0xed2   :  { %v3662_v21 = vpop.xlane.xlu1 %3661 }
 0xed3   :  { %v3663_v51 = vsub.f32 %v3657_v31, %v3662_v21 }
 0xed5   :  { %v7222_v25 = vpop.eup %7221  ;;  %v3664_v24 = vmul.f32 1.442695, %v3663_v51 }
 0xed6   :  { %v3535_v52 = vsel %vm536_vm1, %v7222_v25, 0.0 }
 0xed7   :  { %7223 = vpow2.f32 %v3664_v24  ;;  %3536 = vadd.xlane.f32.xlu0 %v3535_v52 }
 0xed8   :  { %7225 = vrcp.f32 %v3332_v62 }
 0xedd   :  { %v7224_v33 = vpop.eup %7223  ;;  %v3401_v56 = vpop.permute.xlu0 %3400 }
 0xede   :  { %3421 = vmatpush.msra.mxu1 %v3401_v56  ;;  %v3666_v48 = vsel %vm536_vm1, %v7224_v33, 0.0  ;;  %v7226_v19 = vpop.eup %7225 }
 0xedf   :  { %3667 = vadd.xlane.f32.xlu2 %v3666_v48  ;;  %v3334_v60 = vmul.f32 %v7226_v19, %v9164_v38 }
 0xeea   :  { %v3336_v55 = vpop.permute.xlu1 %3335 }
 0xeeb   :  { %3356 = vmatpush.msrb.mxu3 %v3336_v55  ;;  %3541 = vrot.lane.b32.xlu0 %v3168_v35, %s7906_s15 }
 0xeec   :  { %6688 = vmatmul.msk.f32.vlgmr.msrb.gmra.mxu3 %vm536_vm1, %v3334_v60 }
 0xeed   :  { %3496 = vmatpush.msra.mxu3 %v3168_v35 }
 0xef7   :  { %3671 = vrot.lane.b32.xlu2 %v3168_v35, %s7907_s6 }
 0xf03   :  { %v3475_v58 = vpop.xlane.xlu2 %3474 }
 0xf04   :  { %7227 = vrcp.f32 %v3475_v58 }
 0xf0a   :  { %v7228_v46 = vpop.eup %7227 }
 0xf0b   :  { %v3477_v18 = vmul.f32 %v7228_v46, %v7212_v5 }
 0xf0d   :  { %6694 = vmatmul.msk.f32.vlgmr.msra.gmra.mxu3 %vm536_vm1, %v3477_v18 }
 0xf15   :  { %v3603_v54 = vpop.xlane.xlu1 %3602 }
 0xf16   :  { %7229 = vrcp.f32 %v3603_v54 }
 0xf1c   :  { %v7230_v15 = vpop.eup %7229 }
 0xf1d   :  { %v3605_v17 = vmul.f32 %v7230_v15, %v7214_v47 }
 0xf2d   :  { %v3607_v38 = vpop.permute.xlu1 %3606 }
 0xf2e   :  { %3627 = vmatpush.msrb.mxu3 %v3607_v38 }
 0xf2f   :  { %6700 = vmatmul.msk.f32.vlgmr.msrb.gmra.mxu3 %vm536_vm1, %v3605_v17 }
 0xf3a   :  { %v3266_v61 = vpop.xlane.xlu2 %3265 }
 0xf3b   :  { %7231 = vrcp.f32 %v3266_v61 }
 0xf41   :  { %v7232_v8 = vpop.eup %7231 }
 0xf42   :  { %v3268_v59 = vmul.f32 %v7232_v8, %v7218_v42  ;;  %v3397_v57 = vpop.xlane.xlu0 %3396  ;;  %v2968_v42 = vsel %vm418_vm0, %v2958_v41, 0.0 }
 0xf43   :  { %7233 = vrcp.f32 %v3397_v57 }
 0xf44   :  { %6685 = vmatmul.msk.f32.vlgmr.msrb.gmra.mxu1 %vm536_vm1, %v3268_v59 }
 0xf49   :  { %v7234_v26 = vpop.eup %7233  ;;  %v3227_v10 = vpop.f32.mrf.mxu3 }
 0xf4a   :  { %v3399_v0 = vmul.f32 %v7234_v26, %v7220_v50  ;;  %v3537_v27 = vpop.xlane.xlu0 %3536  ;;  %v3081_v50 = vld [vmem:[#allocation16] sm:$0xff] }
 0xf4b   :  { %7235 = vrcp.f32 %v3537_v27  ;;  %3736 = vmatpush.msrb.mxu2 %v3081_v50 }
 0xf4c   :  { %6691 = vmatmul.msk.f32.vlgmr.msra.gmra.mxu1 %vm536_vm1, %v3399_v0 }
 0xf51   :  { %v7236_v16 = vpop.eup %7235 }
 0xf52   :  { %v3668_v31 = vpop.xlane.xlu2 %3667  ;;  %v3539_v4 = vmul.f32 %v7236_v16, %v7222_v25  ;;  %v7022_v16 = vld [vmem:[#allocation17] ss:$0 sm:$0xff] }
 0xf53   :  { %7237 = vrcp.f32 %v3668_v31 }
 0xf59   :  { %v7238_v5 = vpop.eup %7237 }
 0xf5a   :  { %v3672_v29 = vpop.permute.xlu2 %3671  ;;  %v3670_v34 = vmul.f32 %v7238_v5, %v7224_v33 }
 0xf5d   :  { %v3542_v30 = vpop.permute.xlu0 %3541 }
 0xf5e   :  { %3562 = vmatpush.msrb.mxu1 %v3542_v30 }
 0xf5f   :  { %6697 = vmatmul.msk.f32.vlgmr.msrb.gmra.mxu1 %vm536_vm1, %v3539_v4 }
 0xf60   :  { %3692 = vmatpush.msra.mxu1 %v3672_v29 }
 0xf67   :  { %6703 = vmatmul.msk.f32.vlgmr.msra.gmra.mxu1 %vm536_vm1, %v3670_v34 }
 0xf6f   :  { %v3358_v2 = vpop.f32.mrf.mxu3 }
 0xf70   :  { %3431 = vrot.lane.b32.xlu1 %v3358_v2, %s7886_s8 }
 0xf90   :  { %v3498_v47 = vpop.f32.mrf.mxu3 }
 0xfb2   :  { %v3629_v37 = vpop.f32.mrf.mxu3 }
 0xfb3   :  { %3702 = vrot.lane.b32.xlu1 %v3629_v37, %s7886_s8 }
 0xfc1   :  { %v3293_v62 = vpop.f32.mrf.mxu1 }
 0xfc2   :  { %3427 = vrot.lane.b32.xlu0 %v3293_v62, %s7884_s0  ;;  %v3815_v62 = vld [vmem:[#allocation19 + $0x58] sm:$0xff] }
 0xfc3   :  { %3927 = vmatpush.msrb.mxu1 %v3815_v62 }
 0xfc5   :  { %3928 = vmatpush.msrb.mxu1 %v3814_v20 }
 0xfc9   :  { %v3423_v35 = vpop.f32.mrf.mxu1 }
 0xfca   :  { %3435 = vrot.lane.b32.xlu0 %v3423_v35, %s7908_s17  ;;  %v3811_v35 = vld [vmem:[#allocation19 + $0x38] sm:$0xff] }
 0xfcb   :  { %3883 = vmatpush.msra.mxu0 %v3811_v35  ;;  %v7376_v35 = vld [vmem:[#allocation5 + $0x10] sm:$0xff] }
 0xfcd   :  { %3884 = vmatpush.msra.mxu0 %v3810_v53 }
 0xfcf   :  { %3885 = vmatpush.msra.mxu0 %v3809_v12  ;;  %v7377_v12 = vld [vmem:[#allocation5 + $0x18] sm:$0xff] }
 0xfdc   :  { %v3564_v22 = vpop.f32.mrf.mxu1 }
 0xfdd   :  { %2963 = vadd.xlane.f32.xlu1 %v2962_v40  ;;  %3698 = vrot.lane.b32.xlu2 %v3564_v22, %s7884_s0  ;;  %v3812_v22 = vld [vmem:[#allocation19 + $0x40] sm:$0xff] }
 0xfe2   :  { %v3432_v11 = vpop.permute.xlu1 %3431 }
 0xfe4   :  { %v3694_v32 = vpop.f32.mrf.mxu1 }
 0xfe5   :  { %2969 = vadd.xlane.f32.xlu1 %v2968_v42  ;;  %3706 = vrot.lane.b32.xlu0 %v3694_v32, %s7908_s17 }
0x1006   :  { %2960 = vadd.xlane.f32.xlu2 %v2959_v44 }
0x100e   :  { %2966 = vadd.xlane.f32.xlu2 %v2965_v7 }
0x1025   :  { %v3703_v21 = vpop.permute.xlu1 %3702 }
0x1034   :  { %v3428_v3 = vpop.permute.xlu0 %3427 }
0x1035   :  { %v3438_v28 = vsel %vm536_vm1, %v3227_v10, %v3428_v3 }
0x1036   :  { %v3439_v23 = vsel %vm572_vm2, %v3438_v28, %v3432_v11 }
0x1037   :  { %v3699_v25 = vpop.permute.xlu2 %3698 }
0x1038   :  { %v3709_v33 = vsel %vm536_vm1, %v3498_v47, %v3699_v25 }
0x1039   :  { %v3710_v19 = vsel %vm572_vm2, %v3709_v33, %v3703_v21 }
0x103c   :  { %v3436_v43 = vpop.permute.xlu0 %3435 }
0x103d   :  { %v3440_v6 = vsel %vm942_vm3, %v3439_v23, %v3436_v43 }
0x103e   :  { %6704 = vmatmul.msk.f32.vlgmr.msrb.gmra.mxu2 %vm418_vm0, %v3440_v6 }
0x1050   :  { %v2964_v51 = vpop.xlane.xlu1 %2963 }
0x1051   :  { %v2972_v24 = vmul.f32 %v2964_v51, %v8506_v14 }
0x1053   :  { %v9231_v52 = vsub.f32 %v2956_v9, %v2972_v24  ;;  %v3813_v9 = vld [vmem:[#allocation19 + $0x48] sm:$0xff] }
0x1054   :  { %3929 = vmatpush.msrb.mxu1 %v3813_v9 }
0x1055   :  { %v2980_v56 = vmul.f32 %v9231_v52, %v9231_v52 }
0x1056   :  { %3930 = vmatpush.msrb.mxu1 %v3812_v22 }
0x1057   :  { %v3707_v48 = vpop.permute.xlu0 %3706  ;;  %v2986_v60 = vsel %vm418_vm0, %v2980_v56, 0.0 }
0x1058   :  { %v3711_v55 = vsel %vm942_vm3, %v3710_v19, %v3707_v48  ;;  %2987 = vadd.xlane.f32.xlu1 %v2986_v60  ;;  %v2970_v58 = vpop.xlane.xlu1 %2969 }
0x1059   :  { %v2974_v46 = vmul.f32 %v2970_v58, %v8506_v14  ;;  %6705 = vmatmul.msk.f32.gmra.mxu2 %vm418_vm0, %v3711_v55  ;;  %v7023_v58 = vld [vmem:[%s9942_s2 + $0x3] ss:$0 sm:$0xff] }
0x105b   :  { %v9241_v18 = vsub.f32 %v2958_v41, %v2974_v46  ;;  %v3808_v41 = vld [vmem:[#allocation19 + $0x20] sm:$0xff] }
0x105c   :  { %3886 = vmatpush.msra.mxu0 %v3808_v41 }
0x105d   :  { %v2982_v54 = vmul.f32 %v9241_v18, %v9241_v18 }
0x105f   :  { %v2992_v15 = vsel %vm418_vm0, %v2982_v54, 0.0 }
0x1060   :  { %2993 = vadd.xlane.f32.xlu1 %v2992_v15 }
0x1079   :  { %v2961_v17 = vpop.xlane.xlu2 %2960 }
0x107a   :  { %v2971_v38 = vmul.f32 %v2961_v17, %v8506_v14  ;;  %v7024_v17 = vld [vmem:[#allocation11 + $0x3] ss:$0 sm:$0xff] }
0x107c   :  { %v9247_v61 = vsub.f32 %v2955_v39, %v2971_v38 }
0x107e   :  { %v2979_v8 = vmul.f32 %v9247_v61, %v9247_v61 }
0x1080   :  { %v2983_v59 = vsel %vm418_vm0, %v2979_v8, 0.0 }
0x1081   :  { %2984 = vadd.xlane.f32.xlu2 %v2983_v59  ;;  %v2967_v57 = vpop.xlane.xlu2 %2966 }
0x1082   :  { %v2973_v26 = vmul.f32 %v2967_v57, %v8506_v14 }
0x1084   :  { %v9253_v0 = vsub.f32 %v2957_v45, %v2973_v26 }
0x1086   :  { %v2981_v27 = vmul.f32 %v9253_v0, %v9253_v0 }
0x1088   :  { %v2989_v31 = vsel %vm418_vm0, %v2981_v27, 0.0  ;;  %v7374_v27 = vld [vmem:[#allocation5] sm:$0xff] }
0x1089   :  { %2990 = vadd.xlane.f32.xlu2 %v2989_v31 }
0x10c1   :  { %v3738_v4 = vpop.f32.mrf.mxu2 }
0x10c2   :  { %v9258_v30 = vadd.f32 %v7022_v16, %v3738_v4 }
0x10c4   :  { %v3748_v29 = vsel %vm418_vm0, %v9258_v30, 0.0 }
0x10c5   :  { %3749 = vadd.xlane.f32.xlu0 %v3748_v29 }
0x10cb   :  { %v2988_v2 = vpop.xlane.xlu1 %2987 }
0x10cc   :  { %v2996_v47 = vmul.f32 %v2988_v2, %v8506_v14 }
0x10ce   :  { %v3000_v37 = vadd.f32 1e-05, %v2996_v47 }
0x10d0   :  { %7239 = vrsqrt.f32 %v3000_v37  ;;  %vm3019_vm10 = vweird.f32 %v3000_v37 }
0x10d3   :  { %v2994_v40 = vpop.xlane.xlu1 %2993 }
0x10d4   :  { %v2998_v1 = vmul.f32 %v2994_v40, %v8506_v14 }
0x10d6   :  { %v7240_v32 = vpop.eup %7239  ;;  %v3002_v45 = vadd.f32 1e-05, %v2998_v1 }
0x10d7   :  { %v3014_v13 = vmul.f32 %v7240_v32, %v3000_v37  ;;  %vm3020_vm8 = vweird.f32 %v7240_v32 }
0x10d8   :  { %vm3021_vm11 = vmor %vm3019_vm10, %vm3020_vm8  ;;  %vm3039_vm7 = vweird.f32 %v3002_v45 }
0x10d9   :  { %v3015_v7 = vmul.f32 %v7240_v32, %v3014_v13 }
0x10db   :  { %v3016_v49 = vmul.f32 0.5, %v3015_v7  ;;  %v3807_v7 = vld [vmem:[#allocation19 + $0x18] sm:$0xff] }
0x10dc   :  { %v3741_v5 = vpop.f32.mrf.mxu2  ;;  %3845 = vmatpush.msra.mxu3 %v3807_v7 }
0x10dd   :  { %v9262_v34 = vadd.f32 %v7022_v16, %v3741_v5  ;;  %v3017_v11 = vsub.f32 1.5, %v3016_v49  ;;  %v9323_v49 = vld [vmem:[#allocation20 + $0x1] ss:$0 sm:$0xff] }
0x10df   :  { %v3751_v10 = vsel %vm418_vm0, %v9262_v34, 0.0  ;;  %v3018_v21 = vmul.f32 %v7240_v32, %v3017_v11 }
0x10e0   :  { %3752 = vadd.xlane.f32.xlu0 %v3751_v10  ;;  %v7375_v10 = vld [vmem:[#allocation5 + $0x8] sm:$0xff] }
0x10e1   :  { %v3022_v48 = vsel %vm3021_vm11, %v7240_v32, %v3018_v21 }
0x10e2   :  { %v3044_v15 = vmul.f32 %v3022_v48, %v9231_v52 }
0x10f4   :  { %v2985_v42 = vpop.xlane.xlu2 %2984 }
0x10f5   :  { %v2995_v39 = vmul.f32 %v2985_v42, %v8506_v14 }
0x10f7   :  { %v2999_v44 = vadd.f32 1e-05, %v2995_v39 }
0x10f9   :  { %7241 = vrsqrt.f32 %v2999_v44  ;;  %vm3009_vm12 = vweird.f32 %v2999_v44 }
0x10fa   :  { %7243 = vrsqrt.f32 %v3002_v45 }
0x10fc   :  { %v2991_v36 = vpop.xlane.xlu2 %2990 }
0x10fd   :  { %v2997_v63 = vmul.f32 %v2991_v36, %v8506_v14  ;;  %v3806_v36 = vld [vmem:[#allocation19 + $0x10] sm:$0xff] }
0x10fe   :  { %3846 = vmatpush.msra.mxu3 %v3806_v36 }
0x10ff   :  { %v7242_v50 = vpop.eup %7241  ;;  %v3001_v3 = vadd.f32 1e-05, %v2997_v63  ;;  %v3804_v63 = vld [vmem:[#allocation19] sm:$0xff] }
0x1100   :  { %v3004_v28 = vmul.f32 %v7242_v50, %v2999_v44  ;;  %v7244_v43 = vpop.eup %7243  ;;  %vm3010_vm9 = vweird.f32 %v7242_v50 }
0x1101   :  { %7245 = vrsqrt.f32 %v3001_v3  ;;  %v3034_v51 = vmul.f32 %v7244_v43, %v3002_v45  ;;  %vm3011_vm13 = vmor %vm3009_vm12, %vm3010_vm9  ;;  %vm3029_vm15 = vweird.f32 %v3001_v3  ;;  %vm3040_vm6 = vweird.f32 %v7244_v43 }
0x1102   :  { %v3005_v23 = vmul.f32 %v7242_v50, %v3004_v28  ;;  %vm3041_vm8 = vmor %vm3039_vm7, %vm3040_vm6  ;;  %v9328_v28 = vld [vmem:[#allocation20 + $0x2] ss:$0 sm:$0xff] }
0x1103   :  { %v3035_v19 = vmul.f32 %v7244_v43, %v3034_v51 }
0x1104   :  { %v3006_v6 = vmul.f32 0.5, %v3005_v23 }
0x1105   :  { %v3036_v8 = vmul.f32 0.5, %v3035_v19 }
0x1106   :  { %v3007_v25 = vsub.f32 1.5, %v3006_v6 }
0x1107   :  { %v7246_v24 = vpop.eup %7245  ;;  %v3037_v16 = vsub.f32 1.5, %v3036_v8 }
0x1108   :  { %v3008_v33 = vmul.f32 %v7242_v50, %v3007_v25  ;;  %v3024_v56 = vmul.f32 %v7246_v24, %v3001_v3  ;;  %vm3030_vm14 = vweird.f32 %v7246_v24 }
0x1109   :  { %vm3031_vm4 = vmor %vm3029_vm15, %vm3030_vm14  ;;  %v3038_v5 = vmul.f32 %v7244_v43, %v3037_v16 }
0x110a   :  { %v3012_v60 = vsel %vm3011_vm13, %v7242_v50, %v3008_v33  ;;  %v3025_v55 = vmul.f32 %v7246_v24, %v3024_v56 }
0x110b   :  { %v3043_v46 = vmul.f32 %v3012_v60, %v9247_v61  ;;  %v3051_v61 = vmul.f32 %v7023_v58, %v3044_v15  ;;  %v3042_v37 = vsel %vm3041_vm8, %v7244_v43, %v3038_v5  ;;  %v7028_v15 = vld [vmem:[#allocation31] ss:$0 sm:$0xff] }
0x110c   :  { %v3026_v54 = vmul.f32 0.5, %v3025_v55 }
0x110d   :  { %v3050_v38 = vmul.f32 %v7023_v58, %v3043_v46  ;;  %v9285_v29 = vadd.f32 %v7024_v17, %v3051_v61  ;;  %v7027_v46 = vld [vmem:[#allocation29] ss:$0 sm:$0xff] }
0x110e   :  { %v3027_v59 = vsub.f32 1.5, %v3026_v54 }
0x110f   :  { %v9275_v57 = vadd.f32 %v7024_v17, %v3050_v38  ;;  %v9290_v2 = vadd.f32 %v7375_v10, %v9285_v29 }
0x1110   :  { %v3028_v26 = vmul.f32 %v7246_v24, %v3027_v59 }
0x1111   :  { %6712 = vmatmul.msk.f32.vlgmr.msrb.gmra.mxu1 %vm418_vm0, %v9275_v57  ;;  %v9280_v31 = vadd.f32 %v7374_v27, %v9275_v57  ;;  %v9350_v27 = vld [vmem:[%s9944_s18] sm:$0xff] }
0x1112   :  { %v3032_v52 = vsel %vm3031_vm4, %v7246_v24, %v3028_v26 }
0x1113   :  { %6708 = vmatmul.msk.f32.vlgmr.msra.gmra.mxu0 %vm418_vm0, %v9280_v31  ;;  %v3045_v4 = vmul.f32 %v3032_v52, %v9253_v0  ;;  %v3046_v0 = vmul.f32 %v3042_v37, %v9241_v18 }
0x1115   :  { %v3052_v47 = vmul.f32 %v7023_v58, %v3045_v4  ;;  %v3053_v53 = vmul.f32 %v7023_v58, %v3046_v0 }
0x1117   :  { %v9295_v62 = vadd.f32 %v7024_v17, %v3052_v47  ;;  %v9304_v9 = vadd.f32 %v7024_v17, %v3053_v53 }
0x1119   :  { %6713 = vmatmul.msk.f32.gmra.mxu1 %vm418_vm0, %v9285_v29  ;;  %v9300_v20 = vadd.f32 %v7376_v35, %v9295_v62  ;;  %v9309_v18 = vadd.f32 %v7377_v12, %v9304_v9 }
0x111b   :  { %6709 = vmatmul.msk.f32.gmra.mxu0 %vm418_vm0, %v9290_v2 }
0x1121   :  { %6714 = vmatmul.msk.f32.gmra.mxu1 %vm418_vm0, %v9295_v62 }
0x1123   :  { %6710 = vmatmul.msk.f32.gmra.mxu0 %vm418_vm0, %v9300_v20 }
0x1129   :  { %6715 = vmatmul.msk.f32.gmra.mxu1 %vm418_vm0, %v9304_v9 }
0x112b   :  { %6711 = vmatmul.msk.f32.gmra.mxu0 %vm418_vm0, %v9309_v18 }
0x1138   :  { %v3750_v22 = vpop.xlane.xlu0 %3749 }
0x1139   :  { %v3754_v40 = vmul.f32 %v3750_v22, %v8506_v14 }
0x113b   :  { %v3756_v41 = vsub.f32 %v9258_v30, %v3754_v40  ;;  %v3805_v30 = vld [vmem:[#allocation19 + $0x8] sm:$0xff] }
0x113c   :  { %3847 = vmatpush.msra.mxu3 %v3805_v30 }
0x113d   :  { %v3758_v32 = vmul.f32 %v3756_v41, %v3756_v41 }
0x113e   :  { %3848 = vmatpush.msra.mxu3 %v3804_v63 }
0x113f   :  { %v3760_v42 = vsel %vm418_vm0, %v3758_v32, 0.0 }
0x1140   :  { %3761 = vadd.xlane.f32.xlu0 %v3760_v42 }
0x1153   :  { %v3753_v1 = vpop.xlane.xlu0 %3752 }
0x1154   :  { %v3755_v39 = vmul.f32 %v3753_v1, %v8506_v14 }
0x1156   :  { %v9318_v13 = vsub.f32 %v9262_v34, %v3755_v39  ;;  %v7029_v39 = vld [vmem:[#allocation20] ss:$0 sm:$0xff] }
0x1158   :  { %v3759_v44 = vmul.f32 %v9318_v13, %v9318_v13 }
0x115a   :  { %v3763_v45 = vsel %vm418_vm0, %v3759_v44, 0.0 }
0x115b   :  { %3764 = vadd.xlane.f32.xlu0 %v3763_v45 }
0x118e   :  { %v3932_v50 = vpop.f32.mrf.mxu1 }
0x118f   :  { %v3933_v23 = vadd.f32 %v9328_v28, %v3932_v50 }
0x1190   :  { %v3888_v3 = vpop.f32.mrf.mxu0 }
0x1191   :  { %v9326_v34 = vadd.f32 %v9323_v49, %v3888_v3 }
0x1193   :  { %4009 = vrot.lane.b32.xlu1 %v9326_v34, %s7906_s15 }
0x1196   :  { %v3935_v11 = vpop.f32.mrf.mxu1 }
0x1197   :  { %v3936_v43 = vadd.f32 %v9328_v28, %v3935_v11 }
0x1198   :  { %v3891_v6 = vpop.f32.mrf.mxu0 }
0x1199   :  { %v3892_v21 = vadd.f32 %v9323_v49, %v3891_v6  ;;  %4001 = vmatpush.msrb.mxu3 %v3936_v43  ;;  %v9335_v51 = vpack.i.bf16 %v3933_v23, %v3936_v43 }
0x119b   :  { %4002 = vmatpush.msrb.mxu3 %v3933_v23  ;;  %4011 = vrot.lane.b32.xlu2 %v3892_v21, %s7906_s15 }
0x119c   :  { %6716 = vmatpush.xpose.msk.msra.mxu2 %vm536_vm1, %v3892_v21 }
0x11a0   :  { %6717 = vmatpush.xpose.msk.msra.mxu2 %vm536_vm1, %v9326_v34  ;;  %v3894_v1 = vpop.f32.mrf.mxu0 }
0x11a1   :  { %v3895_v36 = vadd.f32 %v9323_v49, %v3894_v1 }
0x11a3   :  { %4085 = vrot.lane.b32.xlu2 %v3892_v21, %s7905_s28 }
0x11a8   :  { %v3897_v45 = vpop.f32.mrf.mxu0 }
0x11a9   :  { %v3898_v7 = vadd.f32 %v9323_v49, %v3897_v45 }
0x11ab   :  { %4157 = vrot.lane.b32.xlu2 %v3892_v21, %s7907_s6 }
0x11b3   :  { %v3762_v25 = vpop.xlane.xlu0 %3761 }
0x11b4   :  { %v3766_v24 = vmul.f32 %v3762_v25, %v8506_v14 }
0x11b6   :  { %v3768_v33 = vadd.f32 1e-05, %v3766_v24 }
0x11b8   :  { %7247 = vrsqrt.f32 %v3768_v33  ;;  %vm3776_vm10 = vweird.f32 %v3768_v33 }
0x11be   :  { %v7248_v56 = vpop.eup %7247 }
0x11bf   :  { %v3771_v48 = vmul.f32 %v7248_v56, %v3768_v33  ;;  %vm3777_vm9 = vweird.f32 %v7248_v56 }
0x11c0   :  { %vm3778_vm11 = vmor %vm3776_vm10, %vm3777_vm9 }
0x11c1   :  { %v3772_v19 = vmul.f32 %v7248_v56, %v3771_v48 }
0x11c3   :  { %v3773_v60 = vmul.f32 0.5, %v3772_v19 }
0x11c5   :  { %v3774_v55 = vsub.f32 1.5, %v3773_v60 }
0x11c7   :  { %v3775_v58 = vmul.f32 %v7248_v56, %v3774_v55 }
0x11c9   :  { %v3779_v54 = vsel %vm3778_vm11, %v7248_v56, %v3775_v58 }
0x11ca   :  { %v3790_v17 = vmul.f32 %v3779_v54, %v3756_v41 }
0x11cc   :  { %v3795_v38 = vmul.f32 %v7027_v46, %v3790_v17 }
0x11ce   :  { %v9344_v8 = vadd.f32 %v7028_v15, %v3795_v38  ;;  %v3765_v59 = vpop.xlane.xlu0 %3764 }
0x11cf   :  { %v3767_v26 = vmul.f32 %v3765_v59, %v8506_v14 }
0x11d0   :  { %v3802_v61 = vadd.f32 %v9350_v27, %v9344_v8 }
0x11d1   :  { %v3769_v16 = vadd.f32 1e-05, %v3767_v26 }
0x11d2   :  { %6706 = vmatmul.msk.f32.vlgmr.msra.gmra.mxu3 %vm418_vm0, %v3802_v61 }
0x11d3   :  { %7249 = vrsqrt.f32 %v3769_v16  ;;  %vm3786_vm13 = vweird.f32 %v3769_v16 }
0x11d9   :  { %v7250_v52 = vpop.eup %7249 }
0x11da   :  { %v3781_v4 = vmul.f32 %v7250_v52, %v3769_v16  ;;  %vm3787_vm12 = vweird.f32 %v7250_v52 }
0x11db   :  { %vm3788_vm14 = vmor %vm3786_vm13, %vm3787_vm12 }
0x11dc   :  { %v3782_v5 = vmul.f32 %v7250_v52, %v3781_v4 }
0x11de   :  { %v3783_v10 = vmul.f32 0.5, %v3782_v5 }
0x11e0   :  { %v3784_v47 = vsub.f32 1.5, %v3783_v10 }
0x11e2   :  { %v3785_v37 = vmul.f32 %v7250_v52, %v3784_v47 }
0x11e4   :  { %v3789_v0 = vsel %vm3788_vm14, %v7250_v52, %v3785_v37 }
0x11e5   :  { %v3791_v35 = vmul.f32 %v3789_v0, %v9318_v13 }
0x11e7   :  { %v3796_v53 = vmul.f32 %v7027_v46, %v3791_v35 }
0x11e9   :  { %v9356_v12 = vadd.f32 %v7028_v15, %v3796_v53 }
0x11eb   :  { %v3803_v22 = vadd.f32 %v9350_v27, %v9356_v12 }
0x11ed   :  { %6707 = vmatmul.msk.f32.gmra.mxu3 %vm418_vm0, %v3803_v22 }
0x11f5   :  { %v4012_v40 = vpop.permute.xlu2 %4011 }
0x11f6   :  { %6720 = vmatpush.xpose.msk.msrb.mxu2 %vm536_vm1, %v4012_v40 }
0x11fd   :  { %v4086_v41 = vpop.permute.xlu2 %4085 }
0x1205   :  { %v4010_v32 = vpop.permute.xlu1 %4009  ;;  %v4158_v42 = vpop.permute.xlu2 %4157 }
0x1206   :  { %6721 = vmatpush.xpose.msk.msrb.mxu2 %vm536_vm1, %v4010_v32  ;;  %6728 = vmatpush.xpose.msk.msrb.mxu0 %vm536_vm1, %v4158_v42 }
0x1255   :  { %v3850_v13 = vpop.f32.mrf.mxu3 }
0x1256   :  { %v3851_v44 = vadd.f32 %v7029_v39, %v3850_v13 }
0x1258   :  { %4007 = vrot.lane.b32.xlu0 %v3851_v44, %s7906_s15  ;;  %4153 = vrot.lane.b32.xlu2 %v3851_v44, %s7907_s6 }
0x1259   :  { %4081 = vrot.lane.b32.xlu1 %v3851_v44, %s7905_s28  ;;  %6718 = vmatmul.msk.f32.vlgmr.msra.gmra.mxu2 %vm536_vm1, %v3851_v44 }
0x125a   :  { %6724 = vmatpush.xpose.msk.msra.mxu2 %vm536_vm1, %v4086_v41  ;;  %v3938_v41 = vpop.f32.mrf.mxu1 }
0x125b   :  { %v9421_v1 = vadd.f32 %v9328_v28, %v3938_v41 }
0x1260   :  { %4083 = vrot.lane.b32.xlu0 %v9326_v34, %s7905_s28 }
0x1261   :  { %4381 = vrot.lane.b32.xlu1 %v3898_v7, %s7905_s28 }
0x1262   :  { %v3941_v32 = vpop.f32.mrf.mxu1 }
0x1263   :  { %v9418_v42 = vadd.f32 %v9328_v28, %v3941_v32 }
0x1268   :  { %4155 = vrot.lane.b32.xlu0 %v9326_v34, %s7907_s6 }
0x1269   :  { %4307 = vrot.lane.b32.xlu1 %v3898_v7, %s7906_s15 }
0x1270   :  { %v3853_v30 = vpop.f32.mrf.mxu3  ;;  %4379 = vrot.lane.b32.xlu0 %v3895_v36, %s7905_s28 }
0x1271   :  { %v3854_v63 = vadd.f32 %v7029_v39, %v3853_v30  ;;  %v9425_v39 = vpack.i.bf16 %v9421_v1, %v9418_v42 }
0x1273   :  { %4377 = vrot.lane.b32.xlu2 %v3854_v63, %s7905_s28  ;;  %4303 = vrot.lane.b32.xlu1 %v3854_v63, %s7906_s15 }
0x1278   :  { %4305 = vrot.lane.b32.xlu0 %v3895_v36, %s7906_s15 }
0x127b   :  { %4453 = vrot.lane.b32.xlu2 %v3898_v7, %s7907_s6  ;;  %4449 = vrot.lane.b32.xlu1 %v3854_v63, %s7907_s6 }
0x1280   :  { %4451 = vrot.lane.b32.xlu0 %v3895_v36, %s7907_s6 }
0x1288   :  { %6937 = vrot.lane.b32.xlu0 %v9335_v51, %s7906_s15 }
0x12b2   :  { %v4154_v11 = vpop.permute.xlu2 %4153 }
0x12ca   :  { %v4008_v49 = vpop.permute.xlu0 %4007 }
0x12cb   :  { %v4082_v50 = vpop.permute.xlu1 %4081  ;;  %6722 = vmatmul.msk.f32.vlgmr.msrb.gmra.mxu2 %vm536_vm1, %v4008_v49 }
0x12cd   :  { %v4378_v25 = vpop.permute.xlu2 %4377 }
0x12d2   :  { %v4084_v3 = vpop.permute.xlu0 %4083 }
0x12d3   :  { %v4382_v34 = vpop.permute.xlu1 %4381  ;;  %6725 = vmatpush.xpose.msk.msra.mxu2 %vm536_vm1, %v4084_v3 }
0x12d5   :  { %v4454_v56 = vpop.permute.xlu2 %4453 }
0x12d6   :  { %6726 = vmatmul.msk.f32.vlgmr.msra.gmra.mxu2 %vm536_vm1, %v4082_v50 }
0x12d7   :  { %6732 = vmatpush.xpose.msk.msrb.mxu2 %vm536_vm1, %v3898_v7 }
0x12da   :  { %v4156_v23 = vpop.permute.xlu0 %4155 }
0x12db   :  { %6733 = vmatpush.xpose.msk.msrb.mxu2 %vm536_vm1, %v3895_v36  ;;  %v4308_v43 = vpop.permute.xlu1 %4307  ;;  %6729 = vmatpush.xpose.msk.msrb.mxu0 %vm536_vm1, %v4156_v23 }
0x12dc   :  { %v3970_v6 = vpop.f32.mrf.mxu2 }
0x12dd   :  { %v3973_v21 = vsel %vm572_vm2, %v3970_v6, -inf }
0x12de   :  { %3974 = vmax.xlane.f32.xlu2 %v3973_v21  ;;  %6730 = vmatmul.msk.f32.vlgmr.msrb.gmra.mxu0 %vm536_vm1, %v4154_v11 }
0x12df   :  { %6740 = vmatpush.xpose.msk.msra.mxu2 %vm536_vm1, %v4382_v34  ;;  %6736 = vmatpush.xpose.msk.msra.mxu0 %vm536_vm1, %v4308_v43 }
0x12e0   :  { %6734 = vmatmul.msk.f32.vlgmr.msrb.gmra.mxu2 %vm536_vm1, %v3854_v63 }
0x12e2   :  { %v4380_v24 = vpop.permute.xlu0 %4379 }
0x12e3   :  { %6741 = vmatpush.xpose.msk.msra.mxu2 %vm536_vm1, %v4380_v24 }
0x12e5   :  { %v4304_v48 = vpop.permute.xlu1 %4303 }
0x12e8   :  { %6742 = vmatmul.msk.f32.vlgmr.msra.gmra.mxu2 %vm536_vm1, %v4378_v25 }
0x12ea   :  { %v4306_v33 = vpop.permute.xlu0 %4305 }
0x12eb   :  { %6737 = vmatpush.xpose.msk.msra.mxu0 %vm536_vm1, %v4306_v33 }
0x12ed   :  { %v4450_v60 = vpop.permute.xlu1 %4449 }
0x12ee   :  { %6738 = vmatmul.msk.f32.vlgmr.msra.gmra.mxu0 %vm536_vm1, %v4304_v48 }
0x12ef   :  { %6744 = vmatpush.xpose.msk.msrb.mxu0 %vm536_vm1, %v4454_v56 }
0x12f2   :  { %v4452_v19 = vpop.permute.xlu0 %4451 }
0x12f3   :  { %6745 = vmatpush.xpose.msk.msrb.mxu0 %vm536_vm1, %v4452_v19 }
0x12f6   :  { %6746 = vmatmul.msk.f32.vlgmr.msrb.gmra.mxu0 %vm536_vm1, %v4450_v60 }
0x12fa   :  { %v6938_v55 = vpop.permute.xlu0 %6937 }
0x12fb   :  { %v6939_v58 = vunpack.i.l.bf16 %v6938_v55  ;;  %v6940_v46 = vunpack.i.h.bf16 %v6938_v55 }
0x12fd   :  { %4075 = vmatpush.msra.mxu3 %v6939_v58 }
0x12ff   :  { %4076 = vmatpush.msra.mxu3 %v6940_v46 }
0x134e   :  { %v4036_v54 = vpop.f32.mrf.mxu2 }
0x134f   :  { %v4039_v15 = vsel %vm572_vm2, %v4036_v54, -inf }
0x1350   :  { %4040 = vmax.xlane.f32.xlu0 %v4039_v15 }
0x1351   :  { %v3975_v61 = vpop.xlane.xlu2 %3974 }
0x1352   :  { %v3976_v52 = vsub.f32 %v3970_v6, %v3975_v61 }
0x1354   :  { %v3977_v5 = vmul.f32 1.442695, %v3976_v52 }
0x1356   :  { %7251 = vpow2.f32 %v3977_v5 }
0x1359   :  { %v4110_v17 = vpop.f32.mrf.mxu2 }
0x135a   :  { %v4113_v38 = vsel %vm572_vm2, %v4110_v17, -inf }
0x135b   :  { %4114 = vmax.xlane.f32.xlu1 %v4113_v38  ;;  %v4182_v59 = vpop.f32.mrf.mxu0 }
0x135c   :  { %v4185_v26 = vsel %vm572_vm2, %v4182_v59, -inf  ;;  %v7252_v35 = vpop.eup %7251 }
0x135d   :  { %4186 = vmax.xlane.f32.xlu2 %v4185_v26  ;;  %v3979_v40 = vsel %vm572_vm2, %v7252_v35, 0.0 }
0x1363   :  { %v4266_v16 = vpop.f32.mrf.mxu2 }
0x1364   :  { %v4269_v4 = vsel %vm572_vm2, %v4266_v16, -inf }
0x1365   :  { %4270 = vmax.xlane.f32.xlu0 %v4269_v4 }
0x136b   :  { %v9408_v10 = vpop.f32.mrf.mxu2  ;;  %v4332_v47 = vpop.f32.mrf.mxu0 }
0x136c   :  { %v4409_v37 = vsel %vm572_vm2, %v9408_v10, -inf  ;;  %v4335_v0 = vsel %vm572_vm2, %v4332_v47, -inf }
0x136d   :  { %4410 = vmax.xlane.f32.xlu2 %v4409_v37  ;;  %4336 = vmax.xlane.f32.xlu1 %v4335_v0 }
0x1373   :  { %v4478_v53 = vpop.f32.mrf.mxu0 }
0x1374   :  { %v4481_v22 = vsel %vm572_vm2, %v4478_v53, -inf }
0x1375   :  { %4482 = vmax.xlane.f32.xlu0 %v4481_v22  ;;  %3980 = vadd.xlane.f32.xlu1 %v3979_v40 }
0x1389   :  { %6947 = vrot.lane.b32.xlu0 %v9335_v51, %s7907_s6 }
0x1391   :  { %6952 = vrot.lane.b32.xlu0 %v9425_v39, %s7906_s15 }
0x13c3   :  { %v4041_v13 = vpop.xlane.xlu0 %4040 }
0x13c4   :  { %v4042_v44 = vsub.f32 %v4036_v54, %v4041_v13 }
0x13c6   :  { %v4043_v45 = vmul.f32 1.442695, %v4042_v44 }
0x13c8   :  { %7253 = vpow2.f32 %v4043_v45 }
0x13ce   :  { %v9429_v7 = vpop.eup %7253  ;;  %v4115_v30 = vpop.xlane.xlu1 %4114 }
0x13cf   :  { %v4045_v36 = vsel %vm572_vm2, %v9429_v7, 0.0  ;;  %v4116_v49 = vsub.f32 %v4110_v17, %v4115_v30 }
0x13d0   :  { %4046 = vadd.xlane.f32.xlu2 %v4045_v36  ;;  %v4187_v28 = vpop.xlane.xlu2 %4186 }
0x13d1   :  { %v4188_v63 = vsub.f32 %v4182_v59, %v4187_v28  ;;  %v4117_v3 = vmul.f32 1.442695, %v4116_v49 }
0x13d3   :  { %v4189_v50 = vmul.f32 1.442695, %v4188_v63 }
0x13d5   :  { %7255 = vpow2.f32 %v4189_v50 }
0x13d6   :  { %7257 = vpow2.f32 %v4117_v3 }
0x13d8   :  { %v4271_v23 = vpop.xlane.xlu0 %4270 }
0x13d9   :  { %v4272_v25 = vsub.f32 %v4266_v16, %v4271_v23 }
0x13db   :  { %v9433_v34 = vpop.eup %7255  ;;  %v4273_v56 = vmul.f32 1.442695, %v4272_v25 }
0x13dc   :  { %v4191_v11 = vsel %vm572_vm2, %v9433_v34, 0.0  ;;  %v9437_v6 = vpop.eup %7257 }
0x13dd   :  { %4192 = vadd.xlane.f32.xlu1 %v4191_v11  ;;  %v4119_v33 = vsel %vm572_vm2, %v9437_v6, 0.0 }
0x13e0   :  { %v4337_v43 = vpop.xlane.xlu1 %4336  ;;  %v4411_v61 = vpop.xlane.xlu2 %4410 }
0x13e1   :  { %v4338_v21 = vsub.f32 %v4332_v47, %v4337_v43  ;;  %v4412_v4 = vsub.f32 %v9408_v10, %v4411_v61 }
0x13e3   :  { %v4339_v24 = vmul.f32 1.442695, %v4338_v21  ;;  %v4413_v5 = vmul.f32 1.442695, %v4412_v4 }
0x13e5   :  { %7259 = vpow2.f32 %v4339_v24  ;;  %4120 = vadd.xlane.f32.xlu1 %v4119_v33 }
0x13e8   :  { %6942 = vrot.lane.b32.xlu2 %v9335_v51, %s7905_s28  ;;  %v4483_v48 = vpop.xlane.xlu0 %4482  ;;  %v3981_v19 = vpop.xlane.xlu1 %3980 }
0x13e9   :  { %v4484_v60 = vsub.f32 %v4478_v53, %v4483_v48  ;;  %7261 = vrcp.f32 %v3981_v19 }
0x13ea   :  { %7263 = vpow2.f32 %v4273_v56 }
0x13eb   :  { %v7260_v55 = vpop.eup %7259  ;;  %v4485_v58 = vmul.f32 1.442695, %v4484_v60 }
0x13ec   :  { %v4341_v46 = vsel %vm572_vm2, %v7260_v55, 0.0 }
0x13ed   :  { %7265 = vpow2.f32 %v4485_v58  ;;  %4342 = vadd.xlane.f32.xlu1 %v4341_v46 }
0x13ee   :  { %7267 = vpow2.f32 %v4413_v5 }
0x13ef   :  { %v7262_v54 = vpop.eup %7261 }
0x13f0   :  { %v3983_v15 = vmul.f32 %v7262_v54, %v7252_v35  ;;  %v7264_v17 = vpop.eup %7263 }
0x13f1   :  { %v4275_v59 = vsel %vm572_vm2, %v7264_v17, 0.0 }
0x13f2   :  { %6719 = vmatmul.msk.f32.vlgmr.msrb.gmra.mxu3 %vm572_vm2, %v3983_v15 }
0x13f3   :  { %v9445_v38 = vpop.eup %7265 }
0x13f4   :  { %v4487_v51 = vsel %vm572_vm2, %v9445_v38, 0.0  ;;  %v7268_v35 = vpop.eup %7267 }
0x13f5   :  { %4488 = vadd.xlane.f32.xlu0 %v4487_v51  ;;  %4276 = vadd.xlane.f32.xlu1 %v4275_v59  ;;  %v4415_v53 = vsel %vm572_vm2, %v7268_v35, 0.0  ;;  %v3821_v51 = vld [vmem:[#allocation22 + $0x10] sm:$0xff]  ;;  %v3820_v59 = vld [vmem:[#allocation22 + $0x8] sm:$0xff] }
0x13fb   :  { %v6948_v26 = vpop.permute.xlu0 %6947 }
0x13fc   :  { %v6949_v16 = vunpack.i.l.bf16 %v6948_v26  ;;  %v6950_v52 = vunpack.i.h.bf16 %v6948_v26  ;;  %v3819_v26 = vld [vmem:[#allocation22] sm:$0xff] }
0x13fe   :  { %4219 = vmatpush.msra.mxu1 %v6949_v16 }
0x1400   :  { %4220 = vmatpush.msra.mxu1 %v6950_v52 }
0x1403   :  { %v6953_v47 = vpop.permute.xlu0 %6952 }
0x1404   :  { %v6954_v37 = vunpack.i.l.bf16 %v6953_v47  ;;  %v6955_v0 = vunpack.i.h.bf16 %v6953_v47 }
0x1406   :  { %4371 = vmatpush.msrb.mxu1 %v6954_v37 }
0x1408   :  { %4372 = vmatpush.msrb.mxu1 %v6955_v0 }
0x140e   :  { %6957 = vrot.lane.b32.xlu1 %v9425_v39, %s7905_s28 }
0x1411   :  { %4416 = vadd.xlane.f32.xlu2 %v4415_v53 }
0x1416   :  { %6962 = vrot.lane.b32.xlu1 %v9425_v39, %s7907_s6 }
0x1443   :  { %v4047_v22 = vpop.xlane.xlu2 %4046 }
0x1444   :  { %7269 = vrcp.f32 %v4047_v22 }
0x144a   :  { %v7270_v10 = vpop.eup %7269 }
0x144b   :  { %v4049_v40 = vmul.f32 %v7270_v10, %v9429_v7  ;;  %v6943_v41 = vpop.permute.xlu2 %6942 }
0x144c   :  { %v6944_v32 = vunpack.i.l.bf16 %v6943_v41  ;;  %v6945_v13 = vunpack.i.h.bf16 %v6943_v41 }
0x144d   :  { %6723 = vmatmul.msk.f32.vlgmr.msra.gmra.mxu3 %vm572_vm2, %v4049_v40  ;;  %v7030_v40 = vld [vmem:[#allocation23] ss:$0 sm:$0xff] }
0x144e   :  { %4147 = vmatpush.msrb.mxu3 %v6944_v32 }
0x1450   :  { %v4193_v44 = vpop.xlane.xlu1 %4192  ;;  %4148 = vmatpush.msrb.mxu3 %v6945_v13 }
0x1451   :  { %7271 = vrcp.f32 %v4193_v44 }
0x1452   :  { %4297 = vmatpush.msra.mxu3 %v9418_v42 }
0x1454   :  { %4298 = vmatpush.msra.mxu3 %v9421_v1 }
0x1457   :  { %v7272_v45 = vpop.eup %7271 }
0x1458   :  { %v4195_v39 = vmul.f32 %v7272_v45, %v9433_v34  ;;  %v4121_v36 = vpop.xlane.xlu1 %4120 }
0x1459   :  { %7273 = vrcp.f32 %v4121_v36 }
0x145a   :  { %6731 = vmatmul.msk.f32.vlgmr.msra.gmra.mxu1 %vm572_vm2, %v4195_v39 }
0x145f   :  { %v7274_v7 = vpop.eup %7273 }
0x1460   :  { %v4123_v30 = vmul.f32 %v7274_v7, %v9437_v6  ;;  %v4343_v28 = vpop.xlane.xlu1 %4342 }
0x1461   :  { %7275 = vrcp.f32 %v4343_v28 }
0x1462   :  { %6727 = vmatmul.msk.f32.vlgmr.msrb.gmra.mxu3 %vm572_vm2, %v4123_v30 }
0x1467   :  { %v7276_v63 = vpop.eup %7275 }
0x1468   :  { %v4345_v49 = vmul.f32 %v7276_v63, %v7260_v55  ;;  %v4277_v50 = vpop.xlane.xlu1 %4276  ;;  %v4489_v3 = vpop.xlane.xlu0 %4488 }
0x1469   :  { %7277 = vrcp.f32 %v4277_v50 }
0x146a   :  { %6739 = vmatmul.msk.f32.vlgmr.msrb.gmra.mxu1 %vm572_vm2, %v4345_v49  ;;  %7279 = vrcp.f32 %v4489_v3 }
0x146f   :  { %v7278_v42 = vpop.eup %7277 }
0x1470   :  { %v4279_v1 = vmul.f32 %v7278_v42, %v7264_v17  ;;  %v7280_v21 = vpop.eup %7279 }
0x1471   :  { %v4491_v56 = vmul.f32 %v7280_v21, %v9445_v38  ;;  %v3822_v38 = vld [vmem:[#allocation22 + $0x18] sm:$0xff] }
0x1472   :  { %6735 = vmatmul.msk.f32.vlgmr.msra.gmra.mxu3 %vm572_vm2, %v4279_v1  ;;  %4557 = vmatpush.msrb.mxu2 %v3822_v38  ;;  %v4674_v38 = vld [vmem:[%s9906_s23 + $0x38] sm:$0xff] }
0x1473   :  { %4693 = vmatpush.msra.mxu0 %v4674_v38  ;;  %v4772_v38 = vld [vmem:[#allocation13 + $0x68] sm:$0xff] }
0x1474   :  { %4558 = vmatpush.msrb.mxu2 %v3821_v51  ;;  %v4673_v51 = vld [vmem:[%s9906_s23 + $0x30] sm:$0xff] }
0x1475   :  { %v4004_v19 = vpop.f32.mrf.mxu3  ;;  %4694 = vmatpush.msra.mxu0 %v4673_v51  ;;  %v4776_v51 = vld [vmem:[#allocation13 + $0x88] sm:$0xff] }
0x1476   :  { %4559 = vmatpush.msrb.mxu2 %v3820_v59  ;;  %v4672_v59 = vld [vmem:[%s9906_s23 + $0x28] sm:$0xff] }
0x1477   :  { %4695 = vmatpush.msra.mxu0 %v4672_v59  ;;  %v4779_v59 = vld [vmem:[#allocation13 + $0xa0] sm:$0xff] }
0x1478   :  { %4560 = vmatpush.msrb.mxu2 %v3819_v26 }
0x1480   :  { %v6958_v34 = vpop.permute.xlu1 %6957 }
0x1481   :  { %v6959_v11 = vunpack.i.l.bf16 %v6958_v34  ;;  %v6960_v23 = vunpack.i.h.bf16 %v6958_v34 }
0x1483   :  { %4443 = vmatpush.msrb.mxu3 %v6959_v11  ;;  %v4630_v11 = vld [vmem:[#allocation25 + $0x10] sm:$0xff] }
0x1484   :  { %v4417_v43 = vpop.xlane.xlu2 %4416 }
0x1485   :  { %7281 = vrcp.f32 %v4417_v43  ;;  %4444 = vmatpush.msrb.mxu3 %v6960_v23  ;;  %v4629_v23 = vld [vmem:[#allocation25 + $0x8] sm:$0xff]  ;;  %v4628_v43 = vld [vmem:[#allocation25] sm:$0xff] }
0x1488   :  { %v6963_v6 = vpop.permute.xlu1 %6962 }
0x1489   :  { %v6964_v25 = vunpack.i.l.bf16 %v6963_v6  ;;  %v6965_v33 = vunpack.i.h.bf16 %v6963_v6 }
0x148b   :  { %v7282_v24 = vpop.eup %7281  ;;  %4515 = vmatpush.msra.mxu1 %v6964_v25 }
0x148c   :  { %v4419_v48 = vmul.f32 %v7282_v24, %v7268_v35 }
0x148d   :  { %4516 = vmatpush.msra.mxu1 %v6965_v33 }
0x148e   :  { %6743 = vmatmul.msk.f32.vlgmr.msrb.gmra.mxu3 %vm572_vm2, %v4419_v48  ;;  %6747 = vmatmul.msk.f32.vlgmr.msra.gmra.mxu1 %vm572_vm2, %v4491_v56 }
0x14d0   :  { %v4078_v60 = vpop.f32.mrf.mxu3 }
0x14d1   :  { %4226 = vrot.lane.b32.xlu1 %v4078_v60, %s7884_s0 }
0x14d7   :  { %v4222_v55 = vpop.f32.mrf.mxu1 }
0x14d9   :  { %4234 = vrot.lane.b32.xlu1 %v4222_v55, %s7908_s17  ;;  %v7031_v55 = vld [vmem:[#allocation29 + $0x1] ss:$0 sm:$0xff] }
0x14e5   :  { %v4150_v58 = vpop.f32.mrf.mxu3 }
0x14e6   :  { %4230 = vrot.lane.b32.xlu2 %v4150_v58, %s7886_s8 }
0x14e7   :  { %v4374_v46 = vpop.f32.mrf.mxu1 }
0x14e8   :  { %4522 = vrot.lane.b32.xlu0 %v4374_v46, %s7884_s0  ;;  %v7032_v46 = vld [vmem:[#allocation31 + $0x1] ss:$0 sm:$0xff] }
0x14f5   :  { %v4300_v54 = vpop.f32.mrf.mxu3 }
0x150b   :  { %v4518_v17 = vpop.f32.mrf.mxu1 }
0x1511   :  { %v4446_v15 = vpop.f32.mrf.mxu3 }
0x1512   :  { %4526 = vrot.lane.b32.xlu1 %v4446_v15, %s7886_s8 }
0x151a   :  { %4530 = vrot.lane.b32.xlu1 %v4518_v17, %s7908_s17 }
0x1540   :  { %v4231_v52 = vpop.permute.xlu2 %4230 }
0x1543   :  { %v4227_v61 = vpop.permute.xlu1 %4226 }
0x1544   :  { %v4237_v16 = vsel %vm536_vm1, %v4004_v19, %v4227_v61 }
0x1545   :  { %v4238_v5 = vsel %vm572_vm2, %v4237_v16, %v4231_v52  ;;  %v4671_v16 = vld [vmem:[%s9906_s23 + $0x20] sm:$0xff] }
0x1546   :  { %4696 = vmatpush.msra.mxu0 %v4671_v16 }
0x154b   :  { %v4235_v4 = vpop.permute.xlu1 %4234 }
0x154c   :  { %v4239_v47 = vsel %vm942_vm3, %v4238_v5, %v4235_v4  ;;  %v4670_v4 = vld [vmem:[%s9906_s23 + $0x18] sm:$0xff] }
0x154d   :  { %6748 = vmatmul.msk.f32.vlgmr.msrb.gmra.mxu2 %vm418_vm0, %v4239_v47  ;;  %4697 = vmatpush.msra.mxu0 %v4670_v4 }
0x155a   :  { %v4523_v0 = vpop.permute.xlu0 %4522 }
0x155b   :  { %v4533_v35 = vsel %vm536_vm1, %v4300_v54, %v4523_v0 }
0x1584   :  { %v4527_v37 = vpop.permute.xlu1 %4526 }
0x1585   :  { %v4534_v53 = vsel %vm572_vm2, %v4533_v35, %v4527_v37 }
0x158c   :  { %v4531_v22 = vpop.permute.xlu1 %4530 }
0x158d   :  { %v4535_v10 = vsel %vm942_vm3, %v4534_v53, %v4531_v22 }
0x158e   :  { %6749 = vmatmul.msk.f32.gmra.mxu2 %vm418_vm0, %v4535_v10 }
0x15d0   :  { %v4562_v41 = vpop.f32.mrf.mxu2 }
0x15d1   :  { %v4563_v32 = vadd.f32 %v7030_v40, %v4562_v41 }
0x15d3   :  { %v4572_v13 = vadd.f32 %v4563_v32, %v9344_v8  ;;  %v4669_v32 = vld [vmem:[%s9906_s23 + $0x10] sm:$0xff] }
0x15d4   :  { %4698 = vmatpush.msra.mxu0 %v4669_v32 }
0x15d5   :  { %v4574_v44 = vsel %vm418_vm0, %v4572_v13, 0.0 }
0x15d6   :  { %4575 = vadd.xlane.f32.xlu2 %v4574_v44  ;;  %v4667_v44 = vld [vmem:[%s9906_s23] sm:$0xff] }
0x1611   :  { %v4565_v45 = vpop.f32.mrf.mxu2 }
0x1612   :  { %v4566_v39 = vadd.f32 %v7030_v40, %v4565_v45  ;;  %v7033_v45 = vld [vmem:[#allocation26] ss:$0 sm:$0xff] }
0x1614   :  { %v4573_v36 = vadd.f32 %v4566_v39, %v9356_v12  ;;  %v4631_v12 = vld [vmem:[#allocation25 + $0x18] sm:$0xff] }
0x1615   :  { %4654 = vmatpush.msra.mxu3 %v4631_v12 }
0x1616   :  { %v4577_v7 = vsel %vm418_vm0, %v4573_v36, 0.0 }
0x1617   :  { %4578 = vadd.xlane.f32.xlu0 %v4577_v7  ;;  %4655 = vmatpush.msra.mxu3 %v4630_v11 }
0x1619   :  { %4656 = vmatpush.msra.mxu3 %v4629_v23 }
0x161b   :  { %4657 = vmatpush.msra.mxu3 %v4628_v43 }
0x1649   :  { %v4576_v30 = vpop.xlane.xlu2 %4575 }
0x164a   :  { %v4580_v28 = vmul.f32 %v4576_v30, %v8506_v14 }
0x164c   :  { %v4582_v63 = vsub.f32 %v4572_v13, %v4580_v28  ;;  %v4668_v13 = vld [vmem:[%s9906_s23 + $0x8] sm:$0xff] }
0x164d   :  { %4699 = vmatpush.msra.mxu0 %v4668_v13 }
0x164e   :  { %v4584_v49 = vmul.f32 %v4582_v63, %v4582_v63 }
0x164f   :  { %4700 = vmatpush.msra.mxu0 %v4667_v44 }
0x1650   :  { %v4586_v50 = vsel %vm418_vm0, %v4584_v49, 0.0  ;;  %v7034_v49 = vld [vmem:[#allocation28] ss:$0 sm:$0xff] }
0x1651   :  { %4587 = vadd.xlane.f32.xlu1 %v4586_v50 }
0x168a   :  { %v4579_v42 = vpop.xlane.xlu0 %4578 }
0x168b   :  { %v4581_v8 = vmul.f32 %v4579_v42, %v8506_v14 }
0x168d   :  { %v4583_v1 = vsub.f32 %v4573_v36, %v4581_v8 }
0x168f   :  { %v4585_v3 = vmul.f32 %v4583_v1, %v4583_v1 }
0x1691   :  { %v4589_v34 = vsel %vm418_vm0, %v4585_v3, 0.0 }
0x1692   :  { %4590 = vadd.xlane.f32.xlu2 %v4589_v34 }
0x16c4   :  { %v4588_v6 = vpop.xlane.xlu1 %4587 }
0x16c5   :  { %v4592_v21 = vmul.f32 %v4588_v6, %v8506_v14 }
0x16c7   :  { %v4594_v25 = vadd.f32 1e-05, %v4592_v21 }
0x16c9   :  { %7283 = vrsqrt.f32 %v4594_v25  ;;  %vm4602_vm4 = vweird.f32 %v4594_v25 }
0x16cf   :  { %v7284_v24 = vpop.eup %7283 }
0x16d0   :  { %v4597_v33 = vmul.f32 %v7284_v24, %v4594_v25  ;;  %vm4603_vm15 = vweird.f32 %v7284_v24 }
0x16d1   :  { %vm4604_vm6 = vmor %vm4602_vm4, %vm4603_vm15 }
0x16d2   :  { %v4598_v56 = vmul.f32 %v7284_v24, %v4597_v33 }
0x16d4   :  { %v4599_v48 = vmul.f32 0.5, %v4598_v56 }
0x16d6   :  { %v4600_v19 = vsub.f32 1.5, %v4599_v48 }
0x16d8   :  { %v4601_v60 = vmul.f32 %v7284_v24, %v4600_v19 }
0x16da   :  { %v4605_v58 = vsel %vm4604_vm6, %v7284_v24, %v4601_v60  ;;  %v4782_v60 = vld [vmem:[#allocation13 + $0xb8] sm:$0xff] }
0x16db   :  { %v4616_v54 = vmul.f32 %v4605_v58, %v4582_v63  ;;  %4873 = vmatpush.msrb.mxu3 %v4782_v60  ;;  %v4778_v58 = vld [vmem:[#allocation13 + $0x98] sm:$0xff] }
0x16dc   :  { %4841 = vmatpush.msra.mxu2 %v4778_v58 }
0x16dd   :  { %v4621_v15 = vmul.f32 %v7031_v55, %v4616_v54  ;;  %v4773_v54 = vld [vmem:[#allocation13 + $0x70] sm:$0xff] }
0x16df   :  { %v4626_v17 = vadd.f32 %v7032_v46, %v4621_v15  ;;  %v4777_v15 = vld [vmem:[#allocation13 + $0x90] sm:$0xff] }
0x16e0   :  { %4842 = vmatpush.msra.mxu2 %v4777_v15 }
0x16e1   :  { %6750 = vmatmul.msk.f32.vlgmr.msra.gmra.mxu3 %vm418_vm0, %v4626_v17 }
0x16e2   :  { %4843 = vmatpush.msra.mxu2 %v4776_v51 }
0x1705   :  { %v4591_v26 = vpop.xlane.xlu2 %4590 }
0x1706   :  { %v4593_v61 = vmul.f32 %v4591_v26, %v8506_v14  ;;  %v4771_v26 = vld [vmem:[#allocation13 + $0x60] sm:$0xff] }
0x1708   :  { %v4595_v52 = vadd.f32 1e-05, %v4593_v61  ;;  %v4775_v61 = vld [vmem:[#allocation13 + $0x80] sm:$0xff] }
0x1709   :  { %4844 = vmatpush.msra.mxu2 %v4775_v61 }
0x170a   :  { %7285 = vrsqrt.f32 %v4595_v52  ;;  %vm4612_vm8 = vweird.f32 %v4595_v52 }
0x1710   :  { %v7286_v5 = vpop.eup %7285 }
0x1711   :  { %v4607_v47 = vmul.f32 %v7286_v5, %v4595_v52  ;;  %vm4613_vm7 = vweird.f32 %v7286_v5 }
0x1712   :  { %vm4614_vm9 = vmor %vm4612_vm8, %vm4613_vm7 }
0x1713   :  { %v4608_v37 = vmul.f32 %v7286_v5, %v4607_v47 }
0x1715   :  { %v4609_v0 = vmul.f32 0.5, %v4608_v37 }
0x1717   :  { %v4610_v35 = vsub.f32 1.5, %v4609_v0 }
0x1719   :  { %v4611_v53 = vmul.f32 %v7286_v5, %v4610_v35 }
0x171b   :  { %v4615_v22 = vsel %vm4614_vm9, %v7286_v5, %v4611_v53 }
0x171c   :  { %v4617_v10 = vmul.f32 %v4615_v22, %v4583_v1  ;;  %v7035_v22 = vld [vmem:[#allocation29 + $0x2] ss:$0 sm:$0xff] }
0x171e   :  { %v4622_v40 = vmul.f32 %v7031_v55, %v4617_v10  ;;  %v4774_v55 = vld [vmem:[#allocation13 + $0x78] sm:$0xff] }
0x171f   :  { %4815 = vmatpush.msrb.mxu1 %v4774_v55 }
0x1720   :  { %v4627_v41 = vadd.f32 %v7032_v46, %v4622_v40  ;;  %v4781_v46 = vld [vmem:[#allocation13 + $0xb0] sm:$0xff]  ;;  %v7036_v40 = vld [vmem:[#allocation31 + $0x2] ss:$0 sm:$0xff] }
0x1721   :  { %4874 = vmatpush.msrb.mxu3 %v4781_v46  ;;  %4816 = vmatpush.msrb.mxu1 %v4773_v54 }
0x1722   :  { %6751 = vmatmul.msk.f32.gmra.mxu3 %vm418_vm0, %v4627_v41 }
0x1723   :  { %4817 = vmatpush.msrb.mxu1 %v4772_v38 }
0x1725   :  { %4818 = vmatpush.msrb.mxu1 %v4771_v26 }
0x1764   :  { %v4659_v39 = vpop.f32.mrf.mxu3 }
0x1765   :  { %v4660_v36 = vadd.f32 %v7033_v45, %v4659_v39 }
0x1767   :  { %v4665_v7 = vmax.f32 %v4660_v36, 0.0 }
0x1769   :  { %6752 = vmatmul.msk.f32.vlgmr.msra.gmra.mxu0 %vm1575_vm5, %v4665_v7 }
0x17a5   :  { %v4662_v30 = vpop.f32.mrf.mxu3 }
0x17a6   :  { %v4663_v28 = vadd.f32 %v7033_v45, %v4662_v30 }
0x17a8   :  { %v4666_v63 = vmax.f32 %v4663_v28, 0.0 }
0x17aa   :  { %6753 = vmatmul.msk.f32.gmra.mxu0 %vm1575_vm5, %v4666_v63 }
0x17e6   :  { %v4702_v50 = vpop.f32.mrf.mxu0 }
0x17e7   :  { %v4703_v42 = vadd.f32 %v7034_v49, %v4702_v50 }
0x17e9   :  { %v4712_v8 = vadd.f32 %v4703_v42, %v4626_v17  ;;  %v4780_v17 = vld [vmem:[#allocation13 + $0xa8] sm:$0xff] }
0x17ea   :  { %4875 = vmatpush.msrb.mxu3 %v4780_v17 }
0x17eb   :  { %v4714_v1 = vsel %vm418_vm0, %v4712_v8, 0.0 }
0x17ec   :  { %4715 = vadd.xlane.f32.xlu0 %v4714_v1  ;;  %4876 = vmatpush.msrb.mxu3 %v4779_v59 }
0x1827   :  { %v4705_v3 = vpop.f32.mrf.mxu0 }
0x1828   :  { %v4706_v34 = vadd.f32 %v7034_v49, %v4705_v3 }
0x182a   :  { %v4713_v12 = vadd.f32 %v4706_v34, %v4627_v41 }
0x182c   :  { %v4717_v11 = vsel %vm418_vm0, %v4713_v12, 0.0 }
0x182d   :  { %4718 = vadd.xlane.f32.xlu2 %v4717_v11 }
0x185f   :  { %v4716_v23 = vpop.xlane.xlu0 %4715 }
0x1860   :  { %v4720_v43 = vmul.f32 %v4716_v23, %v8506_v14 }
0x1862   :  { %v4722_v6 = vsub.f32 %v4712_v8, %v4720_v43  ;;  %v7038_v43 = vld [vmem:[#allocation14 + $0x5] ss:$0 sm:$0xff] }
0x1864   :  { %v4724_v21 = vmul.f32 %v4722_v6, %v4722_v6 }
0x1866   :  { %v4726_v25 = vsel %vm418_vm0, %v4724_v21, 0.0 }
0x1867   :  { %4727 = vadd.xlane.f32.xlu1 %v4726_v25 }
0x18a0   :  { %v4719_v24 = vpop.xlane.xlu2 %4718 }
0x18a1   :  { %v4721_v33 = vmul.f32 %v4719_v24, %v8506_v14 }
0x18a3   :  { %v9526_v56 = vsub.f32 %v4713_v12, %v4721_v33  ;;  %v7037_v12 = vld [vmem:[#allocation14 + $0x3] ss:$0 sm:$0xff] }
0x18a5   :  { %v4725_v48 = vmul.f32 %v9526_v56, %v9526_v56 }
0x18a7   :  { %v4729_v19 = vsel %vm418_vm0, %v4725_v48, 0.0 }
0x18a8   :  { %4730 = vadd.xlane.f32.xlu0 %v4729_v19 }
0x18da   :  { %v4728_v16 = vpop.xlane.xlu1 %4727 }
0x18db   :  { %v4732_v52 = vmul.f32 %v4728_v16, %v8506_v14 }
0x18dd   :  { %v4734_v4 = vadd.f32 1e-05, %v4732_v52  ;;  %v5528_v52 = vld [vmem:[#allocation19 + $0x98] sm:$0xff] }
0x18df   :  { %7287 = vrsqrt.f32 %v4734_v4  ;;  %vm4742_vm11 = vweird.f32 %v4734_v4 }
0x18e5   :  { %v7288_v5 = vpop.eup %7287 }
0x18e6   :  { %v4737_v47 = vmul.f32 %v7288_v5, %v4734_v4  ;;  %vm4743_vm10 = vweird.f32 %v7288_v5 }
0x18e7   :  { %vm4744_vm12 = vmor %vm4742_vm11, %vm4743_vm10 }
0x18e8   :  { %v4738_v37 = vmul.f32 %v7288_v5, %v4737_v47  ;;  %v5526_v47 = vld [vmem:[#allocation19 + $0x88] sm:$0xff] }
0x18ea   :  { %v4739_v0 = vmul.f32 0.5, %v4738_v37  ;;  %v5525_v37 = vld [vmem:[#allocation19 + $0x80] sm:$0xff] }
0x18ec   :  { %v4740_v35 = vsub.f32 1.5, %v4739_v0 }
0x18ee   :  { %v4741_v53 = vmul.f32 %v7288_v5, %v4740_v35 }
0x18f0   :  { %v4745_v10 = vsel %vm4744_vm12, %v7288_v5, %v4741_v53  ;;  %v5527_v5 = vld [vmem:[#allocation19 + $0x90] sm:$0xff] }
0x18f1   :  { %v4756_v41 = vmul.f32 %v4745_v10, %v4722_v6  ;;  %v7039_v6 = vld [vmem:[#allocation14 + $0x4] ss:$0 sm:$0xff] }
0x18f3   :  { %v4761_v32 = vmul.f32 %v7035_v22, %v4756_v41 }
0x18f5   :  { %v9532_v13 = vadd.f32 %v7036_v40, %v4761_v32 }
0x18f7   :  { %6758 = vmatmul.msk.f32.vlgmr.msrb.gmra.mxu3 %vm418_vm0, %v9532_v13  ;;  %v4768_v44 = vadd.f32 %v9350_v27, %v9532_v13 }
0x18f9   :  { %6754 = vmatmul.msk.f32.vlgmr.msrb.gmra.mxu1 %vm418_vm0, %v4768_v44  ;;  %6756 = vmatmul.msk.f32.vlgmr.msra.gmra.mxu2 %vm418_vm0, %v4768_v44 }
0x191b   :  { %v4731_v45 = vpop.xlane.xlu0 %4730 }
0x191c   :  { %v4733_v39 = vmul.f32 %v4731_v45, %v8506_v14 }
0x191e   :  { %v4735_v36 = vadd.f32 1e-05, %v4733_v39 }
0x1920   :  { %7289 = vrsqrt.f32 %v4735_v36  ;;  %vm4752_vm14 = vweird.f32 %v4735_v36 }
0x1926   :  { %v7290_v7 = vpop.eup %7289 }
0x1927   :  { %v4747_v30 = vmul.f32 %v7290_v7, %v4735_v36  ;;  %vm4753_vm13 = vweird.f32 %v7290_v7 }
0x1928   :  { %vm4754_vm15 = vmor %vm4752_vm14, %vm4753_vm13 }
0x1929   :  { %v4748_v28 = vmul.f32 %v7290_v7, %v4747_v30 }
0x192b   :  { %v4749_v63 = vmul.f32 0.5, %v4748_v28  ;;  %v4791_v28 = vld [vmem:[#allocation16 + $0x38] sm:$0xff] }
0x192d   :  { %v4750_v49 = vsub.f32 1.5, %v4749_v63  ;;  %v4790_v63 = vld [vmem:[#allocation16 + $0x30] sm:$0xff] }
0x192f   :  { %v4751_v50 = vmul.f32 %v7290_v7, %v4750_v49  ;;  %v4789_v49 = vld [vmem:[#allocation16 + $0x28] sm:$0xff] }
0x1931   :  { %v4755_v42 = vsel %vm4754_vm15, %v7290_v7, %v4751_v50  ;;  %v4788_v50 = vld [vmem:[#allocation16 + $0x20] sm:$0xff] }
0x1932   :  { %v4757_v8 = vmul.f32 %v4755_v42, %v9526_v56 }
0x1934   :  { %v4762_v1 = vmul.f32 %v7035_v22, %v4757_v8 }
0x1936   :  { %v9542_v3 = vadd.f32 %v7036_v40, %v4762_v1 }
0x1938   :  { %6759 = vmatmul.msk.f32.gmra.mxu3 %vm418_vm0, %v9542_v3  ;;  %v4769_v34 = vadd.f32 %v9350_v27, %v9542_v3 }
0x193a   :  { %6755 = vmatmul.msk.f32.gmra.mxu1 %vm418_vm0, %v4769_v34  ;;  %6757 = vmatmul.msk.f32.gmra.mxu2 %vm418_vm0, %v4769_v34 }
0x1976   :  { %v4820_v11 = vpop.f32.mrf.mxu1 }
0x1977   :  { %v4821_v23 = vadd.f32 %v7037_v12, %v4820_v11 }
0x1979   :  { %4944 = vrot.lane.b32.xlu1 %v4821_v23, %s7906_s15 }
0x197a   :  { %v4878_v21 = vpop.f32.mrf.mxu3 }
0x197b   :  { %v9551_v25 = vadd.f32 %v7038_v43, %v4878_v21 }
0x197c   :  { %v4846_v24 = vpop.f32.mrf.mxu2 }
0x197d   :  { %v4847_v33 = vadd.f32 %v7039_v6, %v4846_v24  ;;  %4939 = vmatpush.msrb.mxu0 %v9551_v25 }
0x197f   :  { %5012 = vrot.lane.b32.xlu0 %v4847_v33, %s7905_s28  ;;  %4946 = vrot.lane.b32.xlu2 %v4847_v33, %s7906_s15 }
0x1980   :  { %6760 = vmatpush.xpose.msk.msra.mxu1 %vm536_vm1, %v4847_v33 }
0x1981   :  { %5010 = vrot.lane.b32.xlu1 %v4821_v23, %s7905_s28 }
0x1983   :  { %6761 = vmatmul.msk.f32.vlgmr.msra.gmra.mxu1 %vm536_vm1, %v4821_v23 }
0x1987   :  { %5077 = vrot.lane.b32.xlu2 %v4847_v33, %s7907_s6  ;;  %5075 = vrot.lane.b32.xlu0 %v4821_v23, %s7907_s6 }
0x19b7   :  { %v4823_v27 = vpop.f32.mrf.mxu1 }
0x19b8   :  { %v4824_v56 = vadd.f32 %v7037_v12, %v4823_v27 }
0x19ba   :  { %5215 = vrot.lane.b32.xlu1 %v4824_v56, %s7906_s15 }
0x19bb   :  { %v4881_v60 = vpop.f32.mrf.mxu3 }
0x19bc   :  { %v9567_v55 = vadd.f32 %v7038_v43, %v4881_v60  ;;  %v9606_v43 = vld [vmem:[#allocation20 + $0x4] ss:$0 sm:$0xff] }
0x19bd   :  { %v4849_v48 = vpop.f32.mrf.mxu2 }
0x19be   :  { %v4850_v19 = vadd.f32 %v7039_v6, %v4849_v48  ;;  %v6966_v58 = vpack.i.bf16 %v9567_v55, %v9551_v25 }
0x19c0   :  { %5283 = vrot.lane.b32.xlu0 %v4850_v19, %s7905_s28  ;;  %5217 = vrot.lane.b32.xlu2 %v4850_v19, %s7906_s15 }
0x19c2   :  { %5281 = vrot.lane.b32.xlu1 %v4824_v56, %s7905_s28 }
0x19c8   :  { %5348 = vrot.lane.b32.xlu2 %v4850_v19, %s7907_s6  ;;  %5346 = vrot.lane.b32.xlu0 %v4824_v56, %s7907_s6 }
0x19d0   :  { %6967 = vrot.lane.b32.xlu0 %v6966_v58, %s7906_s15 }
0x19d9   :  { %v4947_v46 = vpop.permute.xlu2 %4946 }
0x19da   :  { %6763 = vmatpush.xpose.msk.msrb.mxu1 %vm536_vm1, %v4947_v46 }
0x19e1   :  { %v5078_v54 = vpop.permute.xlu2 %5077 }
0x19e2   :  { %6769 = vmatpush.xpose.msk.msra.mxu1 %vm536_vm1, %v5078_v54 }
0x19eb   :  { %v4945_v15 = vpop.permute.xlu1 %4944 }
0x19ec   :  { %6764 = vmatmul.msk.f32.vlgmr.msrb.gmra.mxu1 %vm536_vm1, %v4945_v15 }
0x19f1   :  { %v5013_v17 = vpop.permute.xlu0 %5012 }
0x19f2   :  { %6766 = vmatpush.xpose.msk.msra.mxu3 %vm536_vm1, %v5013_v17 }
0x19f3   :  { %v5011_v38 = vpop.permute.xlu1 %5010 }
0x19f5   :  { %6767 = vmatmul.msk.f32.vlgmr.msra.gmra.mxu3 %vm536_vm1, %v5011_v38 }
0x19f6   :  { %6772 = vmatpush.xpose.msk.msrb.mxu3 %vm536_vm1, %v4850_v19 }
0x19f9   :  { %v5076_v51 = vpop.permute.xlu0 %5075 }
0x19fa   :  { %6770 = vmatmul.msk.f32.vlgmr.msra.gmra.mxu1 %vm536_vm1, %v5076_v51 }
0x19fd   :  { %6773 = vmatmul.msk.f32.vlgmr.msrb.gmra.mxu3 %vm536_vm1, %v4824_v56 }
0x1a00   :  { %v4907_v59 = vpop.f32.mrf.mxu1 }
0x1a01   :  { %v4910_v26 = vsel %vm536_vm1, %v4907_v59, -inf }
0x1a02   :  { %4911 = vmax.xlane.f32.xlu1 %v4910_v26 }
0x1a1a   :  { %v5218_v61 = vpop.permute.xlu2 %5217 }
0x1a1b   :  { %6775 = vmatpush.xpose.msk.msrb.mxu1 %vm536_vm1, %v5218_v61 }
0x1a22   :  { %v5349_v16 = vpop.permute.xlu2 %5348 }
0x1a23   :  { %6781 = vmatpush.xpose.msk.msra.mxu1 %vm536_vm1, %v5349_v16 }
0x1a2c   :  { %v5216_v4 = vpop.permute.xlu1 %5215 }
0x1a2d   :  { %6776 = vmatmul.msk.f32.vlgmr.msrb.gmra.mxu1 %vm536_vm1, %v5216_v4 }
0x1a2e   :  { %5591 = vmatpush.msrb.mxu1 %v5528_v52 }
0x1a30   :  { %5592 = vmatpush.msrb.mxu1 %v5527_v5 }
0x1a32   :  { %v5284_v0 = vpop.permute.xlu0 %5283  ;;  %5593 = vmatpush.msrb.mxu1 %v5526_v47 }
0x1a33   :  { %6778 = vmatpush.xpose.msk.msra.mxu3 %vm536_vm1, %v5284_v0 }
0x1a34   :  { %v5282_v35 = vpop.permute.xlu1 %5281  ;;  %5594 = vmatpush.msrb.mxu1 %v5525_v37 }
0x1a36   :  { %6779 = vmatmul.msk.f32.vlgmr.msra.gmra.mxu3 %vm536_vm1, %v5282_v35 }
0x1a37   :  { %5447 = vmatpush.msrb.mxu3 %v4791_v28 }
0x1a39   :  { %5448 = vmatpush.msrb.mxu3 %v4790_v63 }
0x1a3a   :  { %v5347_v53 = vpop.permute.xlu0 %5346 }
0x1a3b   :  { %6782 = vmatmul.msk.f32.vlgmr.msra.gmra.mxu1 %vm536_vm1, %v5347_v53  ;;  %5449 = vmatpush.msrb.mxu3 %v4789_v49 }
0x1a3d   :  { %5450 = vmatpush.msrb.mxu3 %v4788_v50 }
0x1a42   :  { %v9587_v22 = vpop.permute.xlu0 %6967 }
0x1a43   :  { %v6969_v10 = vunpack.i.l.bf16 %v9587_v22  ;;  %6788 = vmatmul.msk.f32.vlgmr.msrb.gmra.mxu1 %vm418_vm0, %v9280_v31  ;;  %v6970_v49 = vunpack.i.h.bf16 %v9587_v22 }
0x1a45   :  { %5005 = vmatpush.msrb.mxu2 %v6969_v10 }
0x1a4b   :  { %6789 = vmatmul.msk.f32.gmra.mxu1 %vm418_vm0, %v9290_v2 }
0x1a53   :  { %6790 = vmatmul.msk.f32.gmra.mxu1 %vm418_vm0, %v9300_v20 }
0x1a5b   :  { %6791 = vmatmul.msk.f32.gmra.mxu1 %vm418_vm0, %v9309_v18 }
0x1a69   :  { %v4969_v40 = vpop.f32.mrf.mxu1 }
0x1a6a   :  { %v4972_v41 = vsel %vm536_vm1, %v4969_v40, -inf }
0x1a6b   :  { %4973 = vmax.xlane.f32.xlu2 %v4972_v41 }
0x1a75   :  { %v4912_v32 = vpop.xlane.xlu1 %4911 }
0x1a76   :  { %v4913_v44 = vsub.f32 %v4907_v59, %v4912_v32 }
0x1a77   :  { %v5100_v45 = vpop.f32.mrf.mxu1 }
0x1a78   :  { %v4914_v39 = vmul.f32 1.442695, %v4913_v44  ;;  %v5035_v36 = vpop.f32.mrf.mxu3  ;;  %v5103_v31 = vsel %vm536_vm1, %v5100_v45, -inf }
0x1a79   :  { %5104 = vmax.xlane.f32.xlu0 %v5103_v31  ;;  %v5038_v2 = vsel %vm536_vm1, %v5035_v36, -inf }
0x1a7a   :  { %7291 = vpow2.f32 %v4914_v39  ;;  %5039 = vmax.xlane.f32.xlu2 %v5038_v2 }
0x1a80   :  { %v7292_v20 = vpop.eup %7291  ;;  %v5178_v7 = vpop.f32.mrf.mxu3 }
0x1a81   :  { %v4916_v18 = vsel %vm536_vm1, %v7292_v20, 0.0  ;;  %v5181_v30 = vsel %vm536_vm1, %v5178_v7, -inf }
0x1a82   :  { %4917 = vadd.xlane.f32.xlu2 %v4916_v18  ;;  %5182 = vmax.xlane.f32.xlu0 %v5181_v30 }
0x1aaa   :  { %v5240_v42 = vpop.f32.mrf.mxu1 }
0x1aab   :  { %v5243_v8 = vsel %vm536_vm1, %v5240_v42, -inf }
0x1aac   :  { %5244 = vmax.xlane.f32.xlu1 %v5243_v8 }
0x1ab8   :  { %v5371_v1 = vpop.f32.mrf.mxu1 }
0x1ab9   :  { %v5306_v34 = vpop.f32.mrf.mxu3  ;;  %v5374_v12 = vsel %vm536_vm1, %v5371_v1, -inf }
0x1aba   :  { %5375 = vmax.xlane.f32.xlu2 %v5374_v12  ;;  %v5309_v11 = vsel %vm536_vm1, %v5306_v34, -inf }
0x1abb   :  { %5310 = vmax.xlane.f32.xlu1 %v5309_v11 }
0x1ac0   :  { %v5596_v23 = vpop.f32.mrf.mxu1 }
0x1ac1   :  { %v9614_v24 = vadd.f32 %v9606_v43, %v5596_v23 }
0x1ac8   :  { %v5599_v6 = vpop.f32.mrf.mxu1 }
0x1ac9   :  { %v9609_v21 = vadd.f32 %v9606_v43, %v5599_v6 }
0x1acb   :  { %6796 = vmatpush.xpose.msk.msra.mxu3 %vm536_vm1, %v9609_v21 }
0x1acf   :  { %6797 = vmatpush.xpose.msk.msra.mxu3 %vm536_vm1, %v9614_v24 }
0x1ad4   :  { %5114 = vrot.lane.b32.xlu1 %v9551_v25, %s7907_s6 }
0x1ade   :  { %v4974_v33 = vpop.xlane.xlu2 %4973 }
0x1adf   :  { %v4975_v27 = vsub.f32 %v4969_v40, %v4974_v33 }
0x1ae1   :  { %v4976_v56 = vmul.f32 1.442695, %v4975_v27 }
0x1ae3   :  { %7293 = vpow2.f32 %v4976_v56 }
0x1ae9   :  { %v7294_v48 = vpop.eup %7293 }
0x1aea   :  { %v4978_v19 = vsel %vm536_vm1, %v7294_v48, 0.0 }
0x1aeb   :  { %4979 = vadd.xlane.f32.xlu0 %v4978_v19  ;;  %v5531_v19 = vld [vmem:[#allocation19 + $0xb0] sm:$0xff] }
0x1aec   :  { %v5105_v60 = vpop.xlane.xlu0 %5104 }
0x1aed   :  { %v5106_v58 = vsub.f32 %v5100_v45, %v5105_v60  ;;  %v5040_v46 = vpop.xlane.xlu2 %5039  ;;  %v5530_v60 = vld [vmem:[#allocation19 + $0xa8] sm:$0xff] }
0x1aee   :  { %v5041_v54 = vsub.f32 %v5035_v36, %v5040_v46  ;;  %v5529_v46 = vld [vmem:[#allocation19 + $0xa0] sm:$0xff] }
0x1aef   :  { %v5107_v15 = vmul.f32 1.442695, %v5106_v58 }
0x1af0   :  { %v5042_v17 = vmul.f32 1.442695, %v5041_v54 }
0x1af2   :  { %7295 = vpow2.f32 %v5042_v17 }
0x1af3   :  { %7297 = vpow2.f32 %v5107_v15 }
0x1af5   :  { %v4918_v38 = vpop.xlane.xlu2 %4917  ;;  %v5183_v51 = vpop.xlane.xlu0 %5182 }
0x1af6   :  { %7299 = vrcp.f32 %v4918_v38  ;;  %v5184_v59 = vsub.f32 %v5178_v7, %v5183_v51 }
0x1af8   :  { %v7296_v26 = vpop.eup %7295  ;;  %v5185_v61 = vmul.f32 1.442695, %v5184_v59 }
0x1af9   :  { %v5044_v16 = vsel %vm536_vm1, %v7296_v26, 0.0  ;;  %v7298_v52 = vpop.eup %7297 }
0x1afa   :  { %7301 = vpow2.f32 %v5185_v61  ;;  %5045 = vadd.xlane.f32.xlu2 %v5044_v16  ;;  %v5109_v47 = vsel %vm536_vm1, %v7298_v52, 0.0 }
0x1afc   :  { %v7300_v4 = vpop.eup %7299 }
0x1afd   :  { %v4920_v5 = vmul.f32 %v7300_v4, %v7292_v20  ;;  %v5523_v4 = vld [vmem:[#allocation19 + $0x70] sm:$0xff] }
0x1afe   :  { %5110 = vadd.xlane.f32.xlu1 %v5109_v47 }
0x1aff   :  { %6762 = vmatmul.msk.f32.vlgmr.msrb.gmra.mxu0 %vm536_vm1, %v4920_v5  ;;  %5049 = vrot.lane.b32.xlu0 %v9551_v25, %s7905_s28 }
0x1b00   :  { %v7302_v37 = vpop.eup %7301 }
0x1b01   :  { %v5187_v0 = vsel %vm536_vm1, %v7302_v37, 0.0 }
0x1b02   :  { %5188 = vadd.xlane.f32.xlu2 %v5187_v0 }
0x1b17   :  { %5385 = vrot.lane.b32.xlu1 %v9567_v55, %s7907_s6 }
0x1b1f   :  { %v5245_v35 = vpop.xlane.xlu1 %5244 }
0x1b20   :  { %v5246_v53 = vsub.f32 %v5240_v42, %v5245_v35  ;;  %v9657_v35 = vld [vmem:[#allocation20 + $0x5] ss:$0 sm:$0xff] }
0x1b22   :  { %v5247_v10 = vmul.f32 1.442695, %v5246_v53 }
0x1b24   :  { %7303 = vpow2.f32 %v5247_v10 }
0x1b2a   :  { %v7304_v40 = vpop.eup %7303 }
0x1b2b   :  { %v5249_v41 = vsel %vm536_vm1, %v7304_v40, 0.0 }
0x1b2c   :  { %5250 = vadd.xlane.f32.xlu2 %v5249_v41 }
0x1b2d   :  { %v5376_v32 = vpop.xlane.xlu2 %5375 }
0x1b2e   :  { %v5377_v44 = vsub.f32 %v5371_v1, %v5376_v32  ;;  %v5311_v45 = vpop.xlane.xlu1 %5310 }
0x1b2f   :  { %v5312_v39 = vsub.f32 %v5306_v34, %v5311_v45 }
0x1b30   :  { %v5378_v25 = vmul.f32 1.442695, %v5377_v44 }
0x1b31   :  { %v5313_v36 = vmul.f32 1.442695, %v5312_v39 }
0x1b32   :  { %7305 = vpow2.f32 %v5378_v25 }
0x1b33   :  { %7307 = vpow2.f32 %v5313_v36 }
0x1b38   :  { %v7306_v31 = vpop.eup %7305 }
0x1b39   :  { %v7308_v2 = vpop.eup %7307  ;;  %v5380_v20 = vsel %vm536_vm1, %v7306_v31, 0.0 }
0x1b3a   :  { %5381 = vadd.xlane.f32.xlu0 %v5380_v20  ;;  %v5315_v7 = vsel %vm536_vm1, %v7308_v2, 0.0 }
0x1b3b   :  { %5316 = vadd.xlane.f32.xlu2 %v5315_v7 }
0x1b46   :  { %v5115_v18 = vpop.permute.xlu1 %5114 }
0x1b47   :  { %5135 = vmatpush.msra.mxu2 %v5115_v18 }
0x1b53   :  { %5320 = vrot.lane.b32.xlu2 %v9567_v55, %s7905_s28 }
0x1b5e   :  { %v4980_v30 = vpop.xlane.xlu0 %4979 }
0x1b5f   :  { %7309 = vrcp.f32 %v4980_v30 }
0x1b65   :  { %v7310_v28 = vpop.eup %7309 }
0x1b66   :  { %v4982_v63 = vmul.f32 %v7310_v28, %v7294_v48  ;;  %v5532_v48 = vld [vmem:[#allocation19 + $0xb8] sm:$0xff] }
0x1b67   :  { %v7042_v28 = vld [vmem:[#allocation17 + $0x1] ss:$0 sm:$0xff] }
0x1b68   :  { %6765 = vmatmul.msk.f32.vlgmr.msrb.gmra.mxu2 %vm536_vm1, %v4982_v63 }
0x1b69   :  { %5276 = vmatpush.msrb.mxu2 %v6970_v49 }
0x1b6d   :  { %v5046_v50 = vpop.xlane.xlu2 %5045 }
0x1b6e   :  { %7311 = vrcp.f32 %v5046_v50 }
0x1b71   :  { %v5111_v42 = vpop.xlane.xlu1 %5110  ;;  %v5050_v8 = vpop.permute.xlu0 %5049 }
0x1b72   :  { %7313 = vrcp.f32 %v5111_v42  ;;  %5070 = vmatpush.msra.mxu0 %v5050_v8 }
0x1b74   :  { %5210 = vmatpush.msrb.mxu0 %v9567_v55  ;;  %v7312_v1 = vpop.eup %7311 }
0x1b75   :  { %v5048_v34 = vmul.f32 %v7312_v1, %v7296_v26  ;;  %v5189_v12 = vpop.xlane.xlu2 %5188 }
0x1b76   :  { %7315 = vrcp.f32 %v5189_v12 }
0x1b77   :  { %6768 = vmatmul.msk.f32.vlgmr.msra.gmra.mxu0 %vm536_vm1, %v5048_v34 }
0x1b78   :  { %v7314_v11 = vpop.eup %7313 }
0x1b79   :  { %v5113_v23 = vmul.f32 %v7314_v11, %v7298_v52  ;;  %v5602_v11 = vpop.f32.mrf.mxu1 }
0x1b7b   :  { %6771 = vmatmul.msk.f32.vlgmr.msra.gmra.mxu2 %vm536_vm1, %v5113_v23  ;;  %v9678_v23 = vadd.f32 %v9606_v43, %v5602_v11 }
0x1b7c   :  { %v7316_v22 = vpop.eup %7315  ;;  %v4941_v61 = vpop.f32.mrf.mxu0 }
0x1b7d   :  { %v5191_v6 = vmul.f32 %v7316_v22, %v7302_v37 }
0x1b7f   :  { %6774 = vmatmul.msk.f32.vlgmr.msrb.gmra.mxu0 %vm536_vm1, %v5191_v6 }
0x1b89   :  { %v5386_v33 = vpop.permute.xlu1 %5385 }
0x1b8a   :  { %5406 = vmatpush.msra.mxu2 %v5386_v33 }
0x1b9f   :  { %v5251_v27 = vpop.xlane.xlu2 %5250 }
0x1ba0   :  { %7317 = vrcp.f32 %v5251_v27  ;;  %v5605_v27 = vpop.f32.mrf.mxu1 }
0x1ba6   :  { %v7318_v56 = vpop.eup %7317 }
0x1ba7   :  { %v5253_v55 = vmul.f32 %v7318_v56, %v7304_v40  ;;  %v9687_v56 = vadd.f32 %v9606_v43, %v5605_v27 }
0x1ba9   :  { %6777 = vmatmul.msk.f32.vlgmr.msrb.gmra.mxu2 %vm536_vm1, %v5253_v55 }
0x1baa   :  { %5623 = vmatpush.msrb.mxu2 %v5532_v48 }
0x1bac   :  { %5624 = vmatpush.msrb.mxu2 %v5531_v19 }
0x1bad   :  { %v5382_v58 = vpop.xlane.xlu0 %5381 }
0x1bae   :  { %7319 = vrcp.f32 %v5382_v58  ;;  %v5317_v54 = vpop.xlane.xlu2 %5316  ;;  %5625 = vmatpush.msrb.mxu2 %v5530_v60 }
0x1baf   :  { %7321 = vrcp.f32 %v5317_v54 }
0x1bb0   :  { %5626 = vmatpush.msrb.mxu2 %v5529_v46 }
0x1bb4   :  { %v7320_v15 = vpop.eup %7319 }
0x1bb5   :  { %v7322_v17 = vpop.eup %7321  ;;  %v5384_v38 = vmul.f32 %v7320_v15, %v7306_v31 }
0x1bb6   :  { %v5319_v51 = vmul.f32 %v7322_v17, %v7308_v2  ;;  %v5321_v59 = vpop.permute.xlu2 %5320 }
0x1bb7   :  { %5341 = vmatpush.msra.mxu0 %v5321_v59  ;;  %6783 = vmatmul.msk.f32.vlgmr.msra.gmra.mxu2 %vm536_vm1, %v5384_v38 }
0x1bb8   :  { %6780 = vmatmul.msk.f32.vlgmr.msra.gmra.mxu0 %vm536_vm1, %v5319_v51 }
0x1bbf   :  { %6792 = vmatmul.msk.f32.vlgmr.msrb.gmra.mxu2 %vm418_vm0, %v9275_v57  ;;  %v5524_v57 = vld [vmem:[#allocation19 + $0x78] sm:$0xff] }
0x1bc0   :  { %5565 = vmatpush.msrb.mxu0 %v5524_v57 }
0x1bc2   :  { %5566 = vmatpush.msrb.mxu0 %v5523_v4 }
0x1bc7   :  { %6793 = vmatmul.msk.f32.gmra.mxu2 %vm418_vm0, %v9285_v29  ;;  %v5522_v29 = vld [vmem:[#allocation19 + $0x68] sm:$0xff] }
0x1bc8   :  { %5567 = vmatpush.msrb.mxu0 %v5522_v29  ;;  %v7379_v29 = vld [vmem:[%s9944_s18] sm:$0xff] }
0x1bcf   :  { %6794 = vmatmul.msk.f32.gmra.mxu2 %vm418_vm0, %v9295_v62  ;;  %v5521_v62 = vld [vmem:[#allocation19 + $0x60] sm:$0xff] }
0x1bd0   :  { %5568 = vmatpush.msrb.mxu0 %v5521_v62 }
0x1bd7   :  { %6795 = vmatmul.msk.f32.gmra.mxu2 %vm418_vm0, %v9304_v9 }
0x1beb   :  { %v5007_v26 = vpop.f32.mrf.mxu2 }
0x1bec   :  { %5141 = vrot.lane.b32.xlu1 %v5007_v26, %s7884_s0 }
0x1bf4   :  { %v5072_v16 = vpop.f32.mrf.mxu0 }
0x1bf5   :  { %5145 = vrot.lane.b32.xlu1 %v5072_v16, %s7886_s8  ;;  %v7044_v16 = vld [vmem:[#allocation31 + $0x3] ss:$0 sm:$0xff] }
0x1bfc   :  { %v5212_v9 = vpop.f32.mrf.mxu0 }
0x1bfe   :  { %v5137_v52 = vpop.f32.mrf.mxu2 }
0x1bff   :  { %5149 = vrot.lane.b32.xlu1 %v5137_v52, %s7908_s17 }
0x1c2c   :  { %v5278_v5 = vpop.f32.mrf.mxu2 }
0x1c2d   :  { %5412 = vrot.lane.b32.xlu2 %v5278_v5, %s7884_s0 }
0x1c35   :  { %v5343_v47 = vpop.f32.mrf.mxu0 }
0x1c36   :  { %5416 = vrot.lane.b32.xlu1 %v5343_v47, %s7886_s8 }
0x1c3a   :  { %v5408_v37 = vpop.f32.mrf.mxu2 }
0x1c3b   :  { %5420 = vrot.lane.b32.xlu2 %v5408_v37, %s7908_s17 }
0x1c42   :  { %v5628_v0 = vpop.f32.mrf.mxu2 }
0x1c43   :  { %v5629_v10 = vadd.f32 %v9657_v35, %v5628_v0 }
0x1c4a   :  { %v5631_v53 = vpop.f32.mrf.mxu2 }
0x1c4b   :  { %v5632_v40 = vadd.f32 %v9657_v35, %v5631_v53 }
0x1c4d   :  { %5697 = vmatpush.msra.mxu0 %v5632_v40  ;;  %v9661_v41 = vpack.i.bf16 %v5629_v10, %v5632_v40 }
0x1c4f   :  { %5698 = vmatpush.msra.mxu0 %v5629_v10 }
0x1c5e   :  { %v5142_v32 = vpop.permute.xlu1 %5141 }
0x1c5f   :  { %v5152_v45 = vsel %vm536_vm1, %v4941_v61, %v5142_v32 }
0x1c67   :  { %v5146_v44 = vpop.permute.xlu1 %5145 }
0x1c68   :  { %v5153_v39 = vsel %vm572_vm2, %v5152_v45, %v5146_v44 }
0x1c71   :  { %v5150_v25 = vpop.permute.xlu1 %5149 }
0x1c72   :  { %v5154_v36 = vsel %vm942_vm3, %v5153_v39, %v5150_v25 }
0x1c73   :  { %6784 = vmatmul.msk.f32.vlgmr.msrb.gmra.mxu3 %vm418_vm0, %v5154_v36 }
0x1c87   :  { %v5413_v31 = vpop.permute.xlu2 %5412 }
0x1c88   :  { %v5423_v2 = vsel %vm536_vm1, %v5212_v9, %v5413_v31 }
0x1c95   :  { %v5421_v7 = vpop.permute.xlu2 %5420 }
0x1ca8   :  { %v5417_v20 = vpop.permute.xlu1 %5416 }
0x1ca9   :  { %v5424_v18 = vsel %vm572_vm2, %v5423_v2, %v5417_v20 }
0x1caa   :  { %v5425_v30 = vsel %vm942_vm3, %v5424_v18, %v5421_v7 }
0x1cab   :  { %6785 = vmatmul.msk.f32.gmra.mxu3 %vm418_vm0, %v5425_v30 }
0x1cf6   :  { %v5452_v63 = vpop.f32.mrf.mxu3 }
0x1cf7   :  { %v5453_v49 = vadd.f32 %v7042_v28, %v5452_v63 }
0x1cf9   :  { %v5462_v50 = vadd.f32 %v5453_v49, %v9532_v13 }
0x1cfb   :  { %v5464_v42 = vsel %vm418_vm0, %v5462_v50, 0.0 }
0x1cfc   :  { %5465 = vadd.xlane.f32.xlu0 %v5464_v42 }
0x1d2e   :  { %v5455_v8 = vpop.f32.mrf.mxu3 }
0x1d2f   :  { %v5456_v1 = vadd.f32 %v7042_v28, %v5455_v8  ;;  %v7045_v28 = vld [vmem:[#allocation20 + $0x3] ss:$0 sm:$0xff] }
0x1d31   :  { %v5463_v34 = vadd.f32 %v5456_v1, %v9542_v3 }
0x1d33   :  { %v5467_v12 = vsel %vm418_vm0, %v5463_v34, 0.0 }
0x1d34   :  { %5468 = vadd.xlane.f32.xlu1 %v5467_v12 }
0x1d4d   :  { %5781 = vrot.lane.b32.xlu1 %v9609_v21, %s7905_s28 }
0x1d55   :  { %6075 = vrot.lane.b32.xlu1 %v9678_v23, %s7905_s28 }
0x1d6f   :  { %v5466_v13 = vpop.xlane.xlu0 %5465 }
0x1d70   :  { %v5470_v22 = vmul.f32 %v5466_v13, %v8506_v14 }
0x1d72   :  { %v5472_v6 = vsub.f32 %v5462_v50, %v5470_v22 }
0x1d74   :  { %v5474_v33 = vmul.f32 %v5472_v6, %v5472_v6 }
0x1d76   :  { %v5476_v3 = vsel %vm418_vm0, %v5474_v33, 0.0 }
0x1d77   :  { %5477 = vadd.xlane.f32.xlu2 %v5476_v3 }
0x1d8f   :  { %5853 = vrot.lane.b32.xlu2 %v9609_v21, %s7907_s6 }
0x1d97   :  { %6003 = vrot.lane.b32.xlu2 %v9687_v56, %s7906_s15 }
0x1d9f   :  { %6077 = vrot.lane.b32.xlu2 %v9687_v56, %s7905_s28 }
0x1da7   :  { %6147 = vrot.lane.b32.xlu2 %v9678_v23, %s7907_s6  ;;  %v5469_v55 = vpop.xlane.xlu1 %5468 }
0x1da8   :  { %v5471_v48 = vmul.f32 %v5469_v55, %v8506_v14 }
0x1daa   :  { %v5473_v19 = vsub.f32 %v5463_v34, %v5471_v48 }
0x1dac   :  { %v5475_v60 = vmul.f32 %v5473_v19, %v5473_v19 }
0x1dae   :  { %v5479_v58 = vsel %vm418_vm0, %v5475_v60, 0.0 }
0x1daf   :  { %5480 = vadd.xlane.f32.xlu0 %v5479_v58 }
0x1dbf   :  { %v5782_v50 = vpop.permute.xlu1 %5781 }
0x1dc3   :  { %5707 = vrot.lane.b32.xlu0 %v9609_v21, %s7906_s15 }
0x1dc7   :  { %v6076_v1 = vpop.permute.xlu1 %6075 }
0x1dcb   :  { %5705 = vrot.lane.b32.xlu0 %v9614_v24, %s7906_s15 }
0x1dd3   :  { %5779 = vrot.lane.b32.xlu0 %v9614_v24, %s7905_s28 }
0x1ddb   :  { %5851 = vrot.lane.b32.xlu0 %v9614_v24, %s7907_s6  ;;  %v7043_v24 = vld [vmem:[#allocation29 + $0x3] ss:$0 sm:$0xff] }
0x1de3   :  { %6001 = vrot.lane.b32.xlu0 %v9678_v23, %s7906_s15 }
0x1dea   :  { %v5478_v43 = vpop.xlane.xlu2 %5477 }
0x1deb   :  { %v5482_v46 = vmul.f32 %v5478_v43, %v8506_v14 }
0x1ded   :  { %v5484_v54 = vadd.f32 1e-05, %v5482_v46 }
0x1def   :  { %7323 = vrsqrt.f32 %v5484_v54  ;;  %vm5492_vm6 = vweird.f32 %v5484_v54 }
0x1df2   :  { %v5854_v15 = vpop.permute.xlu2 %5853 }
0x1df3   :  { %6808 = vmatpush.xpose.msk.msra.mxu1 %vm536_vm1, %v5854_v15 }
0x1df5   :  { %v7324_v21 = vpop.eup %7323 }
0x1df6   :  { %v5487_v17 = vmul.f32 %v7324_v21, %v5484_v54  ;;  %vm5493_vm4 = vweird.f32 %v7324_v21 }
0x1df7   :  { %vm5494_vm7 = vmor %vm5492_vm6, %vm5493_vm4 }
0x1df8   :  { %v5488_v38 = vmul.f32 %v7324_v21, %v5487_v17 }
0x1dfa   :  { %v5489_v51 = vmul.f32 0.5, %v5488_v38  ;;  %v6004_v18 = vpop.permute.xlu2 %6003 }
0x1dfc   :  { %v5490_v59 = vsub.f32 1.5, %v5489_v51 }
0x1dfe   :  { %v5491_v26 = vmul.f32 %v7324_v21, %v5490_v59 }
0x1e00   :  { %v5495_v61 = vsel %vm5494_vm7, %v7324_v21, %v5491_v26 }
0x1e01   :  { %v5506_v52 = vmul.f32 %v5495_v61, %v5472_v6 }
0x1e02   :  { %v6078_v13 = vpop.permute.xlu2 %6077 }
0x1e03   :  { %v5511_v57 = vmul.f32 %v7043_v24, %v5506_v52 }
0x1e05   :  { %v9709_v4 = vadd.f32 %v7044_v16, %v5511_v57 }
0x1e07   :  { %v5518_v62 = vadd.f32 %v7379_v29, %v9709_v4 }
0x1e09   :  { %6786 = vmatmul.msk.f32.vlgmr.msrb.gmra.mxu0 %vm418_vm0, %v5518_v62 }
0x1e0a   :  { %v6148_v3 = vpop.permute.xlu2 %6147 }
0x1e22   :  { %v5481_v5 = vpop.xlane.xlu0 %5480 }
0x1e23   :  { %v5483_v9 = vmul.f32 %v5481_v5, %v8506_v14 }
0x1e25   :  { %v5485_v47 = vadd.f32 1e-05, %v5483_v9 }
0x1e27   :  { %7325 = vrsqrt.f32 %v5485_v47  ;;  %vm5502_vm9 = vweird.f32 %v5485_v47 }
0x1e2d   :  { %v7326_v37 = vpop.eup %7325 }
0x1e2e   :  { %v5497_v0 = vmul.f32 %v7326_v37, %v5485_v47  ;;  %vm5503_vm8 = vweird.f32 %v7326_v37 }
0x1e2f   :  { %vm5504_vm10 = vmor %vm5502_vm9, %vm5503_vm8 }
0x1e30   :  { %v5498_v53 = vmul.f32 %v7326_v37, %v5497_v0 }
0x1e32   :  { %v5499_v10 = vmul.f32 0.5, %v5498_v53  ;;  %v5634_v53 = vpop.f32.mrf.mxu2 }
0x1e34   :  { %v5500_v40 = vsub.f32 1.5, %v5499_v10 }
0x1e35   :  { %v5708_v32 = vpop.permute.xlu0 %5707 }
0x1e36   :  { %v5501_v44 = vmul.f32 %v7326_v37, %v5500_v40  ;;  %6800 = vmatpush.xpose.msk.msrb.mxu3 %vm536_vm1, %v5708_v32 }
0x1e38   :  { %v5505_v45 = vsel %vm5504_vm10, %v7326_v37, %v5501_v44 }
0x1e39   :  { %v5507_v39 = vmul.f32 %v5505_v45, %v5473_v19 }
0x1e3b   :  { %v5512_v25 = vmul.f32 %v7043_v24, %v5507_v39 }
0x1e3d   :  { %v5706_v36 = vpop.permute.xlu0 %5705  ;;  %v9718_v31 = vadd.f32 %v7044_v16, %v5512_v25  ;;  %v5637_v25 = vpop.f32.mrf.mxu2 }
0x1e3e   :  { %6801 = vmatpush.xpose.msk.msrb.mxu3 %vm536_vm1, %v5706_v36 }
0x1e3f   :  { %v5519_v2 = vadd.f32 %v7379_v29, %v9718_v31 }
0x1e41   :  { %6787 = vmatmul.msk.f32.gmra.mxu0 %vm418_vm0, %v5519_v2 }
0x1e45   :  { %v5780_v20 = vpop.permute.xlu0 %5779 }
0x1e4d   :  { %v5852_v7 = vpop.permute.xlu0 %5851 }
0x1e4e   :  { %6809 = vmatpush.xpose.msk.msra.mxu1 %vm536_vm1, %v5852_v7  ;;  %v9781_v7 = vadd.f32 %v9657_v35, %v5637_v25 }
0x1e52   :  { %6816 = vmatpush.xpose.msk.msrb.mxu1 %vm536_vm1, %v6004_v18 }
0x1e55   :  { %v6002_v30 = vpop.permute.xlu0 %6001 }
0x1e56   :  { %6817 = vmatpush.xpose.msk.msrb.mxu1 %vm536_vm1, %v6002_v30 }
0x1e86   :  { %v5570_v63 = vpop.f32.mrf.mxu0 }
0x1e87   :  { %v5571_v49 = vadd.f32 %v7045_v28, %v5570_v63 }
0x1e89   :  { %5849 = vrot.lane.b32.xlu1 %v5571_v49, %s7907_s6  ;;  %5703 = vrot.lane.b32.xlu0 %v5571_v49, %s7906_s15 }
0x1e8a   :  { %6798 = vmatmul.msk.f32.vlgmr.msra.gmra.mxu3 %vm536_vm1, %v5571_v49 }
0x1e8b   :  { %6804 = vmatpush.xpose.msk.msra.mxu3 %vm536_vm1, %v5782_v50 }
0x1e8f   :  { %6805 = vmatpush.xpose.msk.msra.mxu3 %vm536_vm1, %v5780_v20 }
0x1e91   :  { %5777 = vrot.lane.b32.xlu0 %v5571_v49, %s7905_s28 }
0x1e99   :  { %6149 = vrot.lane.b32.xlu0 %v9687_v56, %s7907_s6 }
0x1ebe   :  { %v5573_v42 = vpop.f32.mrf.mxu0 }
0x1ebf   :  { %v5574_v8 = vadd.f32 %v7045_v28, %v5573_v42  ;;  %v9784_v28 = vadd.f32 %v9657_v35, %v5634_v53 }
0x1ec1   :  { %5999 = vrot.lane.b32.xlu1 %v5574_v8, %s7906_s15  ;;  %6073 = vrot.lane.b32.xlu0 %v5574_v8, %s7905_s28  ;;  %v6986_v50 = vpack.i.bf16 %v9784_v28, %v9781_v7 }
0x1ec9   :  { %6145 = vrot.lane.b32.xlu1 %v5574_v8, %s7907_s6 }
0x1efb   :  { %v5850_v34 = vpop.permute.xlu1 %5849  ;;  %v5704_v12 = vpop.permute.xlu0 %5703 }
0x1efc   :  { %6802 = vmatmul.msk.f32.vlgmr.msrb.gmra.mxu3 %vm536_vm1, %v5704_v12  ;;  %6810 = vmatmul.msk.f32.vlgmr.msra.gmra.mxu1 %vm536_vm1, %v5850_v34 }
0x1efd   :  { %6812 = vmatpush.xpose.msk.msrb.mxu3 %vm536_vm1, %v9687_v56 }
0x1f01   :  { %6813 = vmatpush.xpose.msk.msrb.mxu3 %vm536_vm1, %v9678_v23 }
0x1f03   :  { %v5778_v11 = vpop.permute.xlu0 %5777 }
0x1f04   :  { %6806 = vmatmul.msk.f32.vlgmr.msra.gmra.mxu3 %vm536_vm1, %v5778_v11 }
0x1f05   :  { %6820 = vmatpush.xpose.msk.msra.mxu3 %vm536_vm1, %v6078_v13 }
0x1f09   :  { %6821 = vmatpush.xpose.msk.msra.mxu3 %vm536_vm1, %v6076_v1 }
0x1f0b   :  { %v6150_v22 = vpop.permute.xlu0 %6149 }
0x1f0c   :  { %6814 = vmatmul.msk.f32.vlgmr.msrb.gmra.mxu3 %vm536_vm1, %v5574_v8  ;;  %6824 = vmatpush.xpose.msk.msra.mxu1 %vm536_vm1, %v6150_v22 }
0x1f0d   :  { %v5666_v6 = vpop.f32.mrf.mxu3 }
0x1f0e   :  { %v5669_v33 = vsel %vm572_vm2, %v5666_v6, -inf }
0x1f0f   :  { %5670 = vmax.xlane.f32.xlu2 %v5669_v33 }
0x1f10   :  { %6825 = vmatpush.xpose.msk.msra.mxu1 %vm536_vm1, %v6148_v3 }
0x1f33   :  { %v6000_v23 = vpop.permute.xlu1 %5999  ;;  %v6074_v27 = vpop.permute.xlu0 %6073 }
0x1f34   :  { %6818 = vmatmul.msk.f32.vlgmr.msrb.gmra.mxu1 %vm536_vm1, %v6000_v23  ;;  %6822 = vmatmul.msk.f32.vlgmr.msra.gmra.mxu3 %vm536_vm1, %v6074_v27 }
0x1f3b   :  { %v6146_v56 = vpop.permute.xlu1 %6145 }
0x1f3c   :  { %6826 = vmatmul.msk.f32.vlgmr.msra.gmra.mxu1 %vm536_vm1, %v6146_v56 }
0x1f79   :  { %v5878_v55 = vpop.f32.mrf.mxu1 }
0x1f7a   :  { %v5881_v48 = vsel %vm572_vm2, %v5878_v55, -inf }
0x1f7b   :  { %5882 = vmax.xlane.f32.xlu1 %v5881_v48 }
0x1f7f   :  { %v5732_v19 = vpop.f32.mrf.mxu3 }
0x1f80   :  { %v5735_v60 = vsel %vm572_vm2, %v5732_v19, -inf }
0x1f81   :  { %5736 = vmax.xlane.f32.xlu0 %v5735_v60 }
0x1f82   :  { %v5671_v58 = vpop.xlane.xlu2 %5670 }
0x1f83   :  { %v5672_v43 = vsub.f32 %v5666_v6, %v5671_v58 }
0x1f85   :  { %v5673_v46 = vmul.f32 1.442695, %v5672_v43 }
0x1f87   :  { %7327 = vpow2.f32 %v5673_v46  ;;  %v5806_v54 = vpop.f32.mrf.mxu3 }
0x1f88   :  { %v5809_v15 = vsel %vm572_vm2, %v5806_v54, -inf }
0x1f89   :  { %5810 = vmax.xlane.f32.xlu2 %v5809_v15 }
0x1f8d   :  { %v7328_v21 = vpop.eup %7327 }
0x1f8e   :  { %v5675_v17 = vsel %vm572_vm2, %v7328_v21, 0.0 }
0x1f8f   :  { %5676 = vadd.xlane.f32.xlu1 %v5675_v17  ;;  %v5962_v38 = vpop.f32.mrf.mxu3 }
0x1f90   :  { %v5965_v51 = vsel %vm572_vm2, %v5962_v38, -inf }
0x1f97   :  { %5966 = vmax.xlane.f32.xlu1 %v5965_v51 }
0x1fb0   :  { %6972 = vrot.lane.b32.xlu1 %v9661_v41, %s7906_s15 }
0x1fb1   :  { %v6028_v59 = vpop.f32.mrf.mxu1 }
0x1fb2   :  { %v6031_v26 = vsel %vm572_vm2, %v6028_v59, -inf }
0x1fb3   :  { %6032 = vmax.xlane.f32.xlu0 %v6031_v26 }
0x1fb7   :  { %v9764_v16 = vpop.f32.mrf.mxu3 }
0x1fb8   :  { %v6105_v29 = vsel %vm572_vm2, %v9764_v16, -inf }
0x1fb9   :  { %v6174_v24 = vpop.f32.mrf.mxu1 }
0x1fba   :  { %v6177_v61 = vsel %vm572_vm2, %v6174_v24, -inf }
0x1fbb   :  { %6178 = vmax.xlane.f32.xlu2 %v6177_v61 }
0x1fc7   :  { %6977 = vrot.lane.b32.xlu0 %v9661_v41, %s7907_s6 }
0x1fee   :  { %v5883_v52 = vpop.xlane.xlu1 %5882 }
0x1fef   :  { %v5884_v57 = vsub.f32 %v5878_v55, %v5883_v52 }
0x1ff1   :  { %v5885_v62 = vmul.f32 1.442695, %v5884_v57  ;;  %6106 = vmax.xlane.f32.xlu0 %v6105_v29 }
0x1ff3   :  { %7329 = vpow2.f32 %v5885_v62 }
0x1ff4   :  { %v5737_v5 = vpop.xlane.xlu0 %5736 }
0x1ff5   :  { %v5738_v9 = vsub.f32 %v5732_v19, %v5737_v5 }
0x1ff7   :  { %v5739_v47 = vmul.f32 1.442695, %v5738_v9 }
0x1ff9   :  { %v9768_v37 = vpop.eup %7329  ;;  %7331 = vpow2.f32 %v5739_v47 }
0x1ffa   :  { %v5887_v0 = vsel %vm572_vm2, %v9768_v37, 0.0 }
0x1ffb   :  { %5888 = vadd.xlane.f32.xlu0 %v5887_v0 }
0x1ffc   :  { %v5811_v10 = vpop.xlane.xlu2 %5810 }
0x1ffd   :  { %v5812_v40 = vsub.f32 %v5806_v54, %v5811_v10 }
0x1fff   :  { %v9772_v32 = vpop.eup %7331  ;;  %v5813_v44 = vmul.f32 1.442695, %v5812_v40 }
0x2000   :  { %v5741_v45 = vsel %vm572_vm2, %v9772_v32, 0.0 }
0x2001   :  { %7333 = vpow2.f32 %v5813_v44  ;;  %5742 = vadd.xlane.f32.xlu2 %v5741_v45 }
0x2002   :  { %v5677_v39 = vpop.xlane.xlu1 %5676 }
0x2003   :  { %7335 = vrcp.f32 %v5677_v39 }
0x2007   :  { %v9776_v36 = vpop.eup %7333 }
0x2008   :  { %v5815_v2 = vsel %vm572_vm2, %v9776_v36, 0.0 }
0x2009   :  { %v7336_v20 = vpop.eup %7335  ;;  %5816 = vadd.xlane.f32.xlu2 %v5815_v2 }
0x200a   :  { %v5679_v18 = vmul.f32 %v7336_v20, %v7328_v21  ;;  %v5967_v30 = vpop.xlane.xlu1 %5966 }
0x200b   :  { %v5968_v63 = vsub.f32 %v5962_v38, %v5967_v30 }
0x200c   :  { %6799 = vmatmul.msk.f32.vlgmr.msra.gmra.mxu0 %vm572_vm2, %v5679_v18 }
0x200d   :  { %v5969_v49 = vmul.f32 1.442695, %v5968_v63 }
0x200f   :  { %7337 = vpow2.f32 %v5969_v49  ;;  %6987 = vrot.lane.b32.xlu0 %v6986_v50, %s7906_s15 }
0x2015   :  { %v9790_v42 = vpop.eup %7337 }
0x2016   :  { %v5971_v8 = vsel %vm572_vm2, %v9790_v42, 0.0 }
0x2017   :  { %5972 = vadd.xlane.f32.xlu1 %v5971_v8 }
0x2022   :  { %v6973_v1 = vpop.permute.xlu1 %6972 }
0x2023   :  { %v6974_v34 = vunpack.i.l.bf16 %v6973_v1  ;;  %v6975_v35 = vunpack.i.h.bf16 %v6973_v1 }
0x2025   :  { %5771 = vmatpush.msrb.mxu0 %v6974_v34  ;;  %v5541_v34 = vld [vmem:[#allocation22 + $0x38] sm:$0xff] }
0x2026   :  { %v6033_v12 = vpop.xlane.xlu0 %6032  ;;  %6253 = vmatpush.msrb.mxu3 %v5541_v34 }
0x2027   :  { %v6034_v11 = vsub.f32 %v6028_v59, %v6033_v12  ;;  %5772 = vmatpush.msrb.mxu0 %v6975_v35  ;;  %v5540_v35 = vld [vmem:[#allocation22 + $0x30] sm:$0xff]  ;;  %v5539_v12 = vld [vmem:[#allocation22 + $0x28] sm:$0xff] }
0x2028   :  { %6254 = vmatpush.msrb.mxu3 %v5540_v35 }
0x2029   :  { %v6035_v13 = vmul.f32 1.442695, %v6034_v11  ;;  %v5538_v11 = vld [vmem:[#allocation22 + $0x20] sm:$0xff] }
0x202a   :  { %6255 = vmatpush.msrb.mxu3 %v5539_v12 }
0x202b   :  { %7339 = vpow2.f32 %v6035_v13 }
0x202c   :  { %6256 = vmatpush.msrb.mxu3 %v5538_v11 }
0x202e   :  { %v6179_v22 = vpop.xlane.xlu2 %6178 }
0x202f   :  { %v6180_v6 = vsub.f32 %v6174_v24, %v6179_v22 }
0x2030   :  { %6992 = vrot.lane.b32.xlu1 %v6986_v50, %s7907_s6 }
0x2031   :  { %v7340_v33 = vpop.eup %7339  ;;  %v6181_v3 = vmul.f32 1.442695, %v6180_v6 }
0x2032   :  { %v6037_v23 = vsel %vm572_vm2, %v7340_v33, 0.0 }
0x2033   :  { %7341 = vpow2.f32 %v6181_v3  ;;  %6038 = vadd.xlane.f32.xlu2 %v6037_v23 }
0x2039   :  { %v7342_v27 = vpop.eup %7341  ;;  %v6978_v56 = vpop.permute.xlu0 %6977 }
0x203a   :  { %v6979_v55 = vunpack.i.l.bf16 %v6978_v56  ;;  %v6183_v48 = vsel %vm572_vm2, %v7342_v27, 0.0  ;;  %v6980_v19 = vunpack.i.h.bf16 %v6978_v56 }
0x203b   :  { %6184 = vadd.xlane.f32.xlu0 %v6183_v48 }
0x203c   :  { %5915 = vmatpush.msra.mxu2 %v6979_v55 }
0x203e   :  { %5916 = vmatpush.msra.mxu2 %v6980_v19 }
0x204b   :  { %6982 = vrot.lane.b32.xlu2 %v9661_v41, %s7905_s28 }
0x204f   :  { %6997 = vrot.lane.b32.xlu0 %v6986_v50, %s7905_s28 }
0x2064   :  { %v6107_v60 = vpop.xlane.xlu0 %6106 }
0x2065   :  { %v6108_v58 = vsub.f32 %v9764_v16, %v6107_v60 }
0x2067   :  { %v6109_v43 = vmul.f32 1.442695, %v6108_v58  ;;  %v7046_v58 = vld [vmem:[#allocation23 + $0x1] ss:$0 sm:$0xff] }
0x2069   :  { %7343 = vpow2.f32 %v6109_v43 }
0x206e   :  { %v5889_v46 = vpop.xlane.xlu0 %5888 }
0x206f   :  { %7345 = vrcp.f32 %v5889_v46  ;;  %v7344_v54 = vpop.eup %7343 }
0x2070   :  { %v6111_v15 = vsel %vm572_vm2, %v7344_v54, 0.0 }
0x2074   :  { %v5743_v21 = vpop.xlane.xlu2 %5742  ;;  %6112 = vadd.xlane.f32.xlu2 %v6111_v15 }
0x2075   :  { %v7346_v17 = vpop.eup %7345  ;;  %7347 = vrcp.f32 %v5743_v21 }
0x2076   :  { %v5891_v38 = vmul.f32 %v7346_v17, %v9768_v37 }
0x2078   :  { %6811 = vmatmul.msk.f32.vlgmr.msra.gmra.mxu2 %vm572_vm2, %v5891_v38 }
0x207b   :  { %v7348_v41 = vpop.eup %7347 }
0x207c   :  { %v5745_v51 = vmul.f32 %v7348_v41, %v9772_v32  ;;  %v5817_v16 = vpop.xlane.xlu2 %5816 }
0x207e   :  { %6803 = vmatmul.msk.f32.vlgmr.msrb.gmra.mxu0 %vm572_vm2, %v5745_v51 }
0x2081   :  { %v6988_v59 = vpop.permute.xlu0 %6987 }
0x2082   :  { %v6989_v26 = vunpack.i.l.bf16 %v6988_v59  ;;  %v6990_v24 = vunpack.i.h.bf16 %v6988_v59 }
0x2084   :  { %6067 = vmatpush.msrb.mxu2 %v6989_v26 }
0x2086   :  { %6068 = vmatpush.msrb.mxu2 %v6990_v24 }
0x208a   :  { %v5973_v61 = vpop.xlane.xlu1 %5972 }
0x20a2   :  { %v6993_v52 = vpop.permute.xlu1 %6992 }
0x20a3   :  { %v6994_v57 = vunpack.i.l.bf16 %v6993_v52  ;;  %v6995_v29 = vunpack.i.h.bf16 %v6993_v52 }
0x20a5   :  { %6211 = vmatpush.msra.mxu2 %v6994_v57 }
0x20a6   :  { %v6039_v62 = vpop.xlane.xlu2 %6038 }
0x20a7   :  { %7349 = vrcp.f32 %v6039_v62  ;;  %6212 = vmatpush.msra.mxu2 %v6995_v29  ;;  %v6327_v62 = vld [vmem:[#allocation25 + $0x30] sm:$0xff] }
0x20a8   :  { %7351 = vrcp.f32 %v5817_v16 }
0x20ad   :  { %v7350_v5 = vpop.eup %7349 }
0x20ae   :  { %v6041_v9 = vmul.f32 %v7350_v5, %v7340_v33  ;;  %v6983_v47 = vpop.permute.xlu2 %6982  ;;  %v6185_v37 = vpop.xlane.xlu0 %6184  ;;  %v6326_v5 = vld [vmem:[#allocation25 + $0x28] sm:$0xff] }
0x20af   :  { %v7352_v0 = vpop.eup %7351  ;;  %v6984_v53 = vunpack.i.l.bf16 %v6983_v47  ;;  %7353 = vrcp.f32 %v6185_v37  ;;  %v6985_v10 = vunpack.i.h.bf16 %v6983_v47 }
0x20b0   :  { %6819 = vmatmul.msk.f32.vlgmr.msrb.gmra.mxu2 %vm572_vm2, %v6041_v9  ;;  %7355 = vrcp.f32 %v5973_v61  ;;  %v5819_v40 = vmul.f32 %v7352_v0, %v9776_v36  ;;  %v6325_v9 = vld [vmem:[#allocation25 + $0x20] sm:$0xff] }
0x20b1   :  { %5843 = vmatpush.msra.mxu0 %v6984_v53 }
0x20b3   :  { %5844 = vmatpush.msra.mxu0 %v6985_v10 }
0x20b4   :  { %6807 = vmatmul.msk.f32.vlgmr.msra.gmra.mxu0 %vm572_vm2, %v5819_v40 }
0x20b5   :  { %v7354_v32 = vpop.eup %7353  ;;  %5993 = vmatpush.msrb.mxu0 %v9781_v7  ;;  %v5700_v7 = vpop.f32.mrf.mxu0 }
0x20b6   :  { %v6187_v44 = vmul.f32 %v7354_v32, %v7342_v27  ;;  %v7356_v45 = vpop.eup %7355 }
0x20b7   :  { %5994 = vmatpush.msrb.mxu0 %v9784_v28  ;;  %v5975_v39 = vmul.f32 %v7356_v45, %v9790_v42 }
0x20b8   :  { %6827 = vmatmul.msk.f32.vlgmr.msra.gmra.mxu2 %vm572_vm2, %v6187_v44 }
0x20bc   :  { %6815 = vmatmul.msk.f32.vlgmr.msrb.gmra.mxu0 %vm572_vm2, %v5975_v39  ;;  %v7047_v39 = vld [vmem:[#allocation29 + $0x4] ss:$0 sm:$0xff] }
0x20c1   :  { %v6998_v25 = vpop.permute.xlu0 %6997 }
0x20c2   :  { %v6999_v2 = vunpack.i.l.bf16 %v6998_v25  ;;  %v7000_v20 = vunpack.i.h.bf16 %v6998_v25 }
0x20c4   :  { %6139 = vmatpush.msra.mxu0 %v6999_v2  ;;  %v7048_v2 = vld [vmem:[#allocation31 + $0x4] ss:$0 sm:$0xff] }
0x20c6   :  { %6140 = vmatpush.msra.mxu0 %v7000_v20 }
0x20e7   :  { %v6113_v36 = vpop.xlane.xlu2 %6112 }
0x20e8   :  { %7357 = vrcp.f32 %v6113_v36 }
0x20ee   :  { %v7358_v18 = vpop.eup %7357 }
0x20ef   :  { %v6115_v30 = vmul.f32 %v7358_v18, %v7344_v54 }
0x20f1   :  { %6823 = vmatmul.msk.f32.vlgmr.msra.gmra.mxu0 %vm572_vm2, %v6115_v30  ;;  %v6839_v30 = vld [vmem:[%s9906_s23 + $0x78] sm:$0xff] }
0x20f2   :  { %6393 = vmatpush.msrb.mxu1 %v6839_v30 }
0x20fb   :  { %v5774_v63 = vpop.f32.mrf.mxu0  ;;  %v5918_v28 = vpop.f32.mrf.mxu2 }
0x20fc   :  { %5930 = vrot.lane.b32.xlu0 %v5918_v28, %s7908_s17  ;;  %5922 = vrot.lane.b32.xlu2 %v5774_v63, %s7884_s0  ;;  %v6837_v63 = vld [vmem:[%s9906_s23 + $0x68] sm:$0xff] }
0x2131   :  { %v5846_v49 = vpop.f32.mrf.mxu0 }
0x2132   :  { %5926 = vrot.lane.b32.xlu1 %v5846_v49, %s7886_s8 }
0x2133   :  { %v6070_v50 = vpop.f32.mrf.mxu2 }
0x2139   :  { %v5996_v8 = vpop.f32.mrf.mxu0 }
0x213a   :  { %6218 = vrot.lane.b32.xlu1 %v6070_v50, %s7884_s0  ;;  %v6836_v50 = vld [vmem:[%s9906_s23 + $0x60] sm:$0xff] }
0x213b   :  { %v6214_v42 = vpop.f32.mrf.mxu2 }
0x213c   :  { %6226 = vrot.lane.b32.xlu2 %v6214_v42, %s7908_s17 }
0x2156   :  { %v5923_v13 = vpop.permute.xlu2 %5922 }
0x2157   :  { %v5933_v22 = vsel %vm536_vm1, %v5700_v7, %v5923_v13  ;;  %v6838_v7 = vld [vmem:[%s9906_s23 + $0x70] sm:$0xff] }
0x2158   :  { %6394 = vmatpush.msrb.mxu1 %v6838_v7 }
0x215a   :  { %6395 = vmatpush.msrb.mxu1 %v6837_v63 }
0x215c   :  { %6396 = vmatpush.msrb.mxu1 %v6836_v50 }
0x216e   :  { %v6142_v1 = vpop.f32.mrf.mxu0  ;;  %v5931_v33 = vpop.permute.xlu0 %5930 }
0x216f   :  { %6222 = vrot.lane.b32.xlu0 %v6142_v1, %s7886_s8 }
0x2196   :  { %v6227_v48 = vpop.permute.xlu2 %6226 }
0x21a4   :  { %v5927_v6 = vpop.permute.xlu1 %5926 }
0x21a5   :  { %v5934_v3 = vsel %vm572_vm2, %v5933_v22, %v5927_v6 }
0x21a6   :  { %v5935_v23 = vsel %vm942_vm3, %v5934_v3, %v5931_v33 }
0x21a7   :  { %6828 = vmatmul.msk.f32.vlgmr.msrb.gmra.mxu3 %vm418_vm0, %v5935_v23  ;;  %v6834_v23 = vld [vmem:[%s9906_s23 + $0x50] sm:$0xff] }
0x21ac   :  { %v6219_v27 = vpop.permute.xlu1 %6218 }
0x21ad   :  { %v6229_v56 = vsel %vm536_vm1, %v5996_v8, %v6219_v27  ;;  %v6835_v8 = vld [vmem:[%s9906_s23 + $0x58] sm:$0xff]  ;;  %v6833_v27 = vld [vmem:[%s9906_s23 + $0x48] sm:$0xff] }
0x21ae   :  { %6397 = vmatpush.msrb.mxu1 %v6835_v8 }
0x21b0   :  { %6398 = vmatpush.msrb.mxu1 %v6834_v23 }
0x21b2   :  { %6399 = vmatpush.msrb.mxu1 %v6833_v27 }
0x21e1   :  { %v6223_v55 = vpop.permute.xlu0 %6222 }
0x21e2   :  { %v6230_v19 = vsel %vm572_vm2, %v6229_v56, %v6223_v55  ;;  %v6832_v56 = vld [vmem:[%s9906_s23 + $0x40] sm:$0xff]  ;;  %v7049_v55 = vld [vmem:[#allocation26 + $0x1] ss:$0 sm:$0xff]  ;;  %s7911_s23 = smov [#allocation32]  }
0x21e3   :  { %v6231_v60 = vsel %vm942_vm3, %v6230_v19, %v6227_v48  ;;  %6400 = vmatpush.msrb.mxu1 %v6832_v56  ;;  %s6474_s12 = sshll.u32 %s7911_s23, 4  ;;  %s6475_s12 = int_to_ptr.vmem [resolvable:$true] %s6474_s12 }
0x21e4   :  { %6829 = vmatmul.msk.f32.gmra.mxu3 %vm418_vm0, %v6231_v60 }
0x222a   :  { %v6258_v43 = vpop.f32.mrf.mxu3 }
0x222b   :  { %v6259_v46 = vadd.f32 %v7046_v58, %v6258_v43 }
0x222d   :  { %v6268_v54 = vadd.f32 %v6259_v46, %v9709_v4 }
0x222f   :  { %v6270_v15 = vsel %vm418_vm0, %v6268_v54, 0.0 }
0x2230   :  { %6271 = vadd.xlane.f32.xlu1 %v6270_v15 }
0x2267   :  { %v6261_v21 = vpop.f32.mrf.mxu3 }
0x2268   :  { %v6262_v17 = vadd.f32 %v7046_v58, %v6261_v21 }
0x226a   :  { %v6269_v38 = vadd.f32 %v6262_v17, %v9718_v31  ;;  %v6328_v31 = vld [vmem:[#allocation25 + $0x38] sm:$0xff] }
0x226b   :  { %6352 = vmatpush.msrb.mxu0 %v6328_v31 }
0x226c   :  { %v6273_v41 = vsel %vm418_vm0, %v6269_v38, 0.0 }
0x226d   :  { %6274 = vadd.xlane.f32.xlu0 %v6273_v41  ;;  %6353 = vmatpush.msrb.mxu0 %v6327_v62 }
0x226f   :  { %6354 = vmatpush.msrb.mxu0 %v6326_v5 }
0x2271   :  { %6355 = vmatpush.msrb.mxu0 %v6325_v9 }
0x22a3   :  { %v6272_v51 = vpop.xlane.xlu1 %6271 }
0x22a4   :  { %v6276_v59 = vmul.f32 %v6272_v51, %v8506_v14 }
0x22a6   :  { %v6278_v26 = vsub.f32 %v6268_v54, %v6276_v59  ;;  %v7050_v54 = vld [vmem:[#allocation28 + $0x1] ss:$0 sm:$0xff] }
0x22a8   :  { %v6280_v24 = vmul.f32 %v6278_v26, %v6278_v26 }
0x22aa   :  { %v6282_v61 = vsel %vm418_vm0, %v6280_v24, 0.0 }
0x22ab   :  { %6283 = vadd.xlane.f32.xlu2 %v6282_v61 }
0x22e0   :  { %v6275_v16 = vpop.xlane.xlu0 %6274 }
0x22e1   :  { %v6277_v4 = vmul.f32 %v6275_v16, %v8506_v14 }
0x22e3   :  { %v6279_v52 = vsub.f32 %v6269_v38, %v6277_v4 }
0x22e5   :  { %v6281_v57 = vmul.f32 %v6279_v52, %v6279_v52 }
0x22e7   :  { %v6285_v29 = vsel %vm418_vm0, %v6281_v57, 0.0 }
0x22e8   :  { %6286 = vadd.xlane.f32.xlu1 %v6285_v29 }
0x231e   :  { %v6284_v47 = vpop.xlane.xlu2 %6283 }
0x231f   :  { %v6288_v37 = vmul.f32 %v6284_v47, %v8506_v14 }
0x2321   :  { %v6290_v0 = vadd.f32 1e-05, %v6288_v37 }
0x2323   :  { %7359 = vrsqrt.f32 %v6290_v0  ;;  %vm6298_vm2 = vweird.f32 %v6290_v0 }
0x2329   :  { %v7360_v53 = vpop.eup %7359 }
0x232a   :  { %v6293_v10 = vmul.f32 %v7360_v53, %v6290_v0  ;;  %vm6299_vm1 = vweird.f32 %v7360_v53 }
0x232b   :  { %vm6300_vm3 = vmor %vm6298_vm2, %vm6299_vm1 }
0x232c   :  { %v6294_v40 = vmul.f32 %v7360_v53, %v6293_v10 }
0x232e   :  { %v6295_v32 = vmul.f32 0.5, %v6294_v40 }
0x2330   :  { %v6296_v44 = vsub.f32 1.5, %v6295_v32 }
0x2332   :  { %v6297_v45 = vmul.f32 %v7360_v53, %v6296_v44 }
0x2334   :  { %v6301_v25 = vsel %vm6300_vm3, %v7360_v53, %v6297_v45  ;;  %v7051_v45 = vld [vmem:[#allocation29 + $0x5] ss:$0 sm:$0xff] }
0x2335   :  { %v6312_v20 = vmul.f32 %v6301_v25, %v6278_v26 }
0x2337   :  { %v6317_v36 = vmul.f32 %v7047_v39, %v6312_v20 }
0x2339   :  { %v6322_v18 = vadd.f32 %v7048_v2, %v6317_v36 }
0x233b   :  { %6830 = vmatmul.msk.f32.vlgmr.msrb.gmra.mxu0 %vm418_vm0, %v6322_v18 }
0x235b   :  { %v6287_v28 = vpop.xlane.xlu1 %6286 }
0x235c   :  { %v6289_v49 = vmul.f32 %v6287_v28, %v8506_v14 }
0x235e   :  { %v6291_v42 = vadd.f32 1e-05, %v6289_v49 }
0x2360   :  { %7361 = vrsqrt.f32 %v6291_v42  ;;  %vm6308_vm12 = vweird.f32 %v6291_v42 }
0x2366   :  { %v7362_v1 = vpop.eup %7361 }
0x2367   :  { %v6303_v34 = vmul.f32 %v7362_v1, %v6291_v42  ;;  %vm6309_vm11 = vweird.f32 %v7362_v1 }
0x2368   :  { %vm6310_vm13 = vmor %vm6308_vm12, %vm6309_vm11 }
0x2369   :  { %v6304_v35 = vmul.f32 %v7362_v1, %v6303_v34 }
0x236b   :  { %v6305_v12 = vmul.f32 0.5, %v6304_v35 }
0x236d   :  { %v6306_v11 = vsub.f32 1.5, %v6305_v12 }
0x236f   :  { %v6307_v13 = vmul.f32 %v7362_v1, %v6306_v11 }
0x2371   :  { %v6311_v22 = vsel %vm6310_vm13, %v7362_v1, %v6307_v13 }
0x2372   :  { %v6313_v6 = vmul.f32 %v6311_v22, %v6279_v52 }
0x2374   :  { %v6318_v33 = vmul.f32 %v7047_v39, %v6313_v6 }
0x2376   :  { %v6323_v3 = vadd.f32 %v7048_v2, %v6318_v33  ;;  %v7052_v2 = vld [vmem:[#allocation31 + $0x5] ss:$0 sm:$0xff] }
0x2378   :  { %6831 = vmatmul.msk.f32.gmra.mxu0 %vm418_vm0, %v6323_v3 }
0x23b8   :  { %v6357_v48 = vpop.f32.mrf.mxu0 }
0x23b9   :  { %v6358_v19 = vadd.f32 %v7049_v55, %v6357_v48 }
0x23bb   :  { %v6363_v60 = vmax.f32 %v6358_v19, 0.0 }
0x23bd   :  { %6840 = vmatmul.msk.f32.vlgmr.msrb.gmra.mxu1 %vm1575_vm5, %v6363_v60 }
0x23f5   :  { %v6360_v58 = vpop.f32.mrf.mxu0 }
0x23f6   :  { %v6361_v43 = vadd.f32 %v7049_v55, %v6360_v58 }
0x23f8   :  { %v6364_v46 = vmax.f32 %v6361_v43, 0.0 }
0x23fa   :  { %6841 = vmatmul.msk.f32.gmra.mxu1 %vm1575_vm5, %v6364_v46 }
0x243a   :  { %v6402_v15 = vpop.f32.mrf.mxu1 }
0x243b   :  { %v6403_v21 = vadd.f32 %v7050_v54, %v6402_v15 }
0x243d   :  { %v6412_v17 = vadd.f32 %v6403_v21, %v6322_v18 }
0x243f   :  { %v6414_v38 = vsel %vm418_vm0, %v6412_v17, 0.0 }
0x2440   :  { %6415 = vadd.xlane.f32.xlu0 %v6414_v38 }
0x2477   :  { %v6405_v41 = vpop.f32.mrf.mxu1 }
0x2478   :  { %v6406_v51 = vadd.f32 %v7050_v54, %v6405_v41 }
0x247a   :  { %v6413_v59 = vadd.f32 %v6406_v51, %v6323_v3 }
0x247c   :  { %v6417_v26 = vsel %vm418_vm0, %v6413_v59, 0.0 }
0x247d   :  { %6418 = vadd.xlane.f32.xlu2 %v6417_v26 }
0x24b3   :  { %v6416_v24 = vpop.xlane.xlu0 %6415 }
0x24b4   :  { %v6420_v61 = vmul.f32 %v6416_v24, %v8506_v14 }
0x24b6   :  { %v6422_v16 = vsub.f32 %v6412_v17, %v6420_v61 }
0x24b8   :  { %v6424_v4 = vmul.f32 %v6422_v16, %v6422_v16 }
0x24ba   :  { %v6426_v52 = vsel %vm418_vm0, %v6424_v4, 0.0 }
0x24bb   :  { %6427 = vadd.xlane.f32.xlu1 %v6426_v52 }
0x24f0   :  { %v6419_v57 = vpop.xlane.xlu2 %6418 }
0x24f1   :  { %v6421_v29 = vmul.f32 %v6419_v57, %v8506_v14 }
0x24f3   :  { %v6423_v31 = vsub.f32 %v6413_v59, %v6421_v29 }
0x24f5   :  { %v6425_v62 = vmul.f32 %v6423_v31, %v6423_v31 }
0x24f7   :  { %v6429_v5 = vsel %vm418_vm0, %v6425_v62, 0.0 }
0x24f8   :  { %6430 = vadd.xlane.f32.xlu0 %v6429_v5 }
0x252e   :  { %v6428_v9 = vpop.xlane.xlu1 %6427 }
0x252f   :  { %v6432_v47 = vmul.f32 %v6428_v9, %v8506_v14 }
0x2531   :  { %v6434_v37 = vadd.f32 1e-05, %v6432_v47 }
0x2533   :  { %7363 = vrsqrt.f32 %v6434_v37  ;;  %vm6442_vm14 = vweird.f32 %v6434_v37 }
0x2539   :  { %v7364_v0 = vpop.eup %7363 }
0x253a   :  { %v6437_v53 = vmul.f32 %v7364_v0, %v6434_v37  ;;  %vm6443_vm5 = vweird.f32 %v7364_v0 }
0x253b   :  { %vm6444_vm15 = vmor %vm6442_vm14, %vm6443_vm5 }
0x253c   :  { %v6438_v10 = vmul.f32 %v7364_v0, %v6437_v53 }
0x253e   :  { %v6439_v40 = vmul.f32 0.5, %v6438_v10 }
0x2540   :  { %v6440_v32 = vsub.f32 1.5, %v6439_v40 }
0x2542   :  { %v6441_v44 = vmul.f32 %v7364_v0, %v6440_v32 }
0x2544   :  { %v6445_v39 = vsel %vm6444_vm15, %v7364_v0, %v6441_v44 }
0x2545   :  { %v6456_v25 = vmul.f32 %v6445_v39, %v6422_v16 }
0x2547   :  { %v6461_v20 = vmul.f32 %v7051_v45, %v6456_v25 }
0x2549   :  { %v6466_v36 = vadd.f32 %v7052_v2, %v6461_v20 }
0x254b   :  { %6468 = vst.msk [vmem:[#allocation32] sm:$0xff] %vm418_vm0, %v6466_v36 }
0x256b   :  { %v6431_v18 = vpop.xlane.xlu0 %6430 }
0x256c   :  { %v6433_v30 = vmul.f32 %v6431_v18, %v8506_v14 }
0x256e   :  { %v6435_v7 = vadd.f32 1e-05, %v6433_v30 }
0x2570   :  { %7365 = vrsqrt.f32 %v6435_v7  ;;  %vm6452_vm6 = vweird.f32 %v6435_v7 }
0x2576   :  { %v7366_v63 = vpop.eup %7365 }
0x2577   :  { %v6447_v28 = vmul.f32 %v7366_v63, %v6435_v7  ;;  %vm6453_vm4 = vweird.f32 %v7366_v63 }
0x2578   :  { %vm6454_vm7 = vmor %vm6452_vm6, %vm6453_vm4 }
0x2579   :  { %v6448_v49 = vmul.f32 %v7366_v63, %v6447_v28 }
0x257b   :  { %v6449_v50 = vmul.f32 0.5, %v6448_v49 }
0x257d   :  { %v6450_v42 = vsub.f32 1.5, %v6449_v50 }
0x257f   :  { %v6451_v8 = vmul.f32 %v7366_v63, %v6450_v42 }
0x2581   :  { %v6455_v1 = vsel %vm6454_vm7, %v7366_v63, %v6451_v8 }
0x2582   :  { %v6457_v34 = vmul.f32 %v6455_v1, %v6423_v31 }
0x2584   :  { %v6462_v14 = vmul.f32 %v7051_v45, %v6457_v34 }
0x2586   :  { %v6467_v35 = vadd.f32 %v7052_v2, %v6462_v14 }
0x2588   :  { %6469 = vst.msk [vmem:[#allocation32 + $0x8] sm:$0xff] %vm418_vm0, %v6467_v35 }
0x2589   :  { %6482 = dma.vmem_to_hbm [thread:$0]  %s6475_s12, 256, %s6477_s7, [#allocation4], %s9936_s11, %s9936_s11, %s7884_s0  }
0x258a   :  { %7880 = dma.done.wait [#allocation4], 256  }
0x258b   :  { %7881 = vsyncadd [#allocation4], 4294967040 }
0x258c   :  { %6487 = vsyncpa [#allocation3], 1 }
0x258d   :  { %6488 = vsyncpa [#allocation6], 1 }
0x258e   :  { %6489 = vsyncpa [#allocation9], 1 }
0x258f   :  { %6490 = vsyncpa [#allocation12], 1 }
0x2590   :  { %6491 = vsyncpa [#allocation15], 1 }
0x2591   :  { %6492 = vsyncpa [#allocation18], 1 }
0x2592   :  { %6493 = vsyncpa [#allocation21], 1 }
0x2593   :  { %6494 = vsyncpa [#allocation24], 1 }
0x2594   :  { %6495 = vsyncpa [#allocation27], 1 }
0x2595   :  { %6496 = vsyncpa [#allocation30], 1 }
0x2596   :  { %6497 = vsyncpa [#allocation4], 1 }

</bundles_post_ra>
